<compile_context>
chip_gen: v7x
topology: tpu7x:2x2x1
jax: 0.10.0
libtpu: 0.0.40
codegen_flags: <defaults>
</compile_context>

<pallas_src>
import jax
import jax.numpy as jnp
import numpy as np
from jax import lax
from jax.experimental import pallas as pl
from jax.experimental.pallas import tpu as pltpu

H_IN, W_IN = 40, 62                    # input spatial size implied by fc1 = 32*20*31
H_P, W_P = H_IN // 2, W_IN // 2        # 20, 31 after MaxPool2d(2, 2)
P_OUT = H_P * W_P                      # 620 pooled positions
P_PAD = 640                            # padded to 5*128 lanes
C_OUT = 32
KH = KW = 3
TAPS = KH * KW                         # 9
GROUPS = 4                             # 2x2 pool offsets
ROWS = TAPS * GROUPS                   # 36 im2col rows (tap-major, group-minor)
CG = GROUPS * C_OUT                    # 128 pre-pool conv rows (group-major, channel-minor)
BN_EPS = 1e-5
HIDDEN = 128
N_CLASSES = 2
K_PAD = C_OUT * P_PAD                  # 20480 padded fc1 fan-in


def _tile(n, target):
    """Largest divisor of n that is <= target."""
    t = min(target, n)
    while n % t:
        t -= 1
    return t


# --------- Kernel A: conv3x3 (im2col matmul, BN-scale folded) + shift + ReLU + pool ----
def conv_bn_relu_pool_kernel(p_ref, w_ref, shift_ref, o_ref):
    # p_ref:     (36, bt*640) bf16  im2col; row = tap*4+pool_offset, lanes = [image][pos]
    # w_ref:     (128, 36)    bf16  rows = pool_offset*32+channel, BN scale folded in
    # shift_ref: (128, 1)     f32   folded conv bias + BN shift
    # o_ref:     (bt, 32, 640) bf16 torch flatten (C,H,W) order, lane-padded 620->640
    w = w_ref[...]
    shift = jnp.broadcast_to(shift_ref[...], (CG, P_PAD))   # hoisted once per grid step
    bt = o_ref.shape[0]
    for b in range(bt):                                     # static unroll, small per-iter temps
        y = jnp.dot(w, p_ref[:, b * P_PAD:(b + 1) * P_PAD],
                    preferred_element_type=jnp.float32)     # (128, 640)
        act = jnp.maximum(y + shift, 0.0)                   # BN affine + ReLU (before pool max)
        pooled = jnp.maximum(jnp.maximum(act[0:32], act[32:64]),
                             jnp.maximum(act[64:96], act[96:128]))   # 2x2 max pool
        o_ref[b] = pooled.astype(o_ref.dtype)


def conv_bn_relu_pool(patches, w_big, shift, *, n, bt):
    return pl.pallas_call(
        conv_bn_relu_pool_kernel,
        out_shape=jax.ShapeDtypeStruct((n, C_OUT, P_PAD), jnp.bfloat16),
        grid_spec=pltpu.PrefetchScalarGridSpec(
            num_scalar_prefetch=0,
            grid=(n // bt,),
            in_specs=[
                pl.BlockSpec((ROWS, bt * P_PAD), lambda i: (0, i)),
                pl.BlockSpec((CG, ROWS), lambda i: (0, 0)),      # constant index -> resident
                pl.BlockSpec((CG, 1), lambda i: (0, 0)),         # constant index -> resident
            ],
            out_specs=pl.BlockSpec((bt, C_OUT, P_PAD), lambda i: (i, 0, 0)),
        ),
        compiler_params=pltpu.CompilerParams(dimension_semantics=("parallel",)),
    )(patches, w_big, shift)


# --------- Kernel B: fc1 (resident bf16 weight, one dot) + ReLU + dropout(id) + fc2 ----
def mlp_kernel(x_ref, w1_ref, b1_ref, w2_ref, b2_ref, o_ref):
    # x_ref: (bm, 20480) bf16; w1_ref: (20480, 128) bf16 resident in VMEM.
    h = jnp.dot(x_ref[...], w1_ref[...], preferred_element_type=jnp.float32)
    h = jnp.maximum(h + b1_ref[...], 0.0)
    # TODO(synk): Dropout(0.3) is inference-mode identity here (no RNG masking).
    o_ref[...] = (jnp.dot(h.astype(jnp.bfloat16), w2_ref[...],
                          preferred_element_type=jnp.float32) + b2_ref[...])


def mlp_head(x_flat, w1, b1, w2, b2, *, bm):
    n, kdim = x_flat.shape
    nbytes = lambda a: a.size * a.dtype.itemsize
    cost = pl.CostEstimate(
        flops=2 * n * kdim * HIDDEN + 2 * n * HIDDEN * N_CLASSES,
        transcendentals=0,
        bytes_accessed=(nbytes(x_flat) + nbytes(w1) + nbytes(b1)
                        + nbytes(w2) + nbytes(b2) + n * N_CLASSES * 4),
    )
    return pl.pallas_call(
        mlp_kernel,
        out_shape=jax.ShapeDtypeStruct((n, N_CLASSES), jnp.float32),
        grid_spec=pltpu.PrefetchScalarGridSpec(
            num_scalar_prefetch=0,
            grid=(n // bm,),                                   # batch-only grid, no K axis
            in_specs=[
                pl.BlockSpec((bm, kdim), lambda i: (i, 0)),
                pl.BlockSpec((kdim, HIDDEN), lambda i: (0, 0)),        # resident 5.2 MB weight
                pl.BlockSpec((1, HIDDEN), lambda i: (0, 0)),           # resident
                pl.BlockSpec((HIDDEN, N_CLASSES), lambda i: (0, 0)),   # resident
                pl.BlockSpec((1, N_CLASSES), lambda i: (0, 0)),        # resident
            ],
            out_specs=pl.BlockSpec((bm, N_CLASSES), lambda i: (i, 0)),
        ),
        compiler_params=pltpu.CompilerParams(
            dimension_semantics=("parallel",),
            vmem_limit_bytes=48 * 1024 * 1024),
        cost_estimate=cost,
    )(x_flat, w1, b1, w2, b2)


# --------------------------------- JAX glue ------------------------------------------
def im2col_pooled(x_nchw, n_pad):
    # x: (N, 1, 40, 62) -> bf16 (36, n_pad*640) im2col matrix.
    # Row = tap*4 + pool_offset; lane = image*640 + pooled position (620 real + 20 zero pad).
    n = x_nchw.shape[0]
    xp = jnp.pad(x_nchw[:, 0].astype(jnp.bfloat16),
                 ((0, n_pad - n), (1, 1), (1, 1)))             # (n_pad, 42, 64)
    rows = []
    for dh in range(KH):
        for dw in range(KW):
            for a in (0, 1):
                for b in (0, 1):
                    sl = xp[:, a + dh: a + dh + 2 * H_P: 2,
                               b + dw: b + dw + 2 * W_P: 2]    # (n_pad, 20, 31)
                    sl = sl.reshape(n_pad, P_OUT)
                    sl = jnp.pad(sl, ((0, 0), (0, P_PAD - P_OUT)))
                    rows.append(sl.reshape(n_pad * P_PAD))
    # TODO(synk): building im2col in XLA still writes ~60 KB/image to HBM; an in-kernel
    # im2col from the raw (42, 64) image would cut conv-stage traffic a further ~4x.
    return jnp.stack(rows, axis=0)                             # (36, n_pad*640) bf16


def prepare_params(params):
    # One-time, off the hot path: fold eval-mode BN (+ conv bias) into the conv weight /
    # a per-channel shift, build the block-diagonal (128, 36) conv matrix (one 32-row block
    # per 2x2 pool offset), and zero-pad + transpose + bf16-cast fc1's weight so the
    # padded 620->640 activation columns contribute nothing.
    scale = params["bn_gamma"] / jnp.sqrt(params["bn_var"] + BN_EPS)           # (32,)
    shift = (params["conv_b"] - params["bn_mean"]) * scale + params["bn_beta"]
    w = params["conv_w"].reshape(C_OUT, TAPS) * scale[:, None]                 # scale folded
    eye4 = jnp.eye(GROUPS, dtype=w.dtype)
    w_big = jnp.einsum("ct,gh->gcth", w, eye4).reshape(CG, ROWS)               # (128, 36)
    shift4 = jnp.tile(shift.reshape(C_OUT, 1), (GROUPS, 1)).astype(jnp.float32)  # (128, 1)

    w1 = params["fc1_w"].T.reshape(C_OUT, P_OUT, HIDDEN)                       # torch (C,H,W) order
    w1 = jnp.pad(w1, ((0, 0), (0, P_PAD - P_OUT), (0, 0))).reshape(K_PAD, HIDDEN)
    return {
        "conv_w": w_big.astype(jnp.bfloat16),                                  # (128, 36)
        "shift": shift4,                                                       # (128, 1) f32
        "w1": w1.astype(jnp.bfloat16),                                         # (20480, 128)
        "b1": params["fc1_b"].reshape(1, HIDDEN).astype(jnp.float32),
        "w2": params["fc2_w"].T.astype(jnp.bfloat16),                          # (128, 2)
        "b2": params["fc2_b"].reshape(1, N_CLASSES).astype(jnp.float32),
    }


@jax.jit
def simple_cnn_forward(x, prep):
    n = x.shape[0]
    # Pad awkward batch sizes to a multiple of 8 so blocks never degrade to tiny/whole-batch.
    n_pad = n if n <= 8 else ((n + 7) // 8) * 8
    bt = _tile(n_pad, 32)     # conv batch tile
    bm = _tile(n_pad, 128)    # mlp batch tile (128 keeps VMEM < 22 MB with resident w1)

    patches = im2col_pooled(x, n_pad)                                          # (36, n_pad*640)
    pooled = conv_bn_relu_pool(patches, prep["conv_w"], prep["shift"],
                               n=n_pad, bt=bt)                                 # (n_pad, 32, 640)
    flat = pooled.reshape(n_pad, K_PAD)                                        # padded flatten
    logits = mlp_head(flat, prep["w1"], prep["b1"], prep["w2"], prep["b2"], bm=bm)
    return logits[:n]


def reference_forward(x, params):
    # pure-JAX reference with PyTorch NCHW semantics (f32 end-to-end)
    P = lax.Precision.HIGHEST
    y = lax.conv_general_dilated(x, params["conv_w"], (1, 1), ((1, 1), (1, 1)),
                                 dimension_numbers=("NCHW", "OIHW", "NCHW"),
                                 precision=P)
    y = y + params["conv_b"][None, :, None, None]
    inv = (1.0 / jnp.sqrt(params["bn_var"] + BN_EPS))[None, :, None, None]
    y = (y - params["bn_mean"][None, :, None, None]) * inv
    y = y * params["bn_gamma"][None, :, None, None] + params["bn_beta"][None, :, None, None]
    y = jnp.maximum(y, 0.0)
    y = lax.reduce_window(y, -jnp.inf, lax.max, (1, 1, 2, 2), (1, 1, 2, 2), "VALID")
    flat = y.reshape(x.shape[0], -1)                                           # torch flatten
    h = jnp.maximum(jnp.dot(flat, params["fc1_w"].T, precision=P) + params["fc1_b"], 0.0)
    return jnp.dot(h, params["fc2_w"].T, precision=P) + params["fc2_b"]


if __name__ == "__main__":
    ks = jax.random.split(jax.random.PRNGKey(0), 11)
    params = {
        "conv_w": jax.random.normal(ks[0], (C_OUT, 1, KH, KW), jnp.float32) * 0.2,
        "conv_b": jax.random.normal(ks[1], (C_OUT,), jnp.float32) * 0.1,
        "bn_gamma": 1.0 + 0.1 * jax.random.normal(ks[2], (C_OUT,), jnp.float32),
        "bn_beta": 0.1 * jax.random.normal(ks[3], (C_OUT,), jnp.float32),
        "bn_mean": 0.1 * jax.random.normal(ks[4], (C_OUT,), jnp.float32),
        "bn_var": jax.random.uniform(ks[5], (C_OUT,), jnp.float32, 0.5, 1.5),
        "fc1_w": jax.random.normal(ks[6], (HIDDEN, C_OUT * P_OUT), jnp.float32) * 0.01,
        "fc1_b": jax.random.normal(ks[7], (HIDDEN,), jnp.float32) * 0.1,
        "fc2_w": jax.random.normal(ks[8], (N_CLASSES, HIDDEN), jnp.float32) * 0.1,
        "fc2_b": jax.random.normal(ks[9], (N_CLASSES,), jnp.float32) * 0.1,
    }
    x = jax.random.normal(ks[10], (2, 1, H_IN, W_IN), jnp.float32)

    prep = jax.tree.map(jax.block_until_ready, prepare_params(params))  # one-time weight prep
    out = jax.block_until_ready(simple_cnn_forward(x, prep))
    ref = jax.block_until_ready(reference_forward(x, params))
    np.testing.assert_allclose(np.asarray(out), np.asarray(ref), rtol=2e-2, atol=2e-2)
    print("KERNEL_OK")
</pallas_src>

<mosaic_0001>
module attributes {stable_mosaic.version = 11 : i64} {
  func.func @conv_bn_relu_pool_kernel(%arg0: i32, %arg1: memref<36x1280xbf16, #tpu.memory_space<vmem>>, %arg2: memref<128x36xbf16, #tpu.memory_space<vmem>>, %arg3: memref<128x1xf32, #tpu.memory_space<vmem>>, %arg4: memref<2x32x640xbf16, #tpu.memory_space<vmem>>) attributes {dimension_semantics = [#tpu.dimension_semantics<parallel>], iteration_bounds = array<i64: 1>, scalar_prefetch = 0 : i64, scratch_operands = 0 : i64, tpu.core_type = #tpu.core_type<tc>, window_params = [{transform_indices = @transform_0, window_bounds = array<i64: 36, 1280>}, {pipeline_mode = #tpu.pipeline_mode<synchronous>, transform_indices = @transform_1, window_bounds = array<i64: 128, 36>}, {pipeline_mode = #tpu.pipeline_mode<synchronous>, transform_indices = @transform_2, window_bounds = array<i64: 128, 1>}, {transform_indices = @transform_3, window_bounds = array<i64: 2, 32, 640>}]} {
    %c0 = arith.constant 0 : index
    %c0_0 = arith.constant 0 : index
    %0 = vector.load %arg2[%c0, %c0_0] : memref<128x36xbf16, #tpu.memory_space<vmem>>, vector<128x36xbf16>
    %c0_1 = arith.constant 0 : index
    %c0_2 = arith.constant 0 : index
    %1 = vector.load %arg3[%c0_1, %c0_2] : memref<128x1xf32, #tpu.memory_space<vmem>>, vector<128x1xf32>
    %2 = vector.shape_cast %1 : vector<128x1xf32> to vector<128x1xf32>
    %3 = vector.broadcast %2 : vector<128x1xf32> to vector<128x640xf32>
    %c0_3 = arith.constant 0 : index
    %c0_4 = arith.constant 0 : index
    %4 = vector.load %arg1[%c0_3, %c0_4] : memref<36x1280xbf16, #tpu.memory_space<vmem>>, vector<36x640xbf16>
    %cst = arith.constant dense<0.000000e+00> : vector<128x640xf32>
    %5 = tpu.matmul %0, %4, %cst {dimension_numbers = #tpu.dot_dimension_numbers<[1], [0], [0], [1], [0, 0, 1, 1], [], []>} : vector<128x36xbf16>, vector<36x640xbf16>, vector<128x640xf32> -> vector<128x640xf32>
    %6 = arith.addf %5, %3 : vector<128x640xf32>
    %cst_5 = arith.constant 0.000000e+00 : f32
    %7 = vector.broadcast %cst_5 : f32 to vector<128x640xf32>
    %8 = arith.maximumf %6, %7 : vector<128x640xf32>
    %9 = vector.extract_strided_slice %8 {offsets = [0, 0], sizes = [32, 640], strides = [1, 1]} : vector<128x640xf32> to vector<32x640xf32>
    %10 = vector.extract_strided_slice %8 {offsets = [32, 0], sizes = [32, 640], strides = [1, 1]} : vector<128x640xf32> to vector<32x640xf32>
    %11 = arith.maximumf %9, %10 : vector<32x640xf32>
    %12 = vector.extract_strided_slice %8 {offsets = [64, 0], sizes = [32, 640], strides = [1, 1]} : vector<128x640xf32> to vector<32x640xf32>
    %13 = vector.extract_strided_slice %8 {offsets = [96, 0], sizes = [32, 640], strides = [1, 1]} : vector<128x640xf32> to vector<32x640xf32>
    %14 = arith.maximumf %12, %13 : vector<32x640xf32>
    %15 = arith.maximumf %11, %14 : vector<32x640xf32>
    %16 = arith.truncf %15 : vector<32x640xf32> to vector<32x640xbf16>
    %c0_6 = arith.constant 0 : index
    %c0_7 = arith.constant 0 : index
    %c0_8 = arith.constant 0 : index
    %17 = vector.load %arg4[%c0_6, %c0_7, %c0_8] : memref<2x32x640xbf16, #tpu.memory_space<vmem>>, vector<1x32x640xbf16>
    %18 = vector.shape_cast %17 : vector<1x32x640xbf16> to vector<32x640xbf16>
    %19 = vector.shape_cast %16 : vector<32x640xbf16> to vector<1x32x640xbf16>
    tpu.vector_store %arg4[%c0_6, %c0_7, %c0_8], %19 {strides = array<i32>} : memref<2x32x640xbf16, #tpu.memory_space<vmem>>, vector<1x32x640xbf16>,
    %c0_9 = arith.constant 0 : index
    %c640 = arith.constant 640 : index
    %20 = vector.load %arg1[%c0_9, %c640] : memref<36x1280xbf16, #tpu.memory_space<vmem>>, vector<36x640xbf16>
    %cst_10 = arith.constant dense<0.000000e+00> : vector<128x640xf32>
    %21 = tpu.matmul %0, %20, %cst_10 {dimension_numbers = #tpu.dot_dimension_numbers<[1], [0], [0], [1], [0, 0, 1, 1], [], []>} : vector<128x36xbf16>, vector<36x640xbf16>, vector<128x640xf32> -> vector<128x640xf32>
    %22 = arith.addf %21, %3 : vector<128x640xf32>
    %cst_11 = arith.constant 0.000000e+00 : f32
    %23 = vector.broadcast %cst_11 : f32 to vector<128x640xf32>
    %24 = arith.maximumf %22, %23 : vector<128x640xf32>
    %25 = vector.extract_strided_slice %24 {offsets = [0, 0], sizes = [32, 640], strides = [1, 1]} : vector<128x640xf32> to vector<32x640xf32>
    %26 = vector.extract_strided_slice %24 {offsets = [32, 0], sizes = [32, 640], strides = [1, 1]} : vector<128x640xf32> to vector<32x640xf32>
    %27 = arith.maximumf %25, %26 : vector<32x640xf32>
    %28 = vector.extract_strided_slice %24 {offsets = [64, 0], sizes = [32, 640], strides = [1, 1]} : vector<128x640xf32> to vector<32x640xf32>
    %29 = vector.extract_strided_slice %24 {offsets = [96, 0], sizes = [32, 640], strides = [1, 1]} : vector<128x640xf32> to vector<32x640xf32>
    %30 = arith.maximumf %28, %29 : vector<32x640xf32>
    %31 = arith.maximumf %27, %30 : vector<32x640xf32>
    %32 = arith.truncf %31 : vector<32x640xf32> to vector<32x640xbf16>
    %c1 = arith.constant 1 : index
    %c0_12 = arith.constant 0 : index
    %c0_13 = arith.constant 0 : index
    %33 = vector.load %arg4[%c1, %c0_12, %c0_13] : memref<2x32x640xbf16, #tpu.memory_space<vmem>>, vector<1x32x640xbf16>
    %34 = vector.shape_cast %33 : vector<1x32x640xbf16> to vector<32x640xbf16>
    %35 = vector.shape_cast %32 : vector<32x640xbf16> to vector<1x32x640xbf16>
    tpu.vector_store %arg4[%c1, %c0_12, %c0_13], %35 {strides = array<i32>} : memref<2x32x640xbf16, #tpu.memory_space<vmem>>, vector<1x32x640xbf16>,
    return
  }
  func.func @transform_0(%arg0: i32) -> (i32, i32) {
    %c0_i32 = arith.constant 0 : i32
    %c0_i32_0 = arith.constant 0 : i32
    return %c0_i32, %arg0 : i32, i32
  }
  func.func @transform_1(%arg0: i32) -> (i32, i32) {
    %c0_i32 = arith.constant 0 : i32
    %c0_i32_0 = arith.constant 0 : i32
    %c0_i32_1 = arith.constant 0 : i32
    return %c0_i32, %c0_i32_0 : i32, i32
  }
  func.func @transform_2(%arg0: i32) -> (i32, i32) {
    %c0_i32 = arith.constant 0 : i32
    %c0_i32_0 = arith.constant 0 : i32
    %c0_i32_1 = arith.constant 0 : i32
    return %c0_i32, %c0_i32_0 : i32, i32
  }
  func.func @transform_3(%arg0: i32) -> (i32, i32, i32) {
    %c0_i32 = arith.constant 0 : i32
    %c0_i32_0 = arith.constant 0 : i32
    %c0_i32_1 = arith.constant 0 : i32
    return %arg0, %c0_i32, %c0_i32_0 : i32, i32, i32
  }
}

module attributes {stable_mosaic.version = 11 : i64} {
  func.func @mlp_kernel(%arg0: i32, %arg1: memref<2x20480xbf16, #tpu.memory_space<vmem>>, %arg2: memref<20480x128xbf16, #tpu.memory_space<vmem>>, %arg3: memref<1x128xf32, #tpu.memory_space<vmem>>, %arg4: memref<128x2xbf16, #tpu.memory_space<vmem>>, %arg5: memref<1x2xf32, #tpu.memory_space<vmem>>, %arg6: memref<2x2xf32, #tpu.memory_space<vmem>>) attributes {dimension_semantics = [#tpu.dimension_semantics<parallel>], iteration_bounds = array<i64: 1>, scalar_prefetch = 0 : i64, scratch_operands = 0 : i64, tpu.core_type = #tpu.core_type<tc>, window_params = [{transform_indices = @transform_0, window_bounds = array<i64: 2, 20480>}, {pipeline_mode = #tpu.pipeline_mode<synchronous>, transform_indices = @transform_1, window_bounds = array<i64: 20480, 128>}, {pipeline_mode = #tpu.pipeline_mode<synchronous>, transform_indices = @transform_2, window_bounds = array<i64: 1, 128>}, {pipeline_mode = #tpu.pipeline_mode<synchronous>, transform_indices = @transform_3, window_bounds = array<i64: 128, 2>}, {pipeline_mode = #tpu.pipeline_mode<synchronous>, transform_indices = @transform_4, window_bounds = array<i64: 1, 2>}, {transform_indices = @transform_5, window_bounds = array<i64: 2, 2>}]} {
    %c0 = arith.constant 0 : index
    %c0_0 = arith.constant 0 : index
    %0 = vector.load %arg1[%c0, %c0_0] : memref<2x20480xbf16, #tpu.memory_space<vmem>>, vector<2x20480xbf16>
    %c0_1 = arith.constant 0 : index
    %c0_2 = arith.constant 0 : index
    %1 = vector.load %arg2[%c0_1, %c0_2] : memref<20480x128xbf16, #tpu.memory_space<vmem>>, vector<20480x128xbf16>
    %cst = arith.constant dense<0.000000e+00> : vector<2x128xf32>
    %2 = tpu.matmul %0, %1, %cst {dimension_numbers = #tpu.dot_dimension_numbers<[1], [0], [0], [1], [0, 0, 1, 1], [], []>} : vector<2x20480xbf16>, vector<20480x128xbf16>, vector<2x128xf32> -> vector<2x128xf32>
    %c0_3 = arith.constant 0 : index
    %c0_4 = arith.constant 0 : index
    %3 = vector.load %arg3[%c0_3, %c0_4] : memref<1x128xf32, #tpu.memory_space<vmem>>, vector<1x128xf32>
    %4 = vector.broadcast %3 : vector<1x128xf32> to vector<2x128xf32>
    %5 = arith.addf %2, %4 : vector<2x128xf32>
    %cst_5 = arith.constant 0.000000e+00 : f32
    %6 = vector.broadcast %cst_5 : f32 to vector<2x128xf32>
    %7 = arith.maximumf %5, %6 : vector<2x128xf32>
    %8 = arith.truncf %7 : vector<2x128xf32> to vector<2x128xbf16>
    %c0_6 = arith.constant 0 : index
    %c0_7 = arith.constant 0 : index
    %9 = vector.load %arg4[%c0_6, %c0_7] : memref<128x2xbf16, #tpu.memory_space<vmem>>, vector<128x2xbf16>
    %cst_8 = arith.constant dense<0.000000e+00> : vector<2x2xf32>
    %10 = tpu.matmul %8, %9, %cst_8 {dimension_numbers = #tpu.dot_dimension_numbers<[1], [0], [0], [1], [0, 0, 1, 1], [], []>} : vector<2x128xbf16>, vector<128x2xbf16>, vector<2x2xf32> -> vector<2x2xf32>
    %c0_9 = arith.constant 0 : index
    %c0_10 = arith.constant 0 : index
    %11 = vector.load %arg5[%c0_9, %c0_10] : memref<1x2xf32, #tpu.memory_space<vmem>>, vector<1x2xf32>
    %12 = vector.broadcast %11 : vector<1x2xf32> to vector<2x2xf32>
    %13 = arith.addf %10, %12 : vector<2x2xf32>
    %c0_11 = arith.constant 0 : index
    %c0_12 = arith.constant 0 : index
    %14 = vector.load %arg6[%c0_11, %c0_12] : memref<2x2xf32, #tpu.memory_space<vmem>>, vector<2x2xf32>
    tpu.vector_store %arg6[%c0_11, %c0_12], %13 {strides = array<i32>} : memref<2x2xf32, #tpu.memory_space<vmem>>, vector<2x2xf32>,
    return
  }
  func.func @transform_0(%arg0: i32) -> (i32, i32) {
    %c0_i32 = arith.constant 0 : i32
    %c0_i32_0 = arith.constant 0 : i32
    return %arg0, %c0_i32 : i32, i32
  }
  func.func @transform_1(%arg0: i32) -> (i32, i32) {
    %c0_i32 = arith.constant 0 : i32
    %c0_i32_0 = arith.constant 0 : i32
    %c0_i32_1 = arith.constant 0 : i32
    return %c0_i32, %c0_i32_0 : i32, i32
  }
  func.func @transform_2(%arg0: i32) -> (i32, i32) {
    %c0_i32 = arith.constant 0 : i32
    %c0_i32_0 = arith.constant 0 : i32
    %c0_i32_1 = arith.constant 0 : i32
    return %c0_i32, %c0_i32_0 : i32, i32
  }
  func.func @transform_3(%arg0: i32) -> (i32, i32) {
    %c0_i32 = arith.constant 0 : i32
    %c0_i32_0 = arith.constant 0 : i32
    %c0_i32_1 = arith.constant 0 : i32
    return %c0_i32, %c0_i32_0 : i32, i32
  }
  func.func @transform_4(%arg0: i32) -> (i32, i32) {
    %c0_i32 = arith.constant 0 : i32
    %c0_i32_0 = arith.constant 0 : i32
    %c0_i32_1 = arith.constant 0 : i32
    return %c0_i32, %c0_i32_0 : i32, i32
  }
  func.func @transform_5(%arg0: i32) -> (i32, i32) {
    %c0_i32 = arith.constant 0 : i32
    %c0_i32_0 = arith.constant 0 : i32
    return %arg0, %c0_i32 : i32, i32
  }
}

</mosaic_0001>

<bundles_post_ra>
// kernel: simple_cnn_forward.2
= control target key start
LH: loop header
LB: loop body
LE: loop exit
PB: predicated region body
PF: predicated region fallthrough
CT: control target
= control target key end

     0   :  { %v1733_v1 = vmov 0   ;;  %vm272_vm0 = vcmask 1041408   ;;  %vm247_vm1 = vcmask 293888   ;;  %s2564_s0 = inlined_call_operand.vmem [shape: bf16[36,1280], index: 0, kind: input, shape index: {}]   ;;  %s2565_s1 = inlined_call_operand.vmem [shape: bf16[128,36], index: 1, kind: input, shape index: {}]   ;;  %s2566_s2 = inlined_call_operand.vmem [shape: f32[128,1], index: 2, kind: input, shape index: {}]   ;;  %s2567_s3 = inlined_call_operand.vmem [shape: bf16[2,32,640], index: 3, kind: output, shape index: {}]  }
   0x1   :  { %v1687_v0 = vld [vmem:[%s2564_s0 + $0x4] ss:$40 sps:$4 sm:$0xff]   ;;  %320 = vmatprep.mubr.bf16.mxu0 %v1733_v1  ;;  %433 = vmatprep.mubr.bf16.mxu1 %v1733_v1  ;;  %v1691_v3 = vld [vmem:[%s2564_s0] ss:$40 sps:$4 sm:$0xff]   ;;  %v1693_v5 = vld [vmem:[%s2564_s0 + $0x54] ss:$40 sps:$4 sm:$0xff]  }
   0x2   :  { %v1689_v2 = vld [vmem:[%s2564_s0 + $0xc] ss:$40 sps:$4 sm:$0xff]   ;;  %1685 = vset.pattern.permute.xlu0 %v1733_v1  ;;  %1686 = vset.pattern.permute.xlu1 %v1733_v1  ;;  %v1692_v4 = vld [vmem:[%s2564_s0 + $0x8] ss:$40 sps:$4 sm:$0xff]   ;;  %v1695_v6 = vld [vmem:[%s2564_s0 + $0x5c] ss:$40 sps:$4 sm:$0xff]  }
   0x3   :  { %288 = vmatprep.subr.bf16.mxu0 %v1687_v0  ;;  %401 = vmatprep.subr.bf16.mxu1 %v1689_v2  ;;  %v1697_v7 = vld [vmem:[%s2564_s0 + $0x50] ss:$40 sps:$4 sm:$0xff]   ;;  %v139_v9 = vld [vmem:[%s2564_s0 + $0xa0] sm:$0x33]  ;;  %v140_v10 = vld [vmem:[%s2564_s0 + $0xa8] sm:$0x33] }
   0x4   :  { %289 = vmatpush1.bf16.msra.mxu0 %v1691_v3  ;;  %402 = vmatpush1.bf16.msra.mxu1 %v1692_v4  ;;  %v1698_v8 = vld [vmem:[%s2564_s0 + $0x58] ss:$40 sps:$4 sm:$0xff]   ;;  %v1485_v11 = vcombine.high %v139_v9, %v139_v9  ;;  %v1487_v12 = vcombine.high %v140_v10, %v140_v10  ;;  %v1484_v13 = vcombine.low %v139_v9, %v139_v9  ;;  %v1705_v20 = vld [vmem:[%s2564_s0 + $0x14] ss:$40 sps:$4 sm:$0xff]   ;;  %v1713_v22 = vld [vmem:[%s2564_s0 + $0x68] ss:$40 sps:$4 sm:$0xff]  }
   0x5   :  { %290 = vmatprep.subr.bf16.mxu0 %v1693_v5  ;;  %403 = vmatprep.subr.bf16.mxu1 %v1695_v6  ;;  %v1486_v14 = vcombine.low %v140_v10, %v140_v10  ;;  %v1704_v17 = vld [vmem:[%s2564_s0 + $0x10] ss:$40 sps:$4 sm:$0xff]   ;;  %v1801_v19 = vld [vmem:[%s2565_s1] sm:$0xff]   ;;  %v1830_v28 = vld [vmem:[%s2565_s1 + $0x8] sm:$0xff]  }
   0x6   :  { %v274_v15 = vsel %vm272_vm0, %v1484_v13, 0  ;;  %v1707_v18 = vld [vmem:[%s2564_s0 + $0x18] ss:$40 sps:$4 sm:$0xff]   ;;  %v1711_v23 = vld [vmem:[%s2564_s0 + $0x64] ss:$40 sps:$4 sm:$0xff]   ;;  %v33_v34 = vld [vmem:[%s2566_s2 + $0x10] sm:$0xff] }
   0x7   :  { %v280_v16 = vsel %vm272_vm0, %v1486_v14, 0  ;;  %v1710_v21 = vld [vmem:[%s2564_s0 + $0x60] ss:$40 sps:$4 sm:$0xff]   ;;  %v1717_v24 = vld [vmem:[%s2564_s0 + $0xb0] ss:$0 sps:$4 sm:$0x33]   ;;  %59 = vperm.xlu1 %1686, %v33_v34  }
   0x8   :  { %291 = vmatpush1.bf16.msra.mxu0 %v1697_v7  ;;  %404 = vmatpush1.bf16.msra.mxu1 %v1698_v8  ;;  %v839_v25 = vld [vmem:[%s2564_s0 + $0xb4] sm:$0x33]  ;;  %v1724_v29 = vld [vmem:[%s2564_s0 + $0x20] ss:$40 sps:$4 sm:$0xff]   ;;  %v286_v30 = vsel %vm272_vm0, %v1717_v24, 0 }
   0x9   :  { %1489 = vmatprep.subr.msk.bf16.mxu0 %vm272_vm0, %v1485_v11  ;;  %1498 = vmatprep.subr.msk.bf16.mxu1 %vm272_vm0, %v1487_v12  ;;  %v1538_v26 = vcombine.high %v839_v25, %v839_v25  ;;  %v1537_v27 = vcombine.low %v839_v25, %v839_v25  ;;  %v1842_v32 = vld [vmem:[%s2564_s0 + $0x24] ss:$40 sps:$4 sm:$0xff]   ;;  %v1860_v35 = vld [vmem:[%s2565_s1 + $0x10] sm:$0xff]   ;;  %v34_v37 = vld [vmem:[%s2566_s2 + $0x18] sm:$0xff] }
   0xa   :  { %v31_v33 = vld [vmem:[%s2566_s2] sm:$0xff]  ;;  %v32_v36 = vld [vmem:[%s2566_s2 + $0x8] sm:$0xff]  ;;  %v1883_v40 = vld [vmem:[%s2565_s1 + $0x18] sm:$0xff]  }
   0xb   :  { %v908_v31 = vsel %vm272_vm0, %v1537_v27, 0  ;;  %49 = vperm.xlu0 %1685, %v31_v33   ;;  %64 = vperm.xlu1 %1686, %v34_v37   ;;  %v35_v38 = vld [vmem:[%s2566_s2 + $0x20] sm:$0xff]  ;;  %v36_v39 = vld [vmem:[%s2566_s2 + $0x28] sm:$0xff]  ;;  %v37_v41 = vld [vmem:[%s2566_s2 + $0x30] sm:$0xff] }
   0xc   :  { %293 = vmatpush1.bf16.msra.mxu0 %v274_v15  ;;  %406 = vmatpush1.bf16.msra.mxu1 %v280_v16  ;;  %v38_v42 = vld [vmem:[%s2566_s2 + $0x38] sm:$0xff]  ;;  %v39_v43 = vld [vmem:[%s2566_s2 + $0x40] sm:$0xff]  ;;  %v40_v44 = vld [vmem:[%s2566_s2 + $0x48] sm:$0xff] }
   0xd   :  { %1638 = vmatprep.subr.bf16.mxu0 %v1704_v17  ;;  %922 = vmatprep.subr.bf16.mxu1 %v1707_v18  ;;  %v1906_v45 = vld [vmem:[%s2565_s1 + $0x20] sm:$0xff]   ;;  %v41_v46 = vld [vmem:[%s2566_s2 + $0x50] sm:$0xff]  ;;  %v42_v47 = vld [vmem:[%s2566_s2 + $0x58] sm:$0xff] }
   0xe   :  { %v43_v48 = vld [vmem:[%s2566_s2 + $0x60] sm:$0xff]  ;;  %v44_v49 = vld [vmem:[%s2566_s2 + $0x68] sm:$0xff]  ;;  %v45_v51 = vld [vmem:[%s2566_s2 + $0x70] sm:$0xff] }
   0xf   :  { %1490 = vmatmul.mubr.msk.bf16.vlgmr.msra.gmra.mrb[0].mxu0 %vm247_vm1, %v1801_v19  ;;  %1499 = vmatmul.mubr.msk.bf16.vlgmr.msra.gmra.mrb[0].mxu1 %vm247_vm1, %v1801_v19  ;;  %v1929_v50 = vld [vmem:[%s2565_s1 + $0x28] sm:$0xff]   ;;  %v46_v52 = vld [vmem:[%s2566_s2 + $0x78] sm:$0xff]  ;;  %v1946_v53 = vld [vmem:[%s2565_s1 + $0x30] sm:$0xff]  }
  0x10   :  { %1639 = vmatpush3.bf16.msra.mxu0 %v1704_v17  ;;  %923 = vmatpush1.bf16.msra.mxu1 %v1705_v20  ;;  %v1957_v54 = vld [vmem:[%s2565_s1 + $0x38] sm:$0xff]   ;;  %v1726_v59 = vld [vmem:[%s2564_s0 + $0x6c] ss:$40 sps:$4 sm:$0xff]   ;;  %v1732_v61 = vld [vmem:[%s2564_s0 + $0xc4] ss:$0 sps:$4 sm:$0x33]  }
  0x11   :  { %330 = vmatprep.mubr.bf16.mxu0 %v1733_v1  ;;  %443 = vmatprep.mubr.bf16.mxu1 %v1733_v1  ;;  %v1722_v55 = vld [vmem:[%s2564_s0 + $0x1c] ss:$40 sps:$4 sm:$0xff]   ;;  %v1728_v56 = vld [vmem:[%s2564_s0 + $0x70] ss:$40 sps:$4 sm:$0xff]   ;;  %v920_v0 = vsel %vm272_vm0, %v1732_v61, 0 }
  0x12   :  { %1640 = vmatprep.subr.bf16.mxu0 %v1710_v21  ;;  %924 = vmatprep.subr.bf16.mxu1 %v1713_v22  ;;  %v840_v57 = vld [vmem:[%s2564_s0 + $0xbc] sm:$0x33] }
  0x13   :  { %54 = vperm.xlu0 %1685, %v32_v36   ;;  %74 = vperm.xlu1 %1686, %v36_v39   ;;  %v1730_v58 = vld [vmem:[%s2564_s0 + $0x74] ss:$40 sps:$4 sm:$0xff]   ;;  %v1540_v60 = vcombine.high %v840_v57, %v840_v57  ;;  %v1539_v62 = vcombine.low %v840_v57, %v840_v57 }
  0x14   :  { %1641 = vmatpush3.bf16.msra.mxu0 %v1710_v21  ;;  %925 = vmatpush1.bf16.msra.mxu1 %v1711_v23 }
  0x15   :  { %1682 = vmatprep.subr.msk.bf16.mxu0 %vm272_vm0, %v1717_v24  ;;  %1542 = vmatprep.subr.msk.bf16.mxu1 %vm272_vm0, %v1538_v26  ;;  %v914_v63 = vsel %vm272_vm0, %v1539_v62, 0 }
  0x17   :  { %1491 = vmatmul.mubr.msk.bf16.gmra.mrb[4].mxu0 %vm247_vm1, %v1830_v28  ;;  %1500 = vmatmul.mubr.msk.bf16.gmra.mrb[4].mxu1 %vm247_vm1, %v1830_v28 }
  0x18   :  { %340 = vmatprep.mubr.bf16.mxu0 %v1733_v1  ;;  %453 = vmatprep.mubr.bf16.mxu1 %v1733_v1 }
  0x19   :  { %1643 = vmatpush3.bf16.msra.mxu0 %v286_v30  ;;  %927 = vmatpush1.bf16.msra.mxu1 %v908_v31 }
  0x1a   :  { %1035 = vmatprep.subr.bf16.mxu0 %v1724_v29  ;;  %1660 = vmatprep.subr.bf16.mxu1 %v1842_v32 }
  0x1b   :  { %69 = vperm.xlu0 %1685, %v35_v38   ;;  %84 = vperm.xlu1 %1686, %v38_v42  }
  0x1f   :  { %1492 = vmatmul.mubr.msk.bf16.gmra.mrb[8].mxu0 %vm247_vm1, %v1860_v35  ;;  %1501 = vmatmul.mubr.msk.bf16.gmra.mrb[8].mxu1 %vm247_vm1, %v1860_v35 }
  0x20   :  { %350 = vmatprep.mubr.bf16.mxu0 %v1733_v1  ;;  %463 = vmatprep.mubr.bf16.mxu1 %v1733_v1 }
  0x21   :  { %79 = vperm.xlu0 %1685, %v37_v41   ;;  %94 = vperm.xlu1 %1686, %v40_v44  }
  0x25   :  { %89 = vperm.xlu0 %1685, %v39_v43   ;;  %104 = vperm.xlu1 %1686, %v42_v47  }
  0x27   :  { %1493 = vmatmul.mubr.msk.bf16.gmra.mrb[12].mxu0 %vm247_vm1, %v1883_v40  ;;  %1502 = vmatmul.mubr.msk.bf16.gmra.mrb[12].mxu1 %vm247_vm1, %v1883_v40 }
  0x28   :  { %360 = vmatprep.mubr.bf16.mxu0 %v1733_v1  ;;  %473 = vmatprep.mubr.bf16.mxu1 %v1733_v1 }
  0x29   :  { %99 = vperm.xlu0 %1685, %v41_v46   ;;  %114 = vperm.xlu1 %1686, %v44_v49  }
  0x2d   :  { %109 = vperm.xlu0 %1685, %v43_v48   ;;  %124 = vperm.xlu1 %1686, %v46_v52  }
  0x2f   :  { %1494 = vmatmul.mubr.msk.bf16.gmra.mrb[16].mxu0 %vm247_vm1, %v1906_v45  ;;  %1503 = vmatmul.mubr.msk.bf16.gmra.mrb[16].mxu1 %vm247_vm1, %v1906_v45 }
  0x30   :  { %370 = vmatprep.mubr.bf16.mxu0 %v1733_v1  ;;  %483 = vmatprep.mubr.bf16.mxu1 %v1733_v1 }
  0x31   :  { %119 = vperm.xlu0 %1685, %v45_v51  }
  0x37   :  { %1495 = vmatmul.mubr.msk.bf16.gmra.mrb[20].mxu0 %vm247_vm1, %v1929_v50  ;;  %1504 = vmatmul.mubr.msk.bf16.gmra.mrb[20].mxu1 %vm247_vm1, %v1929_v50 }
  0x38   :  { %380 = vmatprep.mubr.bf16.mxu0 %v1733_v1  ;;  %493 = vmatprep.mubr.bf16.mxu1 %v1733_v1 }
  0x3f   :  { %1496 = vmatmul.mubr.msk.bf16.gmra.mrb[24].mxu0 %vm247_vm1, %v1946_v53  ;;  %1505 = vmatmul.mubr.msk.bf16.gmra.mrb[24].mxu1 %vm247_vm1, %v1946_v53 }
  0x40   :  { %390 = vmatprep.mubr.bf16.mxu0 %v1733_v1  ;;  %503 = vmatprep.mubr.bf16.mxu1 %v1733_v1 }
  0x47   :  { %1497 = vmatmul.mubr.msk.bf16.gmra.mrb[28].mxu0 %vm247_vm1, %v1957_v54  ;;  %1506 = vmatmul.mubr.msk.bf16.gmra.mrb[28].mxu1 %vm247_vm1, %v1957_v54 }
  0x48   :  { %1644 = vmatprep.mubr.msk.bf16.mxu0 %vm247_vm1, %v1801_v19  ;;  %954 = vmatprep.mubr.bf16.mxu1 %v1733_v1 }
  0x4f   :  { %1645 = vmatmul.mubr.msk.bf16.vlgmr.msra.gmra.mrb[32].mxu0 %vm247_vm1, %v1830_v28  ;;  %1543 = vmatmul.mubr.msk.bf16.vlgmr.msra.gmra.mrb[32].mxu1 %vm247_vm1, %v1801_v19 }
  0x50   :  { %1036 = vmatpush1.bf16.msra.mxu0 %v1722_v55  ;;  %1661 = vmatpush3.bf16.msra.mxu1 %v1842_v32 }
  0x51   :  { %1648 = vmatprep.mubr.msk.bf16.mxu0 %vm247_vm1, %v1860_v35  ;;  %964 = vmatprep.mubr.bf16.mxu1 %v1733_v1 }
  0x52   :  { %1037 = vmatprep.subr.bf16.mxu0 %v1728_v56  ;;  %1662 = vmatprep.subr.bf16.mxu1 %v1730_v58 }
  0x54   :  { %1038 = vmatpush1.bf16.msra.mxu0 %v1726_v59  ;;  %1663 = vmatpush3.bf16.msra.mxu1 %v1730_v58 }
  0x55   :  { %1551 = vmatprep.subr.msk.bf16.mxu0 %vm272_vm0, %v1540_v60  ;;  %1683 = vmatprep.subr.msk.bf16.mxu1 %vm272_vm0, %v1732_v61 }
  0x57   :  { %1649 = vmatmul.mubr.msk.bf16.gmra.mrb[36].mxu0 %vm247_vm1, %v1883_v40  ;;  %1544 = vmatmul.mubr.msk.bf16.gmra.mrb[36].mxu1 %vm247_vm1, %v1830_v28 }
  0x58   :  { %1652 = vmatprep.mubr.msk.bf16.mxu0 %vm247_vm1, %v1906_v45  ;;  %974 = vmatprep.mubr.bf16.mxu1 %v1733_v1 }
  0x59   :  { %1040 = vmatpush1.bf16.msra.mxu0 %v914_v63  ;;  %1665 = vmatpush3.bf16.msra.mxu1 %v920_v0 }
  0x5f   :  { %1653 = vmatmul.mubr.msk.bf16.gmra.mrb[40].mxu0 %vm247_vm1, %v1929_v50  ;;  %1545 = vmatmul.mubr.msk.bf16.gmra.mrb[40].mxu1 %vm247_vm1, %v1860_v35 }
  0x60   :  { %1656 = vmatprep.mubr.msk.bf16.mxu0 %vm247_vm1, %v1946_v53  ;;  %984 = vmatprep.mubr.bf16.mxu1 %v1733_v1 }
  0x67   :  { %1657 = vmatmul.mubr.msk.bf16.gmra.mrb[44].mxu0 %vm247_vm1, %v1957_v54  ;;  %1546 = vmatmul.mubr.msk.bf16.gmra.mrb[44].mxu1 %vm247_vm1, %v1883_v40 }
  0x68   :  { %994 = vmatprep.mubr.bf16.mxu1 %v1733_v1  ;;  %1067 = vmatprep.mubr.bf16.mxu0 %v1733_v1 }
  0x6f   :  { %1547 = vmatmul.mubr.msk.bf16.gmra.mrb[48].mxu1 %vm247_vm1, %v1906_v45  ;;  %1552 = vmatmul.mubr.msk.bf16.vlgmr.msra.gmra.mrb[48].mxu0 %vm247_vm1, %v1801_v19 }
  0x70   :  { %1004 = vmatprep.mubr.bf16.mxu1 %v1733_v1  ;;  %1077 = vmatprep.mubr.bf16.mxu0 %v1733_v1 }
  0x77   :  { %1548 = vmatmul.mubr.msk.bf16.gmra.mrb[52].mxu1 %vm247_vm1, %v1929_v50  ;;  %1553 = vmatmul.mubr.msk.bf16.gmra.mrb[52].mxu0 %vm247_vm1, %v1830_v28 }
  0x78   :  { %1014 = vmatprep.mubr.bf16.mxu1 %v1733_v1  ;;  %1087 = vmatprep.mubr.bf16.mxu0 %v1733_v1 }
  0x7f   :  { %1549 = vmatmul.mubr.msk.bf16.gmra.mrb[56].mxu1 %vm247_vm1, %v1946_v53  ;;  %1554 = vmatmul.mubr.msk.bf16.gmra.mrb[56].mxu0 %vm247_vm1, %v1860_v35 }
  0x80   :  { %1024 = vmatprep.mubr.bf16.mxu1 %v1733_v1  ;;  %1097 = vmatprep.mubr.bf16.mxu0 %v1733_v1 }
  0x86   :  { %v2068_v3 = vpop.permute.xlu1 %59 }
  0x87   :  { %1550 = vmatmul.mubr.msk.bf16.gmra.mrb[60].mxu1 %vm247_vm1, %v1957_v54  ;;  %1555 = vmatmul.mubr.msk.bf16.gmra.mrb[60].mxu0 %vm247_vm1, %v1883_v40 }
  0x88   :  { %1107 = vmatprep.mubr.bf16.mxu0 %v1733_v1  ;;  %1666 = vmatprep.mubr.msk.bf16.mxu1 %vm247_vm1, %v1801_v19 }
  0x8a   :  { %v2066_v2 = vpop.permute.xlu0 %49  ;;  %v2072_v12 = vpop.permute.xlu1 %64 }
  0x8f   :  { %1556 = vmatmul.mubr.msk.bf16.gmra.mrb[64].mxu0 %vm247_vm1, %v1906_v45  ;;  %1667 = vmatmul.mubr.msk.bf16.vlgmr.msra.gmra.mrb[64].mxu1 %vm247_vm1, %v1830_v28 }
  0x90   :  { %1117 = vmatprep.mubr.bf16.mxu0 %v1733_v1  ;;  %1670 = vmatprep.mubr.msk.bf16.mxu1 %vm247_vm1, %v1860_v35 }
  0x92   :  { %v2070_v11 = vpop.permute.xlu0 %54  ;;  %v2084_v38 = vpop.permute.xlu1 %74 }
  0x93   :  { %2580 = vst [vmem:[#allocation2_spill] sm:$0xff] %v2084_v38 }
  0x97   :  { %1557 = vmatmul.mubr.msk.bf16.gmra.mrb[68].mxu0 %vm247_vm1, %v1929_v50  ;;  %1671 = vmatmul.mubr.msk.bf16.gmra.mrb[68].mxu1 %vm247_vm1, %v1883_v40 }
  0x98   :  { %1127 = vmatprep.mubr.bf16.mxu0 %v1733_v1  ;;  %1674 = vmatprep.mubr.msk.bf16.mxu1 %vm247_vm1, %v1906_v45 }
  0x9a   :  { %v2082_v33 = vpop.permute.xlu0 %69 }
  0x9f   :  { %1558 = vmatmul.mubr.msk.bf16.gmra.mrb[72].mxu0 %vm247_vm1, %v1946_v53  ;;  %1675 = vmatmul.mubr.msk.bf16.gmra.mrb[72].mxu1 %vm247_vm1, %v1929_v50 }
  0xa0   :  { %1137 = vmatprep.mubr.bf16.mxu0 %v1733_v1  ;;  %1678 = vmatprep.mubr.msk.bf16.mxu1 %vm247_vm1, %v1946_v53 }
  0xa7   :  { %1559 = vmatmul.mubr.msk.bf16.gmra.mrb[76].mxu0 %vm247_vm1, %v1957_v54  ;;  %1679 = vmatmul.mubr.msk.bf16.gmra.mrb[76].mxu1 %vm247_vm1, %v1957_v54 }
  0xe2   :  { %v322_v4 = vpop.f32.mrb[0].mxu0  ;;  %v435_v5 = vpop.f32.mrb[0].mxu1 }
  0xe3   :  { %v324_v6 = vpop.f32.mrb[1].mxu0  ;;  %v437_v7 = vpop.f32.mrb[1].mxu1  ;;  %v323_v17 = vadd.f32 %v322_v4, %v2066_v2  ;;  %v436_v18 = vadd.f32 %v435_v5, %v2066_v2 }
  0xe4   :  { %v326_v8 = vpop.f32.mrb[2].mxu0  ;;  %v439_v9 = vpop.f32.mrb[2].mxu1  ;;  %v325_v19 = vadd.f32 %v324_v6, %v2066_v2  ;;  %v438_v20 = vadd.f32 %v437_v7, %v2066_v2 }
  0xe5   :  { %v328_v1 = vpop.f32.mrb[3].mxu0  ;;  %v441_v10 = vpop.f32.mrb[3].mxu1  ;;  %v327_v23 = vadd.f32 %v326_v8, %v2070_v11  ;;  %v440_v24 = vadd.f32 %v439_v9, %v2070_v11  ;;  %v611_v29 = vmax.f32 %v323_v17, 0.0  ;;  %v613_v30 = vmax.f32 %v436_v18, 0.0 }
  0xe6   :  { %v329_v25 = vadd.f32 %v328_v1, %v2070_v11  ;;  %v442_v26 = vadd.f32 %v441_v10, %v2070_v11  ;;  %v612_v31 = vmax.f32 %v325_v19, 0.0  ;;  %v614_v32 = vmax.f32 %v438_v20, 0.0  ;;  %v2134_v20 = vpop.permute.xlu1 %84 }
  0xe7   :  { %v616_v34 = vmax.f32 %v327_v23, 0.0  ;;  %v618_v35 = vmax.f32 %v440_v24, 0.0 }
  0xe8   :  { %v617_v36 = vmax.f32 %v329_v25, 0.0  ;;  %v619_v37 = vmax.f32 %v442_v26, 0.0 }
  0xea   :  { %v332_v13 = vpop.f32.mrb[4].mxu0  ;;  %v445_v14 = vpop.f32.mrb[4].mxu1 }
  0xeb   :  { %v334_v15 = vpop.f32.mrb[5].mxu0  ;;  %v447_v16 = vpop.f32.mrb[5].mxu1  ;;  %v2087_v39 = vadd.f32 %v332_v13, %v2068_v3  ;;  %v2090_v40 = vadd.f32 %v445_v14, %v2068_v3 }
  0xec   :  { %v336_v21 = vpop.f32.mrb[6].mxu0  ;;  %v449_v22 = vpop.f32.mrb[6].mxu1  ;;  %v2093_v41 = vadd.f32 %v334_v15, %v2068_v3  ;;  %v2096_v42 = vadd.f32 %v447_v16, %v2068_v3 }
  0xed   :  { %v338_v27 = vpop.f32.mrb[7].mxu0  ;;  %v451_v28 = vpop.f32.mrb[7].mxu1  ;;  %v2099_v45 = vadd.f32 %v336_v21, %v2072_v12  ;;  %v2102_v46 = vadd.f32 %v449_v22, %v2072_v12  ;;  %v621_v16 = vmax.f32 %v2087_v39, 0.0  ;;  %v623_v17 = vmax.f32 %v2090_v40, 0.0 }
  0xee   :  { %v2107_v51 = vadd.f32 %v338_v27, %v2072_v12  ;;  %v2110_v52 = vadd.f32 %v451_v28, %v2072_v12  ;;  %v2126_v15 = vpop.permute.xlu0 %79  ;;  %v622_v21 = vmax.f32 %v2093_v41, 0.0  ;;  %v624_v22 = vmax.f32 %v2096_v42, 0.0 }
  0xef   :  { %v626_v27 = vmax.f32 %v2099_v45, 0.0  ;;  %v628_v28 = vmax.f32 %v2102_v46, 0.0 }
  0xf2   :  { %v342_v43 = vpop.f32.mrb[8].mxu0  ;;  %v455_v44 = vpop.f32.mrb[8].mxu1 }
  0xf3   :  { %v343_v47 = vadd.f32 %v342_v43, %v2082_v33  ;;  %v456_v48 = vadd.f32 %v455_v44, %v2082_v33  ;;  %v344_v49 = vpop.f32.mrb[9].mxu0  ;;  %v457_v50 = vpop.f32.mrb[9].mxu1 }
  0xf4   :  { %v345_v53 = vadd.f32 %v344_v49, %v2082_v33  ;;  %v458_v54 = vadd.f32 %v457_v50, %v2082_v33  ;;  %v346_v55 = vpop.f32.mrb[10].mxu0  ;;  %v459_v56 = vpop.f32.mrb[10].mxu1 }
  0xf5   :  { %v631_v57 = vmax.f32 %v343_v47, 0.0  ;;  %v633_v58 = vmax.f32 %v456_v48, 0.0  ;;  %v347_v59 = vadd.f32 %v346_v55, %v2084_v38  ;;  %v460_v60 = vadd.f32 %v459_v56, %v2084_v38  ;;  %v348_v61 = vpop.f32.mrb[11].mxu0  ;;  %v461_v62 = vpop.f32.mrb[11].mxu1 }
  0xf6   :  { %v632_v63 = vmax.f32 %v345_v53, 0.0  ;;  %v634_v0 = vmax.f32 %v458_v54, 0.0  ;;  %v349_v4 = vadd.f32 %v348_v61, %v2084_v38  ;;  %v462_v5 = vadd.f32 %v461_v62, %v2084_v38  ;;  %v2166_v61 = vpop.permute.xlu0 %89  ;;  %v2168_v62 = vpop.permute.xlu1 %94 }
  0xf7   :  { %v2118_v6 = vmax.f32 %v611_v29, %v631_v57  ;;  %v2120_v7 = vmax.f32 %v613_v30, %v633_v58  ;;  %v636_v8 = vmax.f32 %v347_v59, 0.0  ;;  %v638_v9 = vmax.f32 %v460_v60, 0.0  ;;  %2581 = vst [vmem:[#allocation3_spill] sm:$0xff] %v2166_v61  ;;  %2582 = vst [vmem:[#allocation4_spill] sm:$0xff] %v2168_v62 }
  0xf8   :  { %v2122_v1 = vmax.f32 %v612_v31, %v632_v63  ;;  %v2124_v10 = vmax.f32 %v614_v32, %v634_v0  ;;  %v637_v13 = vmax.f32 %v349_v4, 0.0  ;;  %v639_v14 = vmax.f32 %v462_v5, 0.0 }
  0xf9   :  { %v2130_v18 = vmax.f32 %v616_v34, %v636_v8  ;;  %v2132_v19 = vmax.f32 %v618_v35, %v638_v9  ;;  %v627_v34 = vmax.f32 %v2107_v51, 0.0  ;;  %v629_v35 = vmax.f32 %v2110_v52, 0.0 }
  0xfa   :  { %v2138_v23 = vmax.f32 %v617_v36, %v637_v13  ;;  %v2140_v24 = vmax.f32 %v619_v37, %v639_v14  ;;  %v352_v25 = vpop.f32.mrb[12].mxu0  ;;  %v465_v26 = vpop.f32.mrb[12].mxu1 }
  0xfb   :  { %v353_v29 = vadd.f32 %v352_v25, %v2126_v15  ;;  %v466_v30 = vadd.f32 %v465_v26, %v2126_v15  ;;  %v354_v31 = vpop.f32.mrb[13].mxu0  ;;  %v467_v32 = vpop.f32.mrb[13].mxu1 }
  0xfc   :  { %v355_v36 = vadd.f32 %v354_v31, %v2126_v15  ;;  %v468_v37 = vadd.f32 %v467_v32, %v2126_v15  ;;  %v356_v39 = vpop.f32.mrb[14].mxu0  ;;  %v469_v40 = vpop.f32.mrb[14].mxu1 }
  0xfd   :  { %v641_v41 = vmax.f32 %v353_v29, 0.0  ;;  %v643_v42 = vmax.f32 %v466_v30, 0.0  ;;  %v357_v43 = vadd.f32 %v356_v39, %v2134_v20  ;;  %v470_v44 = vadd.f32 %v469_v40, %v2134_v20  ;;  %v358_v45 = vpop.f32.mrb[15].mxu0  ;;  %v471_v46 = vpop.f32.mrb[15].mxu1 }
  0xfe   :  { %v642_v47 = vmax.f32 %v355_v36, 0.0  ;;  %v644_v48 = vmax.f32 %v468_v37, 0.0  ;;  %v359_v49 = vadd.f32 %v358_v45, %v2134_v20  ;;  %v472_v50 = vadd.f32 %v471_v46, %v2134_v20 }
  0xff   :  { %v2154_v51 = vmax.f32 %v621_v16, %v641_v41  ;;  %v2156_v52 = vmax.f32 %v623_v17, %v643_v42  ;;  %v646_v53 = vmax.f32 %v357_v43, 0.0  ;;  %v648_v54 = vmax.f32 %v470_v44, 0.0 }
 0x100   :  { %v2158_v55 = vmax.f32 %v622_v21, %v642_v47  ;;  %v2160_v56 = vmax.f32 %v624_v22, %v644_v48  ;;  %v647_v57 = vmax.f32 %v359_v49, 0.0  ;;  %v649_v58 = vmax.f32 %v472_v50, 0.0  ;;  %v2174_v21 = vpop.permute.xlu0 %99  ;;  %v2176_v22 = vpop.permute.xlu1 %104 }
 0x101   :  { %v2162_v59 = vmax.f32 %v626_v27, %v646_v53  ;;  %v2164_v60 = vmax.f32 %v628_v28, %v648_v54  ;;  %2583 = vst [vmem:[#allocation5_spill] sm:$0xff] %v2174_v21  ;;  %2584 = vst [vmem:[#allocation6_spill] sm:$0xff] %v2176_v22 }
 0x102   :  { %v2170_v63 = vmax.f32 %v627_v34, %v647_v57  ;;  %v2172_v0 = vmax.f32 %v629_v35, %v649_v58  ;;  %v362_v4 = vpop.f32.mrb[16].mxu0  ;;  %v475_v5 = vpop.f32.mrb[16].mxu1 }
 0x103   :  { %v364_v8 = vpop.f32.mrb[17].mxu0  ;;  %v477_v9 = vpop.f32.mrb[17].mxu1  ;;  %v363_v29 = vadd.f32 %v362_v4, %v2166_v61  ;;  %v476_v30 = vadd.f32 %v475_v5, %v2166_v61 }
 0x104   :  { %v366_v13 = vpop.f32.mrb[18].mxu0  ;;  %v479_v14 = vpop.f32.mrb[18].mxu1  ;;  %v365_v31 = vadd.f32 %v364_v8, %v2166_v61  ;;  %v478_v32 = vadd.f32 %v477_v9, %v2166_v61 }
 0x105   :  { %v368_v16 = vpop.f32.mrb[19].mxu0  ;;  %v481_v17 = vpop.f32.mrb[19].mxu1  ;;  %v2183_v36 = vadd.f32 %v366_v13, %v2168_v62  ;;  %v2186_v37 = vadd.f32 %v479_v14, %v2168_v62  ;;  %v651_v49 = vmax.f32 %v363_v29, 0.0  ;;  %v653_v50 = vmax.f32 %v476_v30, 0.0 }
 0x106   :  { %v2189_v39 = vadd.f32 %v368_v16, %v2168_v62  ;;  %v2192_v40 = vadd.f32 %v481_v17, %v2168_v62  ;;  %v652_v53 = vmax.f32 %v365_v31, 0.0  ;;  %v654_v54 = vmax.f32 %v478_v32, 0.0  ;;  %v2218_v4 = vpop.permute.xlu0 %109  ;;  %v2224_v14 = vpop.permute.xlu1 %114 }
 0x107   :  { %2585 = vst [vmem:[#allocation7_spill] sm:$0xff] %v2218_v4  ;;  %v656_v5 = vmax.f32 %v2183_v36, 0.0  ;;  %v658_v8 = vmax.f32 %v2186_v37, 0.0 }
 0x108   :  { %v657_v9 = vmax.f32 %v2189_v39, 0.0  ;;  %v659_v13 = vmax.f32 %v2192_v40, 0.0 }
 0x10a   :  { %v372_v25 = vpop.f32.mrb[20].mxu0  ;;  %v485_v26 = vpop.f32.mrb[20].mxu1 }
 0x10b   :  { %v374_v27 = vpop.f32.mrb[21].mxu0  ;;  %v487_v28 = vpop.f32.mrb[21].mxu1  ;;  %v2201_v45 = vadd.f32 %v372_v25, %v2174_v21  ;;  %v2204_v46 = vadd.f32 %v485_v26, %v2174_v21 }
 0x10c   :  { %v376_v34 = vpop.f32.mrb[22].mxu0  ;;  %v489_v35 = vpop.f32.mrb[22].mxu1  ;;  %v2195_v43 = vadd.f32 %v374_v27, %v2174_v21  ;;  %v2198_v44 = vadd.f32 %v487_v28, %v2174_v21 }
 0x10d   :  { %v378_v41 = vpop.f32.mrb[23].mxu0  ;;  %v491_v42 = vpop.f32.mrb[23].mxu1  ;;  %v2207_v47 = vadd.f32 %v376_v34, %v2176_v22  ;;  %v2210_v48 = vadd.f32 %v489_v35, %v2176_v22 }
 0x10e   :  { %v2213_v57 = vadd.f32 %v378_v41, %v2176_v22  ;;  %v2216_v58 = vadd.f32 %v491_v42, %v2176_v22  ;;  %v2242_v21 = vpop.permute.xlu0 %119  ;;  %v2246_v38 = vpop.permute.xlu1 %124 }
 0x112   :  { %v382_v25 = vpop.f32.mrb[24].mxu0  ;;  %v495_v26 = vpop.f32.mrb[24].mxu1 }
 0x113   :  { %v383_v31 = vadd.f32 %v382_v25, %v2218_v4  ;;  %v496_v32 = vadd.f32 %v495_v26, %v2218_v4  ;;  %v384_v34 = vpop.f32.mrb[25].mxu0  ;;  %v497_v35 = vpop.f32.mrb[25].mxu1 }
 0x114   :  { %v385_v39 = vadd.f32 %v384_v34, %v2218_v4  ;;  %v498_v40 = vadd.f32 %v497_v35, %v2218_v4  ;;  %v386_v41 = vpop.f32.mrb[26].mxu0  ;;  %v499_v42 = vpop.f32.mrb[26].mxu1 }
 0x115   :  { %v671_v17 = vmax.f32 %v383_v31, 0.0  ;;  %v673_v29 = vmax.f32 %v496_v32, 0.0  ;;  %v387_v30 = vadd.f32 %v386_v41, %v2224_v14  ;;  %v500_v25 = vadd.f32 %v499_v42, %v2224_v14  ;;  %v388_v16 = vpop.f32.mrb[27].mxu0  ;;  %v501_v26 = vpop.f32.mrb[27].mxu1 }
 0x116   :  { %v672_v28 = vmax.f32 %v385_v39, 0.0  ;;  %v674_v27 = vmax.f32 %v498_v40, 0.0  ;;  %v389_v36 = vadd.f32 %v388_v16, %v2224_v14  ;;  %v502_v37 = vadd.f32 %v501_v26, %v2224_v14 }
 0x117   :  { %v711_v62 = vmax.f32 %v651_v49, %v671_v17  ;;  %v713_v34 = vmax.f32 %v653_v50, %v673_v29  ;;  %v676_v22 = vmax.f32 %v387_v30, 0.0  ;;  %v678_v35 = vmax.f32 %v500_v25, 0.0 }
 0x118   :  { %v712_v4 = vmax.f32 %v652_v53, %v672_v28  ;;  %v714_v61 = vmax.f32 %v654_v54, %v674_v27  ;;  %v677_v31 = vmax.f32 %v389_v36, 0.0  ;;  %v679_v32 = vmax.f32 %v502_v37, 0.0 }
 0x119   :  { %v731_v41 = vmax.f32 %v2118_v6, %v711_v62  ;;  %v733_v42 = vmax.f32 %v2120_v7, %v713_v34  ;;  %v716_v39 = vmax.f32 %v656_v5, %v676_v22  ;;  %v718_v40 = vmax.f32 %v658_v8, %v678_v35 }
 0x11a   :  { %v732_v16 = vmax.f32 %v2122_v1, %v712_v4  ;;  %v734_v49 = vmax.f32 %v2124_v10, %v714_v61  ;;  %v717_v50 = vmax.f32 %v657_v9, %v677_v31  ;;  %v719_v17 = vmax.f32 %v659_v13, %v679_v32  ;;  %v392_v53 = vpop.f32.mrb[28].mxu0  ;;  %v505_v54 = vpop.f32.mrb[28].mxu1 }
 0x11b   :  { %v736_v27 = vmax.f32 %v2130_v18, %v716_v39  ;;  %v738_v28 = vmax.f32 %v2132_v19, %v718_v40  ;;  %v393_v6 = vadd.f32 %v392_v53, %v2242_v21  ;;  %v506_v7 = vadd.f32 %v505_v54, %v2242_v21  ;;  %v394_v62 = vpop.f32.mrb[29].mxu0  ;;  %v507_v22 = vpop.f32.mrb[29].mxu1 }
 0x11c   :  { %v1592_v5 = vpack.c.bf16 %v732_v16, %v731_v41  ;;  %v1593_v8 = vpack.c.bf16 %v734_v49, %v733_v42  ;;  %v737_v1 = vmax.f32 %v2138_v23, %v717_v50  ;;  %v739_v10 = vmax.f32 %v2140_v24, %v719_v17  ;;  %v396_v61 = vpop.f32.mrb[30].mxu0  ;;  %v509_v4 = vpop.f32.mrb[30].mxu1 }
 0x11d   :  { %v681_v9 = vmax.f32 %v393_v6, 0.0  ;;  %v683_v13 = vmax.f32 %v506_v7, 0.0  ;;  %v395_v18 = vadd.f32 %v394_v62, %v2242_v21  ;;  %v508_v19 = vadd.f32 %v507_v22, %v2242_v21  ;;  %v398_v29 = vpop.f32.mrb[31].mxu0  ;;  %v511_v30 = vpop.f32.mrb[31].mxu1 }
 0x11e   :  { %815 = vst [vmem:[%s2567_s3] sm:$0xff] %v1592_v5  ;;  %816 = vst [vmem:[%s2567_s3 + $0x8] sm:$0xff] %v1593_v8  ;;  %v1595_v23 = vpack.c.bf16 %v737_v1, %v736_v27  ;;  %v1596_v24 = vpack.c.bf16 %v739_v10, %v738_v28  ;;  %v397_v36 = vadd.f32 %v396_v61, %v2246_v38  ;;  %v2586_v25 = vmax.f32 %v2201_v45, 0.0 }
 0x11f   :  { %v510_v37 = vadd.f32 %v509_v4, %v2246_v38  ;;  %v2587_v34 = vmax.f32 %v2204_v46, 0.0  ;;  %v682_v31 = vmax.f32 %v395_v18, 0.0  ;;  %v684_v32 = vmax.f32 %v508_v19, 0.0 }
 0x120   :  { %v721_v26 = vmax.f32 %v2586_v25, %v681_v9  ;;  %818 = vst [vmem:[%s2567_s3 + $0x14] sm:$0xff] %v1595_v23  ;;  %819 = vst [vmem:[%s2567_s3 + $0x1c] sm:$0xff] %v1596_v24  ;;  %v686_v41 = vmax.f32 %v397_v36, 0.0  ;;  %v399_v39 = vadd.f32 %v398_v29, %v2246_v38  ;;  %v512_v45 = vadd.f32 %v511_v30, %v2246_v38 }
 0x121   :  { %v723_v35 = vmax.f32 %v2587_v34, %v683_v13  ;;  %v688_v42 = vmax.f32 %v510_v37, 0.0  ;;  %v2588_v16 = vmax.f32 %v2195_v43, 0.0  ;;  %v2589_v50 = vmax.f32 %v2198_v44, 0.0 }
 0x122   :  { %v741_v40 = vmax.f32 %v2154_v51, %v721_v26  ;;  %v2590_v53 = vmax.f32 %v2207_v47, 0.0  ;;  %v2591_v27 = vmax.f32 %v2210_v48, 0.0  ;;  %v687_v6 = vmax.f32 %v399_v39, 0.0  ;;  %v1646_v62 = vpop.f32.mrb[32].mxu0  ;;  %v956_v22 = vpop.f32.mrb[32].mxu1 }
 0x123   :  { %v743_v46 = vmax.f32 %v2156_v52, %v723_v35  ;;  %v722_v49 = vmax.f32 %v2588_v16, %v682_v31  ;;  %v724_v17 = vmax.f32 %v2589_v50, %v684_v32  ;;  %v689_v7 = vmax.f32 %v512_v45, 0.0  ;;  %v548_v5 = vpop.f32.mrb[33].mxu0  ;;  %v958_v43 = vpop.f32.mrb[33].mxu1 }
 0x124   :  { %v726_v54 = vmax.f32 %v2590_v53, %v686_v41  ;;  %v728_v28 = vmax.f32 %v2591_v27, %v688_v42  ;;  %v2592_v47 = vmax.f32 %v2213_v57, 0.0  ;;  %v2593_v48 = vmax.f32 %v2216_v58, 0.0  ;;  %v1647_v61 = vpop.f32.mrb[34].mxu0  ;;  %v960_v4 = vpop.f32.mrb[34].mxu1 }
 0x125   :  { %v742_v51 = vmax.f32 %v2158_v55, %v722_v49  ;;  %v744_v52 = vmax.f32 %v2160_v56, %v724_v17  ;;  %v551_v18 = vpop.f32.mrb[35].mxu0  ;;  %v962_v55 = vpop.f32.mrb[35].mxu1  ;;  %v557_v57 = vadd.f32 %v1646_v62, %v2068_v3  ;;  %v560_v29 = vadd.f32 %v1647_v61, %v2072_v12 }
 0x126   :  { %v746_v8 = vmax.f32 %v2162_v59, %v726_v54  ;;  %v748_v44 = vmax.f32 %v2164_v60, %v728_v28  ;;  %v727_v1 = vmax.f32 %v2592_v47, %v687_v6  ;;  %v729_v10 = vmax.f32 %v2593_v48, %v689_v7 }
 0x127   :  { %v1598_v9 = vpack.c.bf16 %v742_v51, %v741_v40  ;;  %v1599_v13 = vpack.c.bf16 %v744_v52, %v743_v46  ;;  %v552_v36 = vadd.f32 %v551_v18, %v2070_v11  ;;  %v625_v34 = vmax.f32 %v557_v57, 0.0  ;;  %v2594_v46 = vld [vmem:[#allocation2_spill] sm:$0xff] }
 0x128   :  { %v747_v56 = vmax.f32 %v2170_v63, %v727_v1  ;;  %v749_v19 = vmax.f32 %v2172_v0, %v729_v10  ;;  %v549_v63 = vadd.f32 %v548_v5, %v2066_v2  ;;  %v957_v35 = vadd.f32 %v956_v22, %v2066_v2 }
 0x129   :  { %821 = vst [vmem:[%s2567_s3 + $0x28] sm:$0xff] %v1598_v9  ;;  %822 = vst [vmem:[%s2567_s3 + $0x30] sm:$0xff] %v1599_v13  ;;  %v959_v45 = vadd.f32 %v958_v43, %v2066_v2  ;;  %v630_v49 = vmax.f32 %v560_v29, 0.0  ;;  %v961_v50 = vadd.f32 %v960_v4, %v2070_v11  ;;  %v620_v54 = vmax.f32 %v552_v36, 0.0  ;;  %v2597_v36 = vld [vmem:[#allocation6_spill] sm:$0xff] }
 0x12a   :  { %v1601_v59 = vpack.c.bf16 %v747_v56, %v746_v8  ;;  %v1602_v60 = vpack.c.bf16 %v749_v19, %v748_v44  ;;  %v1650_v0 = vpop.f32.mrb[36].mxu0  ;;  %v966_v58 = vpop.f32.mrb[36].mxu1  ;;  %v615_v39 = vmax.f32 %v549_v63, 0.0  ;;  %v963_v27 = vadd.f32 %v962_v55, %v2070_v11  ;;  %v2595_v63 = vld [vmem:[#allocation5_spill] sm:$0xff] }
 0x12b   :  { %v573_v30 = vadd.f32 %v1650_v0, %v2126_v15  ;;  %v564_v23 = vpop.f32.mrb[37].mxu0  ;;  %v968_v24 = vpop.f32.mrb[37].mxu1  ;;  %v1245_v52 = vmax.f32 %v957_v35, 0.0  ;;  %v1246_v44 = vmax.f32 %v959_v45, 0.0  ;;  %v1250_v47 = vmax.f32 %v961_v50, 0.0 }
 0x12c   :  { %824 = vst [vmem:[%s2567_s3 + $0x3c] sm:$0xff] %v1601_v59  ;;  %825 = vst [vmem:[%s2567_s3 + $0x44] sm:$0xff] %v1602_v60  ;;  %v565_v37 = vadd.f32 %v564_v23, %v2082_v33  ;;  %v1651_v25 = vpop.f32.mrb[38].mxu0  ;;  %v970_v26 = vpop.f32.mrb[38].mxu1  ;;  %v1251_v1 = vmax.f32 %v963_v27, 0.0  ;;  %v967_v4 = vadd.f32 %v966_v58, %v2068_v3  ;;  %v969_v9 = vadd.f32 %v968_v24, %v2068_v3 }
 0x12d   :  { %v645_v31 = vmax.f32 %v573_v30, 0.0  ;;  %v576_v32 = vadd.f32 %v1651_v25, %v2134_v20  ;;  %v567_v41 = vpop.f32.mrb[39].mxu0  ;;  %v972_v42 = vpop.f32.mrb[39].mxu1  ;;  %v971_v19 = vadd.f32 %v970_v26, %v2072_v12  ;;  %v2596_v30 = vld [vmem:[#allocation3_spill] sm:$0xff]  ;;  %v2598_v25 = vld [vmem:[#allocation4_spill] sm:$0xff] }
 0x12e   :  { %v635_v40 = vmax.f32 %v565_v37, 0.0  ;;  %v568_v16 = vadd.f32 %v567_v41, %v2594_v46  ;;  %v973_v59 = vadd.f32 %v972_v42, %v2072_v12  ;;  %v1255_v26 = vmax.f32 %v967_v4, 0.0 }
 0x12f   :  { %v2321_v17 = vmax.f32 %v625_v34, %v645_v31  ;;  %v650_v53 = vmax.f32 %v576_v32, 0.0  ;;  %v1256_v32 = vmax.f32 %v969_v9, 0.0  ;;  %v1260_v41 = vmax.f32 %v971_v19, 0.0 }
 0x130   :  { %v2324_v28 = vmax.f32 %v615_v39, %v635_v40  ;;  %v640_v6 = vmax.f32 %v568_v16, 0.0  ;;  %v1261_v42 = vmax.f32 %v973_v59, 0.0 }
 0x131   :  { %v2326_v7 = vmax.f32 %v630_v49, %v650_v53 }
 0x132   :  { %v2328_v62 = vmax.f32 %v620_v54, %v640_v6  ;;  %v1654_v22 = vpop.f32.mrb[40].mxu0  ;;  %v976_v51 = vpop.f32.mrb[40].mxu1 }
 0x133   :  { %v977_v5 = vadd.f32 %v976_v51, %v2082_v33  ;;  %v580_v43 = vpop.f32.mrb[41].mxu0  ;;  %v978_v8 = vpop.f32.mrb[41].mxu1  ;;  %v589_v0 = vadd.f32 %v1654_v22, %v2595_v63  ;;  %v2599_v51 = vld [vmem:[#allocation7_spill] sm:$0xff] }
 0x134   :  { %v979_v48 = vadd.f32 %v978_v8, %v2082_v33  ;;  %v1655_v10 = vpop.f32.mrb[42].mxu0  ;;  %v980_v61 = vpop.f32.mrb[42].mxu1  ;;  %v581_v58 = vadd.f32 %v580_v43, %v2596_v30 }
 0x135   :  { %v1265_v13 = vmax.f32 %v977_v5, 0.0  ;;  %v981_v18 = vadd.f32 %v980_v61, %v2594_v46  ;;  %v583_v55 = vpop.f32.mrb[43].mxu0  ;;  %v982_v56 = vpop.f32.mrb[43].mxu1  ;;  %v592_v37 = vadd.f32 %v1655_v10, %v2597_v36  ;;  %v665_v16 = vmax.f32 %v589_v0, 0.0 }
 0x136   :  { %v1266_v60 = vmax.f32 %v979_v48, 0.0  ;;  %v983_v57 = vadd.f32 %v982_v56, %v2594_v46  ;;  %v584_v34 = vadd.f32 %v583_v55, %v2598_v25  ;;  %v655_v49 = vmax.f32 %v581_v58, 0.0 }
 0x137   :  { %v2339_v29 = vmax.f32 %v1245_v52, %v1265_v13  ;;  %v1270_v23 = vmax.f32 %v981_v18, 0.0  ;;  %v670_v6 = vmax.f32 %v592_v37, 0.0 }
 0x138   :  { %v2342_v24 = vmax.f32 %v1246_v44, %v1266_v60  ;;  %v1271_v35 = vmax.f32 %v983_v57, 0.0  ;;  %v660_v22 = vmax.f32 %v584_v34, 0.0 }
 0x139   :  { %v2346_v31 = vmax.f32 %v1250_v47, %v1270_v23 }
 0x13a   :  { %v2348_v39 = vmax.f32 %v1251_v1, %v1271_v35  ;;  %v1658_v45 = vpop.f32.mrb[44].mxu0  ;;  %v986_v40 = vpop.f32.mrb[44].mxu1 }
 0x13b   :  { %v605_v50 = vadd.f32 %v1658_v45, %v2242_v21  ;;  %v987_v53 = vadd.f32 %v986_v40, %v2126_v15  ;;  %v596_v54 = vpop.f32.mrb[45].mxu0  ;;  %v988_v27 = vpop.f32.mrb[45].mxu1 }
 0x13c   :  { %v597_v52 = vadd.f32 %v596_v54, %v2599_v51  ;;  %v989_v5 = vadd.f32 %v988_v27, %v2126_v15  ;;  %v1659_v43 = vpop.f32.mrb[46].mxu0  ;;  %v990_v8 = vpop.f32.mrb[46].mxu1 }
 0x13d   :  { %v685_v44 = vmax.f32 %v605_v50, 0.0  ;;  %v1275_v47 = vmax.f32 %v987_v53, 0.0  ;;  %v608_v1 = vadd.f32 %v1659_v43, %v2246_v38  ;;  %v991_v48 = vadd.f32 %v990_v8, %v2134_v20  ;;  %v599_v10 = vpop.f32.mrb[47].mxu0  ;;  %v992_v61 = vpop.f32.mrb[47].mxu1 }
 0x13e   :  { %v675_v4 = vmax.f32 %v597_v52, 0.0  ;;  %v1276_v9 = vmax.f32 %v989_v5, 0.0  ;;  %v600_v13 = vadd.f32 %v599_v10, %v2224_v14  ;;  %v993_v18 = vadd.f32 %v992_v61, %v2134_v20 }
 0x13f   :  { %v725_v55 = vmax.f32 %v665_v16, %v685_v44  ;;  %v2358_v56 = vmax.f32 %v1255_v26, %v1275_v47  ;;  %v690_v19 = vmax.f32 %v608_v1, 0.0  ;;  %v1280_v59 = vmax.f32 %v991_v48, 0.0 }
 0x140   :  { %v715_v60 = vmax.f32 %v655_v49, %v675_v4  ;;  %v2360_v57 = vmax.f32 %v1256_v32, %v1276_v9  ;;  %v680_v0 = vmax.f32 %v600_v13, 0.0  ;;  %v1281_v58 = vmax.f32 %v993_v18, 0.0 }
 0x141   :  { %v745_v23 = vmax.f32 %v2321_v17, %v725_v55  ;;  %v730_v37 = vmax.f32 %v670_v6, %v690_v19  ;;  %v2363_v34 = vmax.f32 %v1260_v41, %v1280_v59 }
 0x142   :  { %v735_v35 = vmax.f32 %v2324_v28, %v715_v60  ;;  %v720_v45 = vmax.f32 %v660_v22, %v680_v0  ;;  %v2366_v40 = vmax.f32 %v1261_v42, %v1281_v58  ;;  %v996_v16 = vpop.f32.mrb[48].mxu1  ;;  %v1069_v26 = vpop.f32.mrb[48].mxu0 }
 0x143   :  { %v1600_v50 = vpack.c.bf16 %v745_v23, %v745_v23  ;;  %v750_v53 = vmax.f32 %v2326_v7, %v730_v37  ;;  %v998_v49 = vpop.f32.mrb[49].mxu1  ;;  %v1071_v32 = vpop.f32.mrb[49].mxu0  ;;  %v997_v43 = vadd.f32 %v996_v16, %v2596_v30  ;;  %v1070_v8 = vadd.f32 %v1069_v26, %v2066_v2 }
 0x144   :  { %v1594_v54 = vpack.c.bf16 %v735_v35, %v735_v35  ;;  %v740_v27 = vmax.f32 %v2328_v62, %v720_v45  ;;  %v1000_v52 = vpop.f32.mrb[50].mxu1  ;;  %v1073_v17 = vpop.f32.mrb[50].mxu0  ;;  %v999_v44 = vadd.f32 %v998_v49, %v2596_v30  ;;  %v1072_v47 = vadd.f32 %v1071_v32, %v2066_v2 }
 0x145   :  { %823 = vst [vmem:[%s2567_s3 + $0x38] sm:$0xf] %v1600_v50  ;;  %v1603_v28 = vpack.c.bf16 %v750_v53, %v750_v53  ;;  %v1002_v41 = vpop.f32.mrb[51].mxu1  ;;  %v1075_v42 = vpop.f32.mrb[51].mxu0  ;;  %v1001_v10 = vadd.f32 %v1000_v52, %v2598_v25  ;;  %v1074_v61 = vadd.f32 %v1073_v17, %v2070_v11  ;;  %v1285_v0 = vmax.f32 %v997_v43, 0.0 }
 0x146   :  { %817 = vst [vmem:[%s2567_s3 + $0x10] sm:$0xf] %v1594_v54  ;;  %v1597_v6 = vpack.c.bf16 %v740_v27, %v740_v27  ;;  %v1003_v4 = vadd.f32 %v1002_v41, %v2598_v25  ;;  %v1076_v9 = vadd.f32 %v1075_v42, %v2070_v11  ;;  %v1247_v58 = vmax.f32 %v1070_v8, 0.0 }
 0x147   :  { %826 = vst [vmem:[%s2567_s3 + $0x4c] sm:$0xf] %v1603_v28  ;;  %v1286_v23 = vmax.f32 %v999_v44, 0.0  ;;  %v1248_v37 = vmax.f32 %v1072_v47, 0.0  ;;  %v1290_v35 = vmax.f32 %v1001_v10, 0.0  ;;  %v1252_v45 = vmax.f32 %v1074_v61, 0.0 }
 0x148   :  { %820 = vst [vmem:[%s2567_s3 + $0x24] sm:$0xf] %v1597_v6  ;;  %v1291_v16 = vmax.f32 %v1003_v4, 0.0  ;;  %v1253_v26 = vmax.f32 %v1076_v9, 0.0 }
 0x14a   :  { %v1006_v7 = vpop.f32.mrb[52].mxu1  ;;  %v1079_v62 = vpop.f32.mrb[52].mxu0 }
 0x14b   :  { %v1008_v22 = vpop.f32.mrb[53].mxu1  ;;  %v1081_v5 = vpop.f32.mrb[53].mxu0  ;;  %v2391_v55 = vadd.f32 %v1006_v7, %v2595_v63  ;;  %v2394_v19 = vadd.f32 %v1079_v62, %v2068_v3 }
 0x14c   :  { %v1010_v1 = vpop.f32.mrb[54].mxu1  ;;  %v1083_v48 = vpop.f32.mrb[54].mxu0  ;;  %v2397_v59 = vadd.f32 %v1008_v22, %v2595_v63  ;;  %v2400_v60 = vadd.f32 %v1081_v5, %v2068_v3 }
 0x14d   :  { %v1012_v13 = vpop.f32.mrb[55].mxu1  ;;  %v1085_v18 = vpop.f32.mrb[55].mxu0  ;;  %v1295_v50 = vmax.f32 %v2391_v55, 0.0  ;;  %v1257_v53 = vmax.f32 %v2394_v19, 0.0  ;;  %v2405_v49 = vadd.f32 %v1010_v1, %v2597_v36  ;;  %v2408_v32 = vadd.f32 %v1083_v48, %v2072_v12 }
 0x14e   :  { %v2415_v7 = vadd.f32 %v1012_v13, %v2597_v36  ;;  %v2418_v62 = vadd.f32 %v1085_v18, %v2072_v12 }
 0x152   :  { %v1016_v54 = vpop.f32.mrb[56].mxu1  ;;  %v1089_v27 = vpop.f32.mrb[56].mxu0 }
 0x153   :  { %v1017_v28 = vadd.f32 %v1016_v54, %v2599_v51  ;;  %v1090_v41 = vadd.f32 %v1089_v27, %v2082_v33  ;;  %v1018_v42 = vpop.f32.mrb[57].mxu1  ;;  %v1091_v6 = vpop.f32.mrb[57].mxu0 }
 0x154   :  { %v1019_v22 = vadd.f32 %v1018_v42, %v2599_v51  ;;  %v1092_v5 = vadd.f32 %v1091_v6, %v2082_v33  ;;  %v1020_v43 = vpop.f32.mrb[58].mxu1  ;;  %v1093_v8 = vpop.f32.mrb[58].mxu0 }
 0x155   :  { %v1305_v44 = vmax.f32 %v1017_v28, 0.0  ;;  %v1267_v47 = vmax.f32 %v1090_v41, 0.0  ;;  %v1021_v1 = vadd.f32 %v1020_v43, %v2224_v14  ;;  %v1094_v48 = vadd.f32 %v1093_v8, %v2594_v46  ;;  %v1022_v10 = vpop.f32.mrb[59].mxu1  ;;  %v1095_v61 = vpop.f32.mrb[59].mxu0 }
 0x156   :  { %v1306_v4 = vmax.f32 %v1019_v22, 0.0  ;;  %v1268_v9 = vmax.f32 %v1092_v5, 0.0  ;;  %v1023_v13 = vadd.f32 %v1022_v10, %v2224_v14  ;;  %v1096_v18 = vadd.f32 %v1095_v61, %v2594_v46 }
 0x157   :  { %v1345_v54 = vmax.f32 %v1285_v0, %v1305_v44  ;;  %v2426_v27 = vmax.f32 %v1247_v58, %v1267_v47  ;;  %v1310_v42 = vmax.f32 %v1021_v1, 0.0  ;;  %v1272_v6 = vmax.f32 %v1094_v48, 0.0 }
 0x158   :  { %v1346_v17 = vmax.f32 %v1286_v23, %v1306_v4  ;;  %v2428_v28 = vmax.f32 %v1248_v37, %v1268_v9  ;;  %v1311_v41 = vmax.f32 %v1023_v13, 0.0  ;;  %v1273_v43 = vmax.f32 %v1096_v18, 0.0 }
 0x159   :  { %v1300_v8 = vmax.f32 %v2405_v49, 0.0  ;;  %v1365_v52 = vmax.f32 %v2339_v29, %v1345_v54  ;;  %v1350_v22 = vmax.f32 %v1290_v35, %v1310_v42  ;;  %v2432_v5 = vmax.f32 %v1252_v45, %v1272_v6 }
 0x15a   :  { %v1262_v10 = vmax.f32 %v2408_v32, 0.0  ;;  %v1366_v0 = vmax.f32 %v2342_v24, %v1346_v17  ;;  %v1351_v58 = vmax.f32 %v1291_v16, %v1311_v41  ;;  %v2436_v44 = vmax.f32 %v1253_v26, %v1273_v43  ;;  %v1026_v47 = vpop.f32.mrb[60].mxu1  ;;  %v1099_v23 = vpop.f32.mrb[60].mxu0 }
 0x15b   :  { %v1301_v37 = vmax.f32 %v2415_v7, 0.0  ;;  %v1370_v1 = vmax.f32 %v2346_v31, %v1350_v22  ;;  %v1027_v49 = vadd.f32 %v1026_v47, %v2242_v21  ;;  %v1100_v29 = vadd.f32 %v1099_v23, %v2126_v15  ;;  %v1028_v35 = vpop.f32.mrb[61].mxu1  ;;  %v1101_v45 = vpop.f32.mrb[61].mxu0 }
 0x15c   :  { %v1604_v48 = vpack.c.bf16 %v1366_v0, %v1365_v52  ;;  %v1371_v32 = vmax.f32 %v2348_v39, %v1351_v58  ;;  %v1029_v24 = vadd.f32 %v1028_v35, %v2242_v21  ;;  %v1102_v16 = vadd.f32 %v1101_v45, %v2126_v15  ;;  %v1030_v26 = vpop.f32.mrb[62].mxu1  ;;  %v1103_v17 = vpop.f32.mrb[62].mxu0 }
 0x15d   :  { %v1315_v61 = vmax.f32 %v1027_v49, 0.0  ;;  %v1277_v4 = vmax.f32 %v1100_v29, 0.0  ;;  %v1031_v7 = vadd.f32 %v1030_v26, %v2246_v38  ;;  %v1104_v31 = vadd.f32 %v1103_v17, %v2134_v20  ;;  %v1032_v9 = vpop.f32.mrb[63].mxu1  ;;  %v1105_v13 = vpop.f32.mrb[63].mxu0 }
 0x15e   :  { %1580 = vst [vmem:[%s2567_s3 + $0x50] sm:$0xff] %v1604_v48  ;;  %v1607_v52 = vpack.c.bf16 %v1371_v32, %v1370_v1  ;;  %v1316_v39 = vmax.f32 %v1029_v24, 0.0  ;;  %v1278_v18 = vmax.f32 %v1102_v16, 0.0  ;;  %v1033_v54 = vadd.f32 %v1032_v9, %v2246_v38 }
 0x15f   :  { %v1355_v42 = vmax.f32 %v1295_v50, %v1315_v61  ;;  %v2455_v6 = vmax.f32 %v1257_v53, %v1277_v4  ;;  %v1320_v41 = vmax.f32 %v1031_v7, 0.0  ;;  %v1282_v43 = vmax.f32 %v1104_v31, 0.0 }
 0x160   :  { %1583 = vst [vmem:[%s2567_s3 + $0x64] sm:$0xff] %v1607_v52  ;;  %v2600_v22 = vmax.f32 %v2397_v59, 0.0  ;;  %v2601_v58 = vmax.f32 %v2400_v60, 0.0  ;;  %v1321_v23 = vmax.f32 %v1033_v54, 0.0  ;;  %v1106_v55 = vadd.f32 %v1105_v13, %v2134_v20 }
 0x161   :  { %v1375_v19 = vmax.f32 %v2358_v56, %v1355_v42  ;;  %v1360_v50 = vmax.f32 %v1300_v8, %v1320_v41  ;;  %v2468_v53 = vmax.f32 %v1262_v10, %v1282_v43  ;;  %v1263_v1 = vmax.f32 %v2418_v62, 0.0 }
 0x162   :  { %v1356_v0 = vmax.f32 %v2600_v22, %v1316_v39  ;;  %v2464_v47 = vmax.f32 %v2601_v58, %v1278_v18  ;;  %v1361_v29 = vmax.f32 %v1301_v37, %v1321_v23  ;;  %v1283_v35 = vmax.f32 %v1106_v55, 0.0  ;;  %v1109_v59 = vpop.f32.mrb[64].mxu0  ;;  %v1668_v45 = vpop.f32.mrb[64].mxu1 }
 0x163   :  { %v1380_v60 = vmax.f32 %v2363_v34, %v1360_v50  ;;  %v1111_v48 = vpop.f32.mrb[65].mxu0  ;;  %v1182_v32 = vpop.f32.mrb[65].mxu1  ;;  %v1191_v34 = vadd.f32 %v1668_v45, %v2068_v3  ;;  %v1110_v18 = vadd.f32 %v1109_v59, %v2596_v30 }
 0x164   :  { %v1376_v49 = vmax.f32 %v2360_v57, %v1356_v0  ;;  %v1381_v16 = vmax.f32 %v2366_v40, %v1361_v29  ;;  %v2474_v26 = vmax.f32 %v1263_v1, %v1283_v35  ;;  %v1113_v56 = vpop.f32.mrb[66].mxu0  ;;  %v1669_v8 = vpop.f32.mrb[66].mxu1  ;;  %v1183_v62 = vadd.f32 %v1182_v32, %v2066_v2 }
 0x165   :  { %v1115_v10 = vpop.f32.mrb[67].mxu0  ;;  %v1185_v17 = vpop.f32.mrb[67].mxu1  ;;  %v1194_v61 = vadd.f32 %v1669_v8, %v2072_v12  ;;  %v1259_v54 = vmax.f32 %v1191_v34, 0.0  ;;  %v1112_v12 = vadd.f32 %v1111_v48, %v2596_v30  ;;  %v1287_v1 = vmax.f32 %v1110_v18, 0.0 }
 0x166   :  { %v1610_v24 = vpack.c.bf16 %v1376_v49, %v1375_v19  ;;  %v1613_v57 = vpack.c.bf16 %v1381_v16, %v1380_v60  ;;  %v1186_v9 = vadd.f32 %v1185_v17, %v2070_v11  ;;  %v1249_v43 = vmax.f32 %v1183_v62, 0.0 }
 0x167   :  { %v1114_v11 = vadd.f32 %v1113_v56, %v2598_v25  ;;  %v1264_v0 = vmax.f32 %v1194_v61, 0.0  ;;  %v1116_v23 = vadd.f32 %v1115_v10, %v2598_v25 }
 0x168   :  { %1586 = vst [vmem:[%s2567_s3 + $0x78] sm:$0xff] %v1610_v24  ;;  %1589 = vst [vmem:[%s2567_s3 + $0x8c] sm:$0xff] %v1613_v57  ;;  %v1254_v55 = vmax.f32 %v1186_v9, 0.0 }
 0x169   :  { %v1292_v59 = vmax.f32 %v1114_v11, 0.0  ;;  %v1293_v24 = vmax.f32 %v1116_v23, 0.0 }
 0x16a   :  { %v1119_v40 = vpop.f32.mrb[68].mxu0  ;;  %v1672_v37 = vpop.f32.mrb[68].mxu1 }
 0x16b   :  { %v1207_v4 = vadd.f32 %v1672_v37, %v2126_v15  ;;  %v1121_v7 = vpop.f32.mrb[69].mxu0  ;;  %v1198_v31 = vpop.f32.mrb[69].mxu1  ;;  %v1120_v45 = vadd.f32 %v1119_v40, %v2595_v63 }
 0x16c   :  { %v1199_v13 = vadd.f32 %v1198_v31, %v2082_v33  ;;  %v1123_v52 = vpop.f32.mrb[70].mxu0  ;;  %v1673_v39 = vpop.f32.mrb[70].mxu1  ;;  %v1122_v16 = vadd.f32 %v1121_v7, %v2595_v63 }
 0x16d   :  { %v1279_v3 = vmax.f32 %v1207_v4, 0.0  ;;  %v1210_v2 = vadd.f32 %v1673_v39, %v2134_v20  ;;  %v1125_v42 = vpop.f32.mrb[71].mxu0  ;;  %v1201_v41 = vpop.f32.mrb[71].mxu1  ;;  %v2506_v56 = vadd.f32 %v1123_v52, %v2597_v36 }
 0x16e   :  { %v1269_v15 = vmax.f32 %v1199_v13, 0.0  ;;  %v1202_v22 = vadd.f32 %v1201_v41, %v2594_v46  ;;  %v1288_v46 = vmax.f32 %v1112_v12, 0.0  ;;  %v2510_v57 = vadd.f32 %v1125_v42, %v2597_v36 }
 0x16f   :  { %v2493_v33 = vmax.f32 %v1259_v54, %v1279_v3  ;;  %v1284_v58 = vmax.f32 %v1210_v2, 0.0  ;;  %v1297_v13 = vmax.f32 %v1120_v45, 0.0  ;;  %v1298_v54 = vmax.f32 %v1122_v16, 0.0 }
 0x170   :  { %v2496_v19 = vmax.f32 %v1249_v43, %v1269_v15  ;;  %v1274_v20 = vmax.f32 %v1202_v22, 0.0  ;;  %v1302_v3 = vmax.f32 %v2506_v56, 0.0  ;;  %v1303_v42 = vmax.f32 %v2510_v57, 0.0 }
 0x171   :  { %v2498_v50 = vmax.f32 %v1264_v0, %v1284_v58 }
 0x172   :  { %v2500_v49 = vmax.f32 %v1254_v55, %v1274_v20  ;;  %v1129_v29 = vpop.f32.mrb[72].mxu0  ;;  %v1676_v35 = vpop.f32.mrb[72].mxu1 }
 0x173   :  { %v1130_v60 = vadd.f32 %v1129_v29, %v2599_v51  ;;  %v1131_v48 = vpop.f32.mrb[73].mxu0  ;;  %v1214_v32 = vpop.f32.mrb[73].mxu1  ;;  %v1223_v62 = vadd.f32 %v1676_v35, %v2595_v63 }
 0x174   :  { %v1132_v8 = vadd.f32 %v1131_v48, %v2599_v51  ;;  %v1133_v10 = vpop.f32.mrb[74].mxu0  ;;  %v1677_v17 = vpop.f32.mrb[74].mxu1  ;;  %v1215_v7 = vadd.f32 %v1214_v32, %v2596_v30 }
 0x175   :  { %v1307_v34 = vmax.f32 %v1130_v60, 0.0  ;;  %v1134_v40 = vadd.f32 %v1133_v10, %v2224_v14  ;;  %v1135_v37 = vpop.f32.mrb[75].mxu0  ;;  %v1217_v61 = vpop.f32.mrb[75].mxu1  ;;  %v1226_v31 = vadd.f32 %v1677_v17, %v2597_v36  ;;  %v1299_v12 = vmax.f32 %v1223_v62, 0.0 }
 0x176   :  { %v1308_v4 = vmax.f32 %v1132_v8, 0.0  ;;  %v1136_v9 = vadd.f32 %v1135_v37, %v2224_v14  ;;  %v1218_v18 = vadd.f32 %v1217_v61, %v2598_v25  ;;  %v1289_v43 = vmax.f32 %v1215_v7, 0.0 }
 0x177   :  { %v1347_v52 = vmax.f32 %v1287_v1, %v1307_v34  ;;  %v1312_v39 = vmax.f32 %v1134_v40, 0.0  ;;  %v1304_v15 = vmax.f32 %v1226_v31, 0.0 }
 0x178   :  { %v1348_v63 = vmax.f32 %v1288_v46, %v1308_v4  ;;  %v1313_v2 = vmax.f32 %v1136_v9, 0.0  ;;  %v1294_v58 = vmax.f32 %v1218_v18, 0.0 }
 0x179   :  { %v1367_v41 = vmax.f32 %v2426_v27, %v1347_v52  ;;  %v1352_v30 = vmax.f32 %v1292_v59, %v1312_v39 }
 0x17a   :  { %v1368_v36 = vmax.f32 %v2428_v28, %v1348_v63  ;;  %v1353_v22 = vmax.f32 %v1293_v24, %v1313_v2  ;;  %v1139_v11 = vpop.f32.mrb[76].mxu0  ;;  %v1680_v0 = vpop.f32.mrb[76].mxu1 }
 0x17b   :  { %v1372_v25 = vmax.f32 %v2432_v5, %v1352_v30  ;;  %v1140_v23 = vadd.f32 %v1139_v11, %v2242_v21  ;;  %v1239_v55 = vadd.f32 %v1680_v0, %v2242_v21  ;;  %v1141_v20 = vpop.f32.mrb[77].mxu0  ;;  %v1230_v1 = vpop.f32.mrb[77].mxu1 }
 0x17c   :  { %v1605_v29 = vpack.c.bf16 %v1368_v36, %v1367_v41  ;;  %v1373_v27 = vmax.f32 %v2436_v44, %v1353_v22  ;;  %v1142_v35 = vadd.f32 %v1141_v20, %v2242_v21  ;;  %v1231_v28 = vadd.f32 %v1230_v1, %v2599_v51  ;;  %v1143_v46 = vpop.f32.mrb[78].mxu0  ;;  %v1681_v59 = vpop.f32.mrb[78].mxu1 }
 0x17d   :  { %v1317_v45 = vmax.f32 %v1140_v23, 0.0  ;;  %v1319_v60 = vmax.f32 %v1239_v55, 0.0  ;;  %v1144_v5 = vadd.f32 %v1143_v46, %v2246_v38  ;;  %v1242_v48 = vadd.f32 %v1681_v59, %v2246_v38  ;;  %v1145_v32 = vpop.f32.mrb[79].mxu0  ;;  %v1233_v24 = vpop.f32.mrb[79].mxu1 }
 0x17e   :  { %1581 = vst [vmem:[%s2567_s3 + $0x58] sm:$0xff] %v1605_v29  ;;  %v1608_v16 = vpack.c.bf16 %v1373_v27, %v1372_v25  ;;  %v1318_v44 = vmax.f32 %v1142_v35, 0.0  ;;  %v1309_v56 = vmax.f32 %v1231_v28, 0.0  ;;  %v1146_v21 = vadd.f32 %v1145_v32, %v2246_v38 }
 0x17f   :  { %v1357_v51 = vmax.f32 %v1297_v13, %v1317_v45  ;;  %v1359_v8 = vmax.f32 %v1299_v12, %v1319_v60  ;;  %v1322_v10 = vmax.f32 %v1144_v5, 0.0  ;;  %v1324_v17 = vmax.f32 %v1242_v48, 0.0 }
 0x180   :  { %1584 = vst [vmem:[%s2567_s3 + $0x6c] sm:$0xff] %v1608_v16  ;;  %v1358_v57 = vmax.f32 %v1298_v54, %v1318_v44  ;;  %v1349_v34 = vmax.f32 %v1289_v43, %v1309_v56  ;;  %v1323_v62 = vmax.f32 %v1146_v21, 0.0  ;;  %v1234_v40 = vadd.f32 %v1233_v24, %v2224_v14 }
 0x181   :  { %v1377_v37 = vmax.f32 %v2455_v6, %v1357_v51  ;;  %v1379_v61 = vmax.f32 %v2493_v33, %v1359_v8  ;;  %v1362_v4 = vmax.f32 %v1302_v3, %v1322_v10  ;;  %v1364_v7 = vmax.f32 %v1304_v15, %v1324_v17 }
 0x182   :  { %v1378_v38 = vmax.f32 %v2464_v47, %v1358_v57  ;;  %v1369_v31 = vmax.f32 %v2496_v19, %v1349_v34  ;;  %v1363_v9 = vmax.f32 %v1303_v42, %v1323_v62  ;;  %v1314_v13 = vmax.f32 %v1234_v40, 0.0 }
 0x183   :  { %v1612_v52 = vpack.c.bf16 %v1379_v61, %v1379_v61  ;;  %v1382_v39 = vmax.f32 %v2468_v53, %v1362_v4  ;;  %v1384_v18 = vmax.f32 %v2498_v50, %v1364_v7 }
 0x184   :  { %v1611_v54 = vpack.c.bf16 %v1378_v38, %v1377_v37  ;;  %v1606_v63 = vpack.c.bf16 %v1369_v31, %v1369_v31  ;;  %v1383_v14 = vmax.f32 %v2474_v26, %v1363_v9  ;;  %v1354_v6 = vmax.f32 %v1294_v58, %v1314_v13 }
 0x185   :  { %1588 = vst [vmem:[%s2567_s3 + $0x88] sm:$0xf] %v1612_v52  ;;  %v1615_v33 = vpack.c.bf16 %v1384_v18, %v1384_v18 }
 0x186   :  { %1587 = vst [vmem:[%s2567_s3 + $0x80] sm:$0xff] %v1611_v54  ;;  %1582 = vst [vmem:[%s2567_s3 + $0x60] sm:$0xf] %v1606_v63  ;;  %v1614_v47 = vpack.c.bf16 %v1383_v14, %v1382_v39  ;;  %v1374_v53 = vmax.f32 %v2500_v49, %v1354_v6 }
 0x187   :  { %1591 = vst [vmem:[%s2567_s3 + $0x9c] sm:$0xf] %v1615_v33 }
 0x188   :  { %1590 = vst [vmem:[%s2567_s3 + $0x94] sm:$0xff] %v1614_v47  ;;  %v1609_v26 = vpack.c.bf16 %v1374_v53, %v1374_v53 }
 0x18a   :  { %1585 = vst [vmem:[%s2567_s3 + $0x74] sm:$0xf] %v1609_v26 }

// kernel: simple_cnn_forward.3
= control target key start
LH: loop header
LB: loop body
LE: loop exit
PB: predicated region body
PF: predicated region fallthrough
CT: control target
= control target key end

     0   :  { %10 = vsyncpa [#allocation3], 0  ;;  %s19803_s0 = inlined_call_operand.vmem [shape: bf16[2,20480], index: 0, kind: input, shape index: {}]   ;;  %s19804_s1 = inlined_call_operand.hbm [shape: bf16[20480,128], index: 1, kind: input, shape index: {}]   ;;  %s19805_s2 = inlined_call_operand.hbm [shape: f32[1,128], index: 2, kind: input, shape index: {}]   ;;  %s19806_s3 = inlined_call_operand.vmem [shape: bf16[128,2], index: 3, kind: input, shape index: {}]   ;;  %s19807_s4 = inlined_call_operand.hbm [shape: f32[1,2], index: 4, kind: input, shape index: {}]   ;;  %s19808_s5 = inlined_call_operand.hbm [shape: f32[2,2], index: 5, kind: output, shape index: {}]  }
   0x1   :  { %11 = vsyncpa [#allocation6], 0 }
   0x2   :  { %12 = vsyncpa [#allocation4], 0  ;;  %s19307_s18 = smov [#allocation5]   ;;  %s19308_s20 = smov [#allocation2]  }
   0x3   :  { %s33_s19 = sshll.u32 %s19307_s18, 4  ;;  %s20_s21 = sshll.u32 %s19308_s20, 4  ;;  %s34_s19 = int_to_ptr.vmem [resolvable:$true] %s33_s19  ;;  %s19346_s21 = int_to_ptr.vmem [resolvable:$true] %s20_s21 }
   0x4   :  { %s19213_s24 = scalar_lea.hbm %s19805_s2, 16 }
   0x5   :  { %p19214_p0 = scmp.ne.s32.totalorder %s19805_s2, %s19213_s24  ;;  %p19217_p1 = scmp.lt.u32.totalorder %s19213_s24, %s19805_s2 }
   0x7   :  { %p19219_p2 = pnand %p19217_p1, %p19214_p0 }
   0x9   :  { %19222 = shalt.err (!%p19219_p2)
}
   0xa   :  { %s19223_s29 = scalar_lea.vmem %s34_s19, 16  ;;  %s19227_s30 = scalar_lea.vmem %s34_s19, 32 }
   0xb   :  { %p19224_p3 = scmp.ne.s32.totalorder %s34_s19, %s19223_s29  ;;  %p19228_p4 = scmp.lt.s32.totalorder %s34_s19, %s34_s19 }
   0xc   :  { %p19229_p5 = scmp.lt.s32.totalorder %s19227_s30, %s19223_s29 }
   0xe   :  { %p19230_p6 = por %p19229_p5, %p19228_p4 }
  0x10   :  { %p19231_p7 = pnand %p19230_p6, %p19224_p3 }
  0x12   :  { %19234 = shalt.err (!%p19231_p7)
}
  0x13   :  { %36 = dma.hbm_to_vmem [thread:$0]  %s19805_s2, 16, %s34_s19, [#allocation6]  }
  0x14   :  { %s19235_s10 = scalar_lea.hbm %s19804_s1, 163840 }
  0x15   :  { %p19236_p8 = scmp.ne.s32.totalorder %s19804_s1, %s19235_s10  ;;  %p19239_p9 = scmp.lt.u32.totalorder %s19235_s10, %s19804_s1 }
  0x17   :  { %p19241_p10 = pnand %p19239_p9, %p19236_p8 }
  0x19   :  { %19244 = shalt.err (!%p19241_p10)
}
  0x1a   :  { %s19245_s15 = scalar_lea.vmem %s19346_s21, 163840  ;;  %p19250_p12 = scmp.lt.s32.totalorder %s19346_s21, %s19346_s21 }
  0x1b   :  { %p19246_p11 = scmp.ne.s32.totalorder %s19346_s21, %s19245_s15  ;;  %p19251_p13 = scmp.lt.s32.totalorder %s19245_s15, %s19245_s15 }
  0x1d   :  { %p19252_p0 = por %p19251_p13, %p19250_p12 }
  0x1f   :  { %p19253_p1 = pnand %p19252_p0, %p19246_p11 }
  0x21   :  { %19256 = shalt.err (!%p19253_p1)
}
  0x22   :  { %s19309_s2 = smov 64   ;;  %s19310_s16 = smov 4  }
  0x23   :  { %26 = dma.hbm_to_vmem [thread:$0]  %s19804_s1, 163840, %s19346_s21, [#allocation3], %s19309_s2, %s19309_s2, %s19310_s16  }
  0x24   :  { %s19311_s19 = smov [#allocation7]   ;;  %s19257_s24 = scalar_lea.hbm %s19807_s4, 16 }
  0x25   :  { %s45_s20 = sshll.u32 %s19311_s19, 4  ;;  %p19258_p2 = scmp.ne.s32.totalorder %s19807_s4, %s19257_s24  ;;  %s46_s20 = int_to_ptr.vmem [resolvable:$true] %s45_s20 }
  0x26   :  { %p19261_p3 = scmp.lt.u32.totalorder %s19257_s24, %s19807_s4 }
  0x28   :  { %p19263_p4 = pnand %p19261_p3, %p19258_p2 }
  0x2a   :  { %19266 = shalt.err (!%p19263_p4)
}
  0x2b   :  { %s19267_s29 = scalar_lea.vmem %s46_s20, 16  ;;  %s19271_s1 = scalar_lea.vmem %s46_s20, 32 }
  0x2c   :  { %p19268_p5 = scmp.ne.s32.totalorder %s46_s20, %s19267_s29  ;;  %p19272_p6 = scmp.lt.s32.totalorder %s46_s20, %s46_s20 }
  0x2d   :  { %p19273_p7 = scmp.lt.s32.totalorder %s19271_s1, %s19267_s29 }
  0x2f   :  { %p19274_p8 = por %p19273_p7, %p19272_p6 }
  0x31   :  { %p19275_p9 = pnand %p19274_p8, %p19268_p5 }
  0x33   :  { %19278 = shalt.err (!%p19275_p9)
}
  0x34   :  { %48 = dma.hbm_to_vmem [thread:$0]  %s19807_s4, 16, %s46_s20, [#allocation6]  }
  0x35   :  { %19301 = dma.done.wait [#allocation3], 163840  }
  0x36   :  { %19302 = vsyncadd [#allocation3], 4294803456 }
  0x37   :  { %19303 = dma.done.wait [#allocation6], 32  }
  0x38   :  { %19304 = vsyncadd [#allocation6], 4294967264  ;;  %v17905_v0 = vld [vmem:[#allocation2 + $0x40] sm:$0xff]   ;;  %v17909_v4 = vld [vmem:[#allocation2 + $0x48] sm:$0xff]   ;;  %v19312_v22 = vmov 1966171168   ;;  %v2670_v24 = vlaneseq }
  0x39   :  { %v17906_v1 = vld [vmem:[#allocation2 + $0xc0] sm:$0xff]   ;;  %16107 = vmatprep.subr.bf16.mxu0 %v17905_v0  ;;  %v17910_v5 = vld [vmem:[#allocation2 + $0xc8] sm:$0xff]   ;;  %v17913_v8 = vld [vmem:[#allocation2 + $0x50] sm:$0xff]   ;;  %v2668_v23 = vunpack.c.l.s4 %v19312_v22  ;;  %vm19314_vm0 = vmmov 0   ;;  %vm14799_vm1 = vcmask 9216  }
  0x3a   :  { %v17907_v2 = vld [vmem:[#allocation2] sm:$0xff]   ;;  %16129 = vmatprep.subr.bf16.mxu1 %v17906_v1  ;;  %v17911_v6 = vld [vmem:[#allocation2 + $0x8] sm:$0xff]   ;;  %v17914_v9 = vld [vmem:[#allocation2 + $0xd0] sm:$0xff]   ;;  %v2671_v30 = vshrl.u32 %v2670_v24, 7 }
  0x3b   :  { %v17908_v3 = vld [vmem:[#allocation2 + $0x80] sm:$0xff]   ;;  %16108 = vmatpush3.bf16.msra.mxu0 %v17907_v2  ;;  %v17912_v7 = vld [vmem:[#allocation2 + $0x88] sm:$0xff]   ;;  %v17915_v10 = vld [vmem:[#allocation2 + $0x10] sm:$0xff]   ;;  %v2669_v29 = vunpack.c.0.s8 %v2668_v23 }
  0x3c   :  { %16130 = vmatpush3.bf16.msra.mxu1 %v17908_v3  ;;  %16109 = vmatprep.subr.bf16.mxu0 %v17909_v4  ;;  %v17916_v11 = vld [vmem:[#allocation2 + $0x90] sm:$0xff]   ;;  %v17917_v12 = vld [vmem:[#allocation2 + $0x58] sm:$0xff]   ;;  %v17921_v16 = vld [vmem:[#allocation2 + $0x60] sm:$0xff]  }
  0x3d   :  { %16131 = vmatprep.subr.bf16.mxu1 %v17910_v5  ;;  %v17918_v13 = vld [vmem:[#allocation2 + $0xd8] sm:$0xff]   ;;  %v17922_v17 = vld [vmem:[#allocation2 + $0xe0] sm:$0xff]   ;;  %v17925_v20 = vld [vmem:[#allocation2 + $0x68] sm:$0xff]   ;;  %v19389_v35 = vsub.s32 %v2669_v29, %v2671_v30 }
  0x3e   :  { %v17919_v14 = vld [vmem:[#allocation2 + $0x18] sm:$0xff]   ;;  %v17923_v18 = vld [vmem:[#allocation2 + $0x20] sm:$0xff]   ;;  %v17926_v21 = vld [vmem:[#allocation2 + $0xe8] sm:$0xff]  }
  0x3f   :  { %16110 = vmatpush3.bf16.msra.mxu0 %v17911_v6  ;;  %v17920_v15 = vld [vmem:[#allocation2 + $0x98] sm:$0xff]   ;;  %v17924_v19 = vld [vmem:[#allocation2 + $0xa0] sm:$0xff]   ;;  %v17927_v25 = vld [vmem:[#allocation2 + $0x28] sm:$0xff]  }
  0x40   :  { %16132 = vmatpush3.bf16.msra.mxu1 %v17912_v7  ;;  %16111 = vmatprep.subr.bf16.mxu0 %v17913_v8  ;;  %v17928_v26 = vld [vmem:[#allocation2 + $0xa8] sm:$0xff]   ;;  %v17929_v27 = vld [vmem:[#allocation2 + $0x70] sm:$0xff]   ;;  %v17933_v33 = vld [vmem:[#allocation2 + $0x78] sm:$0xff]  }
  0x41   :  { %16133 = vmatprep.subr.bf16.mxu1 %v17914_v9  ;;  %v17930_v28 = vld [vmem:[#allocation2 + $0xf0] sm:$0xff]   ;;  %v17934_v34 = vld [vmem:[#allocation2 + $0xf8] sm:$0xff]   ;;  %v59_v38 = vld [vmem:[%s19803_s0] sm:$0xff] }
  0x42   :  { %v17931_v31 = vld [vmem:[#allocation2 + $0x30] sm:$0xff]   ;;  %v17935_v36 = vld [vmem:[#allocation2 + $0x38] sm:$0xff]   ;;  %v2666_v39 = vcombine.high %v59_v38, %v59_v38  ;;  %v2673_v40 = vrot.slane %v59_v38, %v19389_v35  ;;  %v17938_v41 = vld [vmem:[#allocation2 + $0x140] sm:$0xff]  }
  0x43   :  { %16112 = vmatpush3.bf16.msra.mxu0 %v17915_v10  ;;  %v17932_v32 = vld [vmem:[#allocation2 + $0xb0] sm:$0xff]   ;;  %v17936_v37 = vld [vmem:[#allocation2 + $0xb8] sm:$0xff]   ;;  %v17939_v42 = vld [vmem:[#allocation2 + $0x1c0] sm:$0xff]  }
  0x44   :  { %16134 = vmatpush3.bf16.msra.mxu1 %v17916_v11  ;;  %16113 = vmatprep.subr.bf16.mxu0 %v17917_v12  ;;  %v2681_v43 = vcombine.high %v2673_v40, %v2673_v40  ;;  %v2689_v44 = vrot.slane %v2673_v40, %v19389_v35  ;;  %v19397_v45 = vrot.slane %v2666_v39, %v19389_v35  ;;  %v17940_v46 = vld [vmem:[#allocation2 + $0x100] sm:$0xff]   ;;  %v17942_v51 = vld [vmem:[#allocation2 + $0x148] sm:$0xff]   ;;  %v17946_v58 = vld [vmem:[#allocation2 + $0x150] sm:$0xff]  }
  0x45   :  { %16135 = vmatprep.subr.bf16.mxu1 %v17918_v13  ;;  %v17941_v48 = vld [vmem:[#allocation2 + $0x180] sm:$0xff]   ;;  %v17943_v53 = vld [vmem:[#allocation2 + $0x1c8] sm:$0xff]   ;;  %v17947_v59 = vld [vmem:[#allocation2 + $0x1d0] sm:$0xff]  }
  0x46   :  { %v2703_v47 = vrot.slane %v2681_v43, %v19389_v35  ;;  %v2682_v49 = vcombine.high %v19397_v45, %v19397_v45  ;;  %v2711_v50 = vcombine.high %v2689_v44, %v2689_v44  ;;  %v17944_v55 = vld [vmem:[#allocation2 + $0x108] sm:$0xff]   ;;  %v17948_v60 = vld [vmem:[#allocation2 + $0x110] sm:$0xff]   ;;  %v17950_v62 = vld [vmem:[#allocation2 + $0x158] sm:$0xff]  }
  0x47   :  { %16114 = vmatpush3.bf16.msra.mxu0 %v17919_v14  ;;  %v17945_v56 = vld [vmem:[#allocation2 + $0x188] sm:$0xff]   ;;  %v17949_v61 = vld [vmem:[#allocation2 + $0x190] sm:$0xff]   ;;  %v17951_v63 = vld [vmem:[#allocation2 + $0x1d8] sm:$0xff]  }
  0x48   :  { %16136 = vmatpush3.bf16.msra.mxu1 %v17920_v15  ;;  %16115 = vmatprep.subr.bf16.mxu0 %v17921_v16  ;;  %v2713_v52 = vcombine.high %v2703_v47, %v2703_v47  ;;  %v2710_v54 = vrot.slane %v2682_v49, %v19389_v35  ;;  %v17952_v0 = vld [vmem:[#allocation2 + $0x118] sm:$0xff]   ;;  %v17954_v2 = vld [vmem:[#allocation2 + $0x160] sm:$0xff]   ;;  %v17958_v6 = vld [vmem:[#allocation2 + $0x168] sm:$0xff]  }
  0x49   :  { %16137 = vmatprep.subr.bf16.mxu1 %v17922_v17  ;;  %11518 = vmatprep.mubr.bf16.mxu0 %v2703_v47  ;;  %v17953_v1 = vld [vmem:[#allocation2 + $0x198] sm:$0xff]   ;;  %v17955_v3 = vld [vmem:[#allocation2 + $0x1e0] sm:$0xff]   ;;  %v17959_v7 = vld [vmem:[#allocation2 + $0x1e8] sm:$0xff]  }
  0x4a   :  { %11558 = vmatprep.mubr.bf16.mxu1 %v2713_v52  ;;  %v2714_v57 = vcombine.high %v2710_v54, %v2710_v54  ;;  %v17956_v4 = vld [vmem:[#allocation2 + $0x120] sm:$0xff]   ;;  %v17960_v8 = vld [vmem:[#allocation2 + $0x128] sm:$0xff]   ;;  %v17962_v10 = vld [vmem:[#allocation2 + $0x170] sm:$0xff]  }
  0x4b   :  { %16116 = vmatpush3.bf16.msra.mxu0 %v17923_v18  ;;  %v17957_v5 = vld [vmem:[#allocation2 + $0x1a0] sm:$0xff]   ;;  %v17961_v9 = vld [vmem:[#allocation2 + $0x1a8] sm:$0xff]   ;;  %v17963_v11 = vld [vmem:[#allocation2 + $0x1f0] sm:$0xff]   ;;  %v2696_v18 = vrot.slane %v19397_v45, %v19389_v35 }
  0x4c   :  { %16138 = vmatpush3.bf16.msra.mxu1 %v17924_v19  ;;  %16117 = vmatprep.subr.bf16.mxu0 %v17925_v20  ;;  %v17964_v12 = vld [vmem:[#allocation2 + $0x130] sm:$0xff]   ;;  %v17966_v14 = vld [vmem:[#allocation2 + $0x178] sm:$0xff]   ;;  %v17970_v19 = vld [vmem:[#allocation2 + $0x240] sm:$0xff]  }
  0x4d   :  { %16139 = vmatprep.subr.bf16.mxu1 %v17926_v21  ;;  %v17965_v13 = vld [vmem:[#allocation2 + $0x1b0] sm:$0xff]   ;;  %v17967_v15 = vld [vmem:[#allocation2 + $0x1f8] sm:$0xff]   ;;  %v17971_v20 = vld [vmem:[#allocation2 + $0x2c0] sm:$0xff]   ;;  %v2712_v23 = vcombine.high %v2696_v18, %v2696_v18 }
  0x4e   :  { %v17968_v16 = vld [vmem:[#allocation2 + $0x138] sm:$0xff]   ;;  %v17972_v21 = vld [vmem:[#allocation2 + $0x200] sm:$0xff]   ;;  %v17974_v24 = vld [vmem:[#allocation2 + $0x248] sm:$0xff]  }
  0x4f   :  { %16118 = vmatpush3.bf16.msra.mxu0 %v17927_v25  ;;  %v17969_v17 = vld [vmem:[#allocation2 + $0x1b8] sm:$0xff]   ;;  %v17973_v22 = vld [vmem:[#allocation2 + $0x280] sm:$0xff]   ;;  %v17975_v25 = vld [vmem:[#allocation2 + $0x2c8] sm:$0xff]  }
  0x50   :  { %16140 = vmatpush3.bf16.msra.mxu1 %v17928_v26  ;;  %16119 = vmatprep.subr.bf16.mxu0 %v17929_v27  ;;  %v17976_v26 = vld [vmem:[#allocation2 + $0x208] sm:$0xff]   ;;  %v17979_v29 = vld [vmem:[#allocation2 + $0x2d0] sm:$0xff]   ;;  %v17987_v38 = vld [vmem:[#allocation2 + $0x2e0] sm:$0xff]  }
  0x51   :  { %16141 = vmatprep.subr.bf16.mxu1 %v17930_v28  ;;  %v17977_v27 = vld [vmem:[#allocation2 + $0x288] sm:$0xff]   ;;  %v17978_v28 = vld [vmem:[#allocation2 + $0x250] sm:$0xff]   ;;  %v17988_v39 = vld [vmem:[#allocation2 + $0x220] sm:$0xff]  }
  0x52   :  { %v17980_v30 = vld [vmem:[#allocation2 + $0x210] sm:$0xff]   ;;  %v17989_v40 = vld [vmem:[#allocation2 + $0x2a0] sm:$0xff]   ;;  %v17992_v43 = vld [vmem:[#allocation2 + $0x228] sm:$0xff]  }
  0x53   :  { %16120 = vmatpush3.bf16.msra.mxu0 %v17931_v31  ;;  %v17981_v31 = vld [vmem:[#allocation2 + $0x290] sm:$0xff]   ;;  %v17998_v49 = vld [vmem:[#allocation2 + $0x278] sm:$0xff]   ;;  %v60_v52 = vld [vmem:[%s19803_s0 + $0x8] sm:$0xff] }
  0x54   :  { %16142 = vmatpush3.bf16.msra.mxu1 %v17932_v32  ;;  %16121 = vmatprep.subr.bf16.mxu0 %v17933_v33  ;;  %v17982_v32 = vld [vmem:[#allocation2 + $0x258] sm:$0xff]   ;;  %v17994_v45 = vld [vmem:[#allocation2 + $0x270] sm:$0xff]  }
  0x55   :  { %16143 = vmatprep.subr.bf16.mxu1 %v17934_v34  ;;  %v17983_v33 = vld [vmem:[#allocation2 + $0x2d8] sm:$0xff]   ;;  %v17996_v47 = vld [vmem:[#allocation2 + $0x230] sm:$0xff]  }
  0x56   :  { %v17984_v34 = vld [vmem:[#allocation2 + $0x218] sm:$0xff]  }
  0x57   :  { %16122 = vmatpush3.bf16.msra.mxu0 %v17935_v36  ;;  %v17985_v36 = vld [vmem:[#allocation2 + $0x298] sm:$0xff]  }
  0x58   :  { %16144 = vmatpush3.bf16.msra.mxu1 %v17936_v37  ;;  %16151 = vmatprep.subr.bf16.mxu0 %v17938_v41  ;;  %v17986_v37 = vld [vmem:[#allocation2 + $0x260] sm:$0xff]   ;;  %v17990_v41 = vld [vmem:[#allocation2 + $0x268] sm:$0xff]  }
  0x59   :  { %16173 = vmatprep.subr.bf16.mxu1 %v17939_v42  ;;  %v17991_v42 = vld [vmem:[#allocation2 + $0x2e8] sm:$0xff]  }
  0x5a   :  { %11519 = vmatmul.mubr.bf16.vlgmr.msra.gmra.mrb[0].mxu0 %v2689_v44  ;;  %v17993_v44 = vld [vmem:[#allocation2 + $0x2a8] sm:$0xff]  }
  0x5b   :  { %16152 = vmatpush3.bf16.msra.mxu0 %v17940_v46  ;;  %11559 = vmatmul.mubr.bf16.vlgmr.msra.gmra.mrb[0].mxu1 %v2711_v50  ;;  %v17995_v46 = vld [vmem:[#allocation2 + $0x2f0] sm:$0xff]   ;;  %v17999_v50 = vld [vmem:[#allocation2 + $0x2f8] sm:$0xff]  }
  0x5c   :  { %16153 = vmatprep.subr.bf16.mxu0 %v17942_v51  ;;  %16174 = vmatpush3.bf16.msra.mxu1 %v17941_v48  ;;  %v17997_v48 = vld [vmem:[#allocation2 + $0x2b0] sm:$0xff]   ;;  %v18000_v51 = vld [vmem:[#allocation2 + $0x238] sm:$0xff]  }
  0x5d   :  { %11598 = vmatprep.mubr.bf16.mxu0 %v2710_v54  ;;  %16175 = vmatprep.subr.bf16.mxu1 %v17943_v53  ;;  %v18001_v53 = vld [vmem:[#allocation2 + $0x2b8] sm:$0xff]   ;;  %v2722_v54 = vrot.slane %v60_v52, %v19389_v35 }
  0x5e   :  { %11638 = vmatprep.mubr.bf16.mxu1 %v2714_v57 }
  0x5f   :  { %16154 = vmatpush3.bf16.msra.mxu0 %v17944_v55  ;;  %v2715_v55 = vcombine.high %v60_v52, %v60_v52  ;;  %v2730_v57 = vcombine.high %v2722_v54, %v2722_v54  ;;  %v18051_v52 = vld [vmem:[#allocation2 + $0x460] sm:$0xff]  }
  0x60   :  { %16155 = vmatprep.subr.bf16.mxu0 %v17946_v58  ;;  %16176 = vmatpush3.bf16.msra.mxu1 %v17945_v56  ;;  %v18002_v56 = vld [vmem:[#allocation2 + $0x340] sm:$0xff]   ;;  %v2738_v58 = vrot.slane %v2722_v54, %v19389_v35 }
  0x61   :  { %16177 = vmatprep.subr.bf16.mxu1 %v17947_v59  ;;  %v18003_v59 = vld [vmem:[#allocation2 + $0x3c0] sm:$0xff]  }
  0x62   :  { %v18053_v54 = vld [vmem:[#allocation2 + $0x420] sm:$0xff]  }
  0x63   :  { %16156 = vmatpush3.bf16.msra.mxu0 %v17948_v60  ;;  %v19411_v60 = vrot.slane %v2715_v55, %v19389_v35  ;;  %v18054_v55 = vld [vmem:[#allocation2 + $0x4a0] sm:$0xff]  }
  0x64   :  { %16157 = vmatprep.subr.bf16.mxu0 %v17950_v62  ;;  %16178 = vmatpush3.bf16.msra.mxu1 %v17949_v61  ;;  %v18004_v61 = vld [vmem:[#allocation2 + $0x300] sm:$0xff]   ;;  %v2752_v62 = vrot.slane %v2730_v57, %v19389_v35  ;;  %v18056_v57 = vld [vmem:[#allocation2 + $0x4e8] sm:$0xff]  }
  0x65   :  { %16179 = vmatprep.subr.bf16.mxu1 %v17951_v63  ;;  %v18005_v63 = vld [vmem:[#allocation2 + $0x380] sm:$0xff]  }
  0x67   :  { %16158 = vmatpush3.bf16.msra.mxu0 %v17952_v0  ;;  %v2731_v0 = vcombine.high %v19411_v60, %v19411_v60 }
  0x68   :  { %16159 = vmatprep.subr.bf16.mxu0 %v17954_v2  ;;  %16180 = vmatpush3.bf16.msra.mxu1 %v17953_v1  ;;  %v2760_v1 = vcombine.high %v2738_v58, %v2738_v58  ;;  %v18006_v2 = vld [vmem:[#allocation2 + $0x348] sm:$0xff]  }
  0x69   :  { %16181 = vmatprep.subr.bf16.mxu1 %v17955_v3  ;;  %v2762_v3 = vcombine.high %v2752_v62, %v2752_v62 }
  0x6b   :  { %16160 = vmatpush3.bf16.msra.mxu0 %v17956_v4  ;;  %v18007_v4 = vld [vmem:[#allocation2 + $0x3c8] sm:$0xff]  }
  0x6c   :  { %16161 = vmatprep.subr.bf16.mxu0 %v17958_v6  ;;  %16182 = vmatpush3.bf16.msra.mxu1 %v17957_v5  ;;  %v2759_v5 = vrot.slane %v2731_v0, %v19389_v35  ;;  %v18008_v6 = vld [vmem:[#allocation2 + $0x308] sm:$0xff]   ;;  %v18063_v0 = vld [vmem:[#allocation2 + $0x478] sm:$0xff]  }
  0x6d   :  { %16183 = vmatprep.subr.bf16.mxu1 %v17959_v7  ;;  %v18009_v7 = vld [vmem:[#allocation2 + $0x388] sm:$0xff]  }
  0x6f   :  { %16162 = vmatpush3.bf16.msra.mxu0 %v17960_v8  ;;  %v2763_v8 = vcombine.high %v2759_v5, %v2759_v5 }
  0x70   :  { %16163 = vmatprep.subr.bf16.mxu0 %v17962_v10  ;;  %16184 = vmatpush3.bf16.msra.mxu1 %v17961_v9  ;;  %v18010_v9 = vld [vmem:[#allocation2 + $0x350] sm:$0xff]  }
  0x71   :  { %16185 = vmatprep.subr.bf16.mxu1 %v17963_v11  ;;  %v18011_v10 = vld [vmem:[#allocation2 + $0x3d0] sm:$0xff]  }
  0x72   :  { %v18012_v11 = vld [vmem:[#allocation2 + $0x310] sm:$0xff]  }
  0x73   :  { %16164 = vmatpush3.bf16.msra.mxu0 %v17964_v12  ;;  %v18013_v12 = vld [vmem:[#allocation2 + $0x390] sm:$0xff]  }
  0x74   :  { %16165 = vmatprep.subr.bf16.mxu0 %v17966_v14  ;;  %16186 = vmatpush3.bf16.msra.mxu1 %v17965_v13  ;;  %v18014_v13 = vld [vmem:[#allocation2 + $0x358] sm:$0xff]  }
  0x75   :  { %16187 = vmatprep.subr.bf16.mxu1 %v17967_v15  ;;  %v18015_v14 = vld [vmem:[#allocation2 + $0x3d8] sm:$0xff]  }
  0x76   :  { %v18016_v15 = vld [vmem:[#allocation2 + $0x318] sm:$0xff]  }
  0x77   :  { %16166 = vmatpush3.bf16.msra.mxu0 %v17968_v16  ;;  %v18017_v16 = vld [vmem:[#allocation2 + $0x398] sm:$0xff]  }
  0x78   :  { %16195 = vmatprep.subr.bf16.mxu0 %v17970_v19  ;;  %16188 = vmatpush3.bf16.msra.mxu1 %v17969_v17  ;;  %v18018_v17 = vld [vmem:[#allocation2 + $0x360] sm:$0xff]  }
  0x79   :  { %16217 = vmatprep.subr.bf16.mxu1 %v17971_v20  ;;  %v18020_v19 = vld [vmem:[#allocation2 + $0x320] sm:$0xff]  }
  0x7a   :  { %11599 = vmatmul.mubr.bf16.vlgmr.msra.gmra.mrb[4].mxu0 %v2696_v18  ;;  %v18019_v18 = vld [vmem:[#allocation2 + $0x3e0] sm:$0xff]  }
  0x7b   :  { %16196 = vmatpush3.bf16.msra.mxu0 %v17972_v21  ;;  %11639 = vmatmul.mubr.bf16.vlgmr.msra.gmra.mrb[4].mxu1 %v2712_v23  ;;  %v18021_v20 = vld [vmem:[#allocation2 + $0x3a0] sm:$0xff]   ;;  %v18022_v21 = vld [vmem:[#allocation2 + $0x368] sm:$0xff]  }
  0x7c   :  { %16197 = vmatprep.subr.bf16.mxu0 %v17974_v24  ;;  %16218 = vmatpush3.bf16.msra.mxu1 %v17973_v22  ;;  %v18023_v22 = vld [vmem:[#allocation2 + $0x3e8] sm:$0xff]  }
  0x7d   :  { %16219 = vmatprep.subr.bf16.mxu1 %v17975_v25  ;;  %11678 = vmatprep.mubr.bf16.mxu0 %v2752_v62  ;;  %v18024_v23 = vld [vmem:[#allocation2 + $0x328] sm:$0xff]   ;;  %v18026_v25 = vld [vmem:[#allocation2 + $0x370] sm:$0xff]  }
  0x7e   :  { %11718 = vmatprep.mubr.bf16.mxu1 %v2762_v3  ;;  %v18025_v24 = vld [vmem:[#allocation2 + $0x3a8] sm:$0xff]   ;;  %v18061_v62 = vld [vmem:[#allocation2 + $0x430] sm:$0xff]  }
  0x7f   :  { %16198 = vmatpush3.bf16.msra.mxu0 %v17976_v26  ;;  %v18027_v26 = vld [vmem:[#allocation2 + $0x3f0] sm:$0xff]  }
  0x80   :  { %16199 = vmatprep.subr.bf16.mxu0 %v17978_v28  ;;  %16220 = vmatpush3.bf16.msra.mxu1 %v17977_v27  ;;  %v18028_v27 = vld [vmem:[#allocation2 + $0x330] sm:$0xff]  }
  0x81   :  { %16221 = vmatprep.subr.bf16.mxu1 %v17979_v29  ;;  %v18029_v28 = vld [vmem:[#allocation2 + $0x3b0] sm:$0xff]   ;;  %v18030_v29 = vld [vmem:[#allocation2 + $0x378] sm:$0xff]  }
  0x82   :  { %v61_v3 = vld [vmem:[%s19803_s0 + $0x10] sm:$0xff] }
  0x83   :  { %16200 = vmatpush3.bf16.msra.mxu0 %v17980_v30  ;;  %v18031_v30 = vld [vmem:[#allocation2 + $0x3f8] sm:$0xff]  }
  0x84   :  { %16201 = vmatprep.subr.bf16.mxu0 %v17982_v32  ;;  %16222 = vmatpush3.bf16.msra.mxu1 %v17981_v31  ;;  %v18032_v31 = vld [vmem:[#allocation2 + $0x338] sm:$0xff]  }
  0x85   :  { %16223 = vmatprep.subr.bf16.mxu1 %v17983_v33  ;;  %v18033_v32 = vld [vmem:[#allocation2 + $0x3b8] sm:$0xff]   ;;  %v2745_v33 = vrot.slane %v19411_v60, %v19389_v35  ;;  %v18059_v60 = vld [vmem:[#allocation2 + $0x470] sm:$0xff]  }
  0x87   :  { %16202 = vmatpush3.bf16.msra.mxu0 %v17984_v34  ;;  %v18035_v34 = vld [vmem:[#allocation2 + $0x440] sm:$0xff]  }
  0x88   :  { %16203 = vmatprep.subr.bf16.mxu0 %v17986_v37  ;;  %16224 = vmatpush3.bf16.msra.mxu1 %v17985_v36  ;;  %v18036_v36 = vld [vmem:[#allocation2 + $0x4c0] sm:$0xff]  }
  0x89   :  { %16225 = vmatprep.subr.bf16.mxu1 %v17987_v38  ;;  %v18037_v37 = vld [vmem:[#allocation2 + $0x400] sm:$0xff]  }
  0x8a   :  { %v18038_v38 = vld [vmem:[#allocation2 + $0x480] sm:$0xff]  }
  0x8b   :  { %16204 = vmatpush3.bf16.msra.mxu0 %v17988_v39  ;;  %v2761_v39 = vcombine.high %v2745_v33, %v2745_v33 }
  0x8c   :  { %16205 = vmatprep.subr.bf16.mxu0 %v17990_v41  ;;  %16226 = vmatpush3.bf16.msra.mxu1 %v17989_v40  ;;  %v18039_v40 = vld [vmem:[#allocation2 + $0x448] sm:$0xff]  }
  0x8d   :  { %16227 = vmatprep.subr.bf16.mxu1 %v17991_v42  ;;  %v18040_v41 = vld [vmem:[#allocation2 + $0x4c8] sm:$0xff]  }
  0x8e   :  { %v18041_v42 = vld [vmem:[#allocation2 + $0x408] sm:$0xff]  }
  0x8f   :  { %16206 = vmatpush3.bf16.msra.mxu0 %v17992_v43  ;;  %v18042_v43 = vld [vmem:[#allocation2 + $0x488] sm:$0xff]  }
  0x90   :  { %16207 = vmatprep.subr.bf16.mxu0 %v17994_v45  ;;  %16228 = vmatpush3.bf16.msra.mxu1 %v17993_v44  ;;  %v18043_v44 = vld [vmem:[#allocation2 + $0x450] sm:$0xff]  }
  0x91   :  { %16229 = vmatprep.subr.bf16.mxu1 %v17995_v46  ;;  %v18044_v45 = vld [vmem:[#allocation2 + $0x4d0] sm:$0xff]  }
  0x92   :  { %v18045_v46 = vld [vmem:[#allocation2 + $0x410] sm:$0xff]  }
  0x93   :  { %16208 = vmatpush3.bf16.msra.mxu0 %v17996_v47  ;;  %v18046_v47 = vld [vmem:[#allocation2 + $0x490] sm:$0xff]  }
  0x94   :  { %16209 = vmatprep.subr.bf16.mxu0 %v17998_v49  ;;  %16230 = vmatpush3.bf16.msra.mxu1 %v17997_v48  ;;  %v18047_v48 = vld [vmem:[#allocation2 + $0x458] sm:$0xff]  }
  0x95   :  { %16231 = vmatprep.subr.bf16.mxu1 %v17999_v50  ;;  %v18048_v49 = vld [vmem:[#allocation2 + $0x4d8] sm:$0xff]  }
  0x96   :  { %v18049_v50 = vld [vmem:[#allocation2 + $0x418] sm:$0xff]  }
  0x97   :  { %16210 = vmatpush3.bf16.msra.mxu0 %v18000_v51  ;;  %v18050_v51 = vld [vmem:[#allocation2 + $0x498] sm:$0xff]  }
  0x98   :  { %16239 = vmatprep.subr.bf16.mxu0 %v18002_v56  ;;  %16232 = vmatpush3.bf16.msra.mxu1 %v18001_v53  ;;  %v18052_v53 = vld [vmem:[#allocation2 + $0x4e0] sm:$0xff]   ;;  %v18055_v56 = vld [vmem:[#allocation2 + $0x468] sm:$0xff]  }
  0x99   :  { %16261 = vmatprep.subr.bf16.mxu1 %v18003_v59  ;;  %v18058_v59 = vld [vmem:[#allocation2 + $0x4a8] sm:$0xff]  }
  0x9a   :  { %11679 = vmatmul.mubr.bf16.vlgmr.msra.gmra.mrb[8].mxu0 %v2738_v58  ;;  %v18057_v58 = vld [vmem:[#allocation2 + $0x428] sm:$0xff]  }
  0x9b   :  { %16240 = vmatpush3.bf16.msra.mxu0 %v18004_v61  ;;  %11719 = vmatmul.mubr.bf16.vlgmr.msra.gmra.mrb[8].mxu1 %v2760_v1  ;;  %v18060_v61 = vld [vmem:[#allocation2 + $0x4f0] sm:$0xff]   ;;  %v18064_v1 = vld [vmem:[#allocation2 + $0x4f8] sm:$0xff]  }
  0x9c   :  { %16241 = vmatprep.subr.bf16.mxu0 %v18006_v2  ;;  %16262 = vmatpush3.bf16.msra.mxu1 %v18005_v63  ;;  %v18062_v63 = vld [vmem:[#allocation2 + $0x4b0] sm:$0xff]   ;;  %v18065_v2 = vld [vmem:[#allocation2 + $0x438] sm:$0xff]  }
  0x9d   :  { %11758 = vmatprep.mubr.bf16.mxu0 %v2759_v5  ;;  %16263 = vmatprep.subr.bf16.mxu1 %v18007_v4  ;;  %v18066_v4 = vld [vmem:[#allocation2 + $0x4b8] sm:$0xff]   ;;  %v2771_v5 = vrot.slane %v61_v3, %v19389_v35 }
  0x9e   :  { %11798 = vmatprep.mubr.bf16.mxu1 %v2763_v8 }
  0x9f   :  { %16242 = vmatpush3.bf16.msra.mxu0 %v18008_v6  ;;  %v2764_v6 = vcombine.high %v61_v3, %v61_v3  ;;  %v2779_v8 = vcombine.high %v2771_v5, %v2771_v5  ;;  %v18116_v3 = vld [vmem:[#allocation2 + $0x660] sm:$0xff]  }
  0xa0   :  { %16243 = vmatprep.subr.bf16.mxu0 %v18010_v9  ;;  %16264 = vmatpush3.bf16.msra.mxu1 %v18009_v7  ;;  %v18067_v7 = vld [vmem:[#allocation2 + $0x540] sm:$0xff]   ;;  %v2787_v9 = vrot.slane %v2771_v5, %v19389_v35 }
  0xa1   :  { %16265 = vmatprep.subr.bf16.mxu1 %v18011_v10  ;;  %v18068_v10 = vld [vmem:[#allocation2 + $0x5c0] sm:$0xff]  }
  0xa2   :  { %v18118_v5 = vld [vmem:[#allocation2 + $0x620] sm:$0xff]  }
  0xa3   :  { %16244 = vmatpush3.bf16.msra.mxu0 %v18012_v11  ;;  %v19425_v11 = vrot.slane %v2764_v6, %v19389_v35  ;;  %v18119_v6 = vld [vmem:[#allocation2 + $0x6a0] sm:$0xff]  }
  0xa4   :  { %16245 = vmatprep.subr.bf16.mxu0 %v18014_v13  ;;  %16266 = vmatpush3.bf16.msra.mxu1 %v18013_v12  ;;  %v18069_v12 = vld [vmem:[#allocation2 + $0x500] sm:$0xff]   ;;  %v2801_v13 = vrot.slane %v2779_v8, %v19389_v35  ;;  %v18121_v8 = vld [vmem:[#allocation2 + $0x6e8] sm:$0xff]  }
  0xa5   :  { %16267 = vmatprep.subr.bf16.mxu1 %v18015_v14  ;;  %v18070_v14 = vld [vmem:[#allocation2 + $0x580] sm:$0xff]  }
  0xa7   :  { %16246 = vmatpush3.bf16.msra.mxu0 %v18016_v15  ;;  %v2780_v15 = vcombine.high %v19425_v11, %v19425_v11 }
  0xa8   :  { %16247 = vmatprep.subr.bf16.mxu0 %v18018_v17  ;;  %16268 = vmatpush3.bf16.msra.mxu1 %v18017_v16  ;;  %v2809_v16 = vcombine.high %v2787_v9, %v2787_v9  ;;  %v18071_v17 = vld [vmem:[#allocation2 + $0x548] sm:$0xff]  }
  0xa9   :  { %16269 = vmatprep.subr.bf16.mxu1 %v18019_v18  ;;  %v2811_v18 = vcombine.high %v2801_v13, %v2801_v13 }
  0xab   :  { %16248 = vmatpush3.bf16.msra.mxu0 %v18020_v19  ;;  %v18072_v19 = vld [vmem:[#allocation2 + $0x5c8] sm:$0xff]  }
  0xac   :  { %16249 = vmatprep.subr.bf16.mxu0 %v18022_v21  ;;  %16270 = vmatpush3.bf16.msra.mxu1 %v18021_v20  ;;  %v2808_v20 = vrot.slane %v2780_v15, %v19389_v35  ;;  %v18073_v21 = vld [vmem:[#allocation2 + $0x508] sm:$0xff]   ;;  %v18128_v15 = vld [vmem:[#allocation2 + $0x678] sm:$0xff]  }
  0xad   :  { %16271 = vmatprep.subr.bf16.mxu1 %v18023_v22  ;;  %v18074_v22 = vld [vmem:[#allocation2 + $0x588] sm:$0xff]  }
  0xaf   :  { %16250 = vmatpush3.bf16.msra.mxu0 %v18024_v23  ;;  %v2812_v23 = vcombine.high %v2808_v20, %v2808_v20 }
  0xb0   :  { %16251 = vmatprep.subr.bf16.mxu0 %v18026_v25  ;;  %16272 = vmatpush3.bf16.msra.mxu1 %v18025_v24  ;;  %v18075_v24 = vld [vmem:[#allocation2 + $0x550] sm:$0xff]  }
  0xb1   :  { %16273 = vmatprep.subr.bf16.mxu1 %v18027_v26  ;;  %v18076_v25 = vld [vmem:[#allocation2 + $0x5d0] sm:$0xff]  }
  0xb2   :  { %v18077_v26 = vld [vmem:[#allocation2 + $0x510] sm:$0xff]  }
  0xb3   :  { %16252 = vmatpush3.bf16.msra.mxu0 %v18028_v27  ;;  %v18078_v27 = vld [vmem:[#allocation2 + $0x590] sm:$0xff]  }
  0xb4   :  { %16253 = vmatprep.subr.bf16.mxu0 %v18030_v29  ;;  %16274 = vmatpush3.bf16.msra.mxu1 %v18029_v28  ;;  %v18079_v28 = vld [vmem:[#allocation2 + $0x558] sm:$0xff]  }
  0xb5   :  { %16275 = vmatprep.subr.bf16.mxu1 %v18031_v30  ;;  %v18080_v29 = vld [vmem:[#allocation2 + $0x5d8] sm:$0xff]  }
  0xb6   :  { %v18081_v30 = vld [vmem:[#allocation2 + $0x518] sm:$0xff]  }
  0xb7   :  { %16254 = vmatpush3.bf16.msra.mxu0 %v18032_v31  ;;  %v18082_v31 = vld [vmem:[#allocation2 + $0x598] sm:$0xff]  }
  0xb8   :  { %16283 = vmatprep.subr.bf16.mxu0 %v18035_v34  ;;  %16276 = vmatpush3.bf16.msra.mxu1 %v18033_v32  ;;  %v18083_v32 = vld [vmem:[#allocation2 + $0x560] sm:$0xff]  }
  0xb9   :  { %16305 = vmatprep.subr.bf16.mxu1 %v18036_v36  ;;  %v18085_v34 = vld [vmem:[#allocation2 + $0x520] sm:$0xff]  }
  0xba   :  { %11759 = vmatmul.mubr.bf16.vlgmr.msra.gmra.mrb[12].mxu0 %v2745_v33  ;;  %v18084_v33 = vld [vmem:[#allocation2 + $0x5e0] sm:$0xff]  }
  0xbb   :  { %16284 = vmatpush3.bf16.msra.mxu0 %v18037_v37  ;;  %11799 = vmatmul.mubr.bf16.vlgmr.msra.gmra.mrb[12].mxu1 %v2761_v39  ;;  %v18086_v36 = vld [vmem:[#allocation2 + $0x5a0] sm:$0xff]   ;;  %v18087_v37 = vld [vmem:[#allocation2 + $0x568] sm:$0xff]  }
  0xbc   :  { %16285 = vmatprep.subr.bf16.mxu0 %v18039_v40  ;;  %16306 = vmatpush3.bf16.msra.mxu1 %v18038_v38  ;;  %v18088_v38 = vld [vmem:[#allocation2 + $0x5e8] sm:$0xff]  }
  0xbd   :  { %16307 = vmatprep.subr.bf16.mxu1 %v18040_v41  ;;  %11838 = vmatprep.mubr.bf16.mxu0 %v2801_v13  ;;  %v18089_v39 = vld [vmem:[#allocation2 + $0x528] sm:$0xff]   ;;  %v18091_v41 = vld [vmem:[#allocation2 + $0x570] sm:$0xff]  }
  0xbe   :  { %11878 = vmatprep.mubr.bf16.mxu1 %v2811_v18  ;;  %v18090_v40 = vld [vmem:[#allocation2 + $0x5a8] sm:$0xff]   ;;  %v18126_v13 = vld [vmem:[#allocation2 + $0x630] sm:$0xff]   ;;  %v62_v18 = vld [vmem:[%s19803_s0 + $0x18] sm:$0xff] }
  0xbf   :  { %16286 = vmatpush3.bf16.msra.mxu0 %v18041_v42  ;;  %v18092_v42 = vld [vmem:[#allocation2 + $0x5f0] sm:$0xff]  }
  0xc0   :  { %16287 = vmatprep.subr.bf16.mxu0 %v18043_v44  ;;  %16308 = vmatpush3.bf16.msra.mxu1 %v18042_v43  ;;  %v18093_v43 = vld [vmem:[#allocation2 + $0x530] sm:$0xff]  }
  0xc1   :  { %16309 = vmatprep.subr.bf16.mxu1 %v18044_v45  ;;  %v18094_v44 = vld [vmem:[#allocation2 + $0x5b0] sm:$0xff]   ;;  %v18095_v45 = vld [vmem:[#allocation2 + $0x578] sm:$0xff]  }
  0xc3   :  { %16288 = vmatpush3.bf16.msra.mxu0 %v18045_v46  ;;  %v18096_v46 = vld [vmem:[#allocation2 + $0x5f8] sm:$0xff]  }
  0xc4   :  { %16289 = vmatprep.subr.bf16.mxu0 %v18047_v48  ;;  %16310 = vmatpush3.bf16.msra.mxu1 %v18046_v47  ;;  %v18097_v47 = vld [vmem:[#allocation2 + $0x538] sm:$0xff]  }
  0xc5   :  { %16311 = vmatprep.subr.bf16.mxu1 %v18048_v49  ;;  %v18098_v48 = vld [vmem:[#allocation2 + $0x5b8] sm:$0xff]   ;;  %v2794_v49 = vrot.slane %v19425_v11, %v19389_v35  ;;  %v18124_v11 = vld [vmem:[#allocation2 + $0x670] sm:$0xff]  }
  0xc7   :  { %16290 = vmatpush3.bf16.msra.mxu0 %v18049_v50  ;;  %v18100_v50 = vld [vmem:[#allocation2 + $0x640] sm:$0xff]  }
  0xc8   :  { %16291 = vmatprep.subr.bf16.mxu0 %v18051_v52  ;;  %16312 = vmatpush3.bf16.msra.mxu1 %v18050_v51  ;;  %v18101_v51 = vld [vmem:[#allocation2 + $0x6c0] sm:$0xff]  }
  0xc9   :  { %16313 = vmatprep.subr.bf16.mxu1 %v18052_v53  ;;  %v18102_v52 = vld [vmem:[#allocation2 + $0x600] sm:$0xff]  }
  0xca   :  { %v18103_v53 = vld [vmem:[#allocation2 + $0x680] sm:$0xff]  }
  0xcb   :  { %16292 = vmatpush3.bf16.msra.mxu0 %v18053_v54  ;;  %v2810_v54 = vcombine.high %v2794_v49, %v2794_v49 }
  0xcc   :  { %16293 = vmatprep.subr.bf16.mxu0 %v18055_v56  ;;  %16314 = vmatpush3.bf16.msra.mxu1 %v18054_v55  ;;  %v18104_v55 = vld [vmem:[#allocation2 + $0x648] sm:$0xff]  }
  0xcd   :  { %16315 = vmatprep.subr.bf16.mxu1 %v18056_v57  ;;  %v18105_v56 = vld [vmem:[#allocation2 + $0x6c8] sm:$0xff]  }
  0xce   :  { %v18106_v57 = vld [vmem:[#allocation2 + $0x608] sm:$0xff]  }
  0xcf   :  { %16294 = vmatpush3.bf16.msra.mxu0 %v18057_v58  ;;  %v18107_v58 = vld [vmem:[#allocation2 + $0x688] sm:$0xff]  }
  0xd0   :  { %16295 = vmatprep.subr.bf16.mxu0 %v18059_v60  ;;  %16316 = vmatpush3.bf16.msra.mxu1 %v18058_v59  ;;  %v18108_v59 = vld [vmem:[#allocation2 + $0x650] sm:$0xff]  }
  0xd1   :  { %16317 = vmatprep.subr.bf16.mxu1 %v18060_v61  ;;  %v18109_v60 = vld [vmem:[#allocation2 + $0x6d0] sm:$0xff]  }
  0xd2   :  { %v18110_v61 = vld [vmem:[#allocation2 + $0x610] sm:$0xff]  }
  0xd3   :  { %16296 = vmatpush3.bf16.msra.mxu0 %v18061_v62  ;;  %v18111_v62 = vld [vmem:[#allocation2 + $0x690] sm:$0xff]  }
  0xd4   :  { %16297 = vmatprep.subr.bf16.mxu0 %v18063_v0  ;;  %16318 = vmatpush3.bf16.msra.mxu1 %v18062_v63  ;;  %v18112_v63 = vld [vmem:[#allocation2 + $0x658] sm:$0xff]  }
  0xd5   :  { %16319 = vmatprep.subr.bf16.mxu1 %v18064_v1  ;;  %v18113_v0 = vld [vmem:[#allocation2 + $0x6d8] sm:$0xff]  }
  0xd6   :  { %v18114_v1 = vld [vmem:[#allocation2 + $0x618] sm:$0xff]  }
  0xd7   :  { %16298 = vmatpush3.bf16.msra.mxu0 %v18065_v2  ;;  %v18115_v2 = vld [vmem:[#allocation2 + $0x698] sm:$0xff]  }
  0xd8   :  { %16327 = vmatprep.subr.bf16.mxu0 %v18067_v7  ;;  %16320 = vmatpush3.bf16.msra.mxu1 %v18066_v4  ;;  %v18117_v4 = vld [vmem:[#allocation2 + $0x6e0] sm:$0xff]   ;;  %v18120_v7 = vld [vmem:[#allocation2 + $0x668] sm:$0xff]  }
  0xd9   :  { %16349 = vmatprep.subr.bf16.mxu1 %v18068_v10  ;;  %v18123_v10 = vld [vmem:[#allocation2 + $0x6a8] sm:$0xff]  }
  0xda   :  { %11839 = vmatmul.mubr.bf16.vlgmr.msra.gmra.mrb[16].mxu0 %v2787_v9  ;;  %v18122_v9 = vld [vmem:[#allocation2 + $0x628] sm:$0xff]  }
  0xdb   :  { %16328 = vmatpush3.bf16.msra.mxu0 %v18069_v12  ;;  %11879 = vmatmul.mubr.bf16.vlgmr.msra.gmra.mrb[16].mxu1 %v2809_v16  ;;  %v18125_v12 = vld [vmem:[#allocation2 + $0x6f0] sm:$0xff]   ;;  %v18129_v16 = vld [vmem:[#allocation2 + $0x6f8] sm:$0xff]  }
  0xdc   :  { %16329 = vmatprep.subr.bf16.mxu0 %v18071_v17  ;;  %16350 = vmatpush3.bf16.msra.mxu1 %v18070_v14  ;;  %v18127_v14 = vld [vmem:[#allocation2 + $0x6b0] sm:$0xff]   ;;  %v18130_v17 = vld [vmem:[#allocation2 + $0x638] sm:$0xff]  }
  0xdd   :  { %11918 = vmatprep.mubr.bf16.mxu0 %v2808_v20  ;;  %16351 = vmatprep.subr.bf16.mxu1 %v18072_v19  ;;  %v2820_v19 = vrot.slane %v62_v18, %v19389_v35  ;;  %v18132_v20 = vld [vmem:[#allocation2 + $0x740] sm:$0xff]  }
  0xde   :  { %11958 = vmatprep.mubr.bf16.mxu1 %v2812_v23 }
  0xdf   :  { %16330 = vmatpush3.bf16.msra.mxu0 %v18073_v21  ;;  %v2813_v21 = vcombine.high %v62_v18, %v62_v18  ;;  %v2828_v23 = vcombine.high %v2820_v19, %v2820_v19 }
  0xe0   :  { %16331 = vmatprep.subr.bf16.mxu0 %v18075_v24  ;;  %16352 = vmatpush3.bf16.msra.mxu1 %v18074_v22  ;;  %v18131_v22 = vld [vmem:[#allocation2 + $0x6b8] sm:$0xff]   ;;  %v2836_v24 = vrot.slane %v2820_v19, %v19389_v35  ;;  %v18169_v19 = vld [vmem:[#allocation2 + $0x848] sm:$0xff]  }
  0xe1   :  { %16353 = vmatprep.subr.bf16.mxu1 %v18076_v25  ;;  %v18133_v25 = vld [vmem:[#allocation2 + $0x7c0] sm:$0xff]  }
  0xe3   :  { %16332 = vmatpush3.bf16.msra.mxu0 %v18077_v26  ;;  %v19439_v26 = vrot.slane %v2813_v21, %v19389_v35  ;;  %v18171_v21 = vld [vmem:[#allocation2 + $0x808] sm:$0xff]  }
  0xe4   :  { %16333 = vmatprep.subr.bf16.mxu0 %v18079_v28  ;;  %16354 = vmatpush3.bf16.msra.mxu1 %v18078_v27  ;;  %v2850_v27 = vrot.slane %v2828_v23, %v19389_v35  ;;  %v18134_v28 = vld [vmem:[#allocation2 + $0x700] sm:$0xff]   ;;  %v18173_v23 = vld [vmem:[#allocation2 + $0x850] sm:$0xff]  }
  0xe5   :  { %16355 = vmatprep.subr.bf16.mxu1 %v18080_v29  ;;  %v2829_v29 = vcombine.high %v19439_v26, %v19439_v26 }
  0xe7   :  { %16334 = vmatpush3.bf16.msra.mxu0 %v18081_v30  ;;  %v2858_v30 = vcombine.high %v2836_v24, %v2836_v24 }
  0xe8   :  { %16335 = vmatprep.subr.bf16.mxu0 %v18083_v32  ;;  %16356 = vmatpush3.bf16.msra.mxu1 %v18082_v31  ;;  %v18136_v31 = vld [vmem:[#allocation2 + $0x748] sm:$0xff]   ;;  %v2860_v32 = vcombine.high %v2850_v27, %v2850_v27 }
  0xe9   :  { %16357 = vmatprep.subr.bf16.mxu1 %v18084_v33  ;;  %v18135_v33 = vld [vmem:[#allocation2 + $0x780] sm:$0xff]  }
  0xeb   :  { %16336 = vmatpush3.bf16.msra.mxu0 %v18085_v34  ;;  %v2857_v34 = vrot.slane %v2829_v29, %v19389_v35  ;;  %v18179_v29 = vld [vmem:[#allocation2 + $0x818] sm:$0xff]  }
  0xec   :  { %16337 = vmatprep.subr.bf16.mxu0 %v18087_v37  ;;  %16358 = vmatpush3.bf16.msra.mxu1 %v18086_v36  ;;  %v18137_v36 = vld [vmem:[#allocation2 + $0x7c8] sm:$0xff]  }
  0xed   :  { %16359 = vmatprep.subr.bf16.mxu1 %v18088_v38  ;;  %v18138_v37 = vld [vmem:[#allocation2 + $0x708] sm:$0xff]   ;;  %v2861_v38 = vcombine.high %v2857_v34, %v2857_v34 }
  0xef   :  { %16338 = vmatpush3.bf16.msra.mxu0 %v18089_v39  ;;  %v18140_v39 = vld [vmem:[#allocation2 + $0x750] sm:$0xff]  }
  0xf0   :  { %16339 = vmatprep.subr.bf16.mxu0 %v18091_v41  ;;  %16360 = vmatpush3.bf16.msra.mxu1 %v18090_v40  ;;  %v18139_v40 = vld [vmem:[#allocation2 + $0x788] sm:$0xff]   ;;  %v18141_v41 = vld [vmem:[#allocation2 + $0x7d0] sm:$0xff]  }
  0xf1   :  { %16361 = vmatprep.subr.bf16.mxu1 %v18092_v42  ;;  %v18142_v42 = vld [vmem:[#allocation2 + $0x710] sm:$0xff]  }
  0xf3   :  { %16340 = vmatpush3.bf16.msra.mxu0 %v18093_v43  ;;  %v18144_v43 = vld [vmem:[#allocation2 + $0x758] sm:$0xff]  }
  0xf4   :  { %16341 = vmatprep.subr.bf16.mxu0 %v18095_v45  ;;  %16362 = vmatpush3.bf16.msra.mxu1 %v18094_v44  ;;  %v18143_v44 = vld [vmem:[#allocation2 + $0x790] sm:$0xff]   ;;  %v18145_v45 = vld [vmem:[#allocation2 + $0x7d8] sm:$0xff]  }
  0xf5   :  { %16363 = vmatprep.subr.bf16.mxu1 %v18096_v46  ;;  %v18146_v46 = vld [vmem:[#allocation2 + $0x718] sm:$0xff]  }
  0xf7   :  { %16342 = vmatpush3.bf16.msra.mxu0 %v18097_v47  ;;  %v18148_v47 = vld [vmem:[#allocation2 + $0x760] sm:$0xff]  }
  0xf8   :  { %16371 = vmatprep.subr.bf16.mxu0 %v18100_v50  ;;  %16364 = vmatpush3.bf16.msra.mxu1 %v18098_v48  ;;  %v18147_v48 = vld [vmem:[#allocation2 + $0x798] sm:$0xff]   ;;  %v18150_v50 = vld [vmem:[#allocation2 + $0x720] sm:$0xff]  }
  0xf9   :  { %16393 = vmatprep.subr.bf16.mxu1 %v18101_v51  ;;  %v18152_v51 = vld [vmem:[#allocation2 + $0x768] sm:$0xff]  }
  0xfa   :  { %11919 = vmatmul.mubr.bf16.vlgmr.msra.gmra.mrb[20].mxu0 %v2794_v49  ;;  %v18149_v49 = vld [vmem:[#allocation2 + $0x7e0] sm:$0xff]  }
  0xfb   :  { %16372 = vmatpush3.bf16.msra.mxu0 %v18102_v52  ;;  %11959 = vmatmul.mubr.bf16.vlgmr.msra.gmra.mrb[20].mxu1 %v2810_v54  ;;  %v18151_v52 = vld [vmem:[#allocation2 + $0x7a0] sm:$0xff]  }
  0xfc   :  { %16373 = vmatprep.subr.bf16.mxu0 %v18104_v55  ;;  %16394 = vmatpush3.bf16.msra.mxu1 %v18103_v53  ;;  %v18153_v53 = vld [vmem:[#allocation2 + $0x7e8] sm:$0xff]   ;;  %v14817_v54 = vld [vmem:[#allocation5] ss:$0 sm:$0xff] }
  0xfd   :  { %16395 = vmatprep.subr.bf16.mxu1 %v18105_v56  ;;  %11998 = vmatprep.mubr.bf16.mxu0 %v2850_v27  ;;  %v18154_v55 = vld [vmem:[#allocation2 + $0x728] sm:$0xff]   ;;  %v18177_v27 = vld [vmem:[#allocation2 + $0x858] sm:$0xff]  }
  0xfe   :  { %12038 = vmatprep.mubr.bf16.mxu1 %v2860_v32  ;;  %v18182_v32 = vld [vmem:[#allocation2 + $0x8e0] sm:$0xff]  }
  0xff   :  { %16374 = vmatpush3.bf16.msra.mxu0 %v18106_v57  ;;  %v18156_v57 = vld [vmem:[#allocation2 + $0x770] sm:$0xff]  }
 0x100   :  { %16375 = vmatprep.subr.bf16.mxu0 %v18108_v59  ;;  %16396 = vmatpush3.bf16.msra.mxu1 %v18107_v58  ;;  %v18155_v59 = vld [vmem:[#allocation2 + $0x7a8] sm:$0xff]  }
 0x101   :  { %16397 = vmatprep.subr.bf16.mxu1 %v18109_v60 }
 0x103   :  { %16376 = vmatpush3.bf16.msra.mxu0 %v18110_v61 }
 0x104   :  { %16377 = vmatprep.subr.bf16.mxu0 %v18112_v63  ;;  %16398 = vmatpush3.bf16.msra.mxu1 %v18111_v62  ;;  %v18157_v63 = vld [vmem:[#allocation2 + $0x7f0] sm:$0xff]  }
 0x105   :  { %16399 = vmatprep.subr.bf16.mxu1 %v18113_v0  ;;  %v18158_v0 = vld [vmem:[#allocation2 + $0x730] sm:$0xff]  }
 0x107   :  { %16378 = vmatpush3.bf16.msra.mxu0 %v18114_v1 }
 0x108   :  { %16379 = vmatprep.subr.bf16.mxu0 %v18116_v3  ;;  %16400 = vmatpush3.bf16.msra.mxu1 %v18115_v2  ;;  %v18159_v3 = vld [vmem:[#allocation2 + $0x7b0] sm:$0xff]  }
 0x109   :  { %16401 = vmatprep.subr.bf16.mxu1 %v18117_v4 }
 0x10b   :  { %16380 = vmatpush3.bf16.msra.mxu0 %v18118_v5 }
 0x10c   :  { %16381 = vmatprep.subr.bf16.mxu0 %v18120_v7  ;;  %16402 = vmatpush3.bf16.msra.mxu1 %v18119_v6  ;;  %v18160_v7 = vld [vmem:[#allocation2 + $0x778] sm:$0xff]  }
 0x10d   :  { %16403 = vmatprep.subr.bf16.mxu1 %v18121_v8 }
 0x10f   :  { %16382 = vmatpush3.bf16.msra.mxu0 %v18122_v9  ;;  %v18161_v9 = vld [vmem:[#allocation2 + $0x7f8] sm:$0xff]  }
 0x110   :  { %16383 = vmatprep.subr.bf16.mxu0 %v18124_v11  ;;  %16404 = vmatpush3.bf16.msra.mxu1 %v18123_v10  ;;  %v18162_v11 = vld [vmem:[#allocation2 + $0x738] sm:$0xff]  }
 0x111   :  { %16405 = vmatprep.subr.bf16.mxu1 %v18125_v12  ;;  %v18163_v12 = vld [vmem:[#allocation2 + $0x7b8] sm:$0xff]  }
 0x113   :  { %16384 = vmatpush3.bf16.msra.mxu0 %v18126_v13  ;;  %v2843_v13 = vrot.slane %v19439_v26, %v19389_v35  ;;  %v18176_v26 = vld [vmem:[#allocation2 + $0x890] sm:$0xff]  }
 0x114   :  { %16385 = vmatprep.subr.bf16.mxu0 %v18128_v15  ;;  %16406 = vmatpush3.bf16.msra.mxu1 %v18127_v14  ;;  %v18165_v14 = vld [vmem:[#allocation2 + $0x840] sm:$0xff]  }
 0x115   :  { %16407 = vmatprep.subr.bf16.mxu1 %v18129_v16  ;;  %v18166_v15 = vld [vmem:[#allocation2 + $0x8c0] sm:$0xff]   ;;  %v2859_v18 = vcombine.high %v2843_v13, %v2843_v13 }
 0x116   :  { %v18167_v16 = vld [vmem:[#allocation2 + $0x800] sm:$0xff]  }
 0x117   :  { %16386 = vmatpush3.bf16.msra.mxu0 %v18130_v17  ;;  %v18168_v17 = vld [vmem:[#allocation2 + $0x880] sm:$0xff]  }
 0x118   :  { %16415 = vmatprep.subr.bf16.mxu0 %v18132_v20  ;;  %16408 = vmatpush3.bf16.msra.mxu1 %v18131_v22  ;;  %v18170_v20 = vld [vmem:[#allocation2 + $0x8c8] sm:$0xff]  }
 0x119   :  { %16437 = vmatprep.subr.bf16.mxu1 %v18133_v25  ;;  %v18172_v22 = vld [vmem:[#allocation2 + $0x888] sm:$0xff]   ;;  %v18175_v25 = vld [vmem:[#allocation2 + $0x810] sm:$0xff]  }
 0x11a   :  { %11999 = vmatmul.mubr.bf16.vlgmr.msra.gmra.mrb[24].mxu0 %v2836_v24  ;;  %v18174_v24 = vld [vmem:[#allocation2 + $0x8d0] sm:$0xff]  }
 0x11b   :  { %16416 = vmatpush3.bf16.msra.mxu0 %v18134_v28  ;;  %12039 = vmatmul.mubr.bf16.vlgmr.msra.gmra.mrb[24].mxu1 %v2858_v30  ;;  %v18178_v28 = vld [vmem:[#allocation2 + $0x8d8] sm:$0xff]  }
 0x11c   :  { %16417 = vmatprep.subr.bf16.mxu0 %v18136_v31  ;;  %16438 = vmatpush3.bf16.msra.mxu1 %v18135_v33  ;;  %v18180_v30 = vld [vmem:[#allocation2 + $0x898] sm:$0xff]   ;;  %v18181_v31 = vld [vmem:[#allocation2 + $0x860] sm:$0xff]  }
 0x11d   :  { %12078 = vmatprep.mubr.bf16.mxu0 %v2857_v34  ;;  %16439 = vmatprep.subr.bf16.mxu1 %v18137_v36  ;;  %v18183_v33 = vld [vmem:[#allocation2 + $0x820] sm:$0xff]   ;;  %v18185_v36 = vld [vmem:[#allocation2 + $0x868] sm:$0xff]  }
 0x11e   :  { %12118 = vmatprep.mubr.bf16.mxu1 %v2861_v38  ;;  %v18184_v34 = vld [vmem:[#allocation2 + $0x8a0] sm:$0xff]   ;;  %v18187_v38 = vld [vmem:[#allocation2 + $0x828] sm:$0xff]  }
 0x11f   :  { %16418 = vmatpush3.bf16.msra.mxu0 %v18138_v37  ;;  %v18186_v37 = vld [vmem:[#allocation2 + $0x8e8] sm:$0xff]  }
 0x120   :  { %16419 = vmatprep.subr.bf16.mxu0 %v18140_v39  ;;  %16440 = vmatpush3.bf16.msra.mxu1 %v18139_v40  ;;  %v18188_v39 = vld [vmem:[#allocation2 + $0x8a8] sm:$0xff]  }
 0x121   :  { %16441 = vmatprep.subr.bf16.mxu1 %v18141_v41  ;;  %v18189_v41 = vld [vmem:[#allocation2 + $0x870] sm:$0xff]  }
 0x123   :  { %16420 = vmatpush3.bf16.msra.mxu0 %v18142_v42 }
 0x124   :  { %16421 = vmatprep.subr.bf16.mxu0 %v18144_v43  ;;  %16442 = vmatpush3.bf16.msra.mxu1 %v18143_v44  ;;  %v18190_v43 = vld [vmem:[#allocation2 + $0x8f0] sm:$0xff]  }
 0x125   :  { %16443 = vmatprep.subr.bf16.mxu1 %v18145_v45 }
 0x127   :  { %16422 = vmatpush3.bf16.msra.mxu0 %v18146_v46 }
 0x128   :  { %16423 = vmatprep.subr.bf16.mxu0 %v18148_v47  ;;  %16444 = vmatpush3.bf16.msra.mxu1 %v18147_v48 }
 0x129   :  { %16445 = vmatprep.subr.bf16.mxu1 %v18149_v49  ;;  %v18191_v49 = vld [vmem:[#allocation2 + $0x830] sm:$0xff]  }
 0x12b   :  { %16424 = vmatpush3.bf16.msra.mxu0 %v18150_v50  ;;  %v18192_v50 = vld [vmem:[#allocation2 + $0x8b0] sm:$0xff]  }
 0x12c   :  { %16425 = vmatprep.subr.bf16.mxu0 %v18152_v51  ;;  %16446 = vmatpush3.bf16.msra.mxu1 %v18151_v52 }
 0x12d   :  { %v16123_v56 = vpop.f32.mrb[0].mxu0  ;;  %16447 = vmatprep.subr.bf16.mxu1 %v18153_v53 }
 0x12e   :  { %v16124_v58 = vpop.f32.mrb[1].mxu0  ;;  %v16145_v60 = vpop.f32.mrb[0].mxu1 }
 0x12f   :  { %v16125_v61 = vadd.f32 %v16124_v58, %v16123_v56  ;;  %v16126_v62 = vpop.f32.mrb[2].mxu0  ;;  %v16146_v1 = vpop.f32.mrb[1].mxu1  ;;  %16426 = vmatpush3.bf16.msra.mxu0 %v18154_v55  ;;  %v18194_v56 = vld [vmem:[#allocation2 + $0x8f8] sm:$0xff]  }
 0x130   :  { %v16127_v2 = vpop.f32.mrb[3].mxu0  ;;  %v16147_v5 = vadd.f32 %v16146_v1, %v16145_v60  ;;  %v16148_v6 = vpop.f32.mrb[2].mxu1  ;;  %16427 = vmatprep.subr.bf16.mxu0 %v18156_v57  ;;  %16448 = vmatpush3.bf16.msra.mxu1 %v18155_v59  ;;  %v18195_v58 = vld [vmem:[#allocation2 + $0x838] sm:$0xff]   ;;  %v63_v59 = vld [vmem:[%s19803_s0 + $0x20] sm:$0xff] }
 0x131   :  { %v11521_v4 = vadd.f32 %v16125_v61, %v14817_v54  ;;  %v16149_v8 = vpop.f32.mrb[3].mxu1  ;;  %16449 = vmatprep.subr.bf16.mxu1 %v18157_v63  ;;  %v18193_v54 = vld [vmem:[#allocation2 + $0x878] sm:$0xff]   ;;  %v2869_v60 = vrot.slane %v63_v59, %v19389_v35  ;;  %v18197_v61 = vld [vmem:[#allocation2 + $0x940] sm:$0xff]   ;;  %v2862_v62 = vcombine.high %v63_v59, %v63_v59  ;;  %v18234_v59 = vld [vmem:[#allocation2 + $0xa48] sm:$0xff]  }
 0x132   :  { %v18196_v63 = vld [vmem:[#allocation2 + $0x8b8] sm:$0xff]   ;;  %v18198_v2 = vld [vmem:[#allocation2 + $0x9c0] sm:$0xff]  }
 0x133   :  { %v19445_v10 = vadd.f32 %v16147_v5, %v11521_v4  ;;  %16428 = vmatpush3.bf16.msra.mxu0 %v18158_v0  ;;  %v2877_v0 = vcombine.high %v2869_v60, %v2869_v60  ;;  %v2885_v1 = vrot.slane %v2869_v60, %v19389_v35  ;;  %v18199_v4 = vld [vmem:[#allocation2 + $0x900] sm:$0xff]   ;;  %v18235_v60 = vld [vmem:[#allocation2 + $0xac8] sm:$0xff]  }
 0x134   :  { %16429 = vmatprep.subr.bf16.mxu0 %v18160_v7  ;;  %16450 = vmatpush3.bf16.msra.mxu1 %v18159_v3  ;;  %v19458_v3 = vrot.slane %v2862_v62, %v19389_v35  ;;  %v18200_v6 = vld [vmem:[#allocation2 + $0x980] sm:$0xff]   ;;  %v18237_v62 = vld [vmem:[#allocation2 + $0xa88] sm:$0xff]  }
 0x135   :  { %16451 = vmatprep.subr.bf16.mxu1 %v18161_v9  ;;  %v2899_v5 = vrot.slane %v2877_v0, %v19389_v35  ;;  %v2907_v8 = vcombine.high %v2885_v1, %v2885_v1  ;;  %v18201_v9 = vld [vmem:[#allocation2 + $0x948] sm:$0xff]   ;;  %v18239_v0 = vld [vmem:[#allocation2 + $0xad0] sm:$0xff]  }
 0x136   :  { %v2878_v7 = vcombine.high %v19458_v3, %v19458_v3 }
 0x137   :  { %16430 = vmatpush3.bf16.msra.mxu0 %v18162_v11  ;;  %v18202_v11 = vld [vmem:[#allocation2 + $0x9c8] sm:$0xff]  }
 0x138   :  { %16459 = vmatprep.subr.bf16.mxu0 %v18165_v14  ;;  %16452 = vmatpush3.bf16.msra.mxu1 %v18163_v12  ;;  %v2906_v12 = vrot.slane %v2878_v7, %v19389_v35  ;;  %v18204_v14 = vld [vmem:[#allocation2 + $0x988] sm:$0xff]   ;;  %v18246_v7 = vld [vmem:[#allocation2 + $0xa60] sm:$0xff]  }
 0x139   :  { %16481 = vmatprep.subr.bf16.mxu1 %v18166_v15 }
 0x13a   :  { %12079 = vmatmul.mubr.bf16.vlgmr.msra.gmra.mrb[28].mxu0 %v2843_v13  ;;  %v18203_v13 = vld [vmem:[#allocation2 + $0x908] sm:$0xff]   ;;  %v2910_v15 = vcombine.high %v2906_v12, %v2906_v12 }
 0x13b   :  { %16460 = vmatpush3.bf16.msra.mxu0 %v18167_v16  ;;  %12119 = vmatmul.mubr.bf16.vlgmr.msra.gmra.mrb[28].mxu1 %v2859_v18  ;;  %v18205_v16 = vld [vmem:[#allocation2 + $0x950] sm:$0xff]  }
 0x13c   :  { %16461 = vmatprep.subr.bf16.mxu0 %v18169_v19  ;;  %16482 = vmatpush3.bf16.msra.mxu1 %v18168_v17  ;;  %v18206_v17 = vld [vmem:[#allocation2 + $0x9d0] sm:$0xff]  }
 0x13d   :  { %16483 = vmatprep.subr.bf16.mxu1 %v18170_v20  ;;  %12158 = vmatprep.mubr.bf16.mxu0 %v2899_v5  ;;  %v18207_v18 = vld [vmem:[#allocation2 + $0x910] sm:$0xff]   ;;  %v18209_v20 = vld [vmem:[#allocation2 + $0x958] sm:$0xff]  }
 0x13e   :  { %v18208_v19 = vld [vmem:[#allocation2 + $0x990] sm:$0xff]  }
 0x13f   :  { %16462 = vmatpush3.bf16.msra.mxu0 %v18171_v21  ;;  %v18210_v21 = vld [vmem:[#allocation2 + $0x9d8] sm:$0xff]  }
 0x140   :  { %16463 = vmatprep.subr.bf16.mxu0 %v18173_v23  ;;  %16484 = vmatpush3.bf16.msra.mxu1 %v18172_v22  ;;  %v18211_v22 = vld [vmem:[#allocation2 + $0x918] sm:$0xff]  }
 0x141   :  { %16485 = vmatprep.subr.bf16.mxu1 %v18174_v24  ;;  %v18212_v23 = vld [vmem:[#allocation2 + $0x998] sm:$0xff]   ;;  %v18213_v24 = vld [vmem:[#allocation2 + $0x960] sm:$0xff]  }
 0x143   :  { %16464 = vmatpush3.bf16.msra.mxu0 %v18175_v25  ;;  %v18214_v25 = vld [vmem:[#allocation2 + $0x9e0] sm:$0xff]  }
 0x144   :  { %16465 = vmatprep.subr.bf16.mxu0 %v18177_v27  ;;  %16486 = vmatpush3.bf16.msra.mxu1 %v18176_v26  ;;  %v18215_v26 = vld [vmem:[#allocation2 + $0x920] sm:$0xff]  }
 0x145   :  { %16487 = vmatprep.subr.bf16.mxu1 %v18178_v28  ;;  %v18216_v27 = vld [vmem:[#allocation2 + $0x9a0] sm:$0xff]   ;;  %v18217_v28 = vld [vmem:[#allocation2 + $0x968] sm:$0xff]  }
 0x147   :  { %16466 = vmatpush3.bf16.msra.mxu0 %v18179_v29  ;;  %v18218_v29 = vld [vmem:[#allocation2 + $0x9e8] sm:$0xff]  }
 0x148   :  { %16467 = vmatprep.subr.bf16.mxu0 %v18181_v31  ;;  %16488 = vmatpush3.bf16.msra.mxu1 %v18180_v30  ;;  %v18219_v30 = vld [vmem:[#allocation2 + $0x928] sm:$0xff]  }
 0x149   :  { %16489 = vmatprep.subr.bf16.mxu1 %v18182_v32  ;;  %v18220_v32 = vld [vmem:[#allocation2 + $0x9a8] sm:$0xff]  }
 0x14b   :  { %16468 = vmatpush3.bf16.msra.mxu0 %v18183_v33 }
 0x14c   :  { %16469 = vmatprep.subr.bf16.mxu0 %v18185_v36  ;;  %16490 = vmatpush3.bf16.msra.mxu1 %v18184_v34  ;;  %v18221_v34 = vld [vmem:[#allocation2 + $0x970] sm:$0xff]  }
 0x14d   :  { %v16167_v40 = vpop.f32.mrb[4].mxu0  ;;  %16491 = vmatprep.subr.bf16.mxu1 %v18186_v37 }
 0x14e   :  { %v16168_v42 = vpop.f32.mrb[5].mxu0  ;;  %v16189_v44 = vpop.f32.mrb[4].mxu1 }
 0x14f   :  { %v16169_v45 = vadd.f32 %v16168_v42, %v16167_v40  ;;  %v16170_v46 = vpop.f32.mrb[6].mxu0  ;;  %v16190_v47 = vpop.f32.mrb[5].mxu1  ;;  %16470 = vmatpush3.bf16.msra.mxu0 %v18187_v38  ;;  %v18223_v40 = vld [vmem:[#allocation2 + $0x930] sm:$0xff]  }
 0x150   :  { %v16171_v48 = vpop.f32.mrb[7].mxu0  ;;  %v16191_v52 = vadd.f32 %v16190_v47, %v16189_v44  ;;  %v16192_v53 = vpop.f32.mrb[6].mxu1  ;;  %16471 = vmatprep.subr.bf16.mxu0 %v18189_v41  ;;  %16492 = vmatpush3.bf16.msra.mxu1 %v18188_v39  ;;  %v18222_v39 = vld [vmem:[#allocation2 + $0x9f0] sm:$0xff]  }
 0x151   :  { %v11601_v51 = vadd.f32 %v16169_v45, %v19445_v10  ;;  %v16193_v55 = vpop.f32.mrb[7].mxu1  ;;  %16493 = vmatprep.subr.bf16.mxu1 %v18190_v43  ;;  %v2909_v10 = vcombine.high %v2899_v5, %v2899_v5  ;;  %v18224_v46 = vld [vmem:[#allocation2 + $0x9b0] sm:$0xff]   ;;  %v18225_v48 = vld [vmem:[#allocation2 + $0x978] sm:$0xff]   ;;  %v2892_v53 = vrot.slane %v19458_v3, %v19389_v35 }
 0x152   :  { %v18231_v55 = vld [vmem:[#allocation2 + $0xac0] sm:$0xff]   ;;  %v18242_v3 = vld [vmem:[#allocation2 + $0xa58] sm:$0xff]  }
 0x153   :  { %v19450_v57 = vadd.f32 %v16191_v52, %v11601_v51  ;;  %16472 = vmatpush3.bf16.msra.mxu0 %v18191_v49  ;;  %12198 = vmatprep.mubr.bf16.mxu1 %v2909_v10  ;;  %v18227_v51 = vld [vmem:[#allocation2 + $0x938] sm:$0xff]   ;;  %v18249_v10 = vld [vmem:[#allocation2 + $0xaa0] sm:$0xff]  }
 0x154   :  { %16473 = vmatprep.subr.bf16.mxu0 %v18193_v54  ;;  %16494 = vmatpush3.bf16.msra.mxu1 %v18192_v50  ;;  %v18226_v50 = vld [vmem:[#allocation2 + $0x9f8] sm:$0xff]   ;;  %v18230_v54 = vld [vmem:[#allocation2 + $0xa40] sm:$0xff]  }
 0x155   :  { %16495 = vmatprep.subr.bf16.mxu1 %v18194_v56  ;;  %v18228_v52 = vld [vmem:[#allocation2 + $0x9b8] sm:$0xff]   ;;  %v18232_v56 = vld [vmem:[#allocation2 + $0xa00] sm:$0xff]  }
 0x156   :  { %v18244_v5 = vld [vmem:[#allocation2 + $0xa18] sm:$0xff]  }
 0x157   :  { %16474 = vmatpush3.bf16.msra.mxu0 %v18195_v58  ;;  %v2908_v58 = vcombine.high %v2892_v53, %v2892_v53 }
 0x158   :  { %16503 = vmatprep.subr.bf16.mxu0 %v18197_v61  ;;  %16496 = vmatpush3.bf16.msra.mxu1 %v18196_v63  ;;  %v18236_v61 = vld [vmem:[#allocation2 + $0xa08] sm:$0xff]   ;;  %v18238_v63 = vld [vmem:[#allocation2 + $0xa50] sm:$0xff]  }
 0x159   :  { %16525 = vmatprep.subr.bf16.mxu1 %v18198_v2  ;;  %v18241_v2 = vld [vmem:[#allocation2 + $0xa90] sm:$0xff]  }
 0x15a   :  { %12159 = vmatmul.mubr.bf16.vlgmr.msra.gmra.mrb[32].mxu0 %v2885_v1  ;;  %v18240_v1 = vld [vmem:[#allocation2 + $0xa10] sm:$0xff]  }
 0x15b   :  { %16504 = vmatpush3.bf16.msra.mxu0 %v18199_v4  ;;  %12199 = vmatmul.mubr.bf16.vlgmr.msra.gmra.mrb[32].mxu1 %v2907_v8  ;;  %v18243_v4 = vld [vmem:[#allocation2 + $0xad8] sm:$0xff]   ;;  %v18247_v8 = vld [vmem:[#allocation2 + $0xae0] sm:$0xff]  }
 0x15c   :  { %16505 = vmatprep.subr.bf16.mxu0 %v18201_v9  ;;  %16526 = vmatpush3.bf16.msra.mxu1 %v18200_v6  ;;  %v18245_v6 = vld [vmem:[#allocation2 + $0xa98] sm:$0xff]   ;;  %v18248_v9 = vld [vmem:[#allocation2 + $0xa20] sm:$0xff]  }
 0x15d   :  { %12238 = vmatprep.mubr.bf16.mxu0 %v2906_v12  ;;  %16527 = vmatprep.subr.bf16.mxu1 %v18202_v11  ;;  %v18250_v11 = vld [vmem:[#allocation2 + $0xa68] sm:$0xff]  }
 0x15e   :  { %12278 = vmatprep.mubr.bf16.mxu1 %v2910_v15  ;;  %v18251_v12 = vld [vmem:[#allocation2 + $0xae8] sm:$0xff]  }
 0x15f   :  { %16506 = vmatpush3.bf16.msra.mxu0 %v18203_v13  ;;  %v18252_v13 = vld [vmem:[#allocation2 + $0xa28] sm:$0xff]  }
 0x160   :  { %16507 = vmatprep.subr.bf16.mxu0 %v18205_v16  ;;  %16528 = vmatpush3.bf16.msra.mxu1 %v18204_v14  ;;  %v18253_v15 = vld [vmem:[#allocation2 + $0xaa8] sm:$0xff]  }
 0x161   :  { %16529 = vmatprep.subr.bf16.mxu1 %v18206_v17  ;;  %v18254_v17 = vld [vmem:[#allocation2 + $0xa70] sm:$0xff]  }
 0x163   :  { %16508 = vmatpush3.bf16.msra.mxu0 %v18207_v18 }
 0x164   :  { %16509 = vmatprep.subr.bf16.mxu0 %v18209_v20  ;;  %16530 = vmatpush3.bf16.msra.mxu1 %v18208_v19 }
 0x165   :  { %16531 = vmatprep.subr.bf16.mxu1 %v18210_v21 }
 0x167   :  { %16510 = vmatpush3.bf16.msra.mxu0 %v18211_v22 }
 0x168   :  { %16511 = vmatprep.subr.bf16.mxu0 %v18213_v24  ;;  %16532 = vmatpush3.bf16.msra.mxu1 %v18212_v23  ;;  %v18255_v23 = vld [vmem:[#allocation2 + $0xaf0] sm:$0xff]  }
 0x169   :  { %16533 = vmatprep.subr.bf16.mxu1 %v18214_v25  ;;  %v18256_v24 = vld [vmem:[#allocation2 + $0xa30] sm:$0xff]  }
 0x16b   :  { %16512 = vmatpush3.bf16.msra.mxu0 %v18215_v26 }
 0x16c   :  { %16513 = vmatprep.subr.bf16.mxu0 %v18217_v28  ;;  %16534 = vmatpush3.bf16.msra.mxu1 %v18216_v27  ;;  %v18257_v28 = vld [vmem:[#allocation2 + $0xab0] sm:$0xff]  }
 0x16d   :  { %v16211_v31 = vpop.f32.mrb[8].mxu0  ;;  %16535 = vmatprep.subr.bf16.mxu1 %v18218_v29 }
 0x16e   :  { %v16212_v33 = vpop.f32.mrb[9].mxu0  ;;  %v16233_v36 = vpop.f32.mrb[8].mxu1 }
 0x16f   :  { %v16213_v37 = vadd.f32 %v16212_v33, %v16211_v31  ;;  %v16214_v38 = vpop.f32.mrb[10].mxu0  ;;  %v16234_v41 = vpop.f32.mrb[9].mxu1  ;;  %16514 = vmatpush3.bf16.msra.mxu0 %v18219_v30  ;;  %v18258_v30 = vld [vmem:[#allocation2 + $0xa78] sm:$0xff]  }
 0x170   :  { %v16215_v42 = vpop.f32.mrb[11].mxu0  ;;  %v16235_v44 = vadd.f32 %v16234_v41, %v16233_v36  ;;  %v16236_v45 = vpop.f32.mrb[10].mxu1  ;;  %16515 = vmatprep.subr.bf16.mxu0 %v18221_v34  ;;  %16536 = vmatpush3.bf16.msra.mxu1 %v18220_v32  ;;  %v18259_v32 = vld [vmem:[#allocation2 + $0xaf8] sm:$0xff]   ;;  %v64_v34 = vld [vmem:[%s19803_s0 + $0x28] sm:$0xff] }
 0x171   :  { %v11681_v43 = vadd.f32 %v16213_v37, %v19450_v57  ;;  %v16237_v47 = vpop.f32.mrb[11].mxu1  ;;  %16537 = vmatprep.subr.bf16.mxu1 %v18222_v39  ;;  %v18233_v57 = vld [vmem:[#allocation2 + $0xa80] sm:$0xff]   ;;  %v18260_v33 = vld [vmem:[#allocation2 + $0xa38] sm:$0xff]   ;;  %v2918_v36 = vrot.slane %v64_v34, %v19389_v35  ;;  %v2911_v38 = vcombine.high %v64_v34, %v64_v34  ;;  %v18299_v34 = vld [vmem:[#allocation2 + $0xc48] sm:$0xff]  }
 0x172   :  { %v18262_v37 = vld [vmem:[#allocation2 + $0xb40] sm:$0xff]   ;;  %v18261_v39 = vld [vmem:[#allocation2 + $0xab8] sm:$0xff]  }
 0x173   :  { %v19465_v49 = vadd.f32 %v16235_v44, %v11681_v43  ;;  %16516 = vmatpush3.bf16.msra.mxu0 %v18223_v40  ;;  %v2926_v40 = vcombine.high %v2918_v36, %v2918_v36  ;;  %v2934_v41 = vrot.slane %v2918_v36, %v19389_v35  ;;  %v18263_v42 = vld [vmem:[#allocation2 + $0xbc0] sm:$0xff]   ;;  %v19478_v43 = vrot.slane %v2911_v38, %v19389_v35  ;;  %v18300_v36 = vld [vmem:[#allocation2 + $0xcc8] sm:$0xff]  }
 0x174   :  { %16517 = vmatprep.subr.bf16.mxu0 %v18225_v48  ;;  %16538 = vmatpush3.bf16.msra.mxu1 %v18224_v46  ;;  %v18264_v44 = vld [vmem:[#allocation2 + $0xb00] sm:$0xff]   ;;  %v18302_v38 = vld [vmem:[#allocation2 + $0xc88] sm:$0xff]  }
 0x175   :  { %16539 = vmatprep.subr.bf16.mxu1 %v18226_v50  ;;  %v2948_v45 = vrot.slane %v2926_v40, %v19389_v35  ;;  %v18265_v46 = vld [vmem:[#allocation2 + $0xb80] sm:$0xff]   ;;  %v2927_v47 = vcombine.high %v19478_v43, %v19478_v43  ;;  %v2956_v48 = vcombine.high %v2934_v41, %v2934_v41  ;;  %v18304_v40 = vld [vmem:[#allocation2 + $0xcd0] sm:$0xff]  }
 0x177   :  { %16518 = vmatpush3.bf16.msra.mxu0 %v18227_v51  ;;  %v2958_v50 = vcombine.high %v2948_v45, %v2948_v45  ;;  %v18267_v51 = vld [vmem:[#allocation2 + $0xbc8] sm:$0xff]  }
 0x178   :  { %16547 = vmatprep.subr.bf16.mxu0 %v18230_v54  ;;  %16540 = vmatpush3.bf16.msra.mxu1 %v18228_v52  ;;  %v2955_v52 = vrot.slane %v2927_v47, %v19389_v35  ;;  %v18269_v54 = vld [vmem:[#allocation2 + $0xb88] sm:$0xff]   ;;  %v18311_v47 = vld [vmem:[#allocation2 + $0xc60] sm:$0xff]  }
 0x179   :  { %16569 = vmatprep.subr.bf16.mxu1 %v18231_v55 }
 0x17a   :  { %12239 = vmatmul.mubr.bf16.vlgmr.msra.gmra.mrb[36].mxu0 %v2892_v53  ;;  %v18268_v53 = vld [vmem:[#allocation2 + $0xb08] sm:$0xff]   ;;  %v2959_v55 = vcombine.high %v2955_v52, %v2955_v52 }
 0x17b   :  { %16548 = vmatpush3.bf16.msra.mxu0 %v18232_v56  ;;  %12279 = vmatmul.mubr.bf16.vlgmr.msra.gmra.mrb[36].mxu1 %v2908_v58  ;;  %v18270_v56 = vld [vmem:[#allocation2 + $0xb50] sm:$0xff]  }
 0x17c   :  { %16549 = vmatprep.subr.bf16.mxu0 %v18234_v59  ;;  %16570 = vmatpush3.bf16.msra.mxu1 %v18233_v57  ;;  %v18271_v57 = vld [vmem:[#allocation2 + $0xbd0] sm:$0xff]  }
 0x17d   :  { %16571 = vmatprep.subr.bf16.mxu1 %v18235_v60  ;;  %12318 = vmatprep.mubr.bf16.mxu0 %v2948_v45  ;;  %v18272_v58 = vld [vmem:[#allocation2 + $0xb10] sm:$0xff]   ;;  %v18274_v60 = vld [vmem:[#allocation2 + $0xb58] sm:$0xff]  }
 0x17e   :  { %12358 = vmatprep.mubr.bf16.mxu1 %v2958_v50  ;;  %v18273_v59 = vld [vmem:[#allocation2 + $0xb90] sm:$0xff]   ;;  %v18309_v45 = vld [vmem:[#allocation2 + $0xc18] sm:$0xff]   ;;  %v18314_v50 = vld [vmem:[#allocation2 + $0xca0] sm:$0xff]  }
 0x17f   :  { %16550 = vmatpush3.bf16.msra.mxu0 %v18236_v61  ;;  %v18275_v61 = vld [vmem:[#allocation2 + $0xbd8] sm:$0xff]  }
 0x180   :  { %16551 = vmatprep.subr.bf16.mxu0 %v18238_v63  ;;  %16572 = vmatpush3.bf16.msra.mxu1 %v18237_v62  ;;  %v18276_v62 = vld [vmem:[#allocation2 + $0xb18] sm:$0xff]  }
 0x181   :  { %16573 = vmatprep.subr.bf16.mxu1 %v18239_v0  ;;  %v18277_v63 = vld [vmem:[#allocation2 + $0xb98] sm:$0xff]   ;;  %v18278_v0 = vld [vmem:[#allocation2 + $0xb60] sm:$0xff]  }
 0x183   :  { %16552 = vmatpush3.bf16.msra.mxu0 %v18240_v1  ;;  %v18279_v1 = vld [vmem:[#allocation2 + $0xbe0] sm:$0xff]  }
 0x184   :  { %16553 = vmatprep.subr.bf16.mxu0 %v18242_v3  ;;  %16574 = vmatpush3.bf16.msra.mxu1 %v18241_v2  ;;  %v18280_v2 = vld [vmem:[#allocation2 + $0xb20] sm:$0xff]  }
 0x185   :  { %16575 = vmatprep.subr.bf16.mxu1 %v18243_v4  ;;  %v18281_v3 = vld [vmem:[#allocation2 + $0xba0] sm:$0xff]   ;;  %v18282_v4 = vld [vmem:[#allocation2 + $0xb68] sm:$0xff]  }
 0x187   :  { %16554 = vmatpush3.bf16.msra.mxu0 %v18244_v5  ;;  %v18283_v5 = vld [vmem:[#allocation2 + $0xbe8] sm:$0xff]  }
 0x188   :  { %16555 = vmatprep.subr.bf16.mxu0 %v18246_v7  ;;  %16576 = vmatpush3.bf16.msra.mxu1 %v18245_v6  ;;  %v18284_v7 = vld [vmem:[#allocation2 + $0xb28] sm:$0xff]  }
 0x189   :  { %16577 = vmatprep.subr.bf16.mxu1 %v18247_v8 }
 0x18b   :  { %16556 = vmatpush3.bf16.msra.mxu0 %v18248_v9  ;;  %v18285_v9 = vld [vmem:[#allocation2 + $0xba8] sm:$0xff]  }
 0x18c   :  { %16557 = vmatprep.subr.bf16.mxu0 %v18250_v11  ;;  %16578 = vmatpush3.bf16.msra.mxu1 %v18249_v10 }
 0x18d   :  { %v16255_v14 = vpop.f32.mrb[12].mxu0  ;;  %16579 = vmatprep.subr.bf16.mxu1 %v18251_v12 }
 0x18e   :  { %v16256_v16 = vpop.f32.mrb[13].mxu0  ;;  %v16277_v18 = vpop.f32.mrb[12].mxu1 }
 0x18f   :  { %v16257_v19 = vadd.f32 %v16256_v16, %v16255_v14  ;;  %v16258_v20 = vpop.f32.mrb[14].mxu0  ;;  %v16278_v21 = vpop.f32.mrb[13].mxu1  ;;  %16558 = vmatpush3.bf16.msra.mxu0 %v18252_v13  ;;  %v18286_v13 = vld [vmem:[#allocation2 + $0xb70] sm:$0xff]  }
 0x190   :  { %v16259_v22 = vpop.f32.mrb[15].mxu0  ;;  %v16279_v26 = vadd.f32 %v16278_v21, %v16277_v18  ;;  %v16280_v27 = vpop.f32.mrb[14].mxu1  ;;  %16559 = vmatprep.subr.bf16.mxu0 %v18254_v17  ;;  %16580 = vmatpush3.bf16.msra.mxu1 %v18253_v15  ;;  %v18287_v14 = vld [vmem:[#allocation2 + $0xbf0] sm:$0xff]  }
 0x191   :  { %v11761_v25 = vadd.f32 %v16257_v19, %v19465_v49  ;;  %v16281_v29 = vpop.f32.mrb[15].mxu1  ;;  %16581 = vmatprep.subr.bf16.mxu1 %v18255_v23  ;;  %v18266_v49 = vld [vmem:[#allocation2 + $0xb48] sm:$0xff]   ;;  %v18288_v20 = vld [vmem:[#allocation2 + $0xb30] sm:$0xff]   ;;  %v18293_v27 = vld [vmem:[#allocation2 + $0xbb8] sm:$0xff]  }
 0x192   :  { %v18289_v22 = vld [vmem:[#allocation2 + $0xbb0] sm:$0xff]   ;;  %v18295_v29 = vld [vmem:[#allocation2 + $0xc40] sm:$0xff]  }
 0x193   :  { %v19470_v31 = vadd.f32 %v16279_v26, %v11761_v25  ;;  %16560 = vmatpush3.bf16.msra.mxu0 %v18256_v24  ;;  %v18290_v24 = vld [vmem:[#allocation2 + $0xb78] sm:$0xff]  }
 0x194   :  { %16561 = vmatprep.subr.bf16.mxu0 %v18258_v30  ;;  %16582 = vmatpush3.bf16.msra.mxu1 %v18257_v28  ;;  %v18291_v25 = vld [vmem:[#allocation2 + $0xbf8] sm:$0xff]   ;;  %v2941_v28 = vrot.slane %v19478_v43, %v19389_v35  ;;  %v18296_v30 = vld [vmem:[#allocation2 + $0xcc0] sm:$0xff]  }
 0x195   :  { %16583 = vmatprep.subr.bf16.mxu1 %v18259_v32  ;;  %v18292_v26 = vld [vmem:[#allocation2 + $0xb38] sm:$0xff]   ;;  %v18298_v32 = vld [vmem:[#allocation2 + $0xc80] sm:$0xff]  }
 0x196   :  { %v18307_v43 = vld [vmem:[#allocation2 + $0xc58] sm:$0xff]  }
 0x197   :  { %16562 = vmatpush3.bf16.msra.mxu0 %v18260_v33  ;;  %v2957_v33 = vcombine.high %v2941_v28, %v2941_v28 }
 0x198   :  { %16591 = vmatprep.subr.bf16.mxu0 %v18262_v37  ;;  %16584 = vmatpush3.bf16.msra.mxu1 %v18261_v39  ;;  %v18301_v37 = vld [vmem:[#allocation2 + $0xc08] sm:$0xff]   ;;  %v18303_v39 = vld [vmem:[#allocation2 + $0xc50] sm:$0xff]  }
 0x199   :  { %16613 = vmatprep.subr.bf16.mxu1 %v18263_v42  ;;  %v18306_v42 = vld [vmem:[#allocation2 + $0xc90] sm:$0xff]  }
 0x19a   :  { %12319 = vmatmul.mubr.bf16.vlgmr.msra.gmra.mrb[40].mxu0 %v2934_v41  ;;  %v18305_v41 = vld [vmem:[#allocation2 + $0xc10] sm:$0xff]  }
 0x19b   :  { %16592 = vmatpush3.bf16.msra.mxu0 %v18264_v44  ;;  %12359 = vmatmul.mubr.bf16.vlgmr.msra.gmra.mrb[40].mxu1 %v2956_v48  ;;  %v18308_v44 = vld [vmem:[#allocation2 + $0xcd8] sm:$0xff]   ;;  %v18312_v48 = vld [vmem:[#allocation2 + $0xce0] sm:$0xff]  }
 0x19c   :  { %16593 = vmatprep.subr.bf16.mxu0 %v18266_v49  ;;  %16614 = vmatpush3.bf16.msra.mxu1 %v18265_v46  ;;  %v18310_v46 = vld [vmem:[#allocation2 + $0xc98] sm:$0xff]   ;;  %v18313_v49 = vld [vmem:[#allocation2 + $0xc20] sm:$0xff]  }
 0x19d   :  { %12398 = vmatprep.mubr.bf16.mxu0 %v2955_v52  ;;  %16615 = vmatprep.subr.bf16.mxu1 %v18267_v51  ;;  %v18315_v51 = vld [vmem:[#allocation2 + $0xc68] sm:$0xff]  }
 0x19e   :  { %12438 = vmatprep.mubr.bf16.mxu1 %v2959_v55  ;;  %v18316_v52 = vld [vmem:[#allocation2 + $0xce8] sm:$0xff]  }
 0x19f   :  { %16594 = vmatpush3.bf16.msra.mxu0 %v18268_v53 }
 0x1a0   :  { %16595 = vmatprep.subr.bf16.mxu0 %v18270_v56  ;;  %16616 = vmatpush3.bf16.msra.mxu1 %v18269_v54  ;;  %v18317_v54 = vld [vmem:[#allocation2 + $0xc28] sm:$0xff]   ;;  %v18319_v56 = vld [vmem:[#allocation2 + $0xc70] sm:$0xff]  }
 0x1a1   :  { %16617 = vmatprep.subr.bf16.mxu1 %v18271_v57 }
 0x1a3   :  { %16596 = vmatpush3.bf16.msra.mxu0 %v18272_v58 }
 0x1a4   :  { %16597 = vmatprep.subr.bf16.mxu0 %v18274_v60  ;;  %16618 = vmatpush3.bf16.msra.mxu1 %v18273_v59 }
 0x1a5   :  { %16619 = vmatprep.subr.bf16.mxu1 %v18275_v61  ;;  %v18318_v61 = vld [vmem:[#allocation2 + $0xca8] sm:$0xff]  }
 0x1a7   :  { %16598 = vmatpush3.bf16.msra.mxu0 %v18276_v62 }
 0x1a8   :  { %16599 = vmatprep.subr.bf16.mxu0 %v18278_v0  ;;  %16620 = vmatpush3.bf16.msra.mxu1 %v18277_v63  ;;  %v18320_v63 = vld [vmem:[#allocation2 + $0xcf0] sm:$0xff]  }
 0x1a9   :  { %16621 = vmatprep.subr.bf16.mxu1 %v18279_v1 }
 0x1ab   :  { %16600 = vmatpush3.bf16.msra.mxu0 %v18280_v2 }
 0x1ac   :  { %16601 = vmatprep.subr.bf16.mxu0 %v18282_v4  ;;  %16622 = vmatpush3.bf16.msra.mxu1 %v18281_v3  ;;  %v18321_v3 = vld [vmem:[#allocation2 + $0xc30] sm:$0xff]  }
 0x1ad   :  { %v16299_v6 = vpop.f32.mrb[16].mxu0  ;;  %16623 = vmatprep.subr.bf16.mxu1 %v18283_v5  ;;  %v18323_v5 = vld [vmem:[#allocation2 + $0xc78] sm:$0xff]  }
 0x1ae   :  { %v16300_v8 = vpop.f32.mrb[17].mxu0  ;;  %v16321_v10 = vpop.f32.mrb[16].mxu1 }
 0x1af   :  { %v16301_v11 = vadd.f32 %v16300_v8, %v16299_v6  ;;  %v16302_v12 = vpop.f32.mrb[18].mxu0  ;;  %v16322_v15 = vpop.f32.mrb[17].mxu1  ;;  %16602 = vmatpush3.bf16.msra.mxu0 %v18284_v7  ;;  %v18322_v7 = vld [vmem:[#allocation2 + $0xcb0] sm:$0xff]   ;;  %v18324_v8 = vld [vmem:[#allocation2 + $0xcf8] sm:$0xff]  }
 0x1b0   :  { %v16303_v16 = vpop.f32.mrb[19].mxu0  ;;  %v16323_v18 = vadd.f32 %v16322_v15, %v16321_v10  ;;  %v16324_v19 = vpop.f32.mrb[18].mxu1  ;;  %16603 = vmatprep.subr.bf16.mxu0 %v18286_v13  ;;  %16624 = vmatpush3.bf16.msra.mxu1 %v18285_v9  ;;  %v18325_v9 = vld [vmem:[#allocation2 + $0xc38] sm:$0xff]   ;;  %v65_v10 = vld [vmem:[%s19803_s0 + $0x30] sm:$0xff]  ;;  %v18327_v12 = vld [vmem:[#allocation2 + $0xd40] sm:$0xff]  }
 0x1b1   :  { %v11841_v17 = vadd.f32 %v16301_v11, %v19470_v31  ;;  %v16325_v21 = vpop.f32.mrb[19].mxu1  ;;  %16625 = vmatprep.subr.bf16.mxu1 %v18287_v14  ;;  %v18297_v31 = vld [vmem:[#allocation2 + $0xc00] sm:$0xff]   ;;  %v2967_v11 = vrot.slane %v65_v10, %v19389_v35  ;;  %v2960_v13 = vcombine.high %v65_v10, %v65_v10  ;;  %v18326_v14 = vld [vmem:[#allocation2 + $0xcb8] sm:$0xff]   ;;  %v18364_v10 = vld [vmem:[#allocation2 + $0xe48] sm:$0xff]  }
 0x1b2   :  { %v18329_v19 = vld [vmem:[#allocation2 + $0xd00] sm:$0xff]  }
 0x1b3   :  { %v19485_v23 = vadd.f32 %v16323_v18, %v11841_v17  ;;  %16604 = vmatpush3.bf16.msra.mxu0 %v18288_v20  ;;  %v2975_v15 = vcombine.high %v2967_v11, %v2967_v11  ;;  %v2983_v16 = vrot.slane %v2967_v11, %v19389_v35  ;;  %v18328_v17 = vld [vmem:[#allocation2 + $0xdc0] sm:$0xff]   ;;  %v19498_v18 = vrot.slane %v2960_v13, %v19389_v35  ;;  %v18365_v11 = vld [vmem:[#allocation2 + $0xec8] sm:$0xff]  }
 0x1b4   :  { %16605 = vmatprep.subr.bf16.mxu0 %v18290_v24  ;;  %16626 = vmatpush3.bf16.msra.mxu1 %v18289_v22  ;;  %v18330_v21 = vld [vmem:[#allocation2 + $0xd80] sm:$0xff]   ;;  %v18331_v24 = vld [vmem:[#allocation2 + $0xd48] sm:$0xff]  }
 0x1b5   :  { %16627 = vmatprep.subr.bf16.mxu1 %v18291_v25  ;;  %v2997_v20 = vrot.slane %v2975_v15, %v19389_v35  ;;  %v2976_v22 = vcombine.high %v19498_v18, %v19498_v18  ;;  %v18367_v13 = vld [vmem:[#allocation2 + $0xe88] sm:$0xff]   ;;  %v18369_v15 = vld [vmem:[#allocation2 + $0xed0] sm:$0xff]  }
 0x1b7   :  { %16606 = vmatpush3.bf16.msra.mxu0 %v18292_v26  ;;  %v3007_v25 = vcombine.high %v2997_v20, %v2997_v20  ;;  %v18332_v26 = vld [vmem:[#allocation2 + $0xdc8] sm:$0xff]  }
 0x1b8   :  { %16635 = vmatprep.subr.bf16.mxu0 %v18295_v29  ;;  %16628 = vmatpush3.bf16.msra.mxu1 %v18293_v27  ;;  %v3004_v27 = vrot.slane %v2976_v22, %v19389_v35  ;;  %v18334_v29 = vld [vmem:[#allocation2 + $0xd88] sm:$0xff]   ;;  %v18376_v22 = vld [vmem:[#allocation2 + $0xe60] sm:$0xff]  }
 0x1b9   :  { %16657 = vmatprep.subr.bf16.mxu1 %v18296_v30 }
 0x1ba   :  { %12399 = vmatmul.mubr.bf16.vlgmr.msra.gmra.mrb[44].mxu0 %v2941_v28  ;;  %v18333_v28 = vld [vmem:[#allocation2 + $0xd08] sm:$0xff]   ;;  %v3008_v30 = vcombine.high %v3004_v27, %v3004_v27 }
 0x1bb   :  { %16636 = vmatpush3.bf16.msra.mxu0 %v18297_v31  ;;  %12439 = vmatmul.mubr.bf16.vlgmr.msra.gmra.mrb[44].mxu1 %v2957_v33  ;;  %v18335_v31 = vld [vmem:[#allocation2 + $0xd50] sm:$0xff]  }
 0x1bc   :  { %16637 = vmatprep.subr.bf16.mxu0 %v18299_v34  ;;  %16658 = vmatpush3.bf16.msra.mxu1 %v18298_v32  ;;  %v18336_v32 = vld [vmem:[#allocation2 + $0xdd0] sm:$0xff]  }
 0x1bd   :  { %16659 = vmatprep.subr.bf16.mxu1 %v18300_v36  ;;  %12478 = vmatprep.mubr.bf16.mxu0 %v2997_v20  ;;  %v18337_v33 = vld [vmem:[#allocation2 + $0xd10] sm:$0xff]   ;;  %v18339_v36 = vld [vmem:[#allocation2 + $0xd58] sm:$0xff]  }
 0x1be   :  { %12518 = vmatprep.mubr.bf16.mxu1 %v3007_v25  ;;  %v18338_v34 = vld [vmem:[#allocation2 + $0xd90] sm:$0xff]   ;;  %v18374_v20 = vld [vmem:[#allocation2 + $0xe18] sm:$0xff]   ;;  %v18379_v25 = vld [vmem:[#allocation2 + $0xea0] sm:$0xff]  }
 0x1bf   :  { %16638 = vmatpush3.bf16.msra.mxu0 %v18301_v37  ;;  %v18340_v37 = vld [vmem:[#allocation2 + $0xdd8] sm:$0xff]  }
 0x1c0   :  { %16639 = vmatprep.subr.bf16.mxu0 %v18303_v39  ;;  %16660 = vmatpush3.bf16.msra.mxu1 %v18302_v38  ;;  %v18341_v38 = vld [vmem:[#allocation2 + $0xd18] sm:$0xff]  }
 0x1c1   :  { %16661 = vmatprep.subr.bf16.mxu1 %v18304_v40  ;;  %v18342_v39 = vld [vmem:[#allocation2 + $0xd98] sm:$0xff]   ;;  %v18343_v40 = vld [vmem:[#allocation2 + $0xd60] sm:$0xff]  }
 0x1c3   :  { %16640 = vmatpush3.bf16.msra.mxu0 %v18305_v41  ;;  %v18344_v41 = vld [vmem:[#allocation2 + $0xde0] sm:$0xff]  }
 0x1c4   :  { %16641 = vmatprep.subr.bf16.mxu0 %v18307_v43  ;;  %16662 = vmatpush3.bf16.msra.mxu1 %v18306_v42  ;;  %v18345_v42 = vld [vmem:[#allocation2 + $0xd20] sm:$0xff]  }
 0x1c5   :  { %16663 = vmatprep.subr.bf16.mxu1 %v18308_v44  ;;  %v18346_v43 = vld [vmem:[#allocation2 + $0xda0] sm:$0xff]   ;;  %v18347_v44 = vld [vmem:[#allocation2 + $0xd68] sm:$0xff]  }
 0x1c7   :  { %16642 = vmatpush3.bf16.msra.mxu0 %v18309_v45  ;;  %v18348_v45 = vld [vmem:[#allocation2 + $0xde8] sm:$0xff]  }
 0x1c8   :  { %16643 = vmatprep.subr.bf16.mxu0 %v18311_v47  ;;  %16664 = vmatpush3.bf16.msra.mxu1 %v18310_v46  ;;  %v18349_v47 = vld [vmem:[#allocation2 + $0xd28] sm:$0xff]  }
 0x1c9   :  { %16665 = vmatprep.subr.bf16.mxu1 %v18312_v48 }
 0x1cb   :  { %16644 = vmatpush3.bf16.msra.mxu0 %v18313_v49  ;;  %v18350_v49 = vld [vmem:[#allocation2 + $0xda8] sm:$0xff]  }
 0x1cc   :  { %16645 = vmatprep.subr.bf16.mxu0 %v18315_v51  ;;  %16666 = vmatpush3.bf16.msra.mxu1 %v18314_v50 }
 0x1cd   :  { %v16343_v53 = vpop.f32.mrb[20].mxu0  ;;  %16667 = vmatprep.subr.bf16.mxu1 %v18316_v52 }
 0x1ce   :  { %v16344_v55 = vpop.f32.mrb[21].mxu0  ;;  %v16365_v57 = vpop.f32.mrb[20].mxu1 }
 0x1cf   :  { %v16345_v58 = vadd.f32 %v16344_v55, %v16343_v53  ;;  %v16346_v59 = vpop.f32.mrb[22].mxu0  ;;  %v16366_v60 = vpop.f32.mrb[21].mxu1  ;;  %16646 = vmatpush3.bf16.msra.mxu0 %v18317_v54  ;;  %v18351_v53 = vld [vmem:[#allocation2 + $0xd70] sm:$0xff]  }
 0x1d0   :  { %v16347_v62 = vpop.f32.mrb[23].mxu0  ;;  %v16367_v1 = vadd.f32 %v16366_v60, %v16365_v57  ;;  %v16368_v2 = vpop.f32.mrb[22].mxu1  ;;  %16647 = vmatprep.subr.bf16.mxu0 %v18319_v56  ;;  %16668 = vmatpush3.bf16.msra.mxu1 %v18318_v61  ;;  %v18352_v54 = vld [vmem:[#allocation2 + $0xdf0] sm:$0xff]  }
 0x1d1   :  { %v11921_v0 = vadd.f32 %v16345_v58, %v19485_v23  ;;  %v16369_v4 = vpop.f32.mrb[23].mxu1  ;;  %16669 = vmatprep.subr.bf16.mxu1 %v18320_v63  ;;  %v3005_v23 = vcombine.high %v2983_v16, %v2983_v16  ;;  %v18353_v60 = vld [vmem:[#allocation2 + $0xd30] sm:$0xff]   ;;  %v18357_v2 = vld [vmem:[#allocation2 + $0xd38] sm:$0xff]  }
 0x1d2   :  { %v18354_v62 = vld [vmem:[#allocation2 + $0xdb0] sm:$0xff]   ;;  %v2990_v4 = vrot.slane %v19498_v18, %v19389_v35  ;;  %v18372_v18 = vld [vmem:[#allocation2 + $0xe58] sm:$0xff]  }
 0x1d3   :  { %v19490_v6 = vadd.f32 %v16367_v1, %v11921_v0  ;;  %16648 = vmatpush3.bf16.msra.mxu0 %v18321_v3  ;;  %v18355_v0 = vld [vmem:[#allocation2 + $0xd78] sm:$0xff]  }
 0x1d4   :  { %16649 = vmatprep.subr.bf16.mxu0 %v18323_v5  ;;  %16670 = vmatpush3.bf16.msra.mxu1 %v18322_v7  ;;  %v18356_v1 = vld [vmem:[#allocation2 + $0xdf8] sm:$0xff]   ;;  %v18360_v5 = vld [vmem:[#allocation2 + $0xe40] sm:$0xff]  }
 0x1d5   :  { %16671 = vmatprep.subr.bf16.mxu1 %v18324_v8  ;;  %v18358_v3 = vld [vmem:[#allocation2 + $0xdb8] sm:$0xff]   ;;  %v18362_v7 = vld [vmem:[#allocation2 + $0xe00] sm:$0xff]  }
 0x1d6   :  { %v18363_v8 = vld [vmem:[#allocation2 + $0xe80] sm:$0xff]  }
 0x1d7   :  { %16650 = vmatpush3.bf16.msra.mxu0 %v18325_v9  ;;  %v3006_v9 = vcombine.high %v2990_v4, %v2990_v4 }
 0x1d8   :  { %16679 = vmatprep.subr.bf16.mxu0 %v18327_v12  ;;  %16672 = vmatpush3.bf16.msra.mxu1 %v18326_v14  ;;  %v18366_v12 = vld [vmem:[#allocation2 + $0xe08] sm:$0xff]   ;;  %v18368_v14 = vld [vmem:[#allocation2 + $0xe50] sm:$0xff]  }
 0x1d9   :  { %16701 = vmatprep.subr.bf16.mxu1 %v18328_v17  ;;  %v18371_v17 = vld [vmem:[#allocation2 + $0xe90] sm:$0xff]  }
 0x1da   :  { %12479 = vmatmul.mubr.bf16.vlgmr.msra.gmra.mrb[48].mxu0 %v2983_v16  ;;  %v18370_v16 = vld [vmem:[#allocation2 + $0xe10] sm:$0xff]  }
 0x1db   :  { %16680 = vmatpush3.bf16.msra.mxu0 %v18329_v19  ;;  %12519 = vmatmul.mubr.bf16.vlgmr.msra.gmra.mrb[48].mxu1 %v3005_v23  ;;  %v18373_v19 = vld [vmem:[#allocation2 + $0xed8] sm:$0xff]   ;;  %v18377_v23 = vld [vmem:[#allocation2 + $0xee0] sm:$0xff]  }
 0x1dc   :  { %16681 = vmatprep.subr.bf16.mxu0 %v18331_v24  ;;  %16702 = vmatpush3.bf16.msra.mxu1 %v18330_v21  ;;  %v18375_v21 = vld [vmem:[#allocation2 + $0xe98] sm:$0xff]   ;;  %v18378_v24 = vld [vmem:[#allocation2 + $0xe20] sm:$0xff]  }
 0x1dd   :  { %12558 = vmatprep.mubr.bf16.mxu0 %v3004_v27  ;;  %16703 = vmatprep.subr.bf16.mxu1 %v18332_v26  ;;  %v18380_v26 = vld [vmem:[#allocation2 + $0xe68] sm:$0xff]  }
 0x1de   :  { %12598 = vmatprep.mubr.bf16.mxu1 %v3008_v30  ;;  %v18381_v27 = vld [vmem:[#allocation2 + $0xee8] sm:$0xff]  }
 0x1df   :  { %16682 = vmatpush3.bf16.msra.mxu0 %v18333_v28 }
 0x1e0   :  { %16683 = vmatprep.subr.bf16.mxu0 %v18335_v31  ;;  %16704 = vmatpush3.bf16.msra.mxu1 %v18334_v29  ;;  %v18382_v29 = vld [vmem:[#allocation2 + $0xe28] sm:$0xff]   ;;  %v18384_v31 = vld [vmem:[#allocation2 + $0xe70] sm:$0xff]  }
 0x1e1   :  { %16705 = vmatprep.subr.bf16.mxu1 %v18336_v32 }
 0x1e3   :  { %16684 = vmatpush3.bf16.msra.mxu0 %v18337_v33 }
 0x1e4   :  { %16685 = vmatprep.subr.bf16.mxu0 %v18339_v36  ;;  %16706 = vmatpush3.bf16.msra.mxu1 %v18338_v34 }
 0x1e5   :  { %16707 = vmatprep.subr.bf16.mxu1 %v18340_v37  ;;  %v18383_v37 = vld [vmem:[#allocation2 + $0xea8] sm:$0xff]  }
 0x1e7   :  { %16686 = vmatpush3.bf16.msra.mxu0 %v18341_v38 }
 0x1e8   :  { %16687 = vmatprep.subr.bf16.mxu0 %v18343_v40  ;;  %16708 = vmatpush3.bf16.msra.mxu1 %v18342_v39  ;;  %v18385_v39 = vld [vmem:[#allocation2 + $0xef0] sm:$0xff]  }
 0x1e9   :  { %16709 = vmatprep.subr.bf16.mxu1 %v18344_v41 }
 0x1eb   :  { %16688 = vmatpush3.bf16.msra.mxu0 %v18345_v42 }
 0x1ec   :  { %16689 = vmatprep.subr.bf16.mxu0 %v18347_v44  ;;  %16710 = vmatpush3.bf16.msra.mxu1 %v18346_v43  ;;  %v18386_v43 = vld [vmem:[#allocation2 + $0xe30] sm:$0xff]  }
 0x1ed   :  { %v16387_v46 = vpop.f32.mrb[24].mxu0  ;;  %16711 = vmatprep.subr.bf16.mxu1 %v18348_v45  ;;  %v18388_v45 = vld [vmem:[#allocation2 + $0xe78] sm:$0xff]  }
 0x1ee   :  { %v16388_v48 = vpop.f32.mrb[25].mxu0  ;;  %v16409_v50 = vpop.f32.mrb[24].mxu1 }
 0x1ef   :  { %v16389_v51 = vadd.f32 %v16388_v48, %v16387_v46  ;;  %v16390_v52 = vpop.f32.mrb[26].mxu0  ;;  %v16410_v55 = vpop.f32.mrb[25].mxu1  ;;  %16690 = vmatpush3.bf16.msra.mxu0 %v18349_v47  ;;  %v18387_v47 = vld [vmem:[#allocation2 + $0xeb0] sm:$0xff]   ;;  %v18389_v48 = vld [vmem:[#allocation2 + $0xef8] sm:$0xff]  }
 0x1f0   :  { %v16391_v56 = vpop.f32.mrb[27].mxu0  ;;  %v16411_v58 = vadd.f32 %v16410_v55, %v16409_v50  ;;  %v16412_v59 = vpop.f32.mrb[26].mxu1  ;;  %16691 = vmatprep.subr.bf16.mxu0 %v18351_v53  ;;  %16712 = vmatpush3.bf16.msra.mxu1 %v18350_v49  ;;  %v18390_v49 = vld [vmem:[#allocation2 + $0xe38] sm:$0xff]   ;;  %v18392_v52 = vld [vmem:[#allocation2 + $0xf40] sm:$0xff]  }
 0x1f1   :  { %v12001_v57 = vadd.f32 %v16389_v51, %v19490_v6  ;;  %v16413_v61 = vpop.f32.mrb[27].mxu1  ;;  %16713 = vmatprep.subr.bf16.mxu1 %v18352_v54  ;;  %v18361_v6 = vld [vmem:[#allocation2 + $0xec0] sm:$0xff]   ;;  %v66_v50 = vld [vmem:[%s19803_s0 + $0x38] sm:$0xff] }
 0x1f2   :  { %v3016_v51 = vrot.slane %v66_v50, %v19389_v35  ;;  %v3009_v53 = vcombine.high %v66_v50, %v66_v50  ;;  %v18391_v54 = vld [vmem:[#allocation2 + $0xeb8] sm:$0xff]   ;;  %v18394_v59 = vld [vmem:[#allocation2 + $0xf00] sm:$0xff]   ;;  %v18429_v50 = vld [vmem:[#allocation2 + $0x1048] sm:$0xff]  }
 0x1f3   :  { %v19505_v63 = vadd.f32 %v16411_v58, %v12001_v57  ;;  %16692 = vmatpush3.bf16.msra.mxu0 %v18353_v60  ;;  %v18393_v57 = vld [vmem:[#allocation2 + $0xfc0] sm:$0xff]  }
 0x1f4   :  { %16693 = vmatprep.subr.bf16.mxu0 %v18355_v0  ;;  %16714 = vmatpush3.bf16.msra.mxu1 %v18354_v62  ;;  %v3024_v55 = vcombine.high %v3016_v51, %v3016_v51  ;;  %v3032_v56 = vrot.slane %v3016_v51, %v19389_v35  ;;  %v19518_v58 = vrot.slane %v3009_v53, %v19389_v35  ;;  %v18395_v61 = vld [vmem:[#allocation2 + $0xf80] sm:$0xff]   ;;  %v18396_v0 = vld [vmem:[#allocation2 + $0xf48] sm:$0xff]  }
 0x1f5   :  { %16715 = vmatprep.subr.bf16.mxu1 %v18356_v1  ;;  %v18430_v51 = vld [vmem:[#allocation2 + $0x10c8] sm:$0xff]  }
 0x1f6   :  { %v3046_v60 = vrot.slane %v3024_v55, %v19389_v35  ;;  %v3025_v62 = vcombine.high %v19518_v58, %v19518_v58  ;;  %v18432_v53 = vld [vmem:[#allocation2 + $0x1088] sm:$0xff]   ;;  %v18434_v55 = vld [vmem:[#allocation2 + $0x10d0] sm:$0xff]  }
 0x1f7   :  { %16694 = vmatpush3.bf16.msra.mxu0 %v18357_v2  ;;  %v18397_v2 = vld [vmem:[#allocation2 + $0xfc8] sm:$0xff]  }
 0x1f8   :  { %16723 = vmatprep.subr.bf16.mxu0 %v18360_v5  ;;  %16716 = vmatpush3.bf16.msra.mxu1 %v18358_v3  ;;  %v3056_v1 = vcombine.high %v3046_v60, %v3046_v60  ;;  %v3053_v3 = vrot.slane %v3025_v62, %v19389_v35  ;;  %v18399_v5 = vld [vmem:[#allocation2 + $0xf88] sm:$0xff]   ;;  %v18441_v62 = vld [vmem:[#allocation2 + $0x1060] sm:$0xff]  }
 0x1f9   :  { %16745 = vmatprep.subr.bf16.mxu1 %v18361_v6 }
 0x1fa   :  { %12559 = vmatmul.mubr.bf16.vlgmr.msra.gmra.mrb[52].mxu0 %v2990_v4  ;;  %v18398_v4 = vld [vmem:[#allocation2 + $0xf08] sm:$0xff]   ;;  %v3057_v6 = vcombine.high %v3053_v3, %v3053_v3 }
 0x1fb   :  { %16724 = vmatpush3.bf16.msra.mxu0 %v18362_v7  ;;  %12599 = vmatmul.mubr.bf16.vlgmr.msra.gmra.mrb[52].mxu1 %v3006_v9  ;;  %v18400_v7 = vld [vmem:[#allocation2 + $0xf50] sm:$0xff]  }
 0x1fc   :  { %16725 = vmatprep.subr.bf16.mxu0 %v18364_v10  ;;  %16746 = vmatpush3.bf16.msra.mxu1 %v18363_v8  ;;  %v18401_v8 = vld [vmem:[#allocation2 + $0xfd0] sm:$0xff]  }
 0x1fd   :  { %16747 = vmatprep.subr.bf16.mxu1 %v18365_v11  ;;  %12638 = vmatprep.mubr.bf16.mxu0 %v3046_v60  ;;  %v18402_v9 = vld [vmem:[#allocation2 + $0xf10] sm:$0xff]   ;;  %v18404_v11 = vld [vmem:[#allocation2 + $0xf58] sm:$0xff]  }
 0x1fe   :  { %12678 = vmatprep.mubr.bf16.mxu1 %v3056_v1  ;;  %v18403_v10 = vld [vmem:[#allocation2 + $0xf90] sm:$0xff]   ;;  %v18439_v60 = vld [vmem:[#allocation2 + $0x1018] sm:$0xff]   ;;  %v18444_v1 = vld [vmem:[#allocation2 + $0x10a0] sm:$0xff]  }
 0x1ff   :  { %16726 = vmatpush3.bf16.msra.mxu0 %v18366_v12  ;;  %v18405_v12 = vld [vmem:[#allocation2 + $0xfd8] sm:$0xff]  }
 0x200   :  { %16727 = vmatprep.subr.bf16.mxu0 %v18368_v14  ;;  %16748 = vmatpush3.bf16.msra.mxu1 %v18367_v13  ;;  %v18406_v13 = vld [vmem:[#allocation2 + $0xf18] sm:$0xff]  }
 0x201   :  { %16749 = vmatprep.subr.bf16.mxu1 %v18369_v15  ;;  %v18407_v14 = vld [vmem:[#allocation2 + $0xf98] sm:$0xff]   ;;  %v18408_v15 = vld [vmem:[#allocation2 + $0xf60] sm:$0xff]  }
 0x203   :  { %16728 = vmatpush3.bf16.msra.mxu0 %v18370_v16  ;;  %v18409_v16 = vld [vmem:[#allocation2 + $0xfe0] sm:$0xff]  }
 0x204   :  { %16729 = vmatprep.subr.bf16.mxu0 %v18372_v18  ;;  %16750 = vmatpush3.bf16.msra.mxu1 %v18371_v17  ;;  %v18410_v17 = vld [vmem:[#allocation2 + $0xf20] sm:$0xff]  }
 0x205   :  { %16751 = vmatprep.subr.bf16.mxu1 %v18373_v19  ;;  %v18411_v18 = vld [vmem:[#allocation2 + $0xfa0] sm:$0xff]   ;;  %v18412_v19 = vld [vmem:[#allocation2 + $0xf68] sm:$0xff]  }
 0x207   :  { %16730 = vmatpush3.bf16.msra.mxu0 %v18374_v20  ;;  %v18413_v20 = vld [vmem:[#allocation2 + $0xfe8] sm:$0xff]  }
 0x208   :  { %16731 = vmatprep.subr.bf16.mxu0 %v18376_v22  ;;  %16752 = vmatpush3.bf16.msra.mxu1 %v18375_v21  ;;  %v18414_v22 = vld [vmem:[#allocation2 + $0xf28] sm:$0xff]  }
 0x209   :  { %16753 = vmatprep.subr.bf16.mxu1 %v18377_v23 }
 0x20b   :  { %16732 = vmatpush3.bf16.msra.mxu0 %v18378_v24  ;;  %v18415_v24 = vld [vmem:[#allocation2 + $0xfa8] sm:$0xff]  }
 0x20c   :  { %16733 = vmatprep.subr.bf16.mxu0 %v18380_v26  ;;  %16754 = vmatpush3.bf16.msra.mxu1 %v18379_v25 }
 0x20d   :  { %v16431_v28 = vpop.f32.mrb[28].mxu0  ;;  %16755 = vmatprep.subr.bf16.mxu1 %v18381_v27 }
 0x20e   :  { %v16432_v30 = vpop.f32.mrb[29].mxu0  ;;  %v16453_v32 = vpop.f32.mrb[28].mxu1 }
 0x20f   :  { %v16433_v33 = vadd.f32 %v16432_v30, %v16431_v28  ;;  %v16434_v34 = vpop.f32.mrb[30].mxu0  ;;  %v16454_v36 = vpop.f32.mrb[29].mxu1  ;;  %16734 = vmatpush3.bf16.msra.mxu0 %v18382_v29  ;;  %v18416_v28 = vld [vmem:[#allocation2 + $0xf70] sm:$0xff]  }
 0x210   :  { %v16435_v38 = vpop.f32.mrb[31].mxu0  ;;  %v16455_v41 = vadd.f32 %v16454_v36, %v16453_v32  ;;  %v16456_v42 = vpop.f32.mrb[30].mxu1  ;;  %16735 = vmatprep.subr.bf16.mxu0 %v18384_v31  ;;  %16756 = vmatpush3.bf16.msra.mxu1 %v18383_v37  ;;  %v18417_v29 = vld [vmem:[#allocation2 + $0xff0] sm:$0xff]  }
 0x211   :  { %v12081_v40 = vadd.f32 %v16433_v33, %v19505_v63  ;;  %v16457_v44 = vpop.f32.mrb[31].mxu1  ;;  %16757 = vmatprep.subr.bf16.mxu1 %v18385_v39  ;;  %v3054_v63 = vcombine.high %v3032_v56, %v3032_v56  ;;  %v18418_v36 = vld [vmem:[#allocation2 + $0xf30] sm:$0xff]   ;;  %v18422_v42 = vld [vmem:[#allocation2 + $0xf38] sm:$0xff]  }
 0x212   :  { %v18419_v38 = vld [vmem:[#allocation2 + $0xfb0] sm:$0xff]   ;;  %v3039_v44 = vrot.slane %v19518_v58, %v19389_v35  ;;  %v18437_v58 = vld [vmem:[#allocation2 + $0x1058] sm:$0xff]  }
 0x213   :  { %v19510_v46 = vadd.f32 %v16455_v41, %v12081_v40  ;;  %16736 = vmatpush3.bf16.msra.mxu0 %v18386_v43  ;;  %v18420_v40 = vld [vmem:[#allocation2 + $0xf78] sm:$0xff]  }
 0x214   :  { %16737 = vmatprep.subr.bf16.mxu0 %v18388_v45  ;;  %16758 = vmatpush3.bf16.msra.mxu1 %v18387_v47  ;;  %v18421_v41 = vld [vmem:[#allocation2 + $0xff8] sm:$0xff]   ;;  %v18425_v45 = vld [vmem:[#allocation2 + $0x1040] sm:$0xff]  }
 0x215   :  { %16759 = vmatprep.subr.bf16.mxu1 %v18389_v48  ;;  %v18423_v43 = vld [vmem:[#allocation2 + $0xfb8] sm:$0xff]   ;;  %v18427_v47 = vld [vmem:[#allocation2 + $0x1000] sm:$0xff]  }
 0x216   :  { %v18428_v48 = vld [vmem:[#allocation2 + $0x1080] sm:$0xff]  }
 0x217   :  { %16738 = vmatpush3.bf16.msra.mxu0 %v18390_v49  ;;  %v3055_v49 = vcombine.high %v3039_v44, %v3039_v44 }
 0x218   :  { %16767 = vmatprep.subr.bf16.mxu0 %v18392_v52  ;;  %16760 = vmatpush3.bf16.msra.mxu1 %v18391_v54  ;;  %v18431_v52 = vld [vmem:[#allocation2 + $0x1008] sm:$0xff]   ;;  %v18433_v54 = vld [vmem:[#allocation2 + $0x1050] sm:$0xff]  }
 0x219   :  { %16789 = vmatprep.subr.bf16.mxu1 %v18393_v57  ;;  %v18436_v57 = vld [vmem:[#allocation2 + $0x1090] sm:$0xff]  }
 0x21a   :  { %12639 = vmatmul.mubr.bf16.vlgmr.msra.gmra.mrb[56].mxu0 %v3032_v56  ;;  %v18435_v56 = vld [vmem:[#allocation2 + $0x1010] sm:$0xff]  }
 0x21b   :  { %16768 = vmatpush3.bf16.msra.mxu0 %v18394_v59  ;;  %12679 = vmatmul.mubr.bf16.vlgmr.msra.gmra.mrb[56].mxu1 %v3054_v63  ;;  %v18438_v59 = vld [vmem:[#allocation2 + $0x10d8] sm:$0xff]   ;;  %v18442_v63 = vld [vmem:[#allocation2 + $0x10e0] sm:$0xff]  }
 0x21c   :  { %16769 = vmatprep.subr.bf16.mxu0 %v18396_v0  ;;  %16790 = vmatpush3.bf16.msra.mxu1 %v18395_v61  ;;  %v18440_v61 = vld [vmem:[#allocation2 + $0x1098] sm:$0xff]   ;;  %v18443_v0 = vld [vmem:[#allocation2 + $0x1020] sm:$0xff]  }
 0x21d   :  { %12718 = vmatprep.mubr.bf16.mxu0 %v3053_v3  ;;  %16791 = vmatprep.subr.bf16.mxu1 %v18397_v2  ;;  %v18445_v2 = vld [vmem:[#allocation2 + $0x1068] sm:$0xff]  }
 0x21e   :  { %12758 = vmatprep.mubr.bf16.mxu1 %v3057_v6  ;;  %v18446_v3 = vld [vmem:[#allocation2 + $0x10e8] sm:$0xff]  }
 0x21f   :  { %16770 = vmatpush3.bf16.msra.mxu0 %v18398_v4 }
 0x220   :  { %16771 = vmatprep.subr.bf16.mxu0 %v18400_v7  ;;  %16792 = vmatpush3.bf16.msra.mxu1 %v18399_v5  ;;  %v18447_v5 = vld [vmem:[#allocation2 + $0x1028] sm:$0xff]   ;;  %v18449_v7 = vld [vmem:[#allocation2 + $0x1070] sm:$0xff]  }
 0x221   :  { %16793 = vmatprep.subr.bf16.mxu1 %v18401_v8 }
 0x223   :  { %16772 = vmatpush3.bf16.msra.mxu0 %v18402_v9 }
 0x224   :  { %16773 = vmatprep.subr.bf16.mxu0 %v18404_v11  ;;  %16794 = vmatpush3.bf16.msra.mxu1 %v18403_v10 }
 0x225   :  { %16795 = vmatprep.subr.bf16.mxu1 %v18405_v12  ;;  %v18448_v12 = vld [vmem:[#allocation2 + $0x10a8] sm:$0xff]  }
 0x227   :  { %16774 = vmatpush3.bf16.msra.mxu0 %v18406_v13 }
 0x228   :  { %16775 = vmatprep.subr.bf16.mxu0 %v18408_v15  ;;  %16796 = vmatpush3.bf16.msra.mxu1 %v18407_v14  ;;  %v18450_v14 = vld [vmem:[#allocation2 + $0x10f0] sm:$0xff]  }
 0x229   :  { %16797 = vmatprep.subr.bf16.mxu1 %v18409_v16 }
 0x22b   :  { %16776 = vmatpush3.bf16.msra.mxu0 %v18410_v17 }
 0x22c   :  { %16777 = vmatprep.subr.bf16.mxu0 %v18412_v19  ;;  %16798 = vmatpush3.bf16.msra.mxu1 %v18411_v18  ;;  %v18451_v18 = vld [vmem:[#allocation2 + $0x1030] sm:$0xff]  }
 0x22d   :  { %v16475_v21 = vpop.f32.mrb[32].mxu0  ;;  %16799 = vmatprep.subr.bf16.mxu1 %v18413_v20  ;;  %v18453_v20 = vld [vmem:[#allocation2 + $0x1078] sm:$0xff]  }
 0x22e   :  { %v16476_v23 = vpop.f32.mrb[33].mxu0  ;;  %v16497_v25 = vpop.f32.mrb[32].mxu1 }
 0x22f   :  { %v16477_v26 = vadd.f32 %v16476_v23, %v16475_v21  ;;  %v16478_v27 = vpop.f32.mrb[34].mxu0  ;;  %v16498_v30 = vpop.f32.mrb[33].mxu1  ;;  %16778 = vmatpush3.bf16.msra.mxu0 %v18414_v22  ;;  %v18452_v22 = vld [vmem:[#allocation2 + $0x10b0] sm:$0xff]   ;;  %v18454_v23 = vld [vmem:[#allocation2 + $0x10f8] sm:$0xff]  }
 0x230   :  { %v16479_v31 = vpop.f32.mrb[35].mxu0  ;;  %v16499_v33 = vadd.f32 %v16498_v30, %v16497_v25  ;;  %v16500_v34 = vpop.f32.mrb[34].mxu1  ;;  %16779 = vmatprep.subr.bf16.mxu0 %v18416_v28  ;;  %16800 = vmatpush3.bf16.msra.mxu1 %v18415_v24  ;;  %v18455_v24 = vld [vmem:[#allocation2 + $0x1038] sm:$0xff]   ;;  %v67_v25 = vld [vmem:[%s19803_s0 + $0x40] sm:$0xff] }
 0x231   :  { %v12161_v32 = vadd.f32 %v16477_v26, %v19510_v46  ;;  %v16501_v37 = vpop.f32.mrb[35].mxu1  ;;  %16801 = vmatprep.subr.bf16.mxu1 %v18417_v29  ;;  %v18426_v46 = vld [vmem:[#allocation2 + $0x10c0] sm:$0xff]   ;;  %v3065_v26 = vrot.slane %v67_v25, %v19389_v35  ;;  %v3058_v28 = vcombine.high %v67_v25, %v67_v25  ;;  %v18456_v29 = vld [vmem:[#allocation2 + $0x10b8] sm:$0xff]   ;;  %v18494_v25 = vld [vmem:[#allocation2 + $0x1248] sm:$0xff]  }
 0x232   :  { %v18457_v27 = vld [vmem:[#allocation2 + $0x1140] sm:$0xff]  }
 0x233   :  { %v19525_v39 = vadd.f32 %v16499_v33, %v12161_v32  ;;  %16780 = vmatpush3.bf16.msra.mxu0 %v18418_v36  ;;  %v3073_v30 = vcombine.high %v3065_v26, %v3065_v26  ;;  %v3081_v31 = vrot.slane %v3065_v26, %v19389_v35  ;;  %v18458_v32 = vld [vmem:[#allocation2 + $0x11c0] sm:$0xff]   ;;  %v19538_v33 = vrot.slane %v3058_v28, %v19389_v35  ;;  %v18495_v26 = vld [vmem:[#allocation2 + $0x12c8] sm:$0xff]  }
 0x234   :  { %16781 = vmatprep.subr.bf16.mxu0 %v18420_v40  ;;  %16802 = vmatpush3.bf16.msra.mxu1 %v18419_v38  ;;  %v18459_v34 = vld [vmem:[#allocation2 + $0x1100] sm:$0xff]   ;;  %v18461_v40 = vld [vmem:[#allocation2 + $0x1148] sm:$0xff]  }
 0x235   :  { %16803 = vmatprep.subr.bf16.mxu1 %v18421_v41  ;;  %v3095_v36 = vrot.slane %v3073_v30, %v19389_v35  ;;  %v18460_v37 = vld [vmem:[#allocation2 + $0x1180] sm:$0xff]   ;;  %v3074_v38 = vcombine.high %v19538_v33, %v19538_v33  ;;  %v18497_v28 = vld [vmem:[#allocation2 + $0x1288] sm:$0xff]   ;;  %v18499_v30 = vld [vmem:[#allocation2 + $0x12d0] sm:$0xff]  }
 0x237   :  { %16782 = vmatpush3.bf16.msra.mxu0 %v18422_v42  ;;  %v3105_v41 = vcombine.high %v3095_v36, %v3095_v36  ;;  %v18462_v42 = vld [vmem:[#allocation2 + $0x11c8] sm:$0xff]  }
 0x238   :  { %16811 = vmatprep.subr.bf16.mxu0 %v18425_v45  ;;  %16804 = vmatpush3.bf16.msra.mxu1 %v18423_v43  ;;  %v3102_v43 = vrot.slane %v3074_v38, %v19389_v35  ;;  %v18464_v45 = vld [vmem:[#allocation2 + $0x1188] sm:$0xff]   ;;  %v18506_v38 = vld [vmem:[#allocation2 + $0x1260] sm:$0xff]  }
 0x239   :  { %16833 = vmatprep.subr.bf16.mxu1 %v18426_v46 }
 0x23a   :  { %12719 = vmatmul.mubr.bf16.vlgmr.msra.gmra.mrb[60].mxu0 %v3039_v44  ;;  %v18463_v44 = vld [vmem:[#allocation2 + $0x1108] sm:$0xff]   ;;  %v3106_v46 = vcombine.high %v3102_v43, %v3102_v43 }
 0x23b   :  { %16812 = vmatpush3.bf16.msra.mxu0 %v18427_v47  ;;  %12759 = vmatmul.mubr.bf16.vlgmr.msra.gmra.mrb[60].mxu1 %v3055_v49  ;;  %v18465_v47 = vld [vmem:[#allocation2 + $0x1150] sm:$0xff]  }
 0x23c   :  { %16813 = vmatprep.subr.bf16.mxu0 %v18429_v50  ;;  %16834 = vmatpush3.bf16.msra.mxu1 %v18428_v48  ;;  %v18466_v48 = vld [vmem:[#allocation2 + $0x11d0] sm:$0xff]  }
 0x23d   :  { %16835 = vmatprep.subr.bf16.mxu1 %v18430_v51  ;;  %12798 = vmatprep.mubr.bf16.mxu0 %v3095_v36  ;;  %v18467_v49 = vld [vmem:[#allocation2 + $0x1110] sm:$0xff]   ;;  %v18469_v51 = vld [vmem:[#allocation2 + $0x1158] sm:$0xff]  }
 0x23e   :  { %12838 = vmatprep.mubr.bf16.mxu1 %v3105_v41  ;;  %v18468_v50 = vld [vmem:[#allocation2 + $0x1190] sm:$0xff]   ;;  %v18504_v36 = vld [vmem:[#allocation2 + $0x1218] sm:$0xff]   ;;  %v18509_v41 = vld [vmem:[#allocation2 + $0x12a0] sm:$0xff]  }
 0x23f   :  { %16814 = vmatpush3.bf16.msra.mxu0 %v18431_v52  ;;  %v18470_v52 = vld [vmem:[#allocation2 + $0x11d8] sm:$0xff]  }
 0x240   :  { %16815 = vmatprep.subr.bf16.mxu0 %v18433_v54  ;;  %16836 = vmatpush3.bf16.msra.mxu1 %v18432_v53  ;;  %v18471_v53 = vld [vmem:[#allocation2 + $0x1118] sm:$0xff]  }
 0x241   :  { %16837 = vmatprep.subr.bf16.mxu1 %v18434_v55  ;;  %v18472_v54 = vld [vmem:[#allocation2 + $0x1198] sm:$0xff]   ;;  %v18473_v55 = vld [vmem:[#allocation2 + $0x1160] sm:$0xff]  }
 0x243   :  { %16816 = vmatpush3.bf16.msra.mxu0 %v18435_v56  ;;  %v18474_v56 = vld [vmem:[#allocation2 + $0x11e0] sm:$0xff]  }
 0x244   :  { %16817 = vmatprep.subr.bf16.mxu0 %v18437_v58  ;;  %16838 = vmatpush3.bf16.msra.mxu1 %v18436_v57  ;;  %v18475_v57 = vld [vmem:[#allocation2 + $0x1120] sm:$0xff]  }
 0x245   :  { %16839 = vmatprep.subr.bf16.mxu1 %v18438_v59  ;;  %v18476_v58 = vld [vmem:[#allocation2 + $0x11a0] sm:$0xff]   ;;  %v18477_v59 = vld [vmem:[#allocation2 + $0x1168] sm:$0xff]  }
 0x247   :  { %16818 = vmatpush3.bf16.msra.mxu0 %v18439_v60  ;;  %v18478_v60 = vld [vmem:[#allocation2 + $0x11e8] sm:$0xff]  }
 0x248   :  { %16819 = vmatprep.subr.bf16.mxu0 %v18441_v62  ;;  %16840 = vmatpush3.bf16.msra.mxu1 %v18440_v61  ;;  %v18479_v62 = vld [vmem:[#allocation2 + $0x1128] sm:$0xff]  }
 0x249   :  { %16841 = vmatprep.subr.bf16.mxu1 %v18442_v63 }
 0x24b   :  { %16820 = vmatpush3.bf16.msra.mxu0 %v18443_v0  ;;  %v18480_v0 = vld [vmem:[#allocation2 + $0x11a8] sm:$0xff]  }
 0x24c   :  { %16821 = vmatprep.subr.bf16.mxu0 %v18445_v2  ;;  %16842 = vmatpush3.bf16.msra.mxu1 %v18444_v1 }
 0x24d   :  { %v16519_v4 = vpop.f32.mrb[36].mxu0  ;;  %16843 = vmatprep.subr.bf16.mxu1 %v18446_v3 }
 0x24e   :  { %v16520_v6 = vpop.f32.mrb[37].mxu0  ;;  %v16541_v8 = vpop.f32.mrb[36].mxu1 }
 0x24f   :  { %v16521_v9 = vadd.f32 %v16520_v6, %v16519_v4  ;;  %v16522_v10 = vpop.f32.mrb[38].mxu0  ;;  %v16542_v11 = vpop.f32.mrb[37].mxu1  ;;  %16822 = vmatpush3.bf16.msra.mxu0 %v18447_v5  ;;  %v18481_v4 = vld [vmem:[#allocation2 + $0x1170] sm:$0xff]  }
 0x250   :  { %v16523_v13 = vpop.f32.mrb[39].mxu0  ;;  %v16543_v16 = vadd.f32 %v16542_v11, %v16541_v8  ;;  %v16544_v17 = vpop.f32.mrb[38].mxu1  ;;  %16823 = vmatprep.subr.bf16.mxu0 %v18449_v7  ;;  %16844 = vmatpush3.bf16.msra.mxu1 %v18448_v12  ;;  %v18482_v5 = vld [vmem:[#allocation2 + $0x11f0] sm:$0xff]  }
 0x251   :  { %v12241_v15 = vadd.f32 %v16521_v9, %v19525_v39  ;;  %v16545_v19 = vpop.f32.mrb[39].mxu1  ;;  %16845 = vmatprep.subr.bf16.mxu1 %v18450_v14  ;;  %v3103_v39 = vcombine.high %v3081_v31, %v3081_v31  ;;  %v18483_v11 = vld [vmem:[#allocation2 + $0x1130] sm:$0xff]   ;;  %v18487_v17 = vld [vmem:[#allocation2 + $0x1138] sm:$0xff]  }
 0x252   :  { %v18484_v13 = vld [vmem:[#allocation2 + $0x11b0] sm:$0xff]   ;;  %v3088_v19 = vrot.slane %v19538_v33, %v19389_v35  ;;  %v18502_v33 = vld [vmem:[#allocation2 + $0x1258] sm:$0xff]  }
 0x253   :  { %v19530_v21 = vadd.f32 %v16543_v16, %v12241_v15  ;;  %16824 = vmatpush3.bf16.msra.mxu0 %v18451_v18  ;;  %v18485_v15 = vld [vmem:[#allocation2 + $0x1178] sm:$0xff]  }
 0x254   :  { %16825 = vmatprep.subr.bf16.mxu0 %v18453_v20  ;;  %16846 = vmatpush3.bf16.msra.mxu1 %v18452_v22  ;;  %v18486_v16 = vld [vmem:[#allocation2 + $0x11f8] sm:$0xff]   ;;  %v18490_v20 = vld [vmem:[#allocation2 + $0x1240] sm:$0xff]  }
 0x255   :  { %16847 = vmatprep.subr.bf16.mxu1 %v18454_v23  ;;  %v18488_v18 = vld [vmem:[#allocation2 + $0x11b8] sm:$0xff]   ;;  %v18492_v22 = vld [vmem:[#allocation2 + $0x1200] sm:$0xff]  }
 0x256   :  { %v18493_v23 = vld [vmem:[#allocation2 + $0x1280] sm:$0xff]  }
 0x257   :  { %16826 = vmatpush3.bf16.msra.mxu0 %v18455_v24  ;;  %v3104_v24 = vcombine.high %v3088_v19, %v3088_v19 }
 0x258   :  { %16855 = vmatprep.subr.bf16.mxu0 %v18457_v27  ;;  %16848 = vmatpush3.bf16.msra.mxu1 %v18456_v29  ;;  %v18496_v27 = vld [vmem:[#allocation2 + $0x1208] sm:$0xff]   ;;  %v18498_v29 = vld [vmem:[#allocation2 + $0x1250] sm:$0xff]  }
 0x259   :  { %16877 = vmatprep.subr.bf16.mxu1 %v18458_v32  ;;  %v18501_v32 = vld [vmem:[#allocation2 + $0x1290] sm:$0xff]  }
 0x25a   :  { %12799 = vmatmul.mubr.bf16.vlgmr.msra.gmra.mrb[64].mxu0 %v3081_v31  ;;  %v18500_v31 = vld [vmem:[#allocation2 + $0x1210] sm:$0xff]  }
 0x25b   :  { %16856 = vmatpush3.bf16.msra.mxu0 %v18459_v34  ;;  %12839 = vmatmul.mubr.bf16.vlgmr.msra.gmra.mrb[64].mxu1 %v3103_v39  ;;  %v18503_v34 = vld [vmem:[#allocation2 + $0x12d8] sm:$0xff]   ;;  %v18507_v39 = vld [vmem:[#allocation2 + $0x12e0] sm:$0xff]  }
 0x25c   :  { %16857 = vmatprep.subr.bf16.mxu0 %v18461_v40  ;;  %16878 = vmatpush3.bf16.msra.mxu1 %v18460_v37  ;;  %v18505_v37 = vld [vmem:[#allocation2 + $0x1298] sm:$0xff]   ;;  %v18508_v40 = vld [vmem:[#allocation2 + $0x1220] sm:$0xff]  }
 0x25d   :  { %12878 = vmatprep.mubr.bf16.mxu0 %v3102_v43  ;;  %16879 = vmatprep.subr.bf16.mxu1 %v18462_v42  ;;  %v18510_v42 = vld [vmem:[#allocation2 + $0x1268] sm:$0xff]  }
 0x25e   :  { %12918 = vmatprep.mubr.bf16.mxu1 %v3106_v46  ;;  %v18511_v43 = vld [vmem:[#allocation2 + $0x12e8] sm:$0xff]  }
 0x25f   :  { %16858 = vmatpush3.bf16.msra.mxu0 %v18463_v44 }
 0x260   :  { %16859 = vmatprep.subr.bf16.mxu0 %v18465_v47  ;;  %16880 = vmatpush3.bf16.msra.mxu1 %v18464_v45  ;;  %v18512_v45 = vld [vmem:[#allocation2 + $0x1228] sm:$0xff]   ;;  %v18514_v47 = vld [vmem:[#allocation2 + $0x1270] sm:$0xff]  }
 0x261   :  { %16881 = vmatprep.subr.bf16.mxu1 %v18466_v48 }
 0x263   :  { %16860 = vmatpush3.bf16.msra.mxu0 %v18467_v49 }
 0x264   :  { %16861 = vmatprep.subr.bf16.mxu0 %v18469_v51  ;;  %16882 = vmatpush3.bf16.msra.mxu1 %v18468_v50 }
 0x265   :  { %16883 = vmatprep.subr.bf16.mxu1 %v18470_v52  ;;  %v18513_v52 = vld [vmem:[#allocation2 + $0x12a8] sm:$0xff]  }
 0x267   :  { %16862 = vmatpush3.bf16.msra.mxu0 %v18471_v53 }
 0x268   :  { %16863 = vmatprep.subr.bf16.mxu0 %v18473_v55  ;;  %16884 = vmatpush3.bf16.msra.mxu1 %v18472_v54  ;;  %v18515_v54 = vld [vmem:[#allocation2 + $0x12f0] sm:$0xff]  }
 0x269   :  { %16885 = vmatprep.subr.bf16.mxu1 %v18474_v56 }
 0x26b   :  { %16864 = vmatpush3.bf16.msra.mxu0 %v18475_v57 }
 0x26c   :  { %16865 = vmatprep.subr.bf16.mxu0 %v18477_v59  ;;  %16886 = vmatpush3.bf16.msra.mxu1 %v18476_v58  ;;  %v18516_v58 = vld [vmem:[#allocation2 + $0x1230] sm:$0xff]  }
 0x26d   :  { %v16563_v61 = vpop.f32.mrb[40].mxu0  ;;  %16887 = vmatprep.subr.bf16.mxu1 %v18478_v60  ;;  %v18518_v60 = vld [vmem:[#allocation2 + $0x1278] sm:$0xff]  }
 0x26e   :  { %v16564_v63 = vpop.f32.mrb[41].mxu0  ;;  %v16585_v1 = vpop.f32.mrb[40].mxu1 }
 0x26f   :  { %v16565_v2 = vadd.f32 %v16564_v63, %v16563_v61  ;;  %v16566_v3 = vpop.f32.mrb[42].mxu0  ;;  %v16586_v6 = vpop.f32.mrb[41].mxu1  ;;  %16866 = vmatpush3.bf16.msra.mxu0 %v18479_v62  ;;  %v18517_v62 = vld [vmem:[#allocation2 + $0x12b0] sm:$0xff]   ;;  %v18519_v63 = vld [vmem:[#allocation2 + $0x12f8] sm:$0xff]  }
 0x270   :  { %v16567_v7 = vpop.f32.mrb[43].mxu0  ;;  %v16587_v9 = vadd.f32 %v16586_v6, %v16585_v1  ;;  %v16588_v10 = vpop.f32.mrb[42].mxu1  ;;  %16867 = vmatprep.subr.bf16.mxu0 %v18481_v4  ;;  %16888 = vmatpush3.bf16.msra.mxu1 %v18480_v0  ;;  %v18520_v0 = vld [vmem:[#allocation2 + $0x1238] sm:$0xff]   ;;  %v68_v1 = vld [vmem:[%s19803_s0 + $0x48] sm:$0xff]  ;;  %v18522_v3 = vld [vmem:[#allocation2 + $0x1340] sm:$0xff]  }
 0x271   :  { %v12321_v8 = vadd.f32 %v16565_v2, %v19530_v21  ;;  %v16589_v12 = vpop.f32.mrb[43].mxu1  ;;  %16889 = vmatprep.subr.bf16.mxu1 %v18482_v5  ;;  %v18491_v21 = vld [vmem:[#allocation2 + $0x12c0] sm:$0xff]   ;;  %v3114_v2 = vrot.slane %v68_v1, %v19389_v35  ;;  %v3107_v4 = vcombine.high %v68_v1, %v68_v1  ;;  %v18521_v5 = vld [vmem:[#allocation2 + $0x12b8] sm:$0xff]   ;;  %v18559_v1 = vld [vmem:[#allocation2 + $0x1448] sm:$0xff]  }
 0x272   :  { %v18524_v10 = vld [vmem:[#allocation2 + $0x1300] sm:$0xff]  }
 0x273   :  { %v19545_v14 = vadd.f32 %v16587_v9, %v12321_v8  ;;  %16868 = vmatpush3.bf16.msra.mxu0 %v18483_v11  ;;  %v3122_v6 = vcombine.high %v3114_v2, %v3114_v2  ;;  %v3130_v7 = vrot.slane %v3114_v2, %v19389_v35  ;;  %v18523_v8 = vld [vmem:[#allocation2 + $0x13c0] sm:$0xff]   ;;  %v19558_v9 = vrot.slane %v3107_v4, %v19389_v35  ;;  %v18560_v2 = vld [vmem:[#allocation2 + $0x14c8] sm:$0xff]  }
 0x274   :  { %16869 = vmatprep.subr.bf16.mxu0 %v18485_v15  ;;  %16890 = vmatpush3.bf16.msra.mxu1 %v18484_v13  ;;  %v18525_v12 = vld [vmem:[#allocation2 + $0x1380] sm:$0xff]   ;;  %v18526_v15 = vld [vmem:[#allocation2 + $0x1348] sm:$0xff]  }
 0x275   :  { %16891 = vmatprep.subr.bf16.mxu1 %v18486_v16  ;;  %v3144_v11 = vrot.slane %v3122_v6, %v19389_v35  ;;  %v3123_v13 = vcombine.high %v19558_v9, %v19558_v9  ;;  %v18562_v4 = vld [vmem:[#allocation2 + $0x1488] sm:$0xff]   ;;  %v18564_v6 = vld [vmem:[#allocation2 + $0x14d0] sm:$0xff]  }
 0x277   :  { %16870 = vmatpush3.bf16.msra.mxu0 %v18487_v17  ;;  %v3154_v16 = vcombine.high %v3144_v11, %v3144_v11  ;;  %v18527_v17 = vld [vmem:[#allocation2 + $0x13c8] sm:$0xff]  }
 0x278   :  { %16899 = vmatprep.subr.bf16.mxu0 %v18490_v20  ;;  %16892 = vmatpush3.bf16.msra.mxu1 %v18488_v18  ;;  %v3151_v18 = vrot.slane %v3123_v13, %v19389_v35  ;;  %v18529_v20 = vld [vmem:[#allocation2 + $0x1388] sm:$0xff]   ;;  %v18571_v13 = vld [vmem:[#allocation2 + $0x1460] sm:$0xff]  }
 0x279   :  { %16921 = vmatprep.subr.bf16.mxu1 %v18491_v21 }
 0x27a   :  { %12879 = vmatmul.mubr.bf16.vlgmr.msra.gmra.mrb[68].mxu0 %v3088_v19  ;;  %v18528_v19 = vld [vmem:[#allocation2 + $0x1308] sm:$0xff]   ;;  %v3155_v21 = vcombine.high %v3151_v18, %v3151_v18 }
 0x27b   :  { %16900 = vmatpush3.bf16.msra.mxu0 %v18492_v22  ;;  %12919 = vmatmul.mubr.bf16.vlgmr.msra.gmra.mrb[68].mxu1 %v3104_v24  ;;  %v18530_v22 = vld [vmem:[#allocation2 + $0x1350] sm:$0xff]  }
 0x27c   :  { %16901 = vmatprep.subr.bf16.mxu0 %v18494_v25  ;;  %16922 = vmatpush3.bf16.msra.mxu1 %v18493_v23  ;;  %v18531_v23 = vld [vmem:[#allocation2 + $0x13d0] sm:$0xff]  }
 0x27d   :  { %16923 = vmatprep.subr.bf16.mxu1 %v18495_v26  ;;  %12958 = vmatprep.mubr.bf16.mxu0 %v3144_v11  ;;  %v18532_v24 = vld [vmem:[#allocation2 + $0x1310] sm:$0xff]   ;;  %v18534_v26 = vld [vmem:[#allocation2 + $0x1358] sm:$0xff]  }
 0x27e   :  { %12998 = vmatprep.mubr.bf16.mxu1 %v3154_v16  ;;  %v18533_v25 = vld [vmem:[#allocation2 + $0x1390] sm:$0xff]   ;;  %v18569_v11 = vld [vmem:[#allocation2 + $0x1418] sm:$0xff]   ;;  %v18574_v16 = vld [vmem:[#allocation2 + $0x14a0] sm:$0xff]  }
 0x27f   :  { %16902 = vmatpush3.bf16.msra.mxu0 %v18496_v27  ;;  %v18535_v27 = vld [vmem:[#allocation2 + $0x13d8] sm:$0xff]  }
 0x280   :  { %16903 = vmatprep.subr.bf16.mxu0 %v18498_v29  ;;  %16924 = vmatpush3.bf16.msra.mxu1 %v18497_v28  ;;  %v18536_v28 = vld [vmem:[#allocation2 + $0x1318] sm:$0xff]  }
 0x281   :  { %16925 = vmatprep.subr.bf16.mxu1 %v18499_v30  ;;  %v18537_v29 = vld [vmem:[#allocation2 + $0x1398] sm:$0xff]   ;;  %v18538_v30 = vld [vmem:[#allocation2 + $0x1360] sm:$0xff]  }
 0x283   :  { %16904 = vmatpush3.bf16.msra.mxu0 %v18500_v31  ;;  %v18539_v31 = vld [vmem:[#allocation2 + $0x13e0] sm:$0xff]  }
 0x284   :  { %16905 = vmatprep.subr.bf16.mxu0 %v18502_v33  ;;  %16926 = vmatpush3.bf16.msra.mxu1 %v18501_v32  ;;  %v18540_v32 = vld [vmem:[#allocation2 + $0x1320] sm:$0xff]  }
 0x285   :  { %16927 = vmatprep.subr.bf16.mxu1 %v18503_v34  ;;  %v18541_v33 = vld [vmem:[#allocation2 + $0x13a0] sm:$0xff]   ;;  %v18542_v34 = vld [vmem:[#allocation2 + $0x1368] sm:$0xff]  }
 0x287   :  { %16906 = vmatpush3.bf16.msra.mxu0 %v18504_v36  ;;  %v18543_v36 = vld [vmem:[#allocation2 + $0x13e8] sm:$0xff]  }
 0x288   :  { %16907 = vmatprep.subr.bf16.mxu0 %v18506_v38  ;;  %16928 = vmatpush3.bf16.msra.mxu1 %v18505_v37  ;;  %v18544_v38 = vld [vmem:[#allocation2 + $0x1328] sm:$0xff]  }
 0x289   :  { %16929 = vmatprep.subr.bf16.mxu1 %v18507_v39 }
 0x28b   :  { %16908 = vmatpush3.bf16.msra.mxu0 %v18508_v40  ;;  %v18545_v40 = vld [vmem:[#allocation2 + $0x13a8] sm:$0xff]  }
 0x28c   :  { %16909 = vmatprep.subr.bf16.mxu0 %v18510_v42  ;;  %16930 = vmatpush3.bf16.msra.mxu1 %v18509_v41 }
 0x28d   :  { %v16607_v44 = vpop.f32.mrb[44].mxu0  ;;  %16931 = vmatprep.subr.bf16.mxu1 %v18511_v43 }
 0x28e   :  { %v16608_v46 = vpop.f32.mrb[45].mxu0  ;;  %v16629_v48 = vpop.f32.mrb[44].mxu1 }
 0x28f   :  { %v16609_v49 = vadd.f32 %v16608_v46, %v16607_v44  ;;  %v16610_v50 = vpop.f32.mrb[46].mxu0  ;;  %v16630_v51 = vpop.f32.mrb[45].mxu1  ;;  %16910 = vmatpush3.bf16.msra.mxu0 %v18512_v45  ;;  %v18546_v44 = vld [vmem:[#allocation2 + $0x1370] sm:$0xff]  }
 0x290   :  { %v16611_v53 = vpop.f32.mrb[47].mxu0  ;;  %v16631_v56 = vadd.f32 %v16630_v51, %v16629_v48  ;;  %v16632_v57 = vpop.f32.mrb[46].mxu1  ;;  %16911 = vmatprep.subr.bf16.mxu0 %v18514_v47  ;;  %16932 = vmatpush3.bf16.msra.mxu1 %v18513_v52  ;;  %v18547_v45 = vld [vmem:[#allocation2 + $0x13f0] sm:$0xff]  }
 0x291   :  { %v12401_v55 = vadd.f32 %v16609_v49, %v19545_v14  ;;  %v16633_v59 = vpop.f32.mrb[47].mxu1  ;;  %16933 = vmatprep.subr.bf16.mxu1 %v18515_v54  ;;  %v3152_v14 = vcombine.high %v3130_v7, %v3130_v7  ;;  %v18548_v51 = vld [vmem:[#allocation2 + $0x1330] sm:$0xff]   ;;  %v18552_v57 = vld [vmem:[#allocation2 + $0x1338] sm:$0xff]  }
 0x292   :  { %v18549_v53 = vld [vmem:[#allocation2 + $0x13b0] sm:$0xff]   ;;  %v3137_v59 = vrot.slane %v19558_v9, %v19389_v35  ;;  %v18567_v9 = vld [vmem:[#allocation2 + $0x1458] sm:$0xff]  }
 0x293   :  { %v19550_v61 = vadd.f32 %v16631_v56, %v12401_v55  ;;  %16912 = vmatpush3.bf16.msra.mxu0 %v18516_v58  ;;  %v18550_v55 = vld [vmem:[#allocation2 + $0x1378] sm:$0xff]  }
 0x294   :  { %16913 = vmatprep.subr.bf16.mxu0 %v18518_v60  ;;  %16934 = vmatpush3.bf16.msra.mxu1 %v18517_v62  ;;  %v18551_v56 = vld [vmem:[#allocation2 + $0x13f8] sm:$0xff]   ;;  %v18555_v60 = vld [vmem:[#allocation2 + $0x1440] sm:$0xff]  }
 0x295   :  { %16935 = vmatprep.subr.bf16.mxu1 %v18519_v63  ;;  %v18553_v58 = vld [vmem:[#allocation2 + $0x13b8] sm:$0xff]   ;;  %v18557_v62 = vld [vmem:[#allocation2 + $0x1400] sm:$0xff]  }
 0x296   :  { %v18558_v63 = vld [vmem:[#allocation2 + $0x1480] sm:$0xff]  }
 0x297   :  { %16914 = vmatpush3.bf16.msra.mxu0 %v18520_v0  ;;  %v3153_v0 = vcombine.high %v3137_v59, %v3137_v59 }
 0x298   :  { %16943 = vmatprep.subr.bf16.mxu0 %v18522_v3  ;;  %16936 = vmatpush3.bf16.msra.mxu1 %v18521_v5  ;;  %v18561_v3 = vld [vmem:[#allocation2 + $0x1408] sm:$0xff]   ;;  %v18563_v5 = vld [vmem:[#allocation2 + $0x1450] sm:$0xff]  }
 0x299   :  { %16965 = vmatprep.subr.bf16.mxu1 %v18523_v8  ;;  %v18566_v8 = vld [vmem:[#allocation2 + $0x1490] sm:$0xff]  }
 0x29a   :  { %12959 = vmatmul.mubr.bf16.vlgmr.msra.gmra.mrb[72].mxu0 %v3130_v7  ;;  %v18565_v7 = vld [vmem:[#allocation2 + $0x1410] sm:$0xff]  }
 0x29b   :  { %16944 = vmatpush3.bf16.msra.mxu0 %v18524_v10  ;;  %12999 = vmatmul.mubr.bf16.vlgmr.msra.gmra.mrb[72].mxu1 %v3152_v14  ;;  %v18568_v10 = vld [vmem:[#allocation2 + $0x14d8] sm:$0xff]   ;;  %v18572_v14 = vld [vmem:[#allocation2 + $0x14e0] sm:$0xff]  }
 0x29c   :  { %16945 = vmatprep.subr.bf16.mxu0 %v18526_v15  ;;  %16966 = vmatpush3.bf16.msra.mxu1 %v18525_v12  ;;  %v18570_v12 = vld [vmem:[#allocation2 + $0x1498] sm:$0xff]   ;;  %v18573_v15 = vld [vmem:[#allocation2 + $0x1420] sm:$0xff]  }
 0x29d   :  { %13038 = vmatprep.mubr.bf16.mxu0 %v3151_v18  ;;  %16967 = vmatprep.subr.bf16.mxu1 %v18527_v17  ;;  %v18575_v17 = vld [vmem:[#allocation2 + $0x1468] sm:$0xff]  }
 0x29e   :  { %13078 = vmatprep.mubr.bf16.mxu1 %v3155_v21  ;;  %v18576_v18 = vld [vmem:[#allocation2 + $0x14e8] sm:$0xff]  }
 0x29f   :  { %16946 = vmatpush3.bf16.msra.mxu0 %v18528_v19 }
 0x2a0   :  { %16947 = vmatprep.subr.bf16.mxu0 %v18530_v22  ;;  %16968 = vmatpush3.bf16.msra.mxu1 %v18529_v20  ;;  %v18577_v20 = vld [vmem:[#allocation2 + $0x1428] sm:$0xff]   ;;  %v18579_v22 = vld [vmem:[#allocation2 + $0x1470] sm:$0xff]  }
 0x2a1   :  { %16969 = vmatprep.subr.bf16.mxu1 %v18531_v23 }
 0x2a3   :  { %16948 = vmatpush3.bf16.msra.mxu0 %v18532_v24 }
 0x2a4   :  { %16949 = vmatprep.subr.bf16.mxu0 %v18534_v26  ;;  %16970 = vmatpush3.bf16.msra.mxu1 %v18533_v25 }
 0x2a5   :  { %16971 = vmatprep.subr.bf16.mxu1 %v18535_v27  ;;  %v18578_v27 = vld [vmem:[#allocation2 + $0x14a8] sm:$0xff]  }
 0x2a7   :  { %16950 = vmatpush3.bf16.msra.mxu0 %v18536_v28 }
 0x2a8   :  { %16951 = vmatprep.subr.bf16.mxu0 %v18538_v30  ;;  %16972 = vmatpush3.bf16.msra.mxu1 %v18537_v29  ;;  %v18580_v29 = vld [vmem:[#allocation2 + $0x14f0] sm:$0xff]  }
 0x2a9   :  { %16973 = vmatprep.subr.bf16.mxu1 %v18539_v31 }
 0x2ab   :  { %16952 = vmatpush3.bf16.msra.mxu0 %v18540_v32 }
 0x2ac   :  { %16953 = vmatprep.subr.bf16.mxu0 %v18542_v34  ;;  %16974 = vmatpush3.bf16.msra.mxu1 %v18541_v33  ;;  %v18581_v33 = vld [vmem:[#allocation2 + $0x1430] sm:$0xff]  }
 0x2ad   :  { %v16651_v37 = vpop.f32.mrb[48].mxu0  ;;  %16975 = vmatprep.subr.bf16.mxu1 %v18543_v36  ;;  %v18583_v36 = vld [vmem:[#allocation2 + $0x1478] sm:$0xff]  }
 0x2ae   :  { %v16652_v39 = vpop.f32.mrb[49].mxu0  ;;  %v16673_v41 = vpop.f32.mrb[48].mxu1 }
 0x2af   :  { %v16653_v42 = vadd.f32 %v16652_v39, %v16651_v37  ;;  %v16654_v43 = vpop.f32.mrb[50].mxu0  ;;  %v16674_v46 = vpop.f32.mrb[49].mxu1  ;;  %16954 = vmatpush3.bf16.msra.mxu0 %v18544_v38  ;;  %v18582_v38 = vld [vmem:[#allocation2 + $0x14b0] sm:$0xff]   ;;  %v18584_v39 = vld [vmem:[#allocation2 + $0x14f8] sm:$0xff]  }
 0x2b0   :  { %v16655_v47 = vpop.f32.mrb[51].mxu0  ;;  %v16675_v49 = vadd.f32 %v16674_v46, %v16673_v41  ;;  %v16676_v50 = vpop.f32.mrb[50].mxu1  ;;  %16955 = vmatprep.subr.bf16.mxu0 %v18546_v44  ;;  %16976 = vmatpush3.bf16.msra.mxu1 %v18545_v40  ;;  %v18585_v40 = vld [vmem:[#allocation2 + $0x1438] sm:$0xff]   ;;  %v69_v41 = vld [vmem:[%s19803_s0 + $0x50] sm:$0xff]  ;;  %v18587_v43 = vld [vmem:[#allocation2 + $0x1540] sm:$0xff]  }
 0x2b1   :  { %v12481_v48 = vadd.f32 %v16653_v42, %v19550_v61  ;;  %v16677_v52 = vpop.f32.mrb[51].mxu1  ;;  %16977 = vmatprep.subr.bf16.mxu1 %v18547_v45  ;;  %v18556_v61 = vld [vmem:[#allocation2 + $0x14c0] sm:$0xff]   ;;  %v3163_v42 = vrot.slane %v69_v41, %v19389_v35  ;;  %v3156_v44 = vcombine.high %v69_v41, %v69_v41  ;;  %v18586_v45 = vld [vmem:[#allocation2 + $0x14b8] sm:$0xff]   ;;  %v18624_v41 = vld [vmem:[#allocation2 + $0x1648] sm:$0xff]  }
 0x2b2   :  { %v18589_v50 = vld [vmem:[#allocation2 + $0x1500] sm:$0xff]  }
 0x2b3   :  { %v19565_v54 = vadd.f32 %v16675_v49, %v12481_v48  ;;  %16956 = vmatpush3.bf16.msra.mxu0 %v18548_v51  ;;  %v3171_v46 = vcombine.high %v3163_v42, %v3163_v42  ;;  %v3179_v47 = vrot.slane %v3163_v42, %v19389_v35  ;;  %v18588_v48 = vld [vmem:[#allocation2 + $0x15c0] sm:$0xff]   ;;  %v19578_v49 = vrot.slane %v3156_v44, %v19389_v35  ;;  %v18625_v42 = vld [vmem:[#allocation2 + $0x16c8] sm:$0xff]  }
 0x2b4   :  { %16957 = vmatprep.subr.bf16.mxu0 %v18550_v55  ;;  %16978 = vmatpush3.bf16.msra.mxu1 %v18549_v53  ;;  %v18590_v52 = vld [vmem:[#allocation2 + $0x1580] sm:$0xff]   ;;  %v18591_v55 = vld [vmem:[#allocation2 + $0x1548] sm:$0xff]  }
 0x2b5   :  { %16979 = vmatprep.subr.bf16.mxu1 %v18551_v56  ;;  %v3193_v51 = vrot.slane %v3171_v46, %v19389_v35  ;;  %v3172_v53 = vcombine.high %v19578_v49, %v19578_v49  ;;  %v18627_v44 = vld [vmem:[#allocation2 + $0x1688] sm:$0xff]   ;;  %v18629_v46 = vld [vmem:[#allocation2 + $0x16d0] sm:$0xff]  }
 0x2b7   :  { %16958 = vmatpush3.bf16.msra.mxu0 %v18552_v57  ;;  %v3203_v56 = vcombine.high %v3193_v51, %v3193_v51  ;;  %v18592_v57 = vld [vmem:[#allocation2 + $0x15c8] sm:$0xff]  }
 0x2b8   :  { %16987 = vmatprep.subr.bf16.mxu0 %v18555_v60  ;;  %16980 = vmatpush3.bf16.msra.mxu1 %v18553_v58  ;;  %v3200_v58 = vrot.slane %v3172_v53, %v19389_v35  ;;  %v18594_v60 = vld [vmem:[#allocation2 + $0x1588] sm:$0xff]   ;;  %v18636_v53 = vld [vmem:[#allocation2 + $0x1660] sm:$0xff]  }
 0x2b9   :  { %17009 = vmatprep.subr.bf16.mxu1 %v18556_v61 }
 0x2ba   :  { %13039 = vmatmul.mubr.bf16.vlgmr.msra.gmra.mrb[76].mxu0 %v3137_v59  ;;  %v18593_v59 = vld [vmem:[#allocation2 + $0x1508] sm:$0xff]   ;;  %v3204_v61 = vcombine.high %v3200_v58, %v3200_v58 }
 0x2bb   :  { %16988 = vmatpush3.bf16.msra.mxu0 %v18557_v62  ;;  %13079 = vmatmul.mubr.bf16.vlgmr.msra.gmra.mrb[76].mxu1 %v3153_v0  ;;  %v18595_v62 = vld [vmem:[#allocation2 + $0x1550] sm:$0xff]  }
 0x2bc   :  { %16989 = vmatprep.subr.bf16.mxu0 %v18559_v1  ;;  %17010 = vmatpush3.bf16.msra.mxu1 %v18558_v63  ;;  %v18596_v63 = vld [vmem:[#allocation2 + $0x15d0] sm:$0xff]  }
 0x2bd   :  { %17011 = vmatprep.subr.bf16.mxu1 %v18560_v2  ;;  %13118 = vmatprep.mubr.bf16.mxu0 %v3193_v51  ;;  %v18597_v0 = vld [vmem:[#allocation2 + $0x1510] sm:$0xff]   ;;  %v18599_v2 = vld [vmem:[#allocation2 + $0x1558] sm:$0xff]  }
 0x2be   :  { %13158 = vmatprep.mubr.bf16.mxu1 %v3203_v56  ;;  %v18598_v1 = vld [vmem:[#allocation2 + $0x1590] sm:$0xff]   ;;  %v18634_v51 = vld [vmem:[#allocation2 + $0x1618] sm:$0xff]   ;;  %v18639_v56 = vld [vmem:[#allocation2 + $0x16a0] sm:$0xff]  }
 0x2bf   :  { %16990 = vmatpush3.bf16.msra.mxu0 %v18561_v3  ;;  %v18600_v3 = vld [vmem:[#allocation2 + $0x15d8] sm:$0xff]  }
 0x2c0   :  { %16991 = vmatprep.subr.bf16.mxu0 %v18563_v5  ;;  %17012 = vmatpush3.bf16.msra.mxu1 %v18562_v4  ;;  %v18601_v4 = vld [vmem:[#allocation2 + $0x1518] sm:$0xff]  }
 0x2c1   :  { %17013 = vmatprep.subr.bf16.mxu1 %v18564_v6  ;;  %v18602_v5 = vld [vmem:[#allocation2 + $0x1598] sm:$0xff]   ;;  %v18603_v6 = vld [vmem:[#allocation2 + $0x1560] sm:$0xff]  }
 0x2c3   :  { %16992 = vmatpush3.bf16.msra.mxu0 %v18565_v7  ;;  %v18604_v7 = vld [vmem:[#allocation2 + $0x15e0] sm:$0xff]  }
 0x2c4   :  { %16993 = vmatprep.subr.bf16.mxu0 %v18567_v9  ;;  %17014 = vmatpush3.bf16.msra.mxu1 %v18566_v8  ;;  %v18605_v8 = vld [vmem:[#allocation2 + $0x1520] sm:$0xff]  }
 0x2c5   :  { %17015 = vmatprep.subr.bf16.mxu1 %v18568_v10  ;;  %v18606_v9 = vld [vmem:[#allocation2 + $0x15a0] sm:$0xff]   ;;  %v18607_v10 = vld [vmem:[#allocation2 + $0x1568] sm:$0xff]  }
 0x2c7   :  { %16994 = vmatpush3.bf16.msra.mxu0 %v18569_v11  ;;  %v18608_v11 = vld [vmem:[#allocation2 + $0x15e8] sm:$0xff]  }
 0x2c8   :  { %16995 = vmatprep.subr.bf16.mxu0 %v18571_v13  ;;  %17016 = vmatpush3.bf16.msra.mxu1 %v18570_v12  ;;  %v18609_v13 = vld [vmem:[#allocation2 + $0x1528] sm:$0xff]  }
 0x2c9   :  { %17017 = vmatprep.subr.bf16.mxu1 %v18572_v14 }
 0x2cb   :  { %16996 = vmatpush3.bf16.msra.mxu0 %v18573_v15  ;;  %v18610_v15 = vld [vmem:[#allocation2 + $0x15a8] sm:$0xff]  }
 0x2cc   :  { %16997 = vmatprep.subr.bf16.mxu0 %v18575_v17  ;;  %17018 = vmatpush3.bf16.msra.mxu1 %v18574_v16 }
 0x2cd   :  { %v16695_v19 = vpop.f32.mrb[52].mxu0  ;;  %17019 = vmatprep.subr.bf16.mxu1 %v18576_v18 }
 0x2ce   :  { %v16696_v21 = vpop.f32.mrb[53].mxu0  ;;  %v16717_v23 = vpop.f32.mrb[52].mxu1 }
 0x2cf   :  { %v16697_v24 = vadd.f32 %v16696_v21, %v16695_v19  ;;  %v16698_v25 = vpop.f32.mrb[54].mxu0  ;;  %v16718_v26 = vpop.f32.mrb[53].mxu1  ;;  %16998 = vmatpush3.bf16.msra.mxu0 %v18577_v20  ;;  %v18611_v19 = vld [vmem:[#allocation2 + $0x1570] sm:$0xff]  }
 0x2d0   :  { %v16699_v28 = vpop.f32.mrb[55].mxu0  ;;  %v16719_v31 = vadd.f32 %v16718_v26, %v16717_v23  ;;  %v16720_v32 = vpop.f32.mrb[54].mxu1  ;;  %16999 = vmatprep.subr.bf16.mxu0 %v18579_v22  ;;  %17020 = vmatpush3.bf16.msra.mxu1 %v18578_v27  ;;  %v18612_v20 = vld [vmem:[#allocation2 + $0x15f0] sm:$0xff]  }
 0x2d1   :  { %v12561_v30 = vadd.f32 %v16697_v24, %v19565_v54  ;;  %v16721_v34 = vpop.f32.mrb[55].mxu1  ;;  %17021 = vmatprep.subr.bf16.mxu1 %v18580_v29  ;;  %v3201_v54 = vcombine.high %v3179_v47, %v3179_v47  ;;  %v18613_v26 = vld [vmem:[#allocation2 + $0x1530] sm:$0xff]   ;;  %v18617_v32 = vld [vmem:[#allocation2 + $0x1538] sm:$0xff]  }
 0x2d2   :  { %v18614_v28 = vld [vmem:[#allocation2 + $0x15b0] sm:$0xff]   ;;  %v3186_v34 = vrot.slane %v19578_v49, %v19389_v35  ;;  %v18632_v49 = vld [vmem:[#allocation2 + $0x1658] sm:$0xff]  }
 0x2d3   :  { %v19570_v37 = vadd.f32 %v16719_v31, %v12561_v30  ;;  %17000 = vmatpush3.bf16.msra.mxu0 %v18581_v33  ;;  %v18615_v30 = vld [vmem:[#allocation2 + $0x1578] sm:$0xff]  }
 0x2d4   :  { %17001 = vmatprep.subr.bf16.mxu0 %v18583_v36  ;;  %17022 = vmatpush3.bf16.msra.mxu1 %v18582_v38  ;;  %v18616_v31 = vld [vmem:[#allocation2 + $0x15f8] sm:$0xff]   ;;  %v18620_v36 = vld [vmem:[#allocation2 + $0x1640] sm:$0xff]  }
 0x2d5   :  { %17023 = vmatprep.subr.bf16.mxu1 %v18584_v39  ;;  %v18618_v33 = vld [vmem:[#allocation2 + $0x15b8] sm:$0xff]   ;;  %v18622_v38 = vld [vmem:[#allocation2 + $0x1600] sm:$0xff]  }
 0x2d6   :  { %v18623_v39 = vld [vmem:[#allocation2 + $0x1680] sm:$0xff]  }
 0x2d7   :  { %17002 = vmatpush3.bf16.msra.mxu0 %v18585_v40  ;;  %v3202_v40 = vcombine.high %v3186_v34, %v3186_v34 }
 0x2d8   :  { %17031 = vmatprep.subr.bf16.mxu0 %v18587_v43  ;;  %17024 = vmatpush3.bf16.msra.mxu1 %v18586_v45  ;;  %v18626_v43 = vld [vmem:[#allocation2 + $0x1608] sm:$0xff]   ;;  %v18628_v45 = vld [vmem:[#allocation2 + $0x1650] sm:$0xff]  }
 0x2d9   :  { %17053 = vmatprep.subr.bf16.mxu1 %v18588_v48  ;;  %v18631_v48 = vld [vmem:[#allocation2 + $0x1690] sm:$0xff]  }
 0x2da   :  { %13119 = vmatmul.mubr.bf16.vlgmr.msra.gmra.mrb[80].mxu0 %v3179_v47  ;;  %v18630_v47 = vld [vmem:[#allocation2 + $0x1610] sm:$0xff]  }
 0x2db   :  { %17032 = vmatpush3.bf16.msra.mxu0 %v18589_v50  ;;  %13159 = vmatmul.mubr.bf16.vlgmr.msra.gmra.mrb[80].mxu1 %v3201_v54  ;;  %v18633_v50 = vld [vmem:[#allocation2 + $0x16d8] sm:$0xff]   ;;  %v18637_v54 = vld [vmem:[#allocation2 + $0x16e0] sm:$0xff]  }
 0x2dc   :  { %17033 = vmatprep.subr.bf16.mxu0 %v18591_v55  ;;  %17054 = vmatpush3.bf16.msra.mxu1 %v18590_v52  ;;  %v18635_v52 = vld [vmem:[#allocation2 + $0x1698] sm:$0xff]   ;;  %v18638_v55 = vld [vmem:[#allocation2 + $0x1620] sm:$0xff]  }
 0x2dd   :  { %13198 = vmatprep.mubr.bf16.mxu0 %v3200_v58  ;;  %17055 = vmatprep.subr.bf16.mxu1 %v18592_v57  ;;  %v18640_v57 = vld [vmem:[#allocation2 + $0x1668] sm:$0xff]  }
 0x2de   :  { %13238 = vmatprep.mubr.bf16.mxu1 %v3204_v61  ;;  %v18641_v58 = vld [vmem:[#allocation2 + $0x16e8] sm:$0xff]  }
 0x2df   :  { %17034 = vmatpush3.bf16.msra.mxu0 %v18593_v59 }
 0x2e0   :  { %17035 = vmatprep.subr.bf16.mxu0 %v18595_v62  ;;  %17056 = vmatpush3.bf16.msra.mxu1 %v18594_v60  ;;  %v18642_v60 = vld [vmem:[#allocation2 + $0x1628] sm:$0xff]   ;;  %v18644_v62 = vld [vmem:[#allocation2 + $0x1670] sm:$0xff]  }
 0x2e1   :  { %17057 = vmatprep.subr.bf16.mxu1 %v18596_v63 }
 0x2e3   :  { %17036 = vmatpush3.bf16.msra.mxu0 %v18597_v0 }
 0x2e4   :  { %17037 = vmatprep.subr.bf16.mxu0 %v18599_v2  ;;  %17058 = vmatpush3.bf16.msra.mxu1 %v18598_v1 }
 0x2e5   :  { %17059 = vmatprep.subr.bf16.mxu1 %v18600_v3  ;;  %v18643_v3 = vld [vmem:[#allocation2 + $0x16a8] sm:$0xff]  }
 0x2e7   :  { %17038 = vmatpush3.bf16.msra.mxu0 %v18601_v4 }
 0x2e8   :  { %17039 = vmatprep.subr.bf16.mxu0 %v18603_v6  ;;  %17060 = vmatpush3.bf16.msra.mxu1 %v18602_v5  ;;  %v18645_v5 = vld [vmem:[#allocation2 + $0x16f0] sm:$0xff]  }
 0x2e9   :  { %17061 = vmatprep.subr.bf16.mxu1 %v18604_v7 }
 0x2eb   :  { %17040 = vmatpush3.bf16.msra.mxu0 %v18605_v8 }
 0x2ec   :  { %17041 = vmatprep.subr.bf16.mxu0 %v18607_v10  ;;  %17062 = vmatpush3.bf16.msra.mxu1 %v18606_v9  ;;  %v18646_v9 = vld [vmem:[#allocation2 + $0x1630] sm:$0xff]  }
 0x2ed   :  { %v16739_v12 = vpop.f32.mrb[56].mxu0  ;;  %17063 = vmatprep.subr.bf16.mxu1 %v18608_v11  ;;  %v18648_v11 = vld [vmem:[#allocation2 + $0x1678] sm:$0xff]  }
 0x2ee   :  { %v16740_v14 = vpop.f32.mrb[57].mxu0  ;;  %v16761_v16 = vpop.f32.mrb[56].mxu1 }
 0x2ef   :  { %v16741_v17 = vadd.f32 %v16740_v14, %v16739_v12  ;;  %v16742_v18 = vpop.f32.mrb[58].mxu0  ;;  %v16762_v21 = vpop.f32.mrb[57].mxu1  ;;  %17042 = vmatpush3.bf16.msra.mxu0 %v18609_v13  ;;  %v18647_v13 = vld [vmem:[#allocation2 + $0x16b0] sm:$0xff]   ;;  %v18649_v14 = vld [vmem:[#allocation2 + $0x16f8] sm:$0xff]  }
 0x2f0   :  { %v16743_v22 = vpop.f32.mrb[59].mxu0  ;;  %v16763_v24 = vadd.f32 %v16762_v21, %v16761_v16  ;;  %v16764_v25 = vpop.f32.mrb[58].mxu1  ;;  %17043 = vmatprep.subr.bf16.mxu0 %v18611_v19  ;;  %17064 = vmatpush3.bf16.msra.mxu1 %v18610_v15  ;;  %v18650_v15 = vld [vmem:[#allocation2 + $0x1638] sm:$0xff]   ;;  %v18652_v18 = vld [vmem:[#allocation2 + $0x1740] sm:$0xff]  }
 0x2f1   :  { %v12641_v23 = vadd.f32 %v16741_v17, %v19570_v37  ;;  %v16765_v27 = vpop.f32.mrb[59].mxu1  ;;  %17065 = vmatprep.subr.bf16.mxu1 %v18612_v20  ;;  %v18621_v37 = vld [vmem:[#allocation2 + $0x16c0] sm:$0xff]   ;;  %v70_v16 = vld [vmem:[%s19803_s0 + $0x58] sm:$0xff] }
 0x2f2   :  { %v3212_v17 = vrot.slane %v70_v16, %v19389_v35  ;;  %v3205_v19 = vcombine.high %v70_v16, %v70_v16  ;;  %v18651_v20 = vld [vmem:[#allocation2 + $0x16b8] sm:$0xff]   ;;  %v18654_v25 = vld [vmem:[#allocation2 + $0x1700] sm:$0xff]   ;;  %v18689_v16 = vld [vmem:[#allocation2 + $0x1848] sm:$0xff]  }
 0x2f3   :  { %v19585_v29 = vadd.f32 %v16763_v24, %v12641_v23  ;;  %17044 = vmatpush3.bf16.msra.mxu0 %v18613_v26  ;;  %v18653_v23 = vld [vmem:[#allocation2 + $0x17c0] sm:$0xff]  }
 0x2f4   :  { %17045 = vmatprep.subr.bf16.mxu0 %v18615_v30  ;;  %17066 = vmatpush3.bf16.msra.mxu1 %v18614_v28  ;;  %v3220_v21 = vcombine.high %v3212_v17, %v3212_v17  ;;  %v3228_v22 = vrot.slane %v3212_v17, %v19389_v35  ;;  %v19598_v24 = vrot.slane %v3205_v19, %v19389_v35  ;;  %v18655_v27 = vld [vmem:[#allocation2 + $0x1780] sm:$0xff]   ;;  %v18656_v30 = vld [vmem:[#allocation2 + $0x1748] sm:$0xff]  }
 0x2f5   :  { %17067 = vmatprep.subr.bf16.mxu1 %v18616_v31  ;;  %v18690_v17 = vld [vmem:[#allocation2 + $0x18c8] sm:$0xff]  }
 0x2f6   :  { %v3242_v26 = vrot.slane %v3220_v21, %v19389_v35  ;;  %v3221_v28 = vcombine.high %v19598_v24, %v19598_v24  ;;  %v18692_v19 = vld [vmem:[#allocation2 + $0x1888] sm:$0xff]   ;;  %v18694_v21 = vld [vmem:[#allocation2 + $0x18d0] sm:$0xff]  }
 0x2f7   :  { %17046 = vmatpush3.bf16.msra.mxu0 %v18617_v32  ;;  %v18657_v32 = vld [vmem:[#allocation2 + $0x17c8] sm:$0xff]  }
 0x2f8   :  { %17075 = vmatprep.subr.bf16.mxu0 %v18620_v36  ;;  %17068 = vmatpush3.bf16.msra.mxu1 %v18618_v33  ;;  %v3252_v31 = vcombine.high %v3242_v26, %v3242_v26  ;;  %v3249_v33 = vrot.slane %v3221_v28, %v19389_v35  ;;  %v18659_v36 = vld [vmem:[#allocation2 + $0x1788] sm:$0xff]   ;;  %v18701_v28 = vld [vmem:[#allocation2 + $0x1860] sm:$0xff]  }
 0x2f9   :  { %17097 = vmatprep.subr.bf16.mxu1 %v18621_v37 }
 0x2fa   :  { %13199 = vmatmul.mubr.bf16.vlgmr.msra.gmra.mrb[84].mxu0 %v3186_v34  ;;  %v18658_v34 = vld [vmem:[#allocation2 + $0x1708] sm:$0xff]   ;;  %v3253_v37 = vcombine.high %v3249_v33, %v3249_v33 }
 0x2fb   :  { %17076 = vmatpush3.bf16.msra.mxu0 %v18622_v38  ;;  %13239 = vmatmul.mubr.bf16.vlgmr.msra.gmra.mrb[84].mxu1 %v3202_v40  ;;  %v18660_v38 = vld [vmem:[#allocation2 + $0x1750] sm:$0xff]  }
 0x2fc   :  { %17077 = vmatprep.subr.bf16.mxu0 %v18624_v41  ;;  %17098 = vmatpush3.bf16.msra.mxu1 %v18623_v39  ;;  %v18661_v39 = vld [vmem:[#allocation2 + $0x17d0] sm:$0xff]  }
 0x2fd   :  { %17099 = vmatprep.subr.bf16.mxu1 %v18625_v42  ;;  %13278 = vmatprep.mubr.bf16.mxu0 %v3242_v26  ;;  %v18662_v40 = vld [vmem:[#allocation2 + $0x1710] sm:$0xff]   ;;  %v18664_v42 = vld [vmem:[#allocation2 + $0x1758] sm:$0xff]  }
 0x2fe   :  { %13318 = vmatprep.mubr.bf16.mxu1 %v3252_v31  ;;  %v18663_v41 = vld [vmem:[#allocation2 + $0x1790] sm:$0xff]   ;;  %v18699_v26 = vld [vmem:[#allocation2 + $0x1818] sm:$0xff]   ;;  %v18704_v31 = vld [vmem:[#allocation2 + $0x18a0] sm:$0xff]  }
 0x2ff   :  { %17078 = vmatpush3.bf16.msra.mxu0 %v18626_v43  ;;  %v18665_v43 = vld [vmem:[#allocation2 + $0x17d8] sm:$0xff]  }
 0x300   :  { %17079 = vmatprep.subr.bf16.mxu0 %v18628_v45  ;;  %17100 = vmatpush3.bf16.msra.mxu1 %v18627_v44  ;;  %v18666_v44 = vld [vmem:[#allocation2 + $0x1718] sm:$0xff]  }
 0x301   :  { %17101 = vmatprep.subr.bf16.mxu1 %v18629_v46  ;;  %v18667_v45 = vld [vmem:[#allocation2 + $0x1798] sm:$0xff]   ;;  %v18668_v46 = vld [vmem:[#allocation2 + $0x1760] sm:$0xff]  }
 0x303   :  { %17080 = vmatpush3.bf16.msra.mxu0 %v18630_v47  ;;  %v18669_v47 = vld [vmem:[#allocation2 + $0x17e0] sm:$0xff]  }
 0x304   :  { %17081 = vmatprep.subr.bf16.mxu0 %v18632_v49  ;;  %17102 = vmatpush3.bf16.msra.mxu1 %v18631_v48  ;;  %v18670_v48 = vld [vmem:[#allocation2 + $0x1720] sm:$0xff]  }
 0x305   :  { %17103 = vmatprep.subr.bf16.mxu1 %v18633_v50  ;;  %v18671_v49 = vld [vmem:[#allocation2 + $0x17a0] sm:$0xff]   ;;  %v18672_v50 = vld [vmem:[#allocation2 + $0x1768] sm:$0xff]  }
 0x307   :  { %17082 = vmatpush3.bf16.msra.mxu0 %v18634_v51  ;;  %v18673_v51 = vld [vmem:[#allocation2 + $0x17e8] sm:$0xff]  }
 0x308   :  { %17083 = vmatprep.subr.bf16.mxu0 %v18636_v53  ;;  %17104 = vmatpush3.bf16.msra.mxu1 %v18635_v52  ;;  %v18674_v53 = vld [vmem:[#allocation2 + $0x1728] sm:$0xff]  }
 0x309   :  { %17105 = vmatprep.subr.bf16.mxu1 %v18637_v54 }
 0x30b   :  { %17084 = vmatpush3.bf16.msra.mxu0 %v18638_v55  ;;  %v18675_v55 = vld [vmem:[#allocation2 + $0x17a8] sm:$0xff]  }
 0x30c   :  { %17085 = vmatprep.subr.bf16.mxu0 %v18640_v57  ;;  %17106 = vmatpush3.bf16.msra.mxu1 %v18639_v56 }
 0x30d   :  { %v16783_v59 = vpop.f32.mrb[60].mxu0  ;;  %17107 = vmatprep.subr.bf16.mxu1 %v18641_v58 }
 0x30e   :  { %v16784_v61 = vpop.f32.mrb[61].mxu0  ;;  %v16805_v63 = vpop.f32.mrb[60].mxu1 }
 0x30f   :  { %v16785_v0 = vadd.f32 %v16784_v61, %v16783_v59  ;;  %v16786_v1 = vpop.f32.mrb[62].mxu0  ;;  %v16806_v2 = vpop.f32.mrb[61].mxu1  ;;  %17086 = vmatpush3.bf16.msra.mxu0 %v18642_v60  ;;  %v18676_v59 = vld [vmem:[#allocation2 + $0x1770] sm:$0xff]  }
 0x310   :  { %v16787_v4 = vpop.f32.mrb[63].mxu0  ;;  %v16807_v7 = vadd.f32 %v16806_v2, %v16805_v63  ;;  %v16808_v8 = vpop.f32.mrb[62].mxu1  ;;  %17087 = vmatprep.subr.bf16.mxu0 %v18644_v62  ;;  %17108 = vmatpush3.bf16.msra.mxu1 %v18643_v3  ;;  %v18677_v60 = vld [vmem:[#allocation2 + $0x17f0] sm:$0xff]  }
 0x311   :  { %v12721_v6 = vadd.f32 %v16785_v0, %v19585_v29  ;;  %v16809_v10 = vpop.f32.mrb[63].mxu1  ;;  %17109 = vmatprep.subr.bf16.mxu1 %v18645_v5  ;;  %v3250_v29 = vcombine.high %v3228_v22, %v3228_v22  ;;  %v18678_v2 = vld [vmem:[#allocation2 + $0x1730] sm:$0xff]   ;;  %v18682_v8 = vld [vmem:[#allocation2 + $0x1738] sm:$0xff]  }
 0x312   :  { %v18679_v4 = vld [vmem:[#allocation2 + $0x17b0] sm:$0xff]   ;;  %v3235_v10 = vrot.slane %v19598_v24, %v19389_v35  ;;  %v18697_v24 = vld [vmem:[#allocation2 + $0x1858] sm:$0xff]  }
 0x313   :  { %v19590_v12 = vadd.f32 %v16807_v7, %v12721_v6  ;;  %17088 = vmatpush3.bf16.msra.mxu0 %v18646_v9  ;;  %v18680_v6 = vld [vmem:[#allocation2 + $0x1778] sm:$0xff]  }
 0x314   :  { %17089 = vmatprep.subr.bf16.mxu0 %v18648_v11  ;;  %17110 = vmatpush3.bf16.msra.mxu1 %v18647_v13  ;;  %v18681_v7 = vld [vmem:[#allocation2 + $0x17f8] sm:$0xff]   ;;  %v18685_v11 = vld [vmem:[#allocation2 + $0x1840] sm:$0xff]  }
 0x315   :  { %17111 = vmatprep.subr.bf16.mxu1 %v18649_v14  ;;  %v18683_v9 = vld [vmem:[#allocation2 + $0x17b8] sm:$0xff]   ;;  %v18687_v13 = vld [vmem:[#allocation2 + $0x1800] sm:$0xff]  }
 0x316   :  { %v18688_v14 = vld [vmem:[#allocation2 + $0x1880] sm:$0xff]  }
 0x317   :  { %17090 = vmatpush3.bf16.msra.mxu0 %v18650_v15  ;;  %v3251_v15 = vcombine.high %v3235_v10, %v3235_v10 }
 0x318   :  { %17119 = vmatprep.subr.bf16.mxu0 %v18652_v18  ;;  %17112 = vmatpush3.bf16.msra.mxu1 %v18651_v20  ;;  %v18691_v18 = vld [vmem:[#allocation2 + $0x1808] sm:$0xff]   ;;  %v18693_v20 = vld [vmem:[#allocation2 + $0x1850] sm:$0xff]  }
 0x319   :  { %17141 = vmatprep.subr.bf16.mxu1 %v18653_v23  ;;  %v18696_v23 = vld [vmem:[#allocation2 + $0x1890] sm:$0xff]  }
 0x31a   :  { %13279 = vmatmul.mubr.bf16.vlgmr.msra.gmra.mrb[88].mxu0 %v3228_v22  ;;  %v18695_v22 = vld [vmem:[#allocation2 + $0x1810] sm:$0xff]  }
 0x31b   :  { %17120 = vmatpush3.bf16.msra.mxu0 %v18654_v25  ;;  %13319 = vmatmul.mubr.bf16.vlgmr.msra.gmra.mrb[88].mxu1 %v3250_v29  ;;  %v18698_v25 = vld [vmem:[#allocation2 + $0x18d8] sm:$0xff]   ;;  %v18702_v29 = vld [vmem:[#allocation2 + $0x18e0] sm:$0xff]  }
 0x31c   :  { %17121 = vmatprep.subr.bf16.mxu0 %v18656_v30  ;;  %17142 = vmatpush3.bf16.msra.mxu1 %v18655_v27  ;;  %v18700_v27 = vld [vmem:[#allocation2 + $0x1898] sm:$0xff]   ;;  %v18703_v30 = vld [vmem:[#allocation2 + $0x1820] sm:$0xff]  }
 0x31d   :  { %13358 = vmatprep.mubr.bf16.mxu0 %v3249_v33  ;;  %17143 = vmatprep.subr.bf16.mxu1 %v18657_v32  ;;  %v18705_v32 = vld [vmem:[#allocation2 + $0x1868] sm:$0xff]  }
 0x31e   :  { %13398 = vmatprep.mubr.bf16.mxu1 %v3253_v37  ;;  %v18706_v33 = vld [vmem:[#allocation2 + $0x18e8] sm:$0xff]  }
 0x31f   :  { %17122 = vmatpush3.bf16.msra.mxu0 %v18658_v34 }
 0x320   :  { %17123 = vmatprep.subr.bf16.mxu0 %v18660_v38  ;;  %17144 = vmatpush3.bf16.msra.mxu1 %v18659_v36  ;;  %v18707_v36 = vld [vmem:[#allocation2 + $0x1828] sm:$0xff]   ;;  %v18709_v38 = vld [vmem:[#allocation2 + $0x1870] sm:$0xff]  }
 0x321   :  { %17145 = vmatprep.subr.bf16.mxu1 %v18661_v39 }
 0x323   :  { %17124 = vmatpush3.bf16.msra.mxu0 %v18662_v40 }
 0x324   :  { %17125 = vmatprep.subr.bf16.mxu0 %v18664_v42  ;;  %17146 = vmatpush3.bf16.msra.mxu1 %v18663_v41 }
 0x325   :  { %17147 = vmatprep.subr.bf16.mxu1 %v18665_v43  ;;  %v18708_v43 = vld [vmem:[#allocation2 + $0x18a8] sm:$0xff]  }
 0x327   :  { %17126 = vmatpush3.bf16.msra.mxu0 %v18666_v44 }
 0x328   :  { %17127 = vmatprep.subr.bf16.mxu0 %v18668_v46  ;;  %17148 = vmatpush3.bf16.msra.mxu1 %v18667_v45  ;;  %v18710_v45 = vld [vmem:[#allocation2 + $0x18f0] sm:$0xff]  }
 0x329   :  { %17149 = vmatprep.subr.bf16.mxu1 %v18669_v47 }
 0x32b   :  { %17128 = vmatpush3.bf16.msra.mxu0 %v18670_v48 }
 0x32c   :  { %17129 = vmatprep.subr.bf16.mxu0 %v18672_v50  ;;  %17150 = vmatpush3.bf16.msra.mxu1 %v18671_v49  ;;  %v18711_v49 = vld [vmem:[#allocation2 + $0x1830] sm:$0xff]  }
 0x32d   :  { %v16827_v52 = vpop.f32.mrb[64].mxu0  ;;  %17151 = vmatprep.subr.bf16.mxu1 %v18673_v51  ;;  %v18713_v51 = vld [vmem:[#allocation2 + $0x1878] sm:$0xff]  }
 0x32e   :  { %v16828_v54 = vpop.f32.mrb[65].mxu0  ;;  %v16849_v56 = vpop.f32.mrb[64].mxu1 }
 0x32f   :  { %v16829_v57 = vadd.f32 %v16828_v54, %v16827_v52  ;;  %v16830_v58 = vpop.f32.mrb[66].mxu0  ;;  %v16850_v61 = vpop.f32.mrb[65].mxu1  ;;  %17130 = vmatpush3.bf16.msra.mxu0 %v18674_v53  ;;  %v18712_v53 = vld [vmem:[#allocation2 + $0x18b0] sm:$0xff]   ;;  %v18714_v54 = vld [vmem:[#allocation2 + $0x18f8] sm:$0xff]  }
 0x330   :  { %v16831_v62 = vpop.f32.mrb[67].mxu0  ;;  %v16851_v0 = vadd.f32 %v16850_v61, %v16849_v56  ;;  %v16852_v1 = vpop.f32.mrb[66].mxu1  ;;  %17131 = vmatprep.subr.bf16.mxu0 %v18676_v59  ;;  %17152 = vmatpush3.bf16.msra.mxu1 %v18675_v55  ;;  %v18715_v55 = vld [vmem:[#allocation2 + $0x1838] sm:$0xff]   ;;  %v71_v56 = vld [vmem:[%s19803_s0 + $0x60] sm:$0xff] }
 0x331   :  { %v12801_v63 = vadd.f32 %v16829_v57, %v19590_v12  ;;  %v16853_v3 = vpop.f32.mrb[67].mxu1  ;;  %17153 = vmatprep.subr.bf16.mxu1 %v18677_v60  ;;  %v18686_v12 = vld [vmem:[#allocation2 + $0x18c0] sm:$0xff]   ;;  %v3261_v57 = vrot.slane %v71_v56, %v19389_v35  ;;  %v3254_v59 = vcombine.high %v71_v56, %v71_v56  ;;  %v18716_v60 = vld [vmem:[#allocation2 + $0x18b8] sm:$0xff]   ;;  %v18754_v56 = vld [vmem:[#allocation2 + $0x1a48] sm:$0xff]  }
 0x332   :  { %v18717_v58 = vld [vmem:[#allocation2 + $0x1940] sm:$0xff]  }
 0x333   :  { %v19605_v5 = vadd.f32 %v16851_v0, %v12801_v63  ;;  %17132 = vmatpush3.bf16.msra.mxu0 %v18678_v2  ;;  %v3269_v61 = vcombine.high %v3261_v57, %v3261_v57  ;;  %v3277_v62 = vrot.slane %v3261_v57, %v19389_v35  ;;  %v18718_v63 = vld [vmem:[#allocation2 + $0x19c0] sm:$0xff]   ;;  %v19618_v0 = vrot.slane %v3254_v59, %v19389_v35  ;;  %v18755_v57 = vld [vmem:[#allocation2 + $0x1ac8] sm:$0xff]  }
 0x334   :  { %17133 = vmatprep.subr.bf16.mxu0 %v18680_v6  ;;  %17154 = vmatpush3.bf16.msra.mxu1 %v18679_v4  ;;  %v18719_v1 = vld [vmem:[#allocation2 + $0x1900] sm:$0xff]   ;;  %v18721_v6 = vld [vmem:[#allocation2 + $0x1948] sm:$0xff]  }
 0x335   :  { %17155 = vmatprep.subr.bf16.mxu1 %v18681_v7  ;;  %v3291_v2 = vrot.slane %v3269_v61, %v19389_v35  ;;  %v18720_v3 = vld [vmem:[#allocation2 + $0x1980] sm:$0xff]   ;;  %v3270_v4 = vcombine.high %v19618_v0, %v19618_v0  ;;  %v18757_v59 = vld [vmem:[#allocation2 + $0x1a88] sm:$0xff]   ;;  %v18759_v61 = vld [vmem:[#allocation2 + $0x1ad0] sm:$0xff]  }
 0x337   :  { %17134 = vmatpush3.bf16.msra.mxu0 %v18682_v8  ;;  %v3301_v7 = vcombine.high %v3291_v2, %v3291_v2  ;;  %v18722_v8 = vld [vmem:[#allocation2 + $0x19c8] sm:$0xff]  }
 0x338   :  { %17163 = vmatprep.subr.bf16.mxu0 %v18685_v11  ;;  %17156 = vmatpush3.bf16.msra.mxu1 %v18683_v9  ;;  %v3298_v9 = vrot.slane %v3270_v4, %v19389_v35  ;;  %v18724_v11 = vld [vmem:[#allocation2 + $0x1988] sm:$0xff]   ;;  %v18766_v4 = vld [vmem:[#allocation2 + $0x1a60] sm:$0xff]  }
 0x339   :  { %17185 = vmatprep.subr.bf16.mxu1 %v18686_v12 }
 0x33a   :  { %13359 = vmatmul.mubr.bf16.vlgmr.msra.gmra.mrb[92].mxu0 %v3235_v10  ;;  %v18723_v10 = vld [vmem:[#allocation2 + $0x1908] sm:$0xff]   ;;  %v3302_v12 = vcombine.high %v3298_v9, %v3298_v9 }
 0x33b   :  { %17164 = vmatpush3.bf16.msra.mxu0 %v18687_v13  ;;  %13399 = vmatmul.mubr.bf16.vlgmr.msra.gmra.mrb[92].mxu1 %v3251_v15  ;;  %v18725_v13 = vld [vmem:[#allocation2 + $0x1950] sm:$0xff]  }
 0x33c   :  { %17165 = vmatprep.subr.bf16.mxu0 %v18689_v16  ;;  %17186 = vmatpush3.bf16.msra.mxu1 %v18688_v14  ;;  %v18726_v14 = vld [vmem:[#allocation2 + $0x19d0] sm:$0xff]  }
 0x33d   :  { %17187 = vmatprep.subr.bf16.mxu1 %v18690_v17  ;;  %13438 = vmatprep.mubr.bf16.mxu0 %v3291_v2  ;;  %v18727_v15 = vld [vmem:[#allocation2 + $0x1910] sm:$0xff]   ;;  %v18729_v17 = vld [vmem:[#allocation2 + $0x1958] sm:$0xff]  }
 0x33e   :  { %13478 = vmatprep.mubr.bf16.mxu1 %v3301_v7  ;;  %v18728_v16 = vld [vmem:[#allocation2 + $0x1990] sm:$0xff]   ;;  %v18764_v2 = vld [vmem:[#allocation2 + $0x1a18] sm:$0xff]   ;;  %v18769_v7 = vld [vmem:[#allocation2 + $0x1aa0] sm:$0xff]  }
 0x33f   :  { %17166 = vmatpush3.bf16.msra.mxu0 %v18691_v18  ;;  %v18730_v18 = vld [vmem:[#allocation2 + $0x19d8] sm:$0xff]  }
 0x340   :  { %17167 = vmatprep.subr.bf16.mxu0 %v18693_v20  ;;  %17188 = vmatpush3.bf16.msra.mxu1 %v18692_v19  ;;  %v18731_v19 = vld [vmem:[#allocation2 + $0x1918] sm:$0xff]  }
 0x341   :  { %17189 = vmatprep.subr.bf16.mxu1 %v18694_v21  ;;  %v18732_v20 = vld [vmem:[#allocation2 + $0x1998] sm:$0xff]   ;;  %v18733_v21 = vld [vmem:[#allocation2 + $0x1960] sm:$0xff]  }
 0x343   :  { %17168 = vmatpush3.bf16.msra.mxu0 %v18695_v22  ;;  %v18734_v22 = vld [vmem:[#allocation2 + $0x19e0] sm:$0xff]  }
 0x344   :  { %17169 = vmatprep.subr.bf16.mxu0 %v18697_v24  ;;  %17190 = vmatpush3.bf16.msra.mxu1 %v18696_v23  ;;  %v18735_v23 = vld [vmem:[#allocation2 + $0x1920] sm:$0xff]  }
 0x345   :  { %17191 = vmatprep.subr.bf16.mxu1 %v18698_v25  ;;  %v18736_v24 = vld [vmem:[#allocation2 + $0x19a0] sm:$0xff]   ;;  %v18737_v25 = vld [vmem:[#allocation2 + $0x1968] sm:$0xff]  }
 0x347   :  { %17170 = vmatpush3.bf16.msra.mxu0 %v18699_v26  ;;  %v18738_v26 = vld [vmem:[#allocation2 + $0x19e8] sm:$0xff]  }
 0x348   :  { %17171 = vmatprep.subr.bf16.mxu0 %v18701_v28  ;;  %17192 = vmatpush3.bf16.msra.mxu1 %v18700_v27  ;;  %v18739_v28 = vld [vmem:[#allocation2 + $0x1928] sm:$0xff]  }
 0x349   :  { %17193 = vmatprep.subr.bf16.mxu1 %v18702_v29 }
 0x34b   :  { %17172 = vmatpush3.bf16.msra.mxu0 %v18703_v30  ;;  %v18740_v30 = vld [vmem:[#allocation2 + $0x19a8] sm:$0xff]  }
 0x34c   :  { %17173 = vmatprep.subr.bf16.mxu0 %v18705_v32  ;;  %17194 = vmatpush3.bf16.msra.mxu1 %v18704_v31 }
 0x34d   :  { %v16871_v34 = vpop.f32.mrb[68].mxu0  ;;  %17195 = vmatprep.subr.bf16.mxu1 %v18706_v33 }
 0x34e   :  { %v16872_v37 = vpop.f32.mrb[69].mxu0  ;;  %v16893_v39 = vpop.f32.mrb[68].mxu1 }
 0x34f   :  { %v16873_v40 = vadd.f32 %v16872_v37, %v16871_v34  ;;  %v16874_v41 = vpop.f32.mrb[70].mxu0  ;;  %v16894_v42 = vpop.f32.mrb[69].mxu1  ;;  %17174 = vmatpush3.bf16.msra.mxu0 %v18707_v36  ;;  %v18741_v34 = vld [vmem:[#allocation2 + $0x1970] sm:$0xff]  }
 0x350   :  { %v16875_v44 = vpop.f32.mrb[71].mxu0  ;;  %v16895_v47 = vadd.f32 %v16894_v42, %v16893_v39  ;;  %v16896_v48 = vpop.f32.mrb[70].mxu1  ;;  %17175 = vmatprep.subr.bf16.mxu0 %v18709_v38  ;;  %17196 = vmatpush3.bf16.msra.mxu1 %v18708_v43  ;;  %v18742_v36 = vld [vmem:[#allocation2 + $0x19f0] sm:$0xff]  }
 0x351   :  { %v12881_v46 = vadd.f32 %v16873_v40, %v19605_v5  ;;  %v16897_v50 = vpop.f32.mrb[71].mxu1  ;;  %17197 = vmatprep.subr.bf16.mxu1 %v18710_v45  ;;  %v3299_v5 = vcombine.high %v3277_v62, %v3277_v62  ;;  %v18743_v42 = vld [vmem:[#allocation2 + $0x1930] sm:$0xff]   ;;  %v18747_v48 = vld [vmem:[#allocation2 + $0x1938] sm:$0xff]  }
 0x352   :  { %v18744_v44 = vld [vmem:[#allocation2 + $0x19b0] sm:$0xff]   ;;  %v3284_v50 = vrot.slane %v19618_v0, %v19389_v35  ;;  %v18762_v0 = vld [vmem:[#allocation2 + $0x1a58] sm:$0xff]  }
 0x353   :  { %v19610_v52 = vadd.f32 %v16895_v47, %v12881_v46  ;;  %17176 = vmatpush3.bf16.msra.mxu0 %v18711_v49  ;;  %v18745_v46 = vld [vmem:[#allocation2 + $0x1978] sm:$0xff]  }
 0x354   :  { %17177 = vmatprep.subr.bf16.mxu0 %v18713_v51  ;;  %17198 = vmatpush3.bf16.msra.mxu1 %v18712_v53  ;;  %v18746_v47 = vld [vmem:[#allocation2 + $0x19f8] sm:$0xff]   ;;  %v18750_v51 = vld [vmem:[#allocation2 + $0x1a40] sm:$0xff]  }
 0x355   :  { %17199 = vmatprep.subr.bf16.mxu1 %v18714_v54  ;;  %v18748_v49 = vld [vmem:[#allocation2 + $0x19b8] sm:$0xff]   ;;  %v18752_v53 = vld [vmem:[#allocation2 + $0x1a00] sm:$0xff]  }
 0x356   :  { %v18753_v54 = vld [vmem:[#allocation2 + $0x1a80] sm:$0xff]  }
 0x357   :  { %17178 = vmatpush3.bf16.msra.mxu0 %v18715_v55  ;;  %v3300_v55 = vcombine.high %v3284_v50, %v3284_v50 }
 0x358   :  { %17207 = vmatprep.subr.bf16.mxu0 %v18717_v58  ;;  %17200 = vmatpush3.bf16.msra.mxu1 %v18716_v60  ;;  %v18756_v58 = vld [vmem:[#allocation2 + $0x1a08] sm:$0xff]   ;;  %v18758_v60 = vld [vmem:[#allocation2 + $0x1a50] sm:$0xff]  }
 0x359   :  { %17229 = vmatprep.subr.bf16.mxu1 %v18718_v63  ;;  %v18761_v63 = vld [vmem:[#allocation2 + $0x1a90] sm:$0xff]  }
 0x35a   :  { %13439 = vmatmul.mubr.bf16.vlgmr.msra.gmra.mrb[96].mxu0 %v3277_v62  ;;  %v18760_v62 = vld [vmem:[#allocation2 + $0x1a10] sm:$0xff]  }
 0x35b   :  { %17208 = vmatpush3.bf16.msra.mxu0 %v18719_v1  ;;  %13479 = vmatmul.mubr.bf16.vlgmr.msra.gmra.mrb[96].mxu1 %v3299_v5  ;;  %v18763_v1 = vld [vmem:[#allocation2 + $0x1ad8] sm:$0xff]   ;;  %v18767_v5 = vld [vmem:[#allocation2 + $0x1ae0] sm:$0xff]  }
 0x35c   :  { %17209 = vmatprep.subr.bf16.mxu0 %v18721_v6  ;;  %17230 = vmatpush3.bf16.msra.mxu1 %v18720_v3  ;;  %v18765_v3 = vld [vmem:[#allocation2 + $0x1a98] sm:$0xff]   ;;  %v18768_v6 = vld [vmem:[#allocation2 + $0x1a20] sm:$0xff]  }
 0x35d   :  { %13518 = vmatprep.mubr.bf16.mxu0 %v3298_v9  ;;  %17231 = vmatprep.subr.bf16.mxu1 %v18722_v8  ;;  %v18770_v8 = vld [vmem:[#allocation2 + $0x1a68] sm:$0xff]  }
 0x35e   :  { %13558 = vmatprep.mubr.bf16.mxu1 %v3302_v12  ;;  %v18771_v9 = vld [vmem:[#allocation2 + $0x1ae8] sm:$0xff]  }
 0x35f   :  { %17210 = vmatpush3.bf16.msra.mxu0 %v18723_v10 }
 0x360   :  { %17211 = vmatprep.subr.bf16.mxu0 %v18725_v13  ;;  %17232 = vmatpush3.bf16.msra.mxu1 %v18724_v11  ;;  %v18772_v11 = vld [vmem:[#allocation2 + $0x1a28] sm:$0xff]   ;;  %v18774_v13 = vld [vmem:[#allocation2 + $0x1a70] sm:$0xff]  }
 0x361   :  { %17233 = vmatprep.subr.bf16.mxu1 %v18726_v14 }
 0x363   :  { %17212 = vmatpush3.bf16.msra.mxu0 %v18727_v15 }
 0x364   :  { %17213 = vmatprep.subr.bf16.mxu0 %v18729_v17  ;;  %17234 = vmatpush3.bf16.msra.mxu1 %v18728_v16 }
 0x365   :  { %17235 = vmatprep.subr.bf16.mxu1 %v18730_v18  ;;  %v18773_v18 = vld [vmem:[#allocation2 + $0x1aa8] sm:$0xff]  }
 0x367   :  { %17214 = vmatpush3.bf16.msra.mxu0 %v18731_v19 }
 0x368   :  { %17215 = vmatprep.subr.bf16.mxu0 %v18733_v21  ;;  %17236 = vmatpush3.bf16.msra.mxu1 %v18732_v20  ;;  %v18775_v20 = vld [vmem:[#allocation2 + $0x1af0] sm:$0xff]  }
 0x369   :  { %17237 = vmatprep.subr.bf16.mxu1 %v18734_v22 }
 0x36b   :  { %17216 = vmatpush3.bf16.msra.mxu0 %v18735_v23 }
 0x36c   :  { %17217 = vmatprep.subr.bf16.mxu0 %v18737_v25  ;;  %17238 = vmatpush3.bf16.msra.mxu1 %v18736_v24  ;;  %v18776_v24 = vld [vmem:[#allocation2 + $0x1a30] sm:$0xff]  }
 0x36d   :  { %v16915_v27 = vpop.f32.mrb[72].mxu0  ;;  %17239 = vmatprep.subr.bf16.mxu1 %v18738_v26  ;;  %v18778_v26 = vld [vmem:[#allocation2 + $0x1a78] sm:$0xff]  }
 0x36e   :  { %v16916_v29 = vpop.f32.mrb[73].mxu0  ;;  %v16937_v31 = vpop.f32.mrb[72].mxu1 }
 0x36f   :  { %v16917_v32 = vadd.f32 %v16916_v29, %v16915_v27  ;;  %v16918_v33 = vpop.f32.mrb[74].mxu0  ;;  %v16938_v37 = vpop.f32.mrb[73].mxu1  ;;  %17218 = vmatpush3.bf16.msra.mxu0 %v18739_v28  ;;  %v18777_v28 = vld [vmem:[#allocation2 + $0x1ab0] sm:$0xff]   ;;  %v18779_v29 = vld [vmem:[#allocation2 + $0x1af8] sm:$0xff]  }
 0x370   :  { %v16919_v38 = vpop.f32.mrb[75].mxu0  ;;  %v16939_v40 = vadd.f32 %v16938_v37, %v16937_v31  ;;  %v16940_v41 = vpop.f32.mrb[74].mxu1  ;;  %17219 = vmatprep.subr.bf16.mxu0 %v18741_v34  ;;  %17240 = vmatpush3.bf16.msra.mxu1 %v18740_v30  ;;  %v18780_v30 = vld [vmem:[#allocation2 + $0x1a38] sm:$0xff]   ;;  %v72_v31 = vld [vmem:[%s19803_s0 + $0x68] sm:$0xff]  ;;  %v18782_v33 = vld [vmem:[#allocation2 + $0x1b40] sm:$0xff]  }
 0x371   :  { %v12961_v39 = vadd.f32 %v16917_v32, %v19610_v52  ;;  %v16941_v43 = vpop.f32.mrb[75].mxu1  ;;  %17241 = vmatprep.subr.bf16.mxu1 %v18742_v36  ;;  %v18751_v52 = vld [vmem:[#allocation2 + $0x1ac0] sm:$0xff]   ;;  %v3310_v32 = vrot.slane %v72_v31, %v19389_v35  ;;  %v3303_v34 = vcombine.high %v72_v31, %v72_v31  ;;  %v18781_v36 = vld [vmem:[#allocation2 + $0x1ab8] sm:$0xff]   ;;  %v18819_v31 = vld [vmem:[#allocation2 + $0x1c48] sm:$0xff]  }
 0x372   :  { %v18784_v41 = vld [vmem:[#allocation2 + $0x1b00] sm:$0xff]  }
 0x373   :  { %v19625_v45 = vadd.f32 %v16939_v40, %v12961_v39  ;;  %17220 = vmatpush3.bf16.msra.mxu0 %v18743_v42  ;;  %v3318_v37 = vcombine.high %v3310_v32, %v3310_v32  ;;  %v3326_v38 = vrot.slane %v3310_v32, %v19389_v35  ;;  %v18783_v39 = vld [vmem:[#allocation2 + $0x1bc0] sm:$0xff]   ;;  %v19638_v40 = vrot.slane %v3303_v34, %v19389_v35  ;;  %v18820_v32 = vld [vmem:[#allocation2 + $0x1cc8] sm:$0xff]  }
 0x374   :  { %17221 = vmatprep.subr.bf16.mxu0 %v18745_v46  ;;  %17242 = vmatpush3.bf16.msra.mxu1 %v18744_v44  ;;  %v18785_v43 = vld [vmem:[#allocation2 + $0x1b80] sm:$0xff]   ;;  %v18786_v46 = vld [vmem:[#allocation2 + $0x1b48] sm:$0xff]  }
 0x375   :  { %17243 = vmatprep.subr.bf16.mxu1 %v18746_v47  ;;  %v3340_v42 = vrot.slane %v3318_v37, %v19389_v35  ;;  %v3319_v44 = vcombine.high %v19638_v40, %v19638_v40  ;;  %v18822_v34 = vld [vmem:[#allocation2 + $0x1c88] sm:$0xff]   ;;  %v18824_v37 = vld [vmem:[#allocation2 + $0x1cd0] sm:$0xff]  }
 0x377   :  { %17222 = vmatpush3.bf16.msra.mxu0 %v18747_v48  ;;  %v3350_v47 = vcombine.high %v3340_v42, %v3340_v42  ;;  %v18787_v48 = vld [vmem:[#allocation2 + $0x1bc8] sm:$0xff]  }
 0x378   :  { %17251 = vmatprep.subr.bf16.mxu0 %v18750_v51  ;;  %17244 = vmatpush3.bf16.msra.mxu1 %v18748_v49  ;;  %v3347_v49 = vrot.slane %v3319_v44, %v19389_v35  ;;  %v18789_v51 = vld [vmem:[#allocation2 + $0x1b88] sm:$0xff]   ;;  %v18831_v44 = vld [vmem:[#allocation2 + $0x1c60] sm:$0xff]  }
 0x379   :  { %17273 = vmatprep.subr.bf16.mxu1 %v18751_v52 }
 0x37a   :  { %13519 = vmatmul.mubr.bf16.vlgmr.msra.gmra.mrb[100].mxu0 %v3284_v50  ;;  %v18788_v50 = vld [vmem:[#allocation2 + $0x1b08] sm:$0xff]   ;;  %v3351_v52 = vcombine.high %v3347_v49, %v3347_v49 }
 0x37b   :  { %17252 = vmatpush3.bf16.msra.mxu0 %v18752_v53  ;;  %13559 = vmatmul.mubr.bf16.vlgmr.msra.gmra.mrb[100].mxu1 %v3300_v55  ;;  %v18790_v53 = vld [vmem:[#allocation2 + $0x1b50] sm:$0xff]  }
 0x37c   :  { %17253 = vmatprep.subr.bf16.mxu0 %v18754_v56  ;;  %17274 = vmatpush3.bf16.msra.mxu1 %v18753_v54  ;;  %v18791_v54 = vld [vmem:[#allocation2 + $0x1bd0] sm:$0xff]  }
 0x37d   :  { %17275 = vmatprep.subr.bf16.mxu1 %v18755_v57  ;;  %13598 = vmatprep.mubr.bf16.mxu0 %v3340_v42  ;;  %v18792_v55 = vld [vmem:[#allocation2 + $0x1b10] sm:$0xff]   ;;  %v18794_v57 = vld [vmem:[#allocation2 + $0x1b58] sm:$0xff]  }
 0x37e   :  { %13638 = vmatprep.mubr.bf16.mxu1 %v3350_v47  ;;  %v18793_v56 = vld [vmem:[#allocation2 + $0x1b90] sm:$0xff]   ;;  %v18829_v42 = vld [vmem:[#allocation2 + $0x1c18] sm:$0xff]   ;;  %v18834_v47 = vld [vmem:[#allocation2 + $0x1ca0] sm:$0xff]  }
 0x37f   :  { %17254 = vmatpush3.bf16.msra.mxu0 %v18756_v58  ;;  %v18795_v58 = vld [vmem:[#allocation2 + $0x1bd8] sm:$0xff]  }
 0x380   :  { %17255 = vmatprep.subr.bf16.mxu0 %v18758_v60  ;;  %17276 = vmatpush3.bf16.msra.mxu1 %v18757_v59  ;;  %v18796_v59 = vld [vmem:[#allocation2 + $0x1b18] sm:$0xff]  }
 0x381   :  { %17277 = vmatprep.subr.bf16.mxu1 %v18759_v61  ;;  %v18797_v60 = vld [vmem:[#allocation2 + $0x1b98] sm:$0xff]   ;;  %v18798_v61 = vld [vmem:[#allocation2 + $0x1b60] sm:$0xff]  }
 0x383   :  { %17256 = vmatpush3.bf16.msra.mxu0 %v18760_v62  ;;  %v18799_v62 = vld [vmem:[#allocation2 + $0x1be0] sm:$0xff]  }
 0x384   :  { %17257 = vmatprep.subr.bf16.mxu0 %v18762_v0  ;;  %17278 = vmatpush3.bf16.msra.mxu1 %v18761_v63  ;;  %v18800_v63 = vld [vmem:[#allocation2 + $0x1b20] sm:$0xff]  }
 0x385   :  { %17279 = vmatprep.subr.bf16.mxu1 %v18763_v1  ;;  %v18801_v0 = vld [vmem:[#allocation2 + $0x1ba0] sm:$0xff]   ;;  %v18802_v1 = vld [vmem:[#allocation2 + $0x1b68] sm:$0xff]  }
 0x387   :  { %17258 = vmatpush3.bf16.msra.mxu0 %v18764_v2  ;;  %v18803_v2 = vld [vmem:[#allocation2 + $0x1be8] sm:$0xff]  }
 0x388   :  { %17259 = vmatprep.subr.bf16.mxu0 %v18766_v4  ;;  %17280 = vmatpush3.bf16.msra.mxu1 %v18765_v3  ;;  %v18804_v4 = vld [vmem:[#allocation2 + $0x1b28] sm:$0xff]  }
 0x389   :  { %17281 = vmatprep.subr.bf16.mxu1 %v18767_v5 }
 0x38b   :  { %17260 = vmatpush3.bf16.msra.mxu0 %v18768_v6  ;;  %v18805_v6 = vld [vmem:[#allocation2 + $0x1ba8] sm:$0xff]  }
 0x38c   :  { %17261 = vmatprep.subr.bf16.mxu0 %v18770_v8  ;;  %17282 = vmatpush3.bf16.msra.mxu1 %v18769_v7 }
 0x38d   :  { %v16959_v10 = vpop.f32.mrb[76].mxu0  ;;  %17283 = vmatprep.subr.bf16.mxu1 %v18771_v9 }
 0x38e   :  { %v16960_v12 = vpop.f32.mrb[77].mxu0  ;;  %v16981_v14 = vpop.f32.mrb[76].mxu1 }
 0x38f   :  { %v16961_v15 = vadd.f32 %v16960_v12, %v16959_v10  ;;  %v16962_v16 = vpop.f32.mrb[78].mxu0  ;;  %v16982_v17 = vpop.f32.mrb[77].mxu1  ;;  %17262 = vmatpush3.bf16.msra.mxu0 %v18772_v11  ;;  %v18806_v10 = vld [vmem:[#allocation2 + $0x1b70] sm:$0xff]  }
 0x390   :  { %v16963_v19 = vpop.f32.mrb[79].mxu0  ;;  %v16983_v22 = vadd.f32 %v16982_v17, %v16981_v14  ;;  %v16984_v23 = vpop.f32.mrb[78].mxu1  ;;  %17263 = vmatprep.subr.bf16.mxu0 %v18774_v13  ;;  %17284 = vmatpush3.bf16.msra.mxu1 %v18773_v18  ;;  %v18807_v11 = vld [vmem:[#allocation2 + $0x1bf0] sm:$0xff]  }
 0x391   :  { %v13041_v21 = vadd.f32 %v16961_v15, %v19625_v45  ;;  %v16985_v25 = vpop.f32.mrb[79].mxu1  ;;  %17285 = vmatprep.subr.bf16.mxu1 %v18775_v20  ;;  %v3348_v45 = vcombine.high %v3326_v38, %v3326_v38  ;;  %v18808_v17 = vld [vmem:[#allocation2 + $0x1b30] sm:$0xff]   ;;  %v18812_v23 = vld [vmem:[#allocation2 + $0x1b38] sm:$0xff]  }
 0x392   :  { %v18809_v19 = vld [vmem:[#allocation2 + $0x1bb0] sm:$0xff]   ;;  %v3333_v25 = vrot.slane %v19638_v40, %v19389_v35  ;;  %v18827_v40 = vld [vmem:[#allocation2 + $0x1c58] sm:$0xff]  }
 0x393   :  { %v19630_v27 = vadd.f32 %v16983_v22, %v13041_v21  ;;  %17264 = vmatpush3.bf16.msra.mxu0 %v18776_v24  ;;  %v18810_v21 = vld [vmem:[#allocation2 + $0x1b78] sm:$0xff]  }
 0x394   :  { %17265 = vmatprep.subr.bf16.mxu0 %v18778_v26  ;;  %17286 = vmatpush3.bf16.msra.mxu1 %v18777_v28  ;;  %v18811_v22 = vld [vmem:[#allocation2 + $0x1bf8] sm:$0xff]   ;;  %v18815_v26 = vld [vmem:[#allocation2 + $0x1c40] sm:$0xff]  }
 0x395   :  { %17287 = vmatprep.subr.bf16.mxu1 %v18779_v29  ;;  %v18813_v24 = vld [vmem:[#allocation2 + $0x1bb8] sm:$0xff]   ;;  %v18817_v28 = vld [vmem:[#allocation2 + $0x1c00] sm:$0xff]  }
 0x396   :  { %v18818_v29 = vld [vmem:[#allocation2 + $0x1c80] sm:$0xff]  }
 0x397   :  { %17266 = vmatpush3.bf16.msra.mxu0 %v18780_v30  ;;  %v3349_v30 = vcombine.high %v3333_v25, %v3333_v25 }
 0x398   :  { %17295 = vmatprep.subr.bf16.mxu0 %v18782_v33  ;;  %17288 = vmatpush3.bf16.msra.mxu1 %v18781_v36  ;;  %v18821_v33 = vld [vmem:[#allocation2 + $0x1c08] sm:$0xff]   ;;  %v18823_v36 = vld [vmem:[#allocation2 + $0x1c50] sm:$0xff]  }
 0x399   :  { %17317 = vmatprep.subr.bf16.mxu1 %v18783_v39  ;;  %v18826_v39 = vld [vmem:[#allocation2 + $0x1c90] sm:$0xff]  }
 0x39a   :  { %13599 = vmatmul.mubr.bf16.vlgmr.msra.gmra.mrb[104].mxu0 %v3326_v38  ;;  %v18825_v38 = vld [vmem:[#allocation2 + $0x1c10] sm:$0xff]  }
 0x39b   :  { %17296 = vmatpush3.bf16.msra.mxu0 %v18784_v41  ;;  %13639 = vmatmul.mubr.bf16.vlgmr.msra.gmra.mrb[104].mxu1 %v3348_v45  ;;  %v18828_v41 = vld [vmem:[#allocation2 + $0x1cd8] sm:$0xff]   ;;  %v18832_v45 = vld [vmem:[#allocation2 + $0x1ce0] sm:$0xff]  }
 0x39c   :  { %17297 = vmatprep.subr.bf16.mxu0 %v18786_v46  ;;  %17318 = vmatpush3.bf16.msra.mxu1 %v18785_v43  ;;  %v18830_v43 = vld [vmem:[#allocation2 + $0x1c98] sm:$0xff]   ;;  %v18833_v46 = vld [vmem:[#allocation2 + $0x1c20] sm:$0xff]  }
 0x39d   :  { %13678 = vmatprep.mubr.bf16.mxu0 %v3347_v49  ;;  %17319 = vmatprep.subr.bf16.mxu1 %v18787_v48  ;;  %v18835_v48 = vld [vmem:[#allocation2 + $0x1c68] sm:$0xff]  }
 0x39e   :  { %13718 = vmatprep.mubr.bf16.mxu1 %v3351_v52  ;;  %v18836_v49 = vld [vmem:[#allocation2 + $0x1ce8] sm:$0xff]  }
 0x39f   :  { %17298 = vmatpush3.bf16.msra.mxu0 %v18788_v50 }
 0x3a0   :  { %17299 = vmatprep.subr.bf16.mxu0 %v18790_v53  ;;  %17320 = vmatpush3.bf16.msra.mxu1 %v18789_v51  ;;  %v18837_v51 = vld [vmem:[#allocation2 + $0x1c28] sm:$0xff]   ;;  %v18839_v53 = vld [vmem:[#allocation2 + $0x1c70] sm:$0xff]  }
 0x3a1   :  { %17321 = vmatprep.subr.bf16.mxu1 %v18791_v54 }
 0x3a3   :  { %17300 = vmatpush3.bf16.msra.mxu0 %v18792_v55 }
 0x3a4   :  { %17301 = vmatprep.subr.bf16.mxu0 %v18794_v57  ;;  %17322 = vmatpush3.bf16.msra.mxu1 %v18793_v56 }
 0x3a5   :  { %17323 = vmatprep.subr.bf16.mxu1 %v18795_v58  ;;  %v18838_v58 = vld [vmem:[#allocation2 + $0x1ca8] sm:$0xff]  }
 0x3a7   :  { %17302 = vmatpush3.bf16.msra.mxu0 %v18796_v59 }
 0x3a8   :  { %17303 = vmatprep.subr.bf16.mxu0 %v18798_v61  ;;  %17324 = vmatpush3.bf16.msra.mxu1 %v18797_v60  ;;  %v18840_v60 = vld [vmem:[#allocation2 + $0x1cf0] sm:$0xff]  }
 0x3a9   :  { %17325 = vmatprep.subr.bf16.mxu1 %v18799_v62 }
 0x3ab   :  { %17304 = vmatpush3.bf16.msra.mxu0 %v18800_v63 }
 0x3ac   :  { %17305 = vmatprep.subr.bf16.mxu0 %v18802_v1  ;;  %17326 = vmatpush3.bf16.msra.mxu1 %v18801_v0  ;;  %v18841_v0 = vld [vmem:[#allocation2 + $0x1c30] sm:$0xff]  }
 0x3ad   :  { %v17003_v3 = vpop.f32.mrb[80].mxu0  ;;  %17327 = vmatprep.subr.bf16.mxu1 %v18803_v2  ;;  %v18843_v2 = vld [vmem:[#allocation2 + $0x1c78] sm:$0xff]  }
 0x3ae   :  { %v17004_v5 = vpop.f32.mrb[81].mxu0  ;;  %v17025_v7 = vpop.f32.mrb[80].mxu1 }
 0x3af   :  { %v17005_v8 = vadd.f32 %v17004_v5, %v17003_v3  ;;  %v17006_v9 = vpop.f32.mrb[82].mxu0  ;;  %v17026_v12 = vpop.f32.mrb[81].mxu1  ;;  %17306 = vmatpush3.bf16.msra.mxu0 %v18804_v4  ;;  %v18842_v4 = vld [vmem:[#allocation2 + $0x1cb0] sm:$0xff]   ;;  %v18844_v5 = vld [vmem:[#allocation2 + $0x1cf8] sm:$0xff]  }
 0x3b0   :  { %v17007_v13 = vpop.f32.mrb[83].mxu0  ;;  %v17027_v15 = vadd.f32 %v17026_v12, %v17025_v7  ;;  %v17028_v16 = vpop.f32.mrb[82].mxu1  ;;  %17307 = vmatprep.subr.bf16.mxu0 %v18806_v10  ;;  %17328 = vmatpush3.bf16.msra.mxu1 %v18805_v6  ;;  %v18845_v6 = vld [vmem:[#allocation2 + $0x1c38] sm:$0xff]   ;;  %v73_v7 = vld [vmem:[%s19803_s0 + $0x70] sm:$0xff]  ;;  %v18847_v9 = vld [vmem:[#allocation2 + $0x1d40] sm:$0xff]  }
 0x3b1   :  { %v13121_v14 = vadd.f32 %v17005_v8, %v19630_v27  ;;  %v17029_v18 = vpop.f32.mrb[83].mxu1  ;;  %17329 = vmatprep.subr.bf16.mxu1 %v18807_v11  ;;  %v18816_v27 = vld [vmem:[#allocation2 + $0x1cc0] sm:$0xff]   ;;  %v3359_v8 = vrot.slane %v73_v7, %v19389_v35  ;;  %v3352_v10 = vcombine.high %v73_v7, %v73_v7  ;;  %v18846_v11 = vld [vmem:[#allocation2 + $0x1cb8] sm:$0xff]   ;;  %v18884_v7 = vld [vmem:[#allocation2 + $0x1e48] sm:$0xff]  }
 0x3b2   :  { %v18849_v16 = vld [vmem:[#allocation2 + $0x1d00] sm:$0xff]  }
 0x3b3   :  { %v19645_v20 = vadd.f32 %v17027_v15, %v13121_v14  ;;  %17308 = vmatpush3.bf16.msra.mxu0 %v18808_v17  ;;  %v3367_v12 = vcombine.high %v3359_v8, %v3359_v8  ;;  %v3375_v13 = vrot.slane %v3359_v8, %v19389_v35  ;;  %v18848_v14 = vld [vmem:[#allocation2 + $0x1dc0] sm:$0xff]   ;;  %v19658_v15 = vrot.slane %v3352_v10, %v19389_v35  ;;  %v18885_v8 = vld [vmem:[#allocation2 + $0x1ec8] sm:$0xff]  }
 0x3b4   :  { %17309 = vmatprep.subr.bf16.mxu0 %v18810_v21  ;;  %17330 = vmatpush3.bf16.msra.mxu1 %v18809_v19  ;;  %v18850_v18 = vld [vmem:[#allocation2 + $0x1d80] sm:$0xff]   ;;  %v18851_v21 = vld [vmem:[#allocation2 + $0x1d48] sm:$0xff]  }
 0x3b5   :  { %17331 = vmatprep.subr.bf16.mxu1 %v18811_v22  ;;  %v3389_v17 = vrot.slane %v3367_v12, %v19389_v35  ;;  %v3368_v19 = vcombine.high %v19658_v15, %v19658_v15  ;;  %v18887_v10 = vld [vmem:[#allocation2 + $0x1e88] sm:$0xff]   ;;  %v18889_v12 = vld [vmem:[#allocation2 + $0x1ed0] sm:$0xff]  }
 0x3b7   :  { %17310 = vmatpush3.bf16.msra.mxu0 %v18812_v23  ;;  %v3399_v22 = vcombine.high %v3389_v17, %v3389_v17  ;;  %v18852_v23 = vld [vmem:[#allocation2 + $0x1dc8] sm:$0xff]  }
 0x3b8   :  { %17339 = vmatprep.subr.bf16.mxu0 %v18815_v26  ;;  %17332 = vmatpush3.bf16.msra.mxu1 %v18813_v24  ;;  %v3396_v24 = vrot.slane %v3368_v19, %v19389_v35  ;;  %v18854_v26 = vld [vmem:[#allocation2 + $0x1d88] sm:$0xff]   ;;  %v18896_v19 = vld [vmem:[#allocation2 + $0x1e60] sm:$0xff]  }
 0x3b9   :  { %17361 = vmatprep.subr.bf16.mxu1 %v18816_v27 }
 0x3ba   :  { %13679 = vmatmul.mubr.bf16.vlgmr.msra.gmra.mrb[108].mxu0 %v3333_v25  ;;  %v18853_v25 = vld [vmem:[#allocation2 + $0x1d08] sm:$0xff]   ;;  %v3400_v27 = vcombine.high %v3396_v24, %v3396_v24 }
 0x3bb   :  { %17340 = vmatpush3.bf16.msra.mxu0 %v18817_v28  ;;  %13719 = vmatmul.mubr.bf16.vlgmr.msra.gmra.mrb[108].mxu1 %v3349_v30  ;;  %v18855_v28 = vld [vmem:[#allocation2 + $0x1d50] sm:$0xff]  }
 0x3bc   :  { %17341 = vmatprep.subr.bf16.mxu0 %v18819_v31  ;;  %17362 = vmatpush3.bf16.msra.mxu1 %v18818_v29  ;;  %v18856_v29 = vld [vmem:[#allocation2 + $0x1dd0] sm:$0xff]  }
 0x3bd   :  { %17363 = vmatprep.subr.bf16.mxu1 %v18820_v32  ;;  %13758 = vmatprep.mubr.bf16.mxu0 %v3389_v17  ;;  %v18857_v30 = vld [vmem:[#allocation2 + $0x1d10] sm:$0xff]   ;;  %v18859_v32 = vld [vmem:[#allocation2 + $0x1d58] sm:$0xff]  }
 0x3be   :  { %13798 = vmatprep.mubr.bf16.mxu1 %v3399_v22  ;;  %v18858_v31 = vld [vmem:[#allocation2 + $0x1d90] sm:$0xff]   ;;  %v18894_v17 = vld [vmem:[#allocation2 + $0x1e18] sm:$0xff]   ;;  %v18899_v22 = vld [vmem:[#allocation2 + $0x1ea0] sm:$0xff]  }
 0x3bf   :  { %17342 = vmatpush3.bf16.msra.mxu0 %v18821_v33  ;;  %v18860_v33 = vld [vmem:[#allocation2 + $0x1dd8] sm:$0xff]  }
 0x3c0   :  { %17343 = vmatprep.subr.bf16.mxu0 %v18823_v36  ;;  %17364 = vmatpush3.bf16.msra.mxu1 %v18822_v34  ;;  %v18861_v34 = vld [vmem:[#allocation2 + $0x1d18] sm:$0xff]  }
 0x3c1   :  { %17365 = vmatprep.subr.bf16.mxu1 %v18824_v37  ;;  %v18862_v36 = vld [vmem:[#allocation2 + $0x1d98] sm:$0xff]   ;;  %v18863_v37 = vld [vmem:[#allocation2 + $0x1d60] sm:$0xff]  }
 0x3c3   :  { %17344 = vmatpush3.bf16.msra.mxu0 %v18825_v38  ;;  %v18864_v38 = vld [vmem:[#allocation2 + $0x1de0] sm:$0xff]  }
 0x3c4   :  { %17345 = vmatprep.subr.bf16.mxu0 %v18827_v40  ;;  %17366 = vmatpush3.bf16.msra.mxu1 %v18826_v39  ;;  %v18865_v39 = vld [vmem:[#allocation2 + $0x1d20] sm:$0xff]  }
 0x3c5   :  { %17367 = vmatprep.subr.bf16.mxu1 %v18828_v41  ;;  %v18866_v40 = vld [vmem:[#allocation2 + $0x1da0] sm:$0xff]   ;;  %v18867_v41 = vld [vmem:[#allocation2 + $0x1d68] sm:$0xff]  }
 0x3c7   :  { %17346 = vmatpush3.bf16.msra.mxu0 %v18829_v42  ;;  %v18868_v42 = vld [vmem:[#allocation2 + $0x1de8] sm:$0xff]  }
 0x3c8   :  { %17347 = vmatprep.subr.bf16.mxu0 %v18831_v44  ;;  %17368 = vmatpush3.bf16.msra.mxu1 %v18830_v43  ;;  %v18869_v44 = vld [vmem:[#allocation2 + $0x1d28] sm:$0xff]  }
 0x3c9   :  { %17369 = vmatprep.subr.bf16.mxu1 %v18832_v45 }
 0x3cb   :  { %17348 = vmatpush3.bf16.msra.mxu0 %v18833_v46  ;;  %v18870_v46 = vld [vmem:[#allocation2 + $0x1da8] sm:$0xff]  }
 0x3cc   :  { %17349 = vmatprep.subr.bf16.mxu0 %v18835_v48  ;;  %17370 = vmatpush3.bf16.msra.mxu1 %v18834_v47 }
 0x3cd   :  { %v17047_v50 = vpop.f32.mrb[84].mxu0  ;;  %17371 = vmatprep.subr.bf16.mxu1 %v18836_v49 }
 0x3ce   :  { %v17048_v52 = vpop.f32.mrb[85].mxu0  ;;  %v17069_v54 = vpop.f32.mrb[84].mxu1 }
 0x3cf   :  { %v17049_v55 = vadd.f32 %v17048_v52, %v17047_v50  ;;  %v17050_v56 = vpop.f32.mrb[86].mxu0  ;;  %v17070_v57 = vpop.f32.mrb[85].mxu1  ;;  %17350 = vmatpush3.bf16.msra.mxu0 %v18837_v51  ;;  %v18871_v50 = vld [vmem:[#allocation2 + $0x1d70] sm:$0xff]  }
 0x3d0   :  { %v17051_v59 = vpop.f32.mrb[87].mxu0  ;;  %v17071_v62 = vadd.f32 %v17070_v57, %v17069_v54  ;;  %v17072_v63 = vpop.f32.mrb[86].mxu1  ;;  %17351 = vmatprep.subr.bf16.mxu0 %v18839_v53  ;;  %17372 = vmatpush3.bf16.msra.mxu1 %v18838_v58  ;;  %v18872_v51 = vld [vmem:[#allocation2 + $0x1df0] sm:$0xff]  }
 0x3d1   :  { %v13201_v61 = vadd.f32 %v17049_v55, %v19645_v20  ;;  %v17073_v1 = vpop.f32.mrb[87].mxu1  ;;  %17373 = vmatprep.subr.bf16.mxu1 %v18840_v60  ;;  %v3397_v20 = vcombine.high %v3375_v13, %v3375_v13  ;;  %v18873_v57 = vld [vmem:[#allocation2 + $0x1d30] sm:$0xff]   ;;  %v18877_v63 = vld [vmem:[#allocation2 + $0x1d38] sm:$0xff]  }
 0x3d2   :  { %v18874_v59 = vld [vmem:[#allocation2 + $0x1db0] sm:$0xff]   ;;  %v3382_v1 = vrot.slane %v19658_v15, %v19389_v35  ;;  %v18892_v15 = vld [vmem:[#allocation2 + $0x1e58] sm:$0xff]  }
 0x3d3   :  { %v19650_v3 = vadd.f32 %v17071_v62, %v13201_v61  ;;  %17352 = vmatpush3.bf16.msra.mxu0 %v18841_v0  ;;  %v18875_v61 = vld [vmem:[#allocation2 + $0x1d78] sm:$0xff]  }
 0x3d4   :  { %17353 = vmatprep.subr.bf16.mxu0 %v18843_v2  ;;  %17374 = vmatpush3.bf16.msra.mxu1 %v18842_v4  ;;  %v18876_v62 = vld [vmem:[#allocation2 + $0x1df8] sm:$0xff]   ;;  %v18880_v2 = vld [vmem:[#allocation2 + $0x1e40] sm:$0xff]  }
 0x3d5   :  { %17375 = vmatprep.subr.bf16.mxu1 %v18844_v5  ;;  %v18878_v0 = vld [vmem:[#allocation2 + $0x1db8] sm:$0xff]   ;;  %v18882_v4 = vld [vmem:[#allocation2 + $0x1e00] sm:$0xff]  }
 0x3d6   :  { %v18883_v5 = vld [vmem:[#allocation2 + $0x1e80] sm:$0xff]  }
 0x3d7   :  { %17354 = vmatpush3.bf16.msra.mxu0 %v18845_v6  ;;  %v3398_v6 = vcombine.high %v3382_v1, %v3382_v1 }
 0x3d8   :  { %17383 = vmatprep.subr.bf16.mxu0 %v18847_v9  ;;  %17376 = vmatpush3.bf16.msra.mxu1 %v18846_v11  ;;  %v18886_v9 = vld [vmem:[#allocation2 + $0x1e08] sm:$0xff]   ;;  %v18888_v11 = vld [vmem:[#allocation2 + $0x1e50] sm:$0xff]  }
 0x3d9   :  { %17405 = vmatprep.subr.bf16.mxu1 %v18848_v14  ;;  %v18891_v14 = vld [vmem:[#allocation2 + $0x1e90] sm:$0xff]  }
 0x3da   :  { %13759 = vmatmul.mubr.bf16.vlgmr.msra.gmra.mrb[112].mxu0 %v3375_v13  ;;  %v18890_v13 = vld [vmem:[#allocation2 + $0x1e10] sm:$0xff]  }
 0x3db   :  { %17384 = vmatpush3.bf16.msra.mxu0 %v18849_v16  ;;  %13799 = vmatmul.mubr.bf16.vlgmr.msra.gmra.mrb[112].mxu1 %v3397_v20  ;;  %v18893_v16 = vld [vmem:[#allocation2 + $0x1ed8] sm:$0xff]   ;;  %v18897_v20 = vld [vmem:[#allocation2 + $0x1ee0] sm:$0xff]  }
 0x3dc   :  { %17385 = vmatprep.subr.bf16.mxu0 %v18851_v21  ;;  %17406 = vmatpush3.bf16.msra.mxu1 %v18850_v18  ;;  %v18895_v18 = vld [vmem:[#allocation2 + $0x1e98] sm:$0xff]   ;;  %v18898_v21 = vld [vmem:[#allocation2 + $0x1e20] sm:$0xff]  }
 0x3dd   :  { %13838 = vmatprep.mubr.bf16.mxu0 %v3396_v24  ;;  %17407 = vmatprep.subr.bf16.mxu1 %v18852_v23  ;;  %v18900_v23 = vld [vmem:[#allocation2 + $0x1e68] sm:$0xff]  }
 0x3de   :  { %13878 = vmatprep.mubr.bf16.mxu1 %v3400_v27  ;;  %v18901_v24 = vld [vmem:[#allocation2 + $0x1ee8] sm:$0xff]  }
 0x3df   :  { %17386 = vmatpush3.bf16.msra.mxu0 %v18853_v25 }
 0x3e0   :  { %17387 = vmatprep.subr.bf16.mxu0 %v18855_v28  ;;  %17408 = vmatpush3.bf16.msra.mxu1 %v18854_v26  ;;  %v18902_v26 = vld [vmem:[#allocation2 + $0x1e28] sm:$0xff]   ;;  %v18904_v28 = vld [vmem:[#allocation2 + $0x1e70] sm:$0xff]  }
 0x3e1   :  { %17409 = vmatprep.subr.bf16.mxu1 %v18856_v29 }
 0x3e3   :  { %17388 = vmatpush3.bf16.msra.mxu0 %v18857_v30 }
 0x3e4   :  { %17389 = vmatprep.subr.bf16.mxu0 %v18859_v32  ;;  %17410 = vmatpush3.bf16.msra.mxu1 %v18858_v31 }
 0x3e5   :  { %17411 = vmatprep.subr.bf16.mxu1 %v18860_v33  ;;  %v18903_v33 = vld [vmem:[#allocation2 + $0x1ea8] sm:$0xff]  }
 0x3e7   :  { %17390 = vmatpush3.bf16.msra.mxu0 %v18861_v34 }
 0x3e8   :  { %17391 = vmatprep.subr.bf16.mxu0 %v18863_v37  ;;  %17412 = vmatpush3.bf16.msra.mxu1 %v18862_v36  ;;  %v18905_v36 = vld [vmem:[#allocation2 + $0x1ef0] sm:$0xff]  }
 0x3e9   :  { %17413 = vmatprep.subr.bf16.mxu1 %v18864_v38 }
 0x3eb   :  { %17392 = vmatpush3.bf16.msra.mxu0 %v18865_v39 }
 0x3ec   :  { %17393 = vmatprep.subr.bf16.mxu0 %v18867_v41  ;;  %17414 = vmatpush3.bf16.msra.mxu1 %v18866_v40  ;;  %v18906_v40 = vld [vmem:[#allocation2 + $0x1e30] sm:$0xff]  }
 0x3ed   :  { %v17091_v43 = vpop.f32.mrb[88].mxu0  ;;  %17415 = vmatprep.subr.bf16.mxu1 %v18868_v42  ;;  %v18908_v42 = vld [vmem:[#allocation2 + $0x1e78] sm:$0xff]  }
 0x3ee   :  { %v17092_v45 = vpop.f32.mrb[89].mxu0  ;;  %v17113_v47 = vpop.f32.mrb[88].mxu1 }
 0x3ef   :  { %v17093_v48 = vadd.f32 %v17092_v45, %v17091_v43  ;;  %v17094_v49 = vpop.f32.mrb[90].mxu0  ;;  %v17114_v52 = vpop.f32.mrb[89].mxu1  ;;  %17394 = vmatpush3.bf16.msra.mxu0 %v18869_v44  ;;  %v18907_v44 = vld [vmem:[#allocation2 + $0x1eb0] sm:$0xff]   ;;  %v18909_v45 = vld [vmem:[#allocation2 + $0x1ef8] sm:$0xff]  }
 0x3f0   :  { %v17095_v53 = vpop.f32.mrb[91].mxu0  ;;  %v17115_v55 = vadd.f32 %v17114_v52, %v17113_v47  ;;  %v17116_v56 = vpop.f32.mrb[90].mxu1  ;;  %17395 = vmatprep.subr.bf16.mxu0 %v18871_v50  ;;  %17416 = vmatpush3.bf16.msra.mxu1 %v18870_v46  ;;  %v18910_v46 = vld [vmem:[#allocation2 + $0x1e38] sm:$0xff]   ;;  %v18912_v49 = vld [vmem:[#allocation2 + $0x1f40] sm:$0xff]  }
 0x3f1   :  { %v13281_v54 = vadd.f32 %v17093_v48, %v19650_v3  ;;  %v17117_v58 = vpop.f32.mrb[91].mxu1  ;;  %17417 = vmatprep.subr.bf16.mxu1 %v18872_v51  ;;  %v18881_v3 = vld [vmem:[#allocation2 + $0x1ec0] sm:$0xff]   ;;  %v74_v47 = vld [vmem:[%s19803_s0 + $0x78] sm:$0xff] }
 0x3f2   :  { %v3408_v48 = vrot.slane %v74_v47, %v19389_v35  ;;  %v3401_v50 = vcombine.high %v74_v47, %v74_v47  ;;  %v18911_v51 = vld [vmem:[#allocation2 + $0x1eb8] sm:$0xff]   ;;  %v18914_v56 = vld [vmem:[#allocation2 + $0x1f00] sm:$0xff]   ;;  %v18949_v47 = vld [vmem:[#allocation2 + $0x2048] sm:$0xff]  }
 0x3f3   :  { %v19665_v60 = vadd.f32 %v17115_v55, %v13281_v54  ;;  %17396 = vmatpush3.bf16.msra.mxu0 %v18873_v57  ;;  %v18913_v54 = vld [vmem:[#allocation2 + $0x1fc0] sm:$0xff]  }
 0x3f4   :  { %17397 = vmatprep.subr.bf16.mxu0 %v18875_v61  ;;  %17418 = vmatpush3.bf16.msra.mxu1 %v18874_v59  ;;  %v3416_v52 = vcombine.high %v3408_v48, %v3408_v48  ;;  %v3424_v53 = vrot.slane %v3408_v48, %v19389_v35  ;;  %v19678_v55 = vrot.slane %v3401_v50, %v19389_v35  ;;  %v18915_v58 = vld [vmem:[#allocation2 + $0x1f80] sm:$0xff]   ;;  %v18916_v61 = vld [vmem:[#allocation2 + $0x1f48] sm:$0xff]  }
 0x3f5   :  { %17419 = vmatprep.subr.bf16.mxu1 %v18876_v62  ;;  %v18950_v48 = vld [vmem:[#allocation2 + $0x20c8] sm:$0xff]  }
 0x3f6   :  { %v3438_v57 = vrot.slane %v3416_v52, %v19389_v35  ;;  %v3417_v59 = vcombine.high %v19678_v55, %v19678_v55  ;;  %v18952_v50 = vld [vmem:[#allocation2 + $0x2088] sm:$0xff]   ;;  %v18954_v52 = vld [vmem:[#allocation2 + $0x20d0] sm:$0xff]  }
 0x3f7   :  { %17398 = vmatpush3.bf16.msra.mxu0 %v18877_v63  ;;  %v18917_v63 = vld [vmem:[#allocation2 + $0x1fc8] sm:$0xff]  }
 0x3f8   :  { %17427 = vmatprep.subr.bf16.mxu0 %v18880_v2  ;;  %17420 = vmatpush3.bf16.msra.mxu1 %v18878_v0  ;;  %v3448_v62 = vcombine.high %v3438_v57, %v3438_v57  ;;  %v3445_v0 = vrot.slane %v3417_v59, %v19389_v35  ;;  %v18919_v2 = vld [vmem:[#allocation2 + $0x1f88] sm:$0xff]   ;;  %v18961_v59 = vld [vmem:[#allocation2 + $0x2060] sm:$0xff]  }
 0x3f9   :  { %17449 = vmatprep.subr.bf16.mxu1 %v18881_v3 }
 0x3fa   :  { %13839 = vmatmul.mubr.bf16.vlgmr.msra.gmra.mrb[116].mxu0 %v3382_v1  ;;  %v18918_v1 = vld [vmem:[#allocation2 + $0x1f08] sm:$0xff]   ;;  %v3449_v3 = vcombine.high %v3445_v0, %v3445_v0 }
 0x3fb   :  { %17428 = vmatpush3.bf16.msra.mxu0 %v18882_v4  ;;  %13879 = vmatmul.mubr.bf16.vlgmr.msra.gmra.mrb[116].mxu1 %v3398_v6  ;;  %v18920_v4 = vld [vmem:[#allocation2 + $0x1f50] sm:$0xff]  }
 0x3fc   :  { %17429 = vmatprep.subr.bf16.mxu0 %v18884_v7  ;;  %17450 = vmatpush3.bf16.msra.mxu1 %v18883_v5  ;;  %v18921_v5 = vld [vmem:[#allocation2 + $0x1fd0] sm:$0xff]  }
 0x3fd   :  { %17451 = vmatprep.subr.bf16.mxu1 %v18885_v8  ;;  %13918 = vmatprep.mubr.bf16.mxu0 %v3438_v57  ;;  %v18922_v6 = vld [vmem:[#allocation2 + $0x1f10] sm:$0xff]   ;;  %v18924_v8 = vld [vmem:[#allocation2 + $0x1f58] sm:$0xff]  }
 0x3fe   :  { %13958 = vmatprep.mubr.bf16.mxu1 %v3448_v62  ;;  %v18923_v7 = vld [vmem:[#allocation2 + $0x1f90] sm:$0xff]   ;;  %v18959_v57 = vld [vmem:[#allocation2 + $0x2018] sm:$0xff]   ;;  %v18964_v62 = vld [vmem:[#allocation2 + $0x20a0] sm:$0xff]  }
 0x3ff   :  { %17430 = vmatpush3.bf16.msra.mxu0 %v18886_v9  ;;  %v18925_v9 = vld [vmem:[#allocation2 + $0x1fd8] sm:$0xff]  }
 0x400   :  { %17431 = vmatprep.subr.bf16.mxu0 %v18888_v11  ;;  %17452 = vmatpush3.bf16.msra.mxu1 %v18887_v10  ;;  %v18926_v10 = vld [vmem:[#allocation2 + $0x1f18] sm:$0xff]  }
 0x401   :  { %17453 = vmatprep.subr.bf16.mxu1 %v18889_v12  ;;  %v18927_v11 = vld [vmem:[#allocation2 + $0x1f98] sm:$0xff]   ;;  %v18928_v12 = vld [vmem:[#allocation2 + $0x1f60] sm:$0xff]  }
 0x403   :  { %17432 = vmatpush3.bf16.msra.mxu0 %v18890_v13  ;;  %v18929_v13 = vld [vmem:[#allocation2 + $0x1fe0] sm:$0xff]  }
 0x404   :  { %17433 = vmatprep.subr.bf16.mxu0 %v18892_v15  ;;  %17454 = vmatpush3.bf16.msra.mxu1 %v18891_v14  ;;  %v18930_v14 = vld [vmem:[#allocation2 + $0x1f20] sm:$0xff]  }
 0x405   :  { %17455 = vmatprep.subr.bf16.mxu1 %v18893_v16  ;;  %v18931_v15 = vld [vmem:[#allocation2 + $0x1fa0] sm:$0xff]   ;;  %v18932_v16 = vld [vmem:[#allocation2 + $0x1f68] sm:$0xff]  }
 0x407   :  { %17434 = vmatpush3.bf16.msra.mxu0 %v18894_v17  ;;  %v18933_v17 = vld [vmem:[#allocation2 + $0x1fe8] sm:$0xff]  }
 0x408   :  { %17435 = vmatprep.subr.bf16.mxu0 %v18896_v19  ;;  %17456 = vmatpush3.bf16.msra.mxu1 %v18895_v18  ;;  %v18934_v19 = vld [vmem:[#allocation2 + $0x1f28] sm:$0xff]  }
 0x409   :  { %17457 = vmatprep.subr.bf16.mxu1 %v18897_v20 }
 0x40b   :  { %17436 = vmatpush3.bf16.msra.mxu0 %v18898_v21  ;;  %v18935_v21 = vld [vmem:[#allocation2 + $0x1fa8] sm:$0xff]  }
 0x40c   :  { %17437 = vmatprep.subr.bf16.mxu0 %v18900_v23  ;;  %17458 = vmatpush3.bf16.msra.mxu1 %v18899_v22 }
 0x40d   :  { %v17135_v25 = vpop.f32.mrb[92].mxu0  ;;  %17459 = vmatprep.subr.bf16.mxu1 %v18901_v24 }
 0x40e   :  { %v17136_v27 = vpop.f32.mrb[93].mxu0  ;;  %v17157_v29 = vpop.f32.mrb[92].mxu1 }
 0x40f   :  { %v17137_v30 = vadd.f32 %v17136_v27, %v17135_v25  ;;  %v17138_v31 = vpop.f32.mrb[94].mxu0  ;;  %v17158_v32 = vpop.f32.mrb[93].mxu1  ;;  %17438 = vmatpush3.bf16.msra.mxu0 %v18902_v26  ;;  %v18936_v25 = vld [vmem:[#allocation2 + $0x1f70] sm:$0xff]  }
 0x410   :  { %v17139_v34 = vpop.f32.mrb[95].mxu0  ;;  %v17159_v38 = vadd.f32 %v17158_v32, %v17157_v29  ;;  %v17160_v39 = vpop.f32.mrb[94].mxu1  ;;  %17439 = vmatprep.subr.bf16.mxu0 %v18904_v28  ;;  %17460 = vmatpush3.bf16.msra.mxu1 %v18903_v33  ;;  %v18937_v26 = vld [vmem:[#allocation2 + $0x1ff0] sm:$0xff]  }
 0x411   :  { %v13361_v37 = vadd.f32 %v17137_v30, %v19665_v60  ;;  %v17161_v41 = vpop.f32.mrb[95].mxu1  ;;  %17461 = vmatprep.subr.bf16.mxu1 %v18905_v36  ;;  %v3446_v60 = vcombine.high %v3424_v53, %v3424_v53  ;;  %v18938_v32 = vld [vmem:[#allocation2 + $0x1f30] sm:$0xff]   ;;  %v18942_v39 = vld [vmem:[#allocation2 + $0x1f38] sm:$0xff]  }
 0x412   :  { %v18939_v34 = vld [vmem:[#allocation2 + $0x1fb0] sm:$0xff]   ;;  %v3431_v41 = vrot.slane %v19678_v55, %v19389_v35  ;;  %v18957_v55 = vld [vmem:[#allocation2 + $0x2058] sm:$0xff]  }
 0x413   :  { %v19670_v43 = vadd.f32 %v17159_v38, %v13361_v37  ;;  %17440 = vmatpush3.bf16.msra.mxu0 %v18906_v40  ;;  %v18940_v37 = vld [vmem:[#allocation2 + $0x1f78] sm:$0xff]  }
 0x414   :  { %17441 = vmatprep.subr.bf16.mxu0 %v18908_v42  ;;  %17462 = vmatpush3.bf16.msra.mxu1 %v18907_v44  ;;  %v18941_v38 = vld [vmem:[#allocation2 + $0x1ff8] sm:$0xff]   ;;  %v18945_v42 = vld [vmem:[#allocation2 + $0x2040] sm:$0xff]  }
 0x415   :  { %17463 = vmatprep.subr.bf16.mxu1 %v18909_v45  ;;  %v18943_v40 = vld [vmem:[#allocation2 + $0x1fb8] sm:$0xff]   ;;  %v18947_v44 = vld [vmem:[#allocation2 + $0x2000] sm:$0xff]  }
 0x416   :  { %v18948_v45 = vld [vmem:[#allocation2 + $0x2080] sm:$0xff]  }
 0x417   :  { %17442 = vmatpush3.bf16.msra.mxu0 %v18910_v46  ;;  %v3447_v46 = vcombine.high %v3431_v41, %v3431_v41 }
 0x418   :  { %17471 = vmatprep.subr.bf16.mxu0 %v18912_v49  ;;  %17464 = vmatpush3.bf16.msra.mxu1 %v18911_v51  ;;  %v18951_v49 = vld [vmem:[#allocation2 + $0x2008] sm:$0xff]   ;;  %v18953_v51 = vld [vmem:[#allocation2 + $0x2050] sm:$0xff]  }
 0x419   :  { %17493 = vmatprep.subr.bf16.mxu1 %v18913_v54  ;;  %v18956_v54 = vld [vmem:[#allocation2 + $0x2090] sm:$0xff]  }
 0x41a   :  { %13919 = vmatmul.mubr.bf16.vlgmr.msra.gmra.mrb[120].mxu0 %v3424_v53  ;;  %v18955_v53 = vld [vmem:[#allocation2 + $0x2010] sm:$0xff]  }
 0x41b   :  { %17472 = vmatpush3.bf16.msra.mxu0 %v18914_v56  ;;  %13959 = vmatmul.mubr.bf16.vlgmr.msra.gmra.mrb[120].mxu1 %v3446_v60  ;;  %v18958_v56 = vld [vmem:[#allocation2 + $0x20d8] sm:$0xff]   ;;  %v18962_v60 = vld [vmem:[#allocation2 + $0x20e0] sm:$0xff]  }
 0x41c   :  { %17473 = vmatprep.subr.bf16.mxu0 %v18916_v61  ;;  %17494 = vmatpush3.bf16.msra.mxu1 %v18915_v58  ;;  %v18960_v58 = vld [vmem:[#allocation2 + $0x2098] sm:$0xff]   ;;  %v18963_v61 = vld [vmem:[#allocation2 + $0x2020] sm:$0xff]  }
 0x41d   :  { %13998 = vmatprep.mubr.bf16.mxu0 %v3445_v0  ;;  %17495 = vmatprep.subr.bf16.mxu1 %v18917_v63  ;;  %v18965_v63 = vld [vmem:[#allocation2 + $0x2068] sm:$0xff]  }
 0x41e   :  { %14038 = vmatprep.mubr.bf16.mxu1 %v3449_v3  ;;  %v18966_v0 = vld [vmem:[#allocation2 + $0x20e8] sm:$0xff]  }
 0x41f   :  { %17474 = vmatpush3.bf16.msra.mxu0 %v18918_v1 }
 0x420   :  { %17475 = vmatprep.subr.bf16.mxu0 %v18920_v4  ;;  %17496 = vmatpush3.bf16.msra.mxu1 %v18919_v2  ;;  %v18967_v2 = vld [vmem:[#allocation2 + $0x2028] sm:$0xff]   ;;  %v18969_v4 = vld [vmem:[#allocation2 + $0x2070] sm:$0xff]  }
 0x421   :  { %17497 = vmatprep.subr.bf16.mxu1 %v18921_v5 }
 0x423   :  { %17476 = vmatpush3.bf16.msra.mxu0 %v18922_v6 }
 0x424   :  { %17477 = vmatprep.subr.bf16.mxu0 %v18924_v8  ;;  %17498 = vmatpush3.bf16.msra.mxu1 %v18923_v7 }
 0x425   :  { %17499 = vmatprep.subr.bf16.mxu1 %v18925_v9  ;;  %v18968_v9 = vld [vmem:[#allocation2 + $0x20a8] sm:$0xff]  }
 0x427   :  { %17478 = vmatpush3.bf16.msra.mxu0 %v18926_v10 }
 0x428   :  { %17479 = vmatprep.subr.bf16.mxu0 %v18928_v12  ;;  %17500 = vmatpush3.bf16.msra.mxu1 %v18927_v11  ;;  %v18970_v11 = vld [vmem:[#allocation2 + $0x20f0] sm:$0xff]  }
 0x429   :  { %17501 = vmatprep.subr.bf16.mxu1 %v18929_v13 }
 0x42b   :  { %17480 = vmatpush3.bf16.msra.mxu0 %v18930_v14 }
 0x42c   :  { %17481 = vmatprep.subr.bf16.mxu0 %v18932_v16  ;;  %17502 = vmatpush3.bf16.msra.mxu1 %v18931_v15  ;;  %v18971_v15 = vld [vmem:[#allocation2 + $0x2030] sm:$0xff]  }
 0x42d   :  { %v17179_v18 = vpop.f32.mrb[96].mxu0  ;;  %17503 = vmatprep.subr.bf16.mxu1 %v18933_v17  ;;  %v18973_v17 = vld [vmem:[#allocation2 + $0x2078] sm:$0xff]  }
 0x42e   :  { %v17180_v20 = vpop.f32.mrb[97].mxu0  ;;  %v17201_v22 = vpop.f32.mrb[96].mxu1 }
 0x42f   :  { %v17181_v23 = vadd.f32 %v17180_v20, %v17179_v18  ;;  %v17182_v24 = vpop.f32.mrb[98].mxu0  ;;  %v17202_v27 = vpop.f32.mrb[97].mxu1  ;;  %17482 = vmatpush3.bf16.msra.mxu0 %v18934_v19  ;;  %v18972_v19 = vld [vmem:[#allocation2 + $0x20b0] sm:$0xff]   ;;  %v18974_v20 = vld [vmem:[#allocation2 + $0x20f8] sm:$0xff]  }
 0x430   :  { %v17183_v28 = vpop.f32.mrb[99].mxu0  ;;  %v17203_v30 = vadd.f32 %v17202_v27, %v17201_v22  ;;  %v17204_v31 = vpop.f32.mrb[98].mxu1  ;;  %17483 = vmatprep.subr.bf16.mxu0 %v18936_v25  ;;  %17504 = vmatpush3.bf16.msra.mxu1 %v18935_v21  ;;  %v18975_v21 = vld [vmem:[#allocation2 + $0x2038] sm:$0xff]   ;;  %v75_v22 = vld [vmem:[%s19803_s0 + $0x80] sm:$0xff] }
 0x431   :  { %v13441_v29 = vadd.f32 %v17181_v23, %v19670_v43  ;;  %v17205_v33 = vpop.f32.mrb[99].mxu1  ;;  %17505 = vmatprep.subr.bf16.mxu1 %v18937_v26  ;;  %v18946_v43 = vld [vmem:[#allocation2 + $0x20c0] sm:$0xff]   ;;  %v3457_v23 = vrot.slane %v75_v22, %v19389_v35  ;;  %v3450_v25 = vcombine.high %v75_v22, %v75_v22  ;;  %v18976_v26 = vld [vmem:[#allocation2 + $0x20b8] sm:$0xff]   ;;  %v19014_v22 = vld [vmem:[#allocation2 + $0x2248] sm:$0xff]  }
 0x432   :  { %v18977_v24 = vld [vmem:[#allocation2 + $0x2140] sm:$0xff]  }
 0x433   :  { %v19685_v36 = vadd.f32 %v17203_v30, %v13441_v29  ;;  %17484 = vmatpush3.bf16.msra.mxu0 %v18938_v32  ;;  %v3465_v27 = vcombine.high %v3457_v23, %v3457_v23  ;;  %v3473_v28 = vrot.slane %v3457_v23, %v19389_v35  ;;  %v18978_v29 = vld [vmem:[#allocation2 + $0x21c0] sm:$0xff]   ;;  %v19698_v30 = vrot.slane %v3450_v25, %v19389_v35  ;;  %v19015_v23 = vld [vmem:[#allocation2 + $0x22c8] sm:$0xff]  }
 0x434   :  { %17485 = vmatprep.subr.bf16.mxu0 %v18940_v37  ;;  %17506 = vmatpush3.bf16.msra.mxu1 %v18939_v34  ;;  %v18979_v31 = vld [vmem:[#allocation2 + $0x2100] sm:$0xff]   ;;  %v18981_v37 = vld [vmem:[#allocation2 + $0x2148] sm:$0xff]  }
 0x435   :  { %17507 = vmatprep.subr.bf16.mxu1 %v18941_v38  ;;  %v3487_v32 = vrot.slane %v3465_v27, %v19389_v35  ;;  %v18980_v33 = vld [vmem:[#allocation2 + $0x2180] sm:$0xff]   ;;  %v3466_v34 = vcombine.high %v19698_v30, %v19698_v30  ;;  %v19017_v25 = vld [vmem:[#allocation2 + $0x2288] sm:$0xff]   ;;  %v19019_v27 = vld [vmem:[#allocation2 + $0x22d0] sm:$0xff]  }
 0x437   :  { %17486 = vmatpush3.bf16.msra.mxu0 %v18942_v39  ;;  %v3497_v38 = vcombine.high %v3487_v32, %v3487_v32  ;;  %v18982_v39 = vld [vmem:[#allocation2 + $0x21c8] sm:$0xff]  }
 0x438   :  { %17515 = vmatprep.subr.bf16.mxu0 %v18945_v42  ;;  %17508 = vmatpush3.bf16.msra.mxu1 %v18943_v40  ;;  %v3494_v40 = vrot.slane %v3466_v34, %v19389_v35  ;;  %v18984_v42 = vld [vmem:[#allocation2 + $0x2188] sm:$0xff]   ;;  %v19026_v34 = vld [vmem:[#allocation2 + $0x2260] sm:$0xff]  }
 0x439   :  { %17537 = vmatprep.subr.bf16.mxu1 %v18946_v43 }
 0x43a   :  { %13999 = vmatmul.mubr.bf16.vlgmr.msra.gmra.mrb[124].mxu0 %v3431_v41  ;;  %v18983_v41 = vld [vmem:[#allocation2 + $0x2108] sm:$0xff]   ;;  %v3498_v43 = vcombine.high %v3494_v40, %v3494_v40 }
 0x43b   :  { %17516 = vmatpush3.bf16.msra.mxu0 %v18947_v44  ;;  %14039 = vmatmul.mubr.bf16.vlgmr.msra.gmra.mrb[124].mxu1 %v3447_v46  ;;  %v18985_v44 = vld [vmem:[#allocation2 + $0x2150] sm:$0xff]  }
 0x43c   :  { %17517 = vmatprep.subr.bf16.mxu0 %v18949_v47  ;;  %17538 = vmatpush3.bf16.msra.mxu1 %v18948_v45  ;;  %v18986_v45 = vld [vmem:[#allocation2 + $0x21d0] sm:$0xff]  }
 0x43d   :  { %17539 = vmatprep.subr.bf16.mxu1 %v18950_v48  ;;  %14078 = vmatprep.mubr.bf16.mxu0 %v3487_v32  ;;  %v18987_v46 = vld [vmem:[#allocation2 + $0x2110] sm:$0xff]   ;;  %v18989_v48 = vld [vmem:[#allocation2 + $0x2158] sm:$0xff]  }
 0x43e   :  { %14118 = vmatprep.mubr.bf16.mxu1 %v3497_v38  ;;  %v18988_v47 = vld [vmem:[#allocation2 + $0x2190] sm:$0xff]   ;;  %v19024_v32 = vld [vmem:[#allocation2 + $0x2218] sm:$0xff]   ;;  %v19029_v38 = vld [vmem:[#allocation2 + $0x22a0] sm:$0xff]  }
 0x43f   :  { %17518 = vmatpush3.bf16.msra.mxu0 %v18951_v49  ;;  %v18990_v49 = vld [vmem:[#allocation2 + $0x21d8] sm:$0xff]  }
 0x440   :  { %17519 = vmatprep.subr.bf16.mxu0 %v18953_v51  ;;  %17540 = vmatpush3.bf16.msra.mxu1 %v18952_v50  ;;  %v18991_v50 = vld [vmem:[#allocation2 + $0x2118] sm:$0xff]  }
 0x441   :  { %17541 = vmatprep.subr.bf16.mxu1 %v18954_v52  ;;  %v18992_v51 = vld [vmem:[#allocation2 + $0x2198] sm:$0xff]   ;;  %v18993_v52 = vld [vmem:[#allocation2 + $0x2160] sm:$0xff]  }
 0x443   :  { %17520 = vmatpush3.bf16.msra.mxu0 %v18955_v53  ;;  %v18994_v53 = vld [vmem:[#allocation2 + $0x21e0] sm:$0xff]  }
 0x444   :  { %17521 = vmatprep.subr.bf16.mxu0 %v18957_v55  ;;  %17542 = vmatpush3.bf16.msra.mxu1 %v18956_v54  ;;  %v18995_v54 = vld [vmem:[#allocation2 + $0x2120] sm:$0xff]  }
 0x445   :  { %17543 = vmatprep.subr.bf16.mxu1 %v18958_v56  ;;  %v18996_v55 = vld [vmem:[#allocation2 + $0x21a0] sm:$0xff]   ;;  %v18997_v56 = vld [vmem:[#allocation2 + $0x2168] sm:$0xff]  }
 0x447   :  { %17522 = vmatpush3.bf16.msra.mxu0 %v18959_v57  ;;  %v18998_v57 = vld [vmem:[#allocation2 + $0x21e8] sm:$0xff]  }
 0x448   :  { %17523 = vmatprep.subr.bf16.mxu0 %v18961_v59  ;;  %17544 = vmatpush3.bf16.msra.mxu1 %v18960_v58  ;;  %v18999_v59 = vld [vmem:[#allocation2 + $0x2128] sm:$0xff]  }
 0x449   :  { %17545 = vmatprep.subr.bf16.mxu1 %v18962_v60 }
 0x44b   :  { %17524 = vmatpush3.bf16.msra.mxu0 %v18963_v61  ;;  %v19000_v61 = vld [vmem:[#allocation2 + $0x21a8] sm:$0xff]  }
 0x44c   :  { %17525 = vmatprep.subr.bf16.mxu0 %v18965_v63  ;;  %17546 = vmatpush3.bf16.msra.mxu1 %v18964_v62 }
 0x44d   :  { %v17223_v1 = vpop.f32.mrb[100].mxu0  ;;  %17547 = vmatprep.subr.bf16.mxu1 %v18966_v0 }
 0x44e   :  { %v17224_v3 = vpop.f32.mrb[101].mxu0  ;;  %v17245_v5 = vpop.f32.mrb[100].mxu1 }
 0x44f   :  { %v17225_v6 = vadd.f32 %v17224_v3, %v17223_v1  ;;  %v17226_v7 = vpop.f32.mrb[102].mxu0  ;;  %v17246_v8 = vpop.f32.mrb[101].mxu1  ;;  %17526 = vmatpush3.bf16.msra.mxu0 %v18967_v2  ;;  %v19001_v1 = vld [vmem:[#allocation2 + $0x2170] sm:$0xff]  }
 0x450   :  { %v17227_v10 = vpop.f32.mrb[103].mxu0  ;;  %v17247_v13 = vadd.f32 %v17246_v8, %v17245_v5  ;;  %v17248_v14 = vpop.f32.mrb[102].mxu1  ;;  %17527 = vmatprep.subr.bf16.mxu0 %v18969_v4  ;;  %17548 = vmatpush3.bf16.msra.mxu1 %v18968_v9  ;;  %v19002_v2 = vld [vmem:[#allocation2 + $0x21f0] sm:$0xff]  }
 0x451   :  { %v13521_v12 = vadd.f32 %v17225_v6, %v19685_v36  ;;  %v17249_v16 = vpop.f32.mrb[103].mxu1  ;;  %17549 = vmatprep.subr.bf16.mxu1 %v18970_v11  ;;  %v3495_v36 = vcombine.high %v3473_v28, %v3473_v28  ;;  %v19003_v8 = vld [vmem:[#allocation2 + $0x2130] sm:$0xff]   ;;  %v19007_v14 = vld [vmem:[#allocation2 + $0x2138] sm:$0xff]  }
 0x452   :  { %v19004_v10 = vld [vmem:[#allocation2 + $0x21b0] sm:$0xff]   ;;  %v3480_v16 = vrot.slane %v19698_v30, %v19389_v35  ;;  %v19022_v30 = vld [vmem:[#allocation2 + $0x2258] sm:$0xff]  }
 0x453   :  { %v19690_v18 = vadd.f32 %v17247_v13, %v13521_v12  ;;  %17528 = vmatpush3.bf16.msra.mxu0 %v18971_v15  ;;  %v19005_v12 = vld [vmem:[#allocation2 + $0x2178] sm:$0xff]  }
 0x454   :  { %17529 = vmatprep.subr.bf16.mxu0 %v18973_v17  ;;  %17550 = vmatpush3.bf16.msra.mxu1 %v18972_v19  ;;  %v19006_v13 = vld [vmem:[#allocation2 + $0x21f8] sm:$0xff]   ;;  %v19010_v17 = vld [vmem:[#allocation2 + $0x2240] sm:$0xff]  }
 0x455   :  { %17551 = vmatprep.subr.bf16.mxu1 %v18974_v20  ;;  %v19008_v15 = vld [vmem:[#allocation2 + $0x21b8] sm:$0xff]   ;;  %v19012_v19 = vld [vmem:[#allocation2 + $0x2200] sm:$0xff]  }
 0x456   :  { %v19013_v20 = vld [vmem:[#allocation2 + $0x2280] sm:$0xff]  }
 0x457   :  { %17530 = vmatpush3.bf16.msra.mxu0 %v18975_v21  ;;  %v3496_v21 = vcombine.high %v3480_v16, %v3480_v16 }
 0x458   :  { %17559 = vmatprep.subr.bf16.mxu0 %v18977_v24  ;;  %17552 = vmatpush3.bf16.msra.mxu1 %v18976_v26  ;;  %v19016_v24 = vld [vmem:[#allocation2 + $0x2208] sm:$0xff]   ;;  %v19018_v26 = vld [vmem:[#allocation2 + $0x2250] sm:$0xff]  }
 0x459   :  { %17581 = vmatprep.subr.bf16.mxu1 %v18978_v29  ;;  %v19021_v29 = vld [vmem:[#allocation2 + $0x2290] sm:$0xff]  }
 0x45a   :  { %14079 = vmatmul.mubr.bf16.vlgmr.msra.gmra.mrb[128].mxu0 %v3473_v28  ;;  %v19020_v28 = vld [vmem:[#allocation2 + $0x2210] sm:$0xff]  }
 0x45b   :  { %17560 = vmatpush3.bf16.msra.mxu0 %v18979_v31  ;;  %14119 = vmatmul.mubr.bf16.vlgmr.msra.gmra.mrb[128].mxu1 %v3495_v36  ;;  %v19023_v31 = vld [vmem:[#allocation2 + $0x22d8] sm:$0xff]   ;;  %v19027_v36 = vld [vmem:[#allocation2 + $0x22e0] sm:$0xff]  }
 0x45c   :  { %17561 = vmatprep.subr.bf16.mxu0 %v18981_v37  ;;  %17582 = vmatpush3.bf16.msra.mxu1 %v18980_v33  ;;  %v19025_v33 = vld [vmem:[#allocation2 + $0x2298] sm:$0xff]   ;;  %v19028_v37 = vld [vmem:[#allocation2 + $0x2220] sm:$0xff]  }
 0x45d   :  { %14158 = vmatprep.mubr.bf16.mxu0 %v3494_v40  ;;  %17583 = vmatprep.subr.bf16.mxu1 %v18982_v39  ;;  %v19030_v39 = vld [vmem:[#allocation2 + $0x2268] sm:$0xff]  }
 0x45e   :  { %14198 = vmatprep.mubr.bf16.mxu1 %v3498_v43  ;;  %v19031_v40 = vld [vmem:[#allocation2 + $0x22e8] sm:$0xff]  }
 0x45f   :  { %17562 = vmatpush3.bf16.msra.mxu0 %v18983_v41 }
 0x460   :  { %17563 = vmatprep.subr.bf16.mxu0 %v18985_v44  ;;  %17584 = vmatpush3.bf16.msra.mxu1 %v18984_v42  ;;  %v19032_v42 = vld [vmem:[#allocation2 + $0x2228] sm:$0xff]   ;;  %v19034_v44 = vld [vmem:[#allocation2 + $0x2270] sm:$0xff]  }
 0x461   :  { %17585 = vmatprep.subr.bf16.mxu1 %v18986_v45 }
 0x463   :  { %17564 = vmatpush3.bf16.msra.mxu0 %v18987_v46 }
 0x464   :  { %17565 = vmatprep.subr.bf16.mxu0 %v18989_v48  ;;  %17586 = vmatpush3.bf16.msra.mxu1 %v18988_v47 }
 0x465   :  { %17587 = vmatprep.subr.bf16.mxu1 %v18990_v49  ;;  %v19033_v49 = vld [vmem:[#allocation2 + $0x22a8] sm:$0xff]  }
 0x467   :  { %17566 = vmatpush3.bf16.msra.mxu0 %v18991_v50 }
 0x468   :  { %17567 = vmatprep.subr.bf16.mxu0 %v18993_v52  ;;  %17588 = vmatpush3.bf16.msra.mxu1 %v18992_v51  ;;  %v19035_v51 = vld [vmem:[#allocation2 + $0x22f0] sm:$0xff]  }
 0x469   :  { %17589 = vmatprep.subr.bf16.mxu1 %v18994_v53 }
 0x46b   :  { %17568 = vmatpush3.bf16.msra.mxu0 %v18995_v54 }
 0x46c   :  { %17569 = vmatprep.subr.bf16.mxu0 %v18997_v56  ;;  %17590 = vmatpush3.bf16.msra.mxu1 %v18996_v55  ;;  %v19036_v55 = vld [vmem:[#allocation2 + $0x2230] sm:$0xff]  }
 0x46d   :  { %v17267_v58 = vpop.f32.mrb[104].mxu0  ;;  %17591 = vmatprep.subr.bf16.mxu1 %v18998_v57  ;;  %v19038_v57 = vld [vmem:[#allocation2 + $0x2278] sm:$0xff]  }
 0x46e   :  { %v17268_v60 = vpop.f32.mrb[105].mxu0  ;;  %v17289_v62 = vpop.f32.mrb[104].mxu1 }
 0x46f   :  { %v17269_v63 = vadd.f32 %v17268_v60, %v17267_v58  ;;  %v17270_v0 = vpop.f32.mrb[106].mxu0  ;;  %v17290_v3 = vpop.f32.mrb[105].mxu1  ;;  %17570 = vmatpush3.bf16.msra.mxu0 %v18999_v59  ;;  %v19037_v59 = vld [vmem:[#allocation2 + $0x22b0] sm:$0xff]   ;;  %v19039_v60 = vld [vmem:[#allocation2 + $0x22f8] sm:$0xff]  }
 0x470   :  { %v17271_v4 = vpop.f32.mrb[107].mxu0  ;;  %v17291_v6 = vadd.f32 %v17290_v3, %v17289_v62  ;;  %v17292_v7 = vpop.f32.mrb[106].mxu1  ;;  %17571 = vmatprep.subr.bf16.mxu0 %v19001_v1  ;;  %17592 = vmatpush3.bf16.msra.mxu1 %v19000_v61  ;;  %v19040_v61 = vld [vmem:[#allocation2 + $0x2238] sm:$0xff]   ;;  %v76_v62 = vld [vmem:[%s19803_s0 + $0x88] sm:$0xff]  ;;  %v19042_v0 = vld [vmem:[#allocation2 + $0x2340] sm:$0xff]  }
 0x471   :  { %v13601_v5 = vadd.f32 %v17269_v63, %v19690_v18  ;;  %v17293_v9 = vpop.f32.mrb[107].mxu1  ;;  %17593 = vmatprep.subr.bf16.mxu1 %v19002_v2  ;;  %v19011_v18 = vld [vmem:[#allocation2 + $0x22c0] sm:$0xff]   ;;  %v3506_v63 = vrot.slane %v76_v62, %v19389_v35  ;;  %v3499_v1 = vcombine.high %v76_v62, %v76_v62  ;;  %v19041_v2 = vld [vmem:[#allocation2 + $0x22b8] sm:$0xff]   ;;  %v19079_v62 = vld [vmem:[#allocation2 + $0x2448] sm:$0xff]  }
 0x472   :  { %v19044_v7 = vld [vmem:[#allocation2 + $0x2300] sm:$0xff]  }
 0x473   :  { %v19705_v11 = vadd.f32 %v17291_v6, %v13601_v5  ;;  %17572 = vmatpush3.bf16.msra.mxu0 %v19003_v8  ;;  %v3514_v3 = vcombine.high %v3506_v63, %v3506_v63  ;;  %v3522_v4 = vrot.slane %v3506_v63, %v19389_v35  ;;  %v19043_v5 = vld [vmem:[#allocation2 + $0x23c0] sm:$0xff]   ;;  %v19718_v6 = vrot.slane %v3499_v1, %v19389_v35  ;;  %v19080_v63 = vld [vmem:[#allocation2 + $0x24c8] sm:$0xff]  }
 0x474   :  { %17573 = vmatprep.subr.bf16.mxu0 %v19005_v12  ;;  %17594 = vmatpush3.bf16.msra.mxu1 %v19004_v10  ;;  %v19045_v9 = vld [vmem:[#allocation2 + $0x2380] sm:$0xff]   ;;  %v19046_v12 = vld [vmem:[#allocation2 + $0x2348] sm:$0xff]  }
 0x475   :  { %17595 = vmatprep.subr.bf16.mxu1 %v19006_v13  ;;  %v3536_v8 = vrot.slane %v3514_v3, %v19389_v35  ;;  %v3515_v10 = vcombine.high %v19718_v6, %v19718_v6  ;;  %v19082_v1 = vld [vmem:[#allocation2 + $0x2488] sm:$0xff]   ;;  %v19084_v3 = vld [vmem:[#allocation2 + $0x24d0] sm:$0xff]  }
 0x477   :  { %17574 = vmatpush3.bf16.msra.mxu0 %v19007_v14  ;;  %v3546_v13 = vcombine.high %v3536_v8, %v3536_v8  ;;  %v19047_v14 = vld [vmem:[#allocation2 + $0x23c8] sm:$0xff]  }
 0x478   :  { %17603 = vmatprep.subr.bf16.mxu0 %v19010_v17  ;;  %17596 = vmatpush3.bf16.msra.mxu1 %v19008_v15  ;;  %v3543_v15 = vrot.slane %v3515_v10, %v19389_v35  ;;  %v19049_v17 = vld [vmem:[#allocation2 + $0x2388] sm:$0xff]   ;;  %v19091_v10 = vld [vmem:[#allocation2 + $0x2460] sm:$0xff]  }
 0x479   :  { %17625 = vmatprep.subr.bf16.mxu1 %v19011_v18 }
 0x47a   :  { %14159 = vmatmul.mubr.bf16.vlgmr.msra.gmra.mrb[132].mxu0 %v3480_v16  ;;  %v19048_v16 = vld [vmem:[#allocation2 + $0x2308] sm:$0xff]   ;;  %v3547_v18 = vcombine.high %v3543_v15, %v3543_v15 }
 0x47b   :  { %17604 = vmatpush3.bf16.msra.mxu0 %v19012_v19  ;;  %14199 = vmatmul.mubr.bf16.vlgmr.msra.gmra.mrb[132].mxu1 %v3496_v21  ;;  %v19050_v19 = vld [vmem:[#allocation2 + $0x2350] sm:$0xff]  }
 0x47c   :  { %17605 = vmatprep.subr.bf16.mxu0 %v19014_v22  ;;  %17626 = vmatpush3.bf16.msra.mxu1 %v19013_v20  ;;  %v19051_v20 = vld [vmem:[#allocation2 + $0x23d0] sm:$0xff]  }
 0x47d   :  { %17627 = vmatprep.subr.bf16.mxu1 %v19015_v23  ;;  %14238 = vmatprep.mubr.bf16.mxu0 %v3536_v8  ;;  %v19052_v21 = vld [vmem:[#allocation2 + $0x2310] sm:$0xff]   ;;  %v19054_v23 = vld [vmem:[#allocation2 + $0x2358] sm:$0xff]  }
 0x47e   :  { %14278 = vmatprep.mubr.bf16.mxu1 %v3546_v13  ;;  %v19053_v22 = vld [vmem:[#allocation2 + $0x2390] sm:$0xff]   ;;  %v19089_v8 = vld [vmem:[#allocation2 + $0x2418] sm:$0xff]   ;;  %v19094_v13 = vld [vmem:[#allocation2 + $0x24a0] sm:$0xff]  }
 0x47f   :  { %17606 = vmatpush3.bf16.msra.mxu0 %v19016_v24  ;;  %v19055_v24 = vld [vmem:[#allocation2 + $0x23d8] sm:$0xff]  }
 0x480   :  { %17607 = vmatprep.subr.bf16.mxu0 %v19018_v26  ;;  %17628 = vmatpush3.bf16.msra.mxu1 %v19017_v25  ;;  %v19056_v25 = vld [vmem:[#allocation2 + $0x2318] sm:$0xff]  }
 0x481   :  { %17629 = vmatprep.subr.bf16.mxu1 %v19019_v27  ;;  %v19057_v26 = vld [vmem:[#allocation2 + $0x2398] sm:$0xff]   ;;  %v19058_v27 = vld [vmem:[#allocation2 + $0x2360] sm:$0xff]  }
 0x483   :  { %17608 = vmatpush3.bf16.msra.mxu0 %v19020_v28  ;;  %v19059_v28 = vld [vmem:[#allocation2 + $0x23e0] sm:$0xff]  }
 0x484   :  { %17609 = vmatprep.subr.bf16.mxu0 %v19022_v30  ;;  %17630 = vmatpush3.bf16.msra.mxu1 %v19021_v29  ;;  %v19060_v29 = vld [vmem:[#allocation2 + $0x2320] sm:$0xff]  }
 0x485   :  { %17631 = vmatprep.subr.bf16.mxu1 %v19023_v31  ;;  %v19061_v30 = vld [vmem:[#allocation2 + $0x23a0] sm:$0xff]   ;;  %v19062_v31 = vld [vmem:[#allocation2 + $0x2368] sm:$0xff]  }
 0x487   :  { %17610 = vmatpush3.bf16.msra.mxu0 %v19024_v32  ;;  %v19063_v32 = vld [vmem:[#allocation2 + $0x23e8] sm:$0xff]  }
 0x488   :  { %17611 = vmatprep.subr.bf16.mxu0 %v19026_v34  ;;  %17632 = vmatpush3.bf16.msra.mxu1 %v19025_v33  ;;  %v19064_v34 = vld [vmem:[#allocation2 + $0x2328] sm:$0xff]  }
 0x489   :  { %17633 = vmatprep.subr.bf16.mxu1 %v19027_v36 }
 0x48b   :  { %17612 = vmatpush3.bf16.msra.mxu0 %v19028_v37  ;;  %v19065_v37 = vld [vmem:[#allocation2 + $0x23a8] sm:$0xff]  }
 0x48c   :  { %17613 = vmatprep.subr.bf16.mxu0 %v19030_v39  ;;  %17634 = vmatpush3.bf16.msra.mxu1 %v19029_v38 }
 0x48d   :  { %v17311_v41 = vpop.f32.mrb[108].mxu0  ;;  %17635 = vmatprep.subr.bf16.mxu1 %v19031_v40 }
 0x48e   :  { %v17312_v43 = vpop.f32.mrb[109].mxu0  ;;  %v17333_v45 = vpop.f32.mrb[108].mxu1 }
 0x48f   :  { %v17313_v46 = vadd.f32 %v17312_v43, %v17311_v41  ;;  %v17314_v47 = vpop.f32.mrb[110].mxu0  ;;  %v17334_v48 = vpop.f32.mrb[109].mxu1  ;;  %17614 = vmatpush3.bf16.msra.mxu0 %v19032_v42  ;;  %v19066_v41 = vld [vmem:[#allocation2 + $0x2370] sm:$0xff]  }
 0x490   :  { %v17315_v50 = vpop.f32.mrb[111].mxu0  ;;  %v17335_v53 = vadd.f32 %v17334_v48, %v17333_v45  ;;  %v17336_v54 = vpop.f32.mrb[110].mxu1  ;;  %17615 = vmatprep.subr.bf16.mxu0 %v19034_v44  ;;  %17636 = vmatpush3.bf16.msra.mxu1 %v19033_v49  ;;  %v19067_v42 = vld [vmem:[#allocation2 + $0x23f0] sm:$0xff]  }
 0x491   :  { %v13681_v52 = vadd.f32 %v17313_v46, %v19705_v11  ;;  %v17337_v56 = vpop.f32.mrb[111].mxu1  ;;  %17637 = vmatprep.subr.bf16.mxu1 %v19035_v51  ;;  %v3544_v11 = vcombine.high %v3522_v4, %v3522_v4  ;;  %v19068_v48 = vld [vmem:[#allocation2 + $0x2330] sm:$0xff]   ;;  %v19072_v54 = vld [vmem:[#allocation2 + $0x2338] sm:$0xff]  }
 0x492   :  { %v19069_v50 = vld [vmem:[#allocation2 + $0x23b0] sm:$0xff]   ;;  %v3529_v56 = vrot.slane %v19718_v6, %v19389_v35  ;;  %v19087_v6 = vld [vmem:[#allocation2 + $0x2458] sm:$0xff]  }
 0x493   :  { %v19710_v58 = vadd.f32 %v17335_v53, %v13681_v52  ;;  %17616 = vmatpush3.bf16.msra.mxu0 %v19036_v55  ;;  %v19070_v52 = vld [vmem:[#allocation2 + $0x2378] sm:$0xff]  }
 0x494   :  { %17617 = vmatprep.subr.bf16.mxu0 %v19038_v57  ;;  %17638 = vmatpush3.bf16.msra.mxu1 %v19037_v59  ;;  %v19071_v53 = vld [vmem:[#allocation2 + $0x23f8] sm:$0xff]   ;;  %v19075_v57 = vld [vmem:[#allocation2 + $0x2440] sm:$0xff]  }
 0x495   :  { %17639 = vmatprep.subr.bf16.mxu1 %v19039_v60  ;;  %v19073_v55 = vld [vmem:[#allocation2 + $0x23b8] sm:$0xff]   ;;  %v19077_v59 = vld [vmem:[#allocation2 + $0x2400] sm:$0xff]  }
 0x496   :  { %v19078_v60 = vld [vmem:[#allocation2 + $0x2480] sm:$0xff]  }
 0x497   :  { %17618 = vmatpush3.bf16.msra.mxu0 %v19040_v61  ;;  %v3545_v61 = vcombine.high %v3529_v56, %v3529_v56 }
 0x498   :  { %17647 = vmatprep.subr.bf16.mxu0 %v19042_v0  ;;  %17640 = vmatpush3.bf16.msra.mxu1 %v19041_v2  ;;  %v19081_v0 = vld [vmem:[#allocation2 + $0x2408] sm:$0xff]   ;;  %v19083_v2 = vld [vmem:[#allocation2 + $0x2450] sm:$0xff]  }
 0x499   :  { %17669 = vmatprep.subr.bf16.mxu1 %v19043_v5  ;;  %v19086_v5 = vld [vmem:[#allocation2 + $0x2490] sm:$0xff]  }
 0x49a   :  { %14239 = vmatmul.mubr.bf16.vlgmr.msra.gmra.mrb[136].mxu0 %v3522_v4  ;;  %v19085_v4 = vld [vmem:[#allocation2 + $0x2410] sm:$0xff]  }
 0x49b   :  { %17648 = vmatpush3.bf16.msra.mxu0 %v19044_v7  ;;  %14279 = vmatmul.mubr.bf16.vlgmr.msra.gmra.mrb[136].mxu1 %v3544_v11  ;;  %v19088_v7 = vld [vmem:[#allocation2 + $0x24d8] sm:$0xff]   ;;  %v19092_v11 = vld [vmem:[#allocation2 + $0x24e0] sm:$0xff]  }
 0x49c   :  { %17649 = vmatprep.subr.bf16.mxu0 %v19046_v12  ;;  %17670 = vmatpush3.bf16.msra.mxu1 %v19045_v9  ;;  %v19090_v9 = vld [vmem:[#allocation2 + $0x2498] sm:$0xff]   ;;  %v19093_v12 = vld [vmem:[#allocation2 + $0x2420] sm:$0xff]  }
 0x49d   :  { %14318 = vmatprep.mubr.bf16.mxu0 %v3543_v15  ;;  %17671 = vmatprep.subr.bf16.mxu1 %v19047_v14  ;;  %v19095_v14 = vld [vmem:[#allocation2 + $0x2468] sm:$0xff]  }
 0x49e   :  { %14358 = vmatprep.mubr.bf16.mxu1 %v3547_v18  ;;  %v19096_v15 = vld [vmem:[#allocation2 + $0x24e8] sm:$0xff]  }
 0x49f   :  { %17650 = vmatpush3.bf16.msra.mxu0 %v19048_v16 }
 0x4a0   :  { %17651 = vmatprep.subr.bf16.mxu0 %v19050_v19  ;;  %17672 = vmatpush3.bf16.msra.mxu1 %v19049_v17  ;;  %v19097_v17 = vld [vmem:[#allocation2 + $0x2428] sm:$0xff]   ;;  %v19099_v19 = vld [vmem:[#allocation2 + $0x2470] sm:$0xff]  }
 0x4a1   :  { %17673 = vmatprep.subr.bf16.mxu1 %v19051_v20 }
 0x4a3   :  { %17652 = vmatpush3.bf16.msra.mxu0 %v19052_v21 }
 0x4a4   :  { %17653 = vmatprep.subr.bf16.mxu0 %v19054_v23  ;;  %17674 = vmatpush3.bf16.msra.mxu1 %v19053_v22 }
 0x4a5   :  { %17675 = vmatprep.subr.bf16.mxu1 %v19055_v24  ;;  %v19098_v24 = vld [vmem:[#allocation2 + $0x24a8] sm:$0xff]  }
 0x4a7   :  { %17654 = vmatpush3.bf16.msra.mxu0 %v19056_v25 }
 0x4a8   :  { %17655 = vmatprep.subr.bf16.mxu0 %v19058_v27  ;;  %17676 = vmatpush3.bf16.msra.mxu1 %v19057_v26  ;;  %v19100_v26 = vld [vmem:[#allocation2 + $0x24f0] sm:$0xff]  }
 0x4a9   :  { %17677 = vmatprep.subr.bf16.mxu1 %v19059_v28 }
 0x4ab   :  { %17656 = vmatpush3.bf16.msra.mxu0 %v19060_v29 }
 0x4ac   :  { %17657 = vmatprep.subr.bf16.mxu0 %v19062_v31  ;;  %17678 = vmatpush3.bf16.msra.mxu1 %v19061_v30  ;;  %v19101_v30 = vld [vmem:[#allocation2 + $0x2430] sm:$0xff]  }
 0x4ad   :  { %v17355_v33 = vpop.f32.mrb[112].mxu0  ;;  %17679 = vmatprep.subr.bf16.mxu1 %v19063_v32  ;;  %v19103_v32 = vld [vmem:[#allocation2 + $0x2478] sm:$0xff]  }
 0x4ae   :  { %v17356_v36 = vpop.f32.mrb[113].mxu0  ;;  %v17377_v38 = vpop.f32.mrb[112].mxu1 }
 0x4af   :  { %v17357_v39 = vadd.f32 %v17356_v36, %v17355_v33  ;;  %v17358_v40 = vpop.f32.mrb[114].mxu0  ;;  %v17378_v43 = vpop.f32.mrb[113].mxu1  ;;  %17658 = vmatpush3.bf16.msra.mxu0 %v19064_v34  ;;  %v19102_v34 = vld [vmem:[#allocation2 + $0x24b0] sm:$0xff]   ;;  %v19104_v36 = vld [vmem:[#allocation2 + $0x24f8] sm:$0xff]  }
 0x4b0   :  { %v17359_v44 = vpop.f32.mrb[115].mxu0  ;;  %v17379_v46 = vadd.f32 %v17378_v43, %v17377_v38  ;;  %v17380_v47 = vpop.f32.mrb[114].mxu1  ;;  %17659 = vmatprep.subr.bf16.mxu0 %v19066_v41  ;;  %17680 = vmatpush3.bf16.msra.mxu1 %v19065_v37  ;;  %v19105_v37 = vld [vmem:[#allocation2 + $0x2438] sm:$0xff]   ;;  %v77_v38 = vld [vmem:[%s19803_s0 + $0x90] sm:$0xff]  ;;  %v19107_v40 = vld [vmem:[#allocation2 + $0x2540] sm:$0xff]  }
 0x4b1   :  { %v13761_v45 = vadd.f32 %v17357_v39, %v19710_v58  ;;  %v17381_v49 = vpop.f32.mrb[115].mxu1  ;;  %17681 = vmatprep.subr.bf16.mxu1 %v19067_v42  ;;  %v19076_v58 = vld [vmem:[#allocation2 + $0x24c0] sm:$0xff]   ;;  %v3555_v39 = vrot.slane %v77_v38, %v19389_v35  ;;  %v3548_v41 = vcombine.high %v77_v38, %v77_v38  ;;  %v19106_v42 = vld [vmem:[#allocation2 + $0x24b8] sm:$0xff]   ;;  %v19144_v38 = vld [vmem:[#allocation2 + $0x2648] sm:$0xff]  }
 0x4b2   :  { %v19109_v47 = vld [vmem:[#allocation2 + $0x2500] sm:$0xff]  }
 0x4b3   :  { %v19725_v51 = vadd.f32 %v17379_v46, %v13761_v45  ;;  %17660 = vmatpush3.bf16.msra.mxu0 %v19068_v48  ;;  %v3563_v43 = vcombine.high %v3555_v39, %v3555_v39  ;;  %v3571_v44 = vrot.slane %v3555_v39, %v19389_v35  ;;  %v19108_v45 = vld [vmem:[#allocation2 + $0x25c0] sm:$0xff]   ;;  %v19738_v46 = vrot.slane %v3548_v41, %v19389_v35  ;;  %v19145_v39 = vld [vmem:[#allocation2 + $0x26c8] sm:$0xff]  }
 0x4b4   :  { %17661 = vmatprep.subr.bf16.mxu0 %v19070_v52  ;;  %17682 = vmatpush3.bf16.msra.mxu1 %v19069_v50  ;;  %v19110_v49 = vld [vmem:[#allocation2 + $0x2580] sm:$0xff]   ;;  %v19111_v52 = vld [vmem:[#allocation2 + $0x2548] sm:$0xff]  }
 0x4b5   :  { %17683 = vmatprep.subr.bf16.mxu1 %v19071_v53  ;;  %v3585_v48 = vrot.slane %v3563_v43, %v19389_v35  ;;  %v3564_v50 = vcombine.high %v19738_v46, %v19738_v46  ;;  %v19147_v41 = vld [vmem:[#allocation2 + $0x2688] sm:$0xff]   ;;  %v19149_v43 = vld [vmem:[#allocation2 + $0x26d0] sm:$0xff]  }
 0x4b7   :  { %17662 = vmatpush3.bf16.msra.mxu0 %v19072_v54  ;;  %v3595_v53 = vcombine.high %v3585_v48, %v3585_v48  ;;  %v19112_v54 = vld [vmem:[#allocation2 + $0x25c8] sm:$0xff]  }
 0x4b8   :  { %17691 = vmatprep.subr.bf16.mxu0 %v19075_v57  ;;  %17684 = vmatpush3.bf16.msra.mxu1 %v19073_v55  ;;  %v3592_v55 = vrot.slane %v3564_v50, %v19389_v35  ;;  %v19114_v57 = vld [vmem:[#allocation2 + $0x2588] sm:$0xff]   ;;  %v19156_v50 = vld [vmem:[#allocation2 + $0x2660] sm:$0xff]  }
 0x4b9   :  { %17713 = vmatprep.subr.bf16.mxu1 %v19076_v58 }
 0x4ba   :  { %14319 = vmatmul.mubr.bf16.vlgmr.msra.gmra.mrb[140].mxu0 %v3529_v56  ;;  %v19113_v56 = vld [vmem:[#allocation2 + $0x2508] sm:$0xff]   ;;  %v3596_v58 = vcombine.high %v3592_v55, %v3592_v55 }
 0x4bb   :  { %17692 = vmatpush3.bf16.msra.mxu0 %v19077_v59  ;;  %14359 = vmatmul.mubr.bf16.vlgmr.msra.gmra.mrb[140].mxu1 %v3545_v61  ;;  %v19115_v59 = vld [vmem:[#allocation2 + $0x2550] sm:$0xff]  }
 0x4bc   :  { %17693 = vmatprep.subr.bf16.mxu0 %v19079_v62  ;;  %17714 = vmatpush3.bf16.msra.mxu1 %v19078_v60  ;;  %v19116_v60 = vld [vmem:[#allocation2 + $0x25d0] sm:$0xff]  }
 0x4bd   :  { %17715 = vmatprep.subr.bf16.mxu1 %v19080_v63  ;;  %14398 = vmatprep.mubr.bf16.mxu0 %v3585_v48  ;;  %v19117_v61 = vld [vmem:[#allocation2 + $0x2510] sm:$0xff]   ;;  %v19119_v63 = vld [vmem:[#allocation2 + $0x2558] sm:$0xff]  }
 0x4be   :  { %14438 = vmatprep.mubr.bf16.mxu1 %v3595_v53  ;;  %v19118_v62 = vld [vmem:[#allocation2 + $0x2590] sm:$0xff]   ;;  %v19154_v48 = vld [vmem:[#allocation2 + $0x2618] sm:$0xff]   ;;  %v19159_v53 = vld [vmem:[#allocation2 + $0x26a0] sm:$0xff]  }
 0x4bf   :  { %17694 = vmatpush3.bf16.msra.mxu0 %v19081_v0  ;;  %v19120_v0 = vld [vmem:[#allocation2 + $0x25d8] sm:$0xff]  }
 0x4c0   :  { %17695 = vmatprep.subr.bf16.mxu0 %v19083_v2  ;;  %17716 = vmatpush3.bf16.msra.mxu1 %v19082_v1  ;;  %v19121_v1 = vld [vmem:[#allocation2 + $0x2518] sm:$0xff]  }
 0x4c1   :  { %17717 = vmatprep.subr.bf16.mxu1 %v19084_v3  ;;  %v19122_v2 = vld [vmem:[#allocation2 + $0x2598] sm:$0xff]   ;;  %v19123_v3 = vld [vmem:[#allocation2 + $0x2560] sm:$0xff]  }
 0x4c3   :  { %17696 = vmatpush3.bf16.msra.mxu0 %v19085_v4  ;;  %v19124_v4 = vld [vmem:[#allocation2 + $0x25e0] sm:$0xff]  }
 0x4c4   :  { %17697 = vmatprep.subr.bf16.mxu0 %v19087_v6  ;;  %17718 = vmatpush3.bf16.msra.mxu1 %v19086_v5  ;;  %v19125_v5 = vld [vmem:[#allocation2 + $0x2520] sm:$0xff]  }
 0x4c5   :  { %17719 = vmatprep.subr.bf16.mxu1 %v19088_v7  ;;  %v19126_v6 = vld [vmem:[#allocation2 + $0x25a0] sm:$0xff]   ;;  %v19127_v7 = vld [vmem:[#allocation2 + $0x2568] sm:$0xff]  }
 0x4c7   :  { %17698 = vmatpush3.bf16.msra.mxu0 %v19089_v8  ;;  %v19128_v8 = vld [vmem:[#allocation2 + $0x25e8] sm:$0xff]  }
 0x4c8   :  { %17699 = vmatprep.subr.bf16.mxu0 %v19091_v10  ;;  %17720 = vmatpush3.bf16.msra.mxu1 %v19090_v9  ;;  %v19129_v10 = vld [vmem:[#allocation2 + $0x2528] sm:$0xff]  }
 0x4c9   :  { %17721 = vmatprep.subr.bf16.mxu1 %v19092_v11 }
 0x4cb   :  { %17700 = vmatpush3.bf16.msra.mxu0 %v19093_v12  ;;  %v19130_v12 = vld [vmem:[#allocation2 + $0x25a8] sm:$0xff]  }
 0x4cc   :  { %17701 = vmatprep.subr.bf16.mxu0 %v19095_v14  ;;  %17722 = vmatpush3.bf16.msra.mxu1 %v19094_v13 }
 0x4cd   :  { %v17399_v16 = vpop.f32.mrb[116].mxu0  ;;  %17723 = vmatprep.subr.bf16.mxu1 %v19096_v15 }
 0x4ce   :  { %v17400_v18 = vpop.f32.mrb[117].mxu0  ;;  %v17421_v20 = vpop.f32.mrb[116].mxu1 }
 0x4cf   :  { %v17401_v21 = vadd.f32 %v17400_v18, %v17399_v16  ;;  %v17402_v22 = vpop.f32.mrb[118].mxu0  ;;  %v17422_v23 = vpop.f32.mrb[117].mxu1  ;;  %17702 = vmatpush3.bf16.msra.mxu0 %v19097_v17  ;;  %v19131_v16 = vld [vmem:[#allocation2 + $0x2570] sm:$0xff]  }
 0x4d0   :  { %v17403_v25 = vpop.f32.mrb[119].mxu0  ;;  %v17423_v28 = vadd.f32 %v17422_v23, %v17421_v20  ;;  %v17424_v29 = vpop.f32.mrb[118].mxu1  ;;  %17703 = vmatprep.subr.bf16.mxu0 %v19099_v19  ;;  %17724 = vmatpush3.bf16.msra.mxu1 %v19098_v24  ;;  %v19132_v17 = vld [vmem:[#allocation2 + $0x25f0] sm:$0xff]  }
 0x4d1   :  { %v13841_v27 = vadd.f32 %v17401_v21, %v19725_v51  ;;  %v17425_v31 = vpop.f32.mrb[119].mxu1  ;;  %17725 = vmatprep.subr.bf16.mxu1 %v19100_v26  ;;  %v3593_v51 = vcombine.high %v3571_v44, %v3571_v44  ;;  %v19133_v23 = vld [vmem:[#allocation2 + $0x2530] sm:$0xff]   ;;  %v19137_v29 = vld [vmem:[#allocation2 + $0x2538] sm:$0xff]  }
 0x4d2   :  { %v19134_v25 = vld [vmem:[#allocation2 + $0x25b0] sm:$0xff]   ;;  %v3578_v31 = vrot.slane %v19738_v46, %v19389_v35  ;;  %v19152_v46 = vld [vmem:[#allocation2 + $0x2658] sm:$0xff]  }
 0x4d3   :  { %v19730_v33 = vadd.f32 %v17423_v28, %v13841_v27  ;;  %17704 = vmatpush3.bf16.msra.mxu0 %v19101_v30  ;;  %v19135_v27 = vld [vmem:[#allocation2 + $0x2578] sm:$0xff]  }
 0x4d4   :  { %17705 = vmatprep.subr.bf16.mxu0 %v19103_v32  ;;  %17726 = vmatpush3.bf16.msra.mxu1 %v19102_v34  ;;  %v19136_v28 = vld [vmem:[#allocation2 + $0x25f8] sm:$0xff]   ;;  %v19140_v32 = vld [vmem:[#allocation2 + $0x2640] sm:$0xff]  }
 0x4d5   :  { %17727 = vmatprep.subr.bf16.mxu1 %v19104_v36  ;;  %v19138_v30 = vld [vmem:[#allocation2 + $0x25b8] sm:$0xff]   ;;  %v19142_v34 = vld [vmem:[#allocation2 + $0x2600] sm:$0xff]  }
 0x4d6   :  { %v19143_v36 = vld [vmem:[#allocation2 + $0x2680] sm:$0xff]  }
 0x4d7   :  { %17706 = vmatpush3.bf16.msra.mxu0 %v19105_v37  ;;  %v3594_v37 = vcombine.high %v3578_v31, %v3578_v31 }
 0x4d8   :  { %17735 = vmatprep.subr.bf16.mxu0 %v19107_v40  ;;  %17728 = vmatpush3.bf16.msra.mxu1 %v19106_v42  ;;  %v19146_v40 = vld [vmem:[#allocation2 + $0x2608] sm:$0xff]   ;;  %v19148_v42 = vld [vmem:[#allocation2 + $0x2650] sm:$0xff]  }
 0x4d9   :  { %17757 = vmatprep.subr.bf16.mxu1 %v19108_v45  ;;  %v19151_v45 = vld [vmem:[#allocation2 + $0x2690] sm:$0xff]  }
 0x4da   :  { %14399 = vmatmul.mubr.bf16.vlgmr.msra.gmra.mrb[144].mxu0 %v3571_v44  ;;  %v19150_v44 = vld [vmem:[#allocation2 + $0x2610] sm:$0xff]  }
 0x4db   :  { %17736 = vmatpush3.bf16.msra.mxu0 %v19109_v47  ;;  %14439 = vmatmul.mubr.bf16.vlgmr.msra.gmra.mrb[144].mxu1 %v3593_v51  ;;  %v19153_v47 = vld [vmem:[#allocation2 + $0x26d8] sm:$0xff]   ;;  %v19157_v51 = vld [vmem:[#allocation2 + $0x26e0] sm:$0xff]  }
 0x4dc   :  { %17737 = vmatprep.subr.bf16.mxu0 %v19111_v52  ;;  %17758 = vmatpush3.bf16.msra.mxu1 %v19110_v49  ;;  %v19155_v49 = vld [vmem:[#allocation2 + $0x2698] sm:$0xff]   ;;  %v19158_v52 = vld [vmem:[#allocation2 + $0x2620] sm:$0xff]  }
 0x4dd   :  { %14478 = vmatprep.mubr.bf16.mxu0 %v3592_v55  ;;  %17759 = vmatprep.subr.bf16.mxu1 %v19112_v54  ;;  %v19160_v54 = vld [vmem:[#allocation2 + $0x2668] sm:$0xff]  }
 0x4de   :  { %14518 = vmatprep.mubr.bf16.mxu1 %v3596_v58  ;;  %v19161_v55 = vld [vmem:[#allocation2 + $0x26e8] sm:$0xff]  }
 0x4df   :  { %17738 = vmatpush3.bf16.msra.mxu0 %v19113_v56 }
 0x4e0   :  { %17739 = vmatprep.subr.bf16.mxu0 %v19115_v59  ;;  %17760 = vmatpush3.bf16.msra.mxu1 %v19114_v57  ;;  %v19162_v57 = vld [vmem:[#allocation2 + $0x2628] sm:$0xff]   ;;  %v19164_v59 = vld [vmem:[#allocation2 + $0x2670] sm:$0xff]  }
 0x4e1   :  { %17761 = vmatprep.subr.bf16.mxu1 %v19116_v60 }
 0x4e3   :  { %17740 = vmatpush3.bf16.msra.mxu0 %v19117_v61 }
 0x4e4   :  { %17741 = vmatprep.subr.bf16.mxu0 %v19119_v63  ;;  %17762 = vmatpush3.bf16.msra.mxu1 %v19118_v62 }
 0x4e5   :  { %17763 = vmatprep.subr.bf16.mxu1 %v19120_v0  ;;  %v19163_v0 = vld [vmem:[#allocation2 + $0x26a8] sm:$0xff]  }
 0x4e7   :  { %17742 = vmatpush3.bf16.msra.mxu0 %v19121_v1 }
 0x4e8   :  { %17743 = vmatprep.subr.bf16.mxu0 %v19123_v3  ;;  %17764 = vmatpush3.bf16.msra.mxu1 %v19122_v2  ;;  %v19165_v2 = vld [vmem:[#allocation2 + $0x26f0] sm:$0xff]  }
 0x4e9   :  { %17765 = vmatprep.subr.bf16.mxu1 %v19124_v4 }
 0x4eb   :  { %17744 = vmatpush3.bf16.msra.mxu0 %v19125_v5 }
 0x4ec   :  { %17745 = vmatprep.subr.bf16.mxu0 %v19127_v7  ;;  %17766 = vmatpush3.bf16.msra.mxu1 %v19126_v6  ;;  %v19166_v6 = vld [vmem:[#allocation2 + $0x2630] sm:$0xff]  }
 0x4ed   :  { %v17443_v9 = vpop.f32.mrb[120].mxu0  ;;  %17767 = vmatprep.subr.bf16.mxu1 %v19128_v8  ;;  %v19168_v8 = vld [vmem:[#allocation2 + $0x2678] sm:$0xff]  }
 0x4ee   :  { %v17444_v11 = vpop.f32.mrb[121].mxu0  ;;  %v17465_v13 = vpop.f32.mrb[120].mxu1 }
 0x4ef   :  { %v17445_v14 = vadd.f32 %v17444_v11, %v17443_v9  ;;  %v17446_v15 = vpop.f32.mrb[122].mxu0  ;;  %v17466_v18 = vpop.f32.mrb[121].mxu1  ;;  %17746 = vmatpush3.bf16.msra.mxu0 %v19129_v10  ;;  %v19167_v10 = vld [vmem:[#allocation2 + $0x26b0] sm:$0xff]   ;;  %v19169_v11 = vld [vmem:[#allocation2 + $0x26f8] sm:$0xff]  }
 0x4f0   :  { %v17447_v19 = vpop.f32.mrb[123].mxu0  ;;  %v17467_v21 = vadd.f32 %v17466_v18, %v17465_v13  ;;  %v17468_v22 = vpop.f32.mrb[122].mxu1  ;;  %17747 = vmatprep.subr.bf16.mxu0 %v19131_v16  ;;  %17768 = vmatpush3.bf16.msra.mxu1 %v19130_v12  ;;  %v19170_v12 = vld [vmem:[#allocation2 + $0x2638] sm:$0xff]   ;;  %v19172_v15 = vld [vmem:[#allocation2 + $0x2740] sm:$0xff]  }
 0x4f1   :  { %v13921_v20 = vadd.f32 %v17445_v14, %v19730_v33  ;;  %v17469_v24 = vpop.f32.mrb[123].mxu1  ;;  %17769 = vmatprep.subr.bf16.mxu1 %v19132_v17  ;;  %v19141_v33 = vld [vmem:[#allocation2 + $0x26c0] sm:$0xff]   ;;  %v78_v13 = vld [vmem:[%s19803_s0 + $0x98] sm:$0xff] }
 0x4f2   :  { %v3604_v14 = vrot.slane %v78_v13, %v19389_v35  ;;  %v3597_v16 = vcombine.high %v78_v13, %v78_v13  ;;  %v19171_v17 = vld [vmem:[#allocation2 + $0x26b8] sm:$0xff]   ;;  %v19174_v22 = vld [vmem:[#allocation2 + $0x2700] sm:$0xff]  }
 0x4f3   :  { %v19745_v26 = vadd.f32 %v17467_v21, %v13921_v20  ;;  %17748 = vmatpush3.bf16.msra.mxu0 %v19133_v23  ;;  %v19173_v20 = vld [vmem:[#allocation2 + $0x27c0] sm:$0xff]  }
 0x4f4   :  { %17749 = vmatprep.subr.bf16.mxu0 %v19135_v27  ;;  %17770 = vmatpush3.bf16.msra.mxu1 %v19134_v25  ;;  %v3612_v18 = vcombine.high %v3604_v14, %v3604_v14  ;;  %v3620_v19 = vrot.slane %v3604_v14, %v19389_v35  ;;  %v19758_v21 = vrot.slane %v3597_v16, %v19389_v35  ;;  %v19175_v24 = vld [vmem:[#allocation2 + $0x2780] sm:$0xff]   ;;  %v19176_v27 = vld [vmem:[#allocation2 + $0x2748] sm:$0xff]  }
 0x4f5   :  { %17771 = vmatprep.subr.bf16.mxu1 %v19136_v28 }
 0x4f6   :  { %v3634_v23 = vrot.slane %v3612_v18, %v19389_v35  ;;  %v3613_v25 = vcombine.high %v19758_v21, %v19758_v21 }
 0x4f7   :  { %17750 = vmatpush3.bf16.msra.mxu0 %v19137_v29  ;;  %v19177_v29 = vld [vmem:[#allocation2 + $0x27c8] sm:$0xff]  }
 0x4f8   :  { %17779 = vmatprep.subr.bf16.mxu0 %v19140_v32  ;;  %17772 = vmatpush3.bf16.msra.mxu1 %v19138_v30  ;;  %v3644_v28 = vcombine.high %v3634_v23, %v3634_v23  ;;  %v3641_v30 = vrot.slane %v3613_v25, %v19389_v35  ;;  %v19179_v32 = vld [vmem:[#allocation2 + $0x2788] sm:$0xff]  }
 0x4f9   :  { %17801 = vmatprep.subr.bf16.mxu1 %v19141_v33 }
 0x4fa   :  { %14479 = vmatmul.mubr.bf16.vlgmr.msra.gmra.mrb[148].mxu0 %v3578_v31  ;;  %v19178_v31 = vld [vmem:[#allocation2 + $0x2708] sm:$0xff]   ;;  %v3645_v33 = vcombine.high %v3641_v30, %v3641_v30 }
 0x4fb   :  { %17780 = vmatpush3.bf16.msra.mxu0 %v19142_v34  ;;  %14519 = vmatmul.mubr.bf16.vlgmr.msra.gmra.mrb[148].mxu1 %v3594_v37  ;;  %v19180_v34 = vld [vmem:[#allocation2 + $0x2750] sm:$0xff]  }
 0x4fc   :  { %17781 = vmatprep.subr.bf16.mxu0 %v19144_v38  ;;  %17802 = vmatpush3.bf16.msra.mxu1 %v19143_v36  ;;  %v19181_v36 = vld [vmem:[#allocation2 + $0x27d0] sm:$0xff]  }
 0x4fd   :  { %17803 = vmatprep.subr.bf16.mxu1 %v19145_v39  ;;  %14558 = vmatprep.mubr.bf16.mxu0 %v3634_v23  ;;  %v19182_v37 = vld [vmem:[#allocation2 + $0x2710] sm:$0xff]   ;;  %v19184_v39 = vld [vmem:[#allocation2 + $0x2758] sm:$0xff]  }
 0x4fe   :  { %14598 = vmatprep.mubr.bf16.mxu1 %v3644_v28  ;;  %v19183_v38 = vld [vmem:[#allocation2 + $0x2790] sm:$0xff]  }
 0x4ff   :  { %17782 = vmatpush3.bf16.msra.mxu0 %v19146_v40  ;;  %v19185_v40 = vld [vmem:[#allocation2 + $0x27d8] sm:$0xff]  }
 0x500   :  { %17783 = vmatprep.subr.bf16.mxu0 %v19148_v42  ;;  %17804 = vmatpush3.bf16.msra.mxu1 %v19147_v41  ;;  %v19186_v41 = vld [vmem:[#allocation2 + $0x2718] sm:$0xff]  }
 0x501   :  { %17805 = vmatprep.subr.bf16.mxu1 %v19149_v43  ;;  %v19187_v42 = vld [vmem:[#allocation2 + $0x2798] sm:$0xff]   ;;  %v19188_v43 = vld [vmem:[#allocation2 + $0x2760] sm:$0xff]  }
 0x503   :  { %17784 = vmatpush3.bf16.msra.mxu0 %v19150_v44  ;;  %v19189_v44 = vld [vmem:[#allocation2 + $0x27e0] sm:$0xff]  }
 0x504   :  { %17785 = vmatprep.subr.bf16.mxu0 %v19152_v46  ;;  %17806 = vmatpush3.bf16.msra.mxu1 %v19151_v45  ;;  %v19190_v45 = vld [vmem:[#allocation2 + $0x2720] sm:$0xff]  }
 0x505   :  { %17807 = vmatprep.subr.bf16.mxu1 %v19153_v47  ;;  %v19191_v46 = vld [vmem:[#allocation2 + $0x27a0] sm:$0xff]   ;;  %v19192_v47 = vld [vmem:[#allocation2 + $0x2768] sm:$0xff]  }
 0x507   :  { %17786 = vmatpush3.bf16.msra.mxu0 %v19154_v48  ;;  %v19193_v48 = vld [vmem:[#allocation2 + $0x27e8] sm:$0xff]  }
 0x508   :  { %17787 = vmatprep.subr.bf16.mxu0 %v19156_v50  ;;  %17808 = vmatpush3.bf16.msra.mxu1 %v19155_v49  ;;  %v19194_v50 = vld [vmem:[#allocation2 + $0x2728] sm:$0xff]  }
 0x509   :  { %17809 = vmatprep.subr.bf16.mxu1 %v19157_v51 }
 0x50b   :  { %17788 = vmatpush3.bf16.msra.mxu0 %v19158_v52  ;;  %v19195_v52 = vld [vmem:[#allocation2 + $0x27a8] sm:$0xff]  }
 0x50c   :  { %17789 = vmatprep.subr.bf16.mxu0 %v19160_v54  ;;  %17810 = vmatpush3.bf16.msra.mxu1 %v19159_v53 }
 0x50d   :  { %v17487_v56 = vpop.f32.mrb[124].mxu0  ;;  %17811 = vmatprep.subr.bf16.mxu1 %v19161_v55 }
 0x50e   :  { %v17488_v58 = vpop.f32.mrb[125].mxu0  ;;  %v17509_v60 = vpop.f32.mrb[124].mxu1 }
 0x50f   :  { %v17489_v61 = vadd.f32 %v17488_v58, %v17487_v56  ;;  %v17490_v62 = vpop.f32.mrb[126].mxu0  ;;  %v17510_v63 = vpop.f32.mrb[125].mxu1  ;;  %17790 = vmatpush3.bf16.msra.mxu0 %v19162_v57  ;;  %v19196_v56 = vld [vmem:[#allocation2 + $0x2770] sm:$0xff]  }
 0x510   :  { %v17491_v1 = vpop.f32.mrb[127].mxu0  ;;  %v17511_v4 = vadd.f32 %v17510_v63, %v17509_v60  ;;  %v17512_v5 = vpop.f32.mrb[126].mxu1  ;;  %17791 = vmatprep.subr.bf16.mxu0 %v19164_v59  ;;  %17812 = vmatpush3.bf16.msra.mxu1 %v19163_v0  ;;  %v19197_v57 = vld [vmem:[#allocation2 + $0x27f0] sm:$0xff]  }
 0x511   :  { %v14001_v3 = vadd.f32 %v17489_v61, %v19745_v26  ;;  %v17513_v7 = vpop.f32.mrb[127].mxu1  ;;  %17813 = vmatprep.subr.bf16.mxu1 %v19165_v2  ;;  %v3642_v26 = vcombine.high %v3620_v19, %v3620_v19  ;;  %v19198_v63 = vld [vmem:[#allocation2 + $0x2730] sm:$0xff]   ;;  %v19202_v5 = vld [vmem:[#allocation2 + $0x2738] sm:$0xff]  }
 0x512   :  { %v19199_v1 = vld [vmem:[#allocation2 + $0x27b0] sm:$0xff]   ;;  %v3627_v7 = vrot.slane %v19758_v21, %v19389_v35 }
 0x513   :  { %v19750_v9 = vadd.f32 %v17511_v4, %v14001_v3  ;;  %17792 = vmatpush3.bf16.msra.mxu0 %v19166_v6  ;;  %v19200_v3 = vld [vmem:[#allocation2 + $0x2778] sm:$0xff]  }
 0x514   :  { %17793 = vmatprep.subr.bf16.mxu0 %v19168_v8  ;;  %17814 = vmatpush3.bf16.msra.mxu1 %v19167_v10  ;;  %v19201_v4 = vld [vmem:[#allocation2 + $0x27f8] sm:$0xff]   ;;  %v3643_v8 = vcombine.high %v3627_v7, %v3627_v7 }
 0x515   :  { %17815 = vmatprep.subr.bf16.mxu1 %v19169_v11  ;;  %v19203_v6 = vld [vmem:[#allocation2 + $0x27b8] sm:$0xff]  }
 0x517   :  { %17794 = vmatpush3.bf16.msra.mxu0 %v19170_v12 }
 0x518   :  { %17823 = vmatprep.subr.bf16.mxu0 %v19172_v15  ;;  %17816 = vmatpush3.bf16.msra.mxu1 %v19171_v17 }
 0x519   :  { %17845 = vmatprep.subr.bf16.mxu1 %v19173_v20 }
 0x51a   :  { %14559 = vmatmul.mubr.bf16.vlgmr.msra.gmra.mrb[152].mxu0 %v3620_v19 }
 0x51b   :  { %17824 = vmatpush3.bf16.msra.mxu0 %v19174_v22  ;;  %14599 = vmatmul.mubr.bf16.vlgmr.msra.gmra.mrb[152].mxu1 %v3642_v26 }
 0x51c   :  { %17825 = vmatprep.subr.bf16.mxu0 %v19176_v27  ;;  %17846 = vmatpush3.bf16.msra.mxu1 %v19175_v24 }
 0x51d   :  { %14638 = vmatprep.mubr.bf16.mxu0 %v3641_v30  ;;  %17847 = vmatprep.subr.bf16.mxu1 %v19177_v29 }
 0x51e   :  { %14678 = vmatprep.mubr.bf16.mxu1 %v3645_v33  ;;  %v19313_v33 = vmov 0.0  }
 0x51f   :  { %17826 = vmatpush3.bf16.msra.mxu0 %v19178_v31 }
 0x520   :  { %17827 = vmatprep.subr.bf16.mxu0 %v19180_v34  ;;  %17848 = vmatpush3.bf16.msra.mxu1 %v19179_v32  ;;  %v19205_v32 = vld [vmem:[%s19806_s3] sm:$0xff]   ;;  %v19206_v34 = vld [vmem:[%s19806_s3 + $0x8] sm:$0xff]  }
 0x521   :  { %17849 = vmatprep.subr.bf16.mxu1 %v19181_v36  ;;  %v19207_v36 = vld [vmem:[%s19806_s3 + $0x10] sm:$0xff]  }
 0x523   :  { %17828 = vmatpush3.bf16.msra.mxu0 %v19182_v37  ;;  %v19208_v37 = vld [vmem:[%s19806_s3 + $0x18] sm:$0xff]  }
 0x524   :  { %17829 = vmatprep.subr.bf16.mxu0 %v19184_v39  ;;  %17850 = vmatpush3.bf16.msra.mxu1 %v19183_v38  ;;  %v19209_v38 = vld [vmem:[%s19806_s3 + $0x20] sm:$0xff]  }
 0x525   :  { %17851 = vmatprep.subr.bf16.mxu1 %v19185_v40 }
 0x527   :  { %17830 = vmatpush3.bf16.msra.mxu0 %v19186_v41 }
 0x528   :  { %17831 = vmatprep.subr.bf16.mxu0 %v19188_v43  ;;  %17852 = vmatpush3.bf16.msra.mxu1 %v19187_v42 }
 0x529   :  { %17853 = vmatprep.subr.bf16.mxu1 %v19189_v44 }
 0x52b   :  { %17832 = vmatpush3.bf16.msra.mxu0 %v19190_v45 }
 0x52c   :  { %17833 = vmatprep.subr.bf16.mxu0 %v19192_v47  ;;  %17854 = vmatpush3.bf16.msra.mxu1 %v19191_v46  ;;  %v19210_v46 = vld [vmem:[%s19806_s3 + $0x28] sm:$0xff]  }
 0x52d   :  { %v17531_v49 = vpop.f32.mrb[128].mxu0  ;;  %17855 = vmatprep.subr.bf16.mxu1 %v19193_v48 }
 0x52e   :  { %v17532_v51 = vpop.f32.mrb[129].mxu0  ;;  %v17553_v53 = vpop.f32.mrb[128].mxu1 }
 0x52f   :  { %v17533_v54 = vadd.f32 %v17532_v51, %v17531_v49  ;;  %v17534_v55 = vpop.f32.mrb[130].mxu0  ;;  %v17554_v58 = vpop.f32.mrb[129].mxu1  ;;  %17834 = vmatpush3.bf16.msra.mxu0 %v19194_v50 }
 0x530   :  { %v17535_v59 = vpop.f32.mrb[131].mxu0  ;;  %v17555_v61 = vadd.f32 %v17554_v58, %v17553_v53  ;;  %v17556_v62 = vpop.f32.mrb[130].mxu1  ;;  %17835 = vmatprep.subr.bf16.mxu0 %v19196_v56  ;;  %17856 = vmatpush3.bf16.msra.mxu1 %v19195_v52  ;;  %v19211_v52 = vld [vmem:[%s19806_s3 + $0x30] sm:$0xff]   ;;  %v19212_v53 = vld [vmem:[%s19806_s3 + $0x38] sm:$0xff]   ;;  %s19315_s3 = smov [#allocation8]  }
 0x531   :  { %v14081_v60 = vadd.f32 %v17533_v54, %v19750_v9  ;;  %v17557_v0 = vpop.f32.mrb[131].mxu1  ;;  %17857 = vmatprep.subr.bf16.mxu1 %v19197_v57  ;;  %s14807_s30 = sshll.u32 %s19315_s3, 4  ;;  %s14808_s30 = int_to_ptr.vmem [resolvable:$true] %s14807_s30 }
 0x532   :  { %s19279_s4 = scalar_lea.vmem %s14808_s30, 32  ;;  %p19284_p11 = scmp.lt.s32.totalorder %s14808_s30, %s14808_s30 }
 0x533   :  { %v14121_v2 = vadd.f32 %v17555_v61, %v14081_v60  ;;  %17836 = vmatpush3.bf16.msra.mxu0 %v19198_v63  ;;  %p19280_p10 = scmp.ne.s32.totalorder %s14808_s30, %s19279_s4  ;;  %p19285_p12 = scmp.lt.s32.totalorder %s19279_s4, %s19279_s4 }
 0x534   :  { %17837 = vmatprep.subr.bf16.mxu0 %v19200_v3  ;;  %17858 = vmatpush3.bf16.msra.mxu1 %v19199_v1 }
 0x535   :  { %17859 = vmatprep.subr.bf16.mxu1 %v19201_v4  ;;  %p19286_p13 = por %p19285_p12, %p19284_p11 }
 0x537   :  { %17838 = vmatpush3.bf16.msra.mxu0 %v19202_v5  ;;  %p19287_p0 = pnand %p19286_p13, %p19280_p10 }
 0x538   :  { %17860 = vmatpush3.bf16.msra.mxu1 %v19203_v6  ;;  %17876 = vmatprep.subr.bf16.mxu0 %v19313_v33 }
 0x53a   :  { %14639 = vmatmul.mubr.bf16.vlgmr.msra.gmra.mrb[156].mxu0 %v3627_v7 }
 0x53b   :  { %14679 = vmatmul.mubr.bf16.vlgmr.msra.gmra.mrb[156].mxu1 %v3643_v8  ;;  %17877 = vmatpush3.bf16.msra.mxu0 %v19205_v32 }
 0x53c   :  { %17878 = vmatprep.subr.bf16.mxu0 %v19313_v33  ;;  %17892 = vmatprep.mubr.msk.bf16.mxu0 %vm19314_vm0, %v19313_v33 }
 0x53f   :  { %17879 = vmatpush3.bf16.msra.mxu0 %v19206_v34 }
 0x540   :  { %17880 = vmatprep.subr.bf16.mxu0 %v19313_v33 }
 0x543   :  { %17881 = vmatpush3.bf16.msra.mxu0 %v19207_v36 }
 0x544   :  { %17882 = vmatprep.subr.bf16.mxu0 %v19313_v33 }
 0x547   :  { %17883 = vmatpush3.bf16.msra.mxu0 %v19208_v37 }
 0x548   :  { %17884 = vmatprep.subr.bf16.mxu0 %v19313_v33 }
 0x54b   :  { %17885 = vmatpush3.bf16.msra.mxu0 %v19209_v38 }
 0x54c   :  { %17886 = vmatprep.subr.bf16.mxu0 %v19313_v33 }
 0x54d   :  { %v17575_v9 = vpop.f32.mrb[132].mxu0 }
 0x54e   :  { %v17576_v10 = vpop.f32.mrb[133].mxu0  ;;  %v17597_v11 = vpop.f32.mrb[132].mxu1 }
 0x54f   :  { %v17577_v12 = vadd.f32 %v17576_v10, %v17575_v9  ;;  %v17578_v13 = vpop.f32.mrb[134].mxu0  ;;  %v17598_v14 = vpop.f32.mrb[133].mxu1  ;;  %17887 = vmatpush3.bf16.msra.mxu0 %v19210_v46 }
 0x550   :  { %v17579_v15 = vpop.f32.mrb[135].mxu0  ;;  %v17599_v17 = vadd.f32 %v17598_v14, %v17597_v11  ;;  %v17600_v18 = vpop.f32.mrb[134].mxu1  ;;  %17888 = vmatprep.subr.bf16.mxu0 %v19313_v33 }
 0x551   :  { %v14161_v16 = vadd.f32 %v17577_v12, %v14121_v2  ;;  %v17601_v19 = vpop.f32.mrb[135].mxu1 }
 0x553   :  { %v14201_v20 = vadd.f32 %v17599_v17, %v14161_v16  ;;  %17889 = vmatpush3.bf16.msra.mxu0 %v19211_v52 }
 0x554   :  { %17890 = vmatprep.subr.bf16.mxu0 %v19313_v33 }
 0x557   :  { %17891 = vmatpush3.bf16.msra.mxu0 %v19212_v53 }
 0x56d   :  { %v17619_v35 = vpop.f32.mrb[136].mxu0 }
 0x56e   :  { %v17620_v21 = vpop.f32.mrb[137].mxu0  ;;  %v17641_v22 = vpop.f32.mrb[136].mxu1 }
 0x56f   :  { %v17621_v23 = vadd.f32 %v17620_v21, %v17619_v35  ;;  %v17622_v24 = vpop.f32.mrb[138].mxu0  ;;  %v17642_v25 = vpop.f32.mrb[137].mxu1 }
 0x570   :  { %v17623_v26 = vpop.f32.mrb[139].mxu0  ;;  %v17643_v28 = vadd.f32 %v17642_v25, %v17641_v22  ;;  %v17644_v29 = vpop.f32.mrb[138].mxu1 }
 0x571   :  { %v14241_v27 = vadd.f32 %v17621_v23, %v14201_v20  ;;  %v17645_v30 = vpop.f32.mrb[139].mxu1 }
 0x573   :  { %v14281_v31 = vadd.f32 %v17643_v28, %v14241_v27 }
 0x58d   :  { %v17663_v39 = vpop.f32.mrb[140].mxu0 }
 0x58e   :  { %v17664_v40 = vpop.f32.mrb[141].mxu0  ;;  %v17685_v41 = vpop.f32.mrb[140].mxu1 }
 0x58f   :  { %v17665_v42 = vadd.f32 %v17664_v40, %v17663_v39  ;;  %v17666_v43 = vpop.f32.mrb[142].mxu0  ;;  %v17686_v44 = vpop.f32.mrb[141].mxu1  ;;  %v16098_v40 = vld [vmem:[#allocation7] ss:$0 sm:$0xff] }
 0x590   :  { %v17667_v45 = vpop.f32.mrb[143].mxu0  ;;  %v17687_v48 = vadd.f32 %v17686_v44, %v17685_v41  ;;  %v17688_v49 = vpop.f32.mrb[142].mxu1 }
 0x591   :  { %v14321_v47 = vadd.f32 %v17665_v42, %v14281_v31  ;;  %v17689_v50 = vpop.f32.mrb[143].mxu1 }
 0x593   :  { %v14361_v51 = vadd.f32 %v17687_v48, %v14321_v47 }
 0x5ad   :  { %v17707_v54 = vpop.f32.mrb[144].mxu0 }
 0x5ae   :  { %v17708_v55 = vpop.f32.mrb[145].mxu0  ;;  %v17729_v56 = vpop.f32.mrb[144].mxu1 }
 0x5af   :  { %v17709_v57 = vadd.f32 %v17708_v55, %v17707_v54  ;;  %v17710_v58 = vpop.f32.mrb[146].mxu0  ;;  %v17730_v59 = vpop.f32.mrb[145].mxu1 }
 0x5b0   :  { %v17711_v60 = vpop.f32.mrb[147].mxu0  ;;  %v17731_v62 = vadd.f32 %v17730_v59, %v17729_v56  ;;  %v17732_v63 = vpop.f32.mrb[146].mxu1 }
 0x5b1   :  { %v14401_v61 = vadd.f32 %v17709_v57, %v14361_v51  ;;  %v17733_v0 = vpop.f32.mrb[147].mxu1 }
 0x5b3   :  { %v14441_v1 = vadd.f32 %v17731_v62, %v14401_v61 }
 0x5cd   :  { %v17751_v2 = vpop.f32.mrb[148].mxu0 }
 0x5ce   :  { %v17752_v3 = vpop.f32.mrb[149].mxu0  ;;  %v17773_v4 = vpop.f32.mrb[148].mxu1 }
 0x5cf   :  { %v17753_v5 = vadd.f32 %v17752_v3, %v17751_v2  ;;  %v17754_v6 = vpop.f32.mrb[150].mxu0  ;;  %v17774_v7 = vpop.f32.mrb[149].mxu1 }
 0x5d0   :  { %v17755_v8 = vpop.f32.mrb[151].mxu0  ;;  %v17775_v10 = vadd.f32 %v17774_v7, %v17773_v4  ;;  %v17776_v11 = vpop.f32.mrb[150].mxu1 }
 0x5d1   :  { %v14481_v9 = vadd.f32 %v17753_v5, %v14441_v1  ;;  %v17777_v12 = vpop.f32.mrb[151].mxu1 }
 0x5d3   :  { %v14521_v13 = vadd.f32 %v17775_v10, %v14481_v9 }
 0x5ed   :  { %v17795_v14 = vpop.f32.mrb[152].mxu0 }
 0x5ee   :  { %v17796_v15 = vpop.f32.mrb[153].mxu0  ;;  %v17817_v16 = vpop.f32.mrb[152].mxu1 }
 0x5ef   :  { %v17797_v17 = vadd.f32 %v17796_v15, %v17795_v14  ;;  %v17798_v18 = vpop.f32.mrb[154].mxu0  ;;  %v17818_v19 = vpop.f32.mrb[153].mxu1 }
 0x5f0   :  { %v17799_v20 = vpop.f32.mrb[155].mxu0  ;;  %v17819_v21 = vadd.f32 %v17818_v19, %v17817_v16  ;;  %v17820_v22 = vpop.f32.mrb[154].mxu1 }
 0x5f1   :  { %v14561_v35 = vadd.f32 %v17797_v17, %v14521_v13  ;;  %v17821_v23 = vpop.f32.mrb[155].mxu1 }
 0x5f3   :  { %v14601_v24 = vadd.f32 %v17819_v21, %v14561_v35 }
 0x60d   :  { %v17839_v25 = vpop.f32.mrb[156].mxu0 }
 0x60e   :  { %v17840_v26 = vpop.f32.mrb[157].mxu0  ;;  %v17861_v27 = vpop.f32.mrb[156].mxu1 }
 0x60f   :  { %v17841_v28 = vadd.f32 %v17840_v26, %v17839_v25  ;;  %v17842_v29 = vpop.f32.mrb[158].mxu0  ;;  %v17862_v30 = vpop.f32.mrb[157].mxu1 }
 0x610   :  { %v17843_v31 = vpop.f32.mrb[159].mxu0  ;;  %v17863_v33 = vadd.f32 %v17862_v30, %v17861_v27  ;;  %v17864_v34 = vpop.f32.mrb[158].mxu1 }
 0x611   :  { %v14641_v32 = vadd.f32 %v17841_v28, %v14601_v24  ;;  %v17865_v36 = vpop.f32.mrb[159].mxu1 }
 0x613   :  { %v14681_v37 = vadd.f32 %v17863_v33, %v14641_v32 }
 0x615   :  { %v14686_v38 = vmax.f32 %v14681_v37, 0.0 }
 0x617   :  { %v14687_v39 = vpack.c.bf16 %v14686_v38, %v14686_v38 }
 0x619   :  { %17893 = vmatmul.mubr.bf16.vlgmr.msra.gmra.mrb[160].mxu0 %v14687_v39 }
 0x6ec   :  { %v14793_v41 = vpop.f32.mrb[160].mxu0 }
 0x6ed   :  { %v14794_v42 = vadd.f32 %v16098_v40, %v14793_v41  ;;  %v17894_v43 = vpop.f32.mrb[161].mxu0 }
 0x6ee   :  { %v14796_v44 = vpop.f32.mrb[162].mxu0 }
 0x6ef   :  { %v17895_v45 = vpop.f32.mrb[163].mxu0  ;;  %14800 = vst.msk [vmem:[#allocation8] sm:$0x3] %vm14799_vm1, %v14794_v42 }
 0x6f0   :  { %19290 = shalt.err (!%p19287_p0)
}
 0x6f1   :  { %s19291_s8 = scalar_lea.hbm %s19808_s5, 32 }
 0x6f2   :  { %p19292_p1 = scmp.ne.s32.totalorder %s19808_s5, %s19291_s8  ;;  %p19295_p2 = scmp.lt.u32.totalorder %s19291_s8, %s19808_s5 }
 0x6f4   :  { %p19297_p3 = pnand %p19295_p2, %p19292_p1 }
 0x6f6   :  { %19300 = shalt.err (!%p19297_p3)
}
 0x6f7   :  { %14810 = dma.vmem_to_hbm [thread:$0]  %s14808_s30, 32, %s19808_s5, [#allocation4]  }
 0x6f8   :  { %19305 = dma.done.wait [#allocation4], 32  }
 0x6f9   :  { %19306 = vsyncadd [#allocation4], 4294967264 }
 0x6fa   :  { %14814 = vsyncpa [#allocation3], 1 }
 0x6fb   :  { %14815 = vsyncpa [#allocation6], 1 }
 0x6fc   :  { %14816 = vsyncpa [#allocation4], 1 }

</bundles_post_ra>
